<compile_context>
chip_gen: v7x
topology: tpu7x:2x2x1
jax: 0.10.0
libtpu: 0.0.40
codegen_flags: <defaults>
</compile_context>

<pallas_src>
import functools

import jax
import jax.numpy as jnp
from jax import lax
from jax.experimental import pallas as pl
from jax.experimental.pallas import tpu as pltpu


def _round_up(x, m):
    return (x + m - 1) // m * m


def _choose_tile_rows(H, W, N):
    """Image rows per tile: ~2k flat rows, at least 2 tiles when possible."""
    target = max(1, 2048 // max(1, W * N))
    if H >= 2:
        target = min(target, H // 2)
    target = max(target, 1)
    for th in range(target, 0, -1):
        if H % th == 0:
            return th
    return 1


def _vmem_bytes_hint(Rs, Rt, Cp):
    blocks = (Rs * Cp * 2          # conv source tile (bf16)
              + 9 * Cp * Cp * 2    # weights (bf16)
              + 2 * Rt * Cp * 4    # f32 activation blocks (in/out)
              + 4 * Rt * 128 * 2   # lane-padded (Rt,1) masks + halo slivers
              + 8 * Cp * 4)        # stats / scale / shift
    scratch = Rs * Cp * 2 + Rt * 9 * Cp * 2
    total = 2 * blocks + scratch   # double-buffered pipeline
    return int(min(max(2 * total, 8 << 20), 64 << 20))


def _im2col_matmul(src_ref, base, col_ref, w_ref, mneg_ref, mpos_ref,
                   *, W, N, Rt, Cp):
    """Stage 9 shifted bf16 taps and do one fused K=9*Cp MXU matmul (f32 acc).

    Rows are ordered (h, w, n); tap (dy, dx) of output row r lives at
    src row base + r + (dy*W + dx)*N.  Only dx = +/-1 taps need the W-wrap
    mask; the (Rt, 1) mask is re-read per tap (implicit broadcast, no hoisted
    full-tile broadcast per the performance review).
    """
    t = 0
    for ky in range(3):
        for kx in range(3):
            dy, dx = ky - 1, kx - 1
            shift = (dy * W + dx) * N
            s = src_ref[pl.ds(base + shift, Rt), :]
            if dx == -1:
                s = s * mneg_ref[...]
            elif dx == 1:
                s = s * mpos_ref[...]
            col_ref[:, t * Cp:(t + 1) * Cp] = s
            t += 1
    return jnp.dot(col_ref[...], w_ref[...], preferred_element_type=jnp.float32)


def _conv_bn_stats_kernel(xsrc_ref, w_ref, mneg_ref, mpos_ref,
                          y_ref, st_ref, col_ref, *, W, N, Rt, Cp, Pm):
    """Pass 1: conv1 on one row tile + per-tile BN1 partial sums.

    xsrc_ref : (Rt + 2*Pm, Cp) bf16  pre-padded input rows (tile + halo)
    w_ref    : (9*Cp, Cp)      bf16  im2col weights
    m*_ref   : (Rt, 1)         bf16  dx = -1 / +1 wrap masks
    y_ref    : (Rt, Cp)        f32   raw conv output (pre-BN)
    st_ref   : (2, Cp)         f32   rows: sum, sum-of-squares
    col_ref  : (Rt, 9*Cp)      bf16  im2col scratch
    """
    acc = _im2col_matmul(xsrc_ref, Pm, col_ref, w_ref, mneg_ref, mpos_ref,
                         W=W, N=N, Rt=Rt, Cp=Cp)
    st_ref[0:1, :] = jnp.sum(acc, axis=0, keepdims=True)
    st_ref[1:2, :] = jnp.sum(acc * acc, axis=0, keepdims=True)
    y_ref[...] = acc


def _bnrelu_conv_stats_kernel(y1_ref, topz_ref, botz_ref, sc_ref, sh_ref,
                              w_ref, mneg_ref, mpos_ref,
                              y2_ref, st_ref, z_ref, col_ref,
                              *, W, N, Rt, Cp, Pm):
    """Pass 2: apply BN1 + ReLU, conv2 on the tile, BN2 partial sums.

    y1_ref       : (Rt, Cp)  f32   raw conv1 output (this tile)
    topz/botz_ref: (W*N, Cp) bf16  neighbour-row halos, already BN+ReLU'd
                                   (zeros at the image border)
    sc/sh_ref    : (1, Cp)   f32   BN1 fused scale / shift
    y2_ref       : (Rt, Cp)  f32   raw conv2 output (pre-BN)
    z_ref        : (Rt+2*Pm, Cp) bf16 shift scratch for conv2 taps
    """
    Hh = W * N
    guard = Pm - Hh
    zeros = jnp.zeros((guard, Cp), jnp.bfloat16)
    # Guard bands: only ever read by masked dx taps -> keep them zero
    # (avoids reading stale data).  Rewritten every tile so the "parallel"
    # grid axis stays safe on multi-core chips.
    z_ref[pl.ds(0, guard), :] = zeros
    z_ref[pl.ds(Pm + Rt + Hh, guard), :] = zeros
    # Halo image rows (one above / one below the tile).
    z_ref[pl.ds(Pm - Hh, Hh), :] = topz_ref[...]
    z_ref[pl.ds(Pm + Rt, Hh), :] = botz_ref[...]
    # Core rows: fused BN1 scale/shift + ReLU, cast to bf16 for the MXU.
    z = jnp.maximum(y1_ref[...] * sc_ref[...] + sh_ref[...], 0.0)
    z_ref[pl.ds(Pm, Rt), :] = z.astype(jnp.bfloat16)

    acc = _im2col_matmul(z_ref, Pm, col_ref, w_ref, mneg_ref, mpos_ref,
                         W=W, N=N, Rt=Rt, Cp=Cp)
    st_ref[0:1, :] = jnp.sum(acc, axis=0, keepdims=True)
    st_ref[1:2, :] = jnp.sum(acc * acc, axis=0, keepdims=True)
    y2_ref[...] = acc


def _bn_residual_kernel(y2_ref, xres_ref, sc_ref, sh_ref, o_ref):
    """Pass 3: apply BN2 scale/shift and add the residual (all f32)."""
    o_ref[...] = y2_ref[...] * sc_ref[...] + sh_ref[...] + xres_ref[...]


def resblock_forward(x_nchw, w_oihw, bias, gamma, beta):
    """ResBlock forward. x_nchw: (N, C, H, W); returns (N, C, H, W)."""
    del bias  # cancels exactly inside training-mode BatchNorm (see header).
    N, C, H, W = x_nchw.shape
    assert w_oihw.shape == (C, C, 3, 3), "ResBlock requires C_in == C_out"
    eps = 1e-5

    Cp = _round_up(C, 128)            # lane-dense channel dim (NOTE: with
    #                                   tiny C most MXU work is padding; a
    #                                   VPU small-C path would be better.)
    Th = _choose_tile_rows(H, W, N)   # image rows per tile
    T = H // Th
    Rt = Th * W * N                   # flat rows per tile ((h, w, n) order)
    R = H * W * N
    Hh = W * N                        # one image row of flat rows
    Pm = _round_up((W + 1) * N, 8)    # >= largest tap shift, sublane aligned
    Rs = Rt + 2 * Pm                  # conv source rows per tile

    f32, bf16 = jnp.float32, jnp.bfloat16

    # ---- layout plumbing (wrapper-side, channel-last, lane-dense) ---------
    x2d = jnp.transpose(x_nchw, (2, 3, 0, 1)).reshape(R, C).astype(f32)
    xres = jnp.zeros((R, Cp), f32).at[:, :C].set(x2d).reshape(T, Rt, Cp)

    # Per-tile conv1 source (bf16): tile rows plus Pm halo/zero rows each side.
    xflat = jnp.zeros((Pm + R + Pm, Cp), bf16).at[Pm:Pm + R, :C].set(
        x2d.astype(bf16))
    gidx = jnp.arange(T)[:, None] * Rt + jnp.arange(Rs)[None, :]
    x_tiles = xflat[gidx]                                   # (T, Rs, Cp)

    # Conv weight OIHW -> (ky, kx, ci, co), channel-padded, im2col-flattened.
    w_hwio = jnp.transpose(w_oihw, (2, 3, 1, 0)).astype(f32)
    w2d = (jnp.zeros((3, 3, Cp, Cp), f32).at[:, :, :C, :C].set(w_hwio)
           .reshape(9 * Cp, Cp).astype(bf16))

    # W-wrap masks for the dx = +/-1 taps, identical for every tile.
    wc = (jnp.arange(Rt, dtype=jnp.int32) // N) % W
    mneg = (wc >= 1).astype(bf16).reshape(Rt, 1)
    mpos = (wc <= W - 2).astype(bf16).reshape(Rt, 1)

    gamma_p = jnp.zeros((Cp,), f32).at[:C].set(gamma.astype(f32))
    beta_p = jnp.zeros((Cp,), f32).at[:C].set(beta.astype(f32))

    def bn_scale_shift(stats):
        # Finalize training-mode BN from per-tile partial sums ((Cp,)-sized
        # parameter math -> plain JAX glue).
        s1 = jnp.sum(stats[:, 0, :], axis=0)
        s2 = jnp.sum(stats[:, 1, :], axis=0)
        mean = s1 / R
        var = jnp.maximum(s2 / R - mean * mean, 0.0)   # clamp one-pass var
        scale = gamma_p * lax.rsqrt(var + eps)
        shift = beta_p - mean * scale
        return scale.reshape(1, Cp), shift.reshape(1, Cp)

    cparams = pltpu.CompilerParams(
        dimension_semantics=("parallel",),
        vmem_limit_bytes=_vmem_bytes_hint(Rs, Rt, Cp))
    conv_cost = pl.CostEstimate(
        flops=2 * R * 9 * Cp * Cp, transcendentals=0,
        bytes_accessed=T * Rs * Cp * 2 + 9 * Cp * Cp * 2 + R * Cp * 4)

    # ---- pass 1: conv1 + per-tile BN1 partial sums ------------------------
    kern_a = functools.partial(_conv_bn_stats_kernel,
                               W=W, N=N, Rt=Rt, Cp=Cp, Pm=Pm)
    y1, st1 = pl.pallas_call(
        kern_a,
        grid=(T,),
        in_specs=[
            pl.BlockSpec((None, Rs, Cp), lambda t: (t, 0, 0)),
            pl.BlockSpec((9 * Cp, Cp), lambda t: (0, 0)),
            pl.BlockSpec((Rt, 1), lambda t: (0, 0)),
            pl.BlockSpec((Rt, 1), lambda t: (0, 0)),
        ],
        out_specs=[
            pl.BlockSpec((None, Rt, Cp), lambda t: (t, 0, 0)),
            pl.BlockSpec((None, 2, Cp), lambda t: (t, 0, 0)),
        ],
        out_shape=[
            jax.ShapeDtypeStruct((T, Rt, Cp), f32),
            jax.ShapeDtypeStruct((T, 2, Cp), f32),
        ],
        scratch_shapes=[pltpu.VMEM((Rt, 9 * Cp), bf16)],
        compiler_params=cparams,
        cost_estimate=conv_cost,
    )(x_tiles, w2d, mneg, mpos)

    scale1, shift1 = bn_scale_shift(st1)

    # Halo slivers for conv2 (one image row per tile edge), BN+ReLU applied
    # here (tiny boundary plumbing); image-border halos are true zero padding.
    zero_row = jnp.zeros((1, Hh, Cp), f32)
    top_raw = jnp.concatenate([zero_row, y1[:-1, Rt - Hh:, :]], axis=0)
    bot_raw = jnp.concatenate([y1[1:, :Hh, :], zero_row], axis=0)
    top_z = jnp.maximum(top_raw * scale1 + shift1, 0.0).at[0].set(0.0).astype(bf16)
    bot_z = jnp.maximum(bot_raw * scale1 + shift1, 0.0).at[-1].set(0.0).astype(bf16)

    # ---- pass 2: BN1-apply + ReLU + conv2 + per-tile BN2 partial sums -----
    kern_b = functools.partial(_bnrelu_conv_stats_kernel,
                               W=W, N=N, Rt=Rt, Cp=Cp, Pm=Pm)
    y2, st2 = pl.pallas_call(
        kern_b,
        grid=(T,),
        in_specs=[
            pl.BlockSpec((None, Rt, Cp), lambda t: (t, 0, 0)),   # y1 core
            pl.BlockSpec((None, Hh, Cp), lambda t: (t, 0, 0)),   # top halo
            pl.BlockSpec((None, Hh, Cp), lambda t: (t, 0, 0)),   # bottom halo
            pl.BlockSpec((1, Cp), lambda t: (0, 0)),             # BN1 scale
            pl.BlockSpec((1, Cp), lambda t: (0, 0)),             # BN1 shift
            pl.BlockSpec((9 * Cp, Cp), lambda t: (0, 0)),
            pl.BlockSpec((Rt, 1), lambda t: (0, 0)),
            pl.BlockSpec((Rt, 1), lambda t: (0, 0)),
        ],
        out_specs=[
            pl.BlockSpec((None, Rt, Cp), lambda t: (t, 0, 0)),
            pl.BlockSpec((None, 2, Cp), lambda t: (t, 0, 0)),
        ],
        out_shape=[
            jax.ShapeDtypeStruct((T, Rt, Cp), f32),
            jax.ShapeDtypeStruct((T, 2, Cp), f32),
        ],
        scratch_shapes=[pltpu.VMEM((Rs, Cp), bf16),
                        pltpu.VMEM((Rt, 9 * Cp), bf16)],
        compiler_params=cparams,
        cost_estimate=conv_cost,
    )(y1, top_z, bot_z, scale1, shift1, w2d, mneg, mpos)

    scale2, shift2 = bn_scale_shift(st2)

    # ---- pass 3: BN2-apply + residual add ---------------------------------
    out = pl.pallas_call(
        _bn_residual_kernel,
        grid=(T,),
        in_specs=[
            pl.BlockSpec((None, Rt, Cp), lambda t: (t, 0, 0)),
            pl.BlockSpec((None, Rt, Cp), lambda t: (t, 0, 0)),
            pl.BlockSpec((1, Cp), lambda t: (0, 0)),
            pl.BlockSpec((1, Cp), lambda t: (0, 0)),
        ],
        out_specs=pl.BlockSpec((None, Rt, Cp), lambda t: (t, 0, 0)),
        out_shape=jax.ShapeDtypeStruct((T, Rt, Cp), f32),
        compiler_params=cparams,
    )(y2, xres, scale2, shift2)

    out2d = out.reshape(R, Cp)[:, :C]
    return jnp.transpose(out2d.reshape(H, W, N, C), (2, 3, 0, 1))


def _reference(x, w, b, gamma, beta):
    """Plain-JAX reference mirroring the PyTorch forward (NCHW, f32 math)."""
    eps = 1e-5
    N, C, H, W = x.shape

    def conv(z):
        zp = jnp.pad(z, ((0, 0), (0, 0), (1, 1), (1, 1)))
        out = jnp.zeros((N, C, H, W), jnp.float32)
        for ky in range(3):
            for kx in range(3):
                patch = zp[:, :, ky:ky + H, kx:kx + W]
                out = out + jnp.einsum("nihw,oi->nohw", patch, w[:, :, ky, kx],
                                       precision="highest")
        return out + b.reshape(1, -1, 1, 1)

    def bn(z):
        m = z.mean(axis=(0, 2, 3), keepdims=True)
        v = ((z - m) ** 2).mean(axis=(0, 2, 3), keepdims=True)
        return ((z - m) / jnp.sqrt(v + eps) * gamma.reshape(1, -1, 1, 1)
                + beta.reshape(1, -1, 1, 1))

    y = conv(x)
    y = bn(y)
    y = jnp.maximum(y, 0.0)
    y = conv(y)
    y = bn(y)
    return y + x


if __name__ == "__main__":
    key = jax.random.PRNGKey(0)
    kx, kw, kb, kg, kbt = jax.random.split(key, 5)

    N, C, H, W = 2, 4, 16, 16          # batch=2, in=out channels=4, 16x16
    x = jax.random.normal(kx, (N, C, H, W), jnp.float32)

    # Deterministic synthetic parameters (Conv2d-style fan-in uniform init).
    bound = 1.0 / (C * 3 * 3) ** 0.5
    w = jax.random.uniform(kw, (C, C, 3, 3), jnp.float32, -bound, bound)
    b = jax.random.uniform(kb, (C,), jnp.float32, -bound, bound)
    gamma = 1.0 + 0.1 * jax.random.normal(kg, (C,), jnp.float32)
    beta = 0.1 * jax.random.normal(kbt, (C,), jnp.float32)

    fwd = jax.jit(resblock_forward)
    out = jax.block_until_ready(fwd(x, w, b, gamma, beta))

    ref = _reference(x, w, b, gamma, beta)
    assert out.shape == ref.shape, (out.shape, ref.shape)
    max_err = float(jnp.max(jnp.abs(out - ref)))
    # Convs run at native bf16 MXU precision (per the perf review); the
    # reference is full precision, hence the relaxed tolerance.
    assert jnp.allclose(out, ref, atol=3e-2, rtol=3e-2), f"max_err={max_err}"

    print("KERNEL_OK")
</pallas_src>

<mosaic_0001>
module attributes {stable_mosaic.version = 11 : i64} {
  func.func @_conv_bn_stats_kernel(%arg0: i32, %arg1: memref<1x336x128xbf16, #tpu.memory_space<vmem>>, %arg2: memref<1152x128xbf16, #tpu.memory_space<vmem>>, %arg3: memref<256x1xbf16, #tpu.memory_space<vmem>>, %arg4: memref<256x1xbf16, #tpu.memory_space<vmem>>, %arg5: memref<1x256x128xf32, #tpu.memory_space<vmem>>, %arg6: memref<1x2x128xf32, #tpu.memory_space<vmem>>, %arg7: memref<256x1152xbf16, #tpu.memory_space<vmem>>) attributes {dimension_semantics = [#tpu.dimension_semantics<parallel>], iteration_bounds = array<i64: 2>, scalar_prefetch = 0 : i64, scratch_operands = 1 : i64, tpu.core_type = #tpu.core_type<tc>, window_params = [{transform_indices = @transform_0, window_bounds = array<i64: 1, 336, 128>}, {pipeline_mode = #tpu.pipeline_mode<synchronous>, transform_indices = @transform_1, window_bounds = array<i64: 1152, 128>}, {pipeline_mode = #tpu.pipeline_mode<synchronous>, transform_indices = @transform_2, window_bounds = array<i64: 256, 1>}, {pipeline_mode = #tpu.pipeline_mode<synchronous>, transform_indices = @transform_3, window_bounds = array<i64: 256, 1>}, {transform_indices = @transform_4, window_bounds = array<i64: 1, 256, 128>}, {transform_indices = @transform_5, window_bounds = array<i64: 1, 2, 128>}]} {
    %c0 = arith.constant 0 : index
    %c6 = arith.constant 6 : index
    %c0_0 = arith.constant 0 : index
    %0 = vector.load %arg1[%c0, %c6, %c0_0] : memref<1x336x128xbf16, #tpu.memory_space<vmem>>, vector<1x256x128xbf16>
    %1 = vector.shape_cast %0 : vector<1x256x128xbf16> to vector<256x128xbf16>
    %c0_1 = arith.constant 0 : index
    %c0_2 = arith.constant 0 : index
    %2 = vector.load %arg3[%c0_1, %c0_2] : memref<256x1xbf16, #tpu.memory_space<vmem>>, vector<256x1xbf16>
    %3 = vector.broadcast %2 : vector<256x1xbf16> to vector<256x128xbf16>
    %4 = arith.mulf %1, %3 : vector<256x128xbf16>
    %c0_3 = arith.constant 0 : index
    %c0_4 = arith.constant 0 : index
    %5 = vector.load %arg7[%c0_3, %c0_4] : memref<256x1152xbf16, #tpu.memory_space<vmem>>, vector<256x128xbf16>
    tpu.vector_store %arg7[%c0_3, %c0_4], %4 {strides = array<i32>} : memref<256x1152xbf16, #tpu.memory_space<vmem>>, vector<256x128xbf16>,
    %c0_5 = arith.constant 0 : index
    %c8 = arith.constant 8 : index
    %c0_6 = arith.constant 0 : index
    %6 = vector.load %arg1[%c0_5, %c8, %c0_6] : memref<1x336x128xbf16, #tpu.memory_space<vmem>>, vector<1x256x128xbf16>
    %7 = vector.shape_cast %6 : vector<1x256x128xbf16> to vector<256x128xbf16>
    %c0_7 = arith.constant 0 : index
    %c128 = arith.constant 128 : index
    %8 = vector.load %arg7[%c0_7, %c128] : memref<256x1152xbf16, #tpu.memory_space<vmem>>, vector<256x128xbf16>
    tpu.vector_store %arg7[%c0_7, %c128], %7 {strides = array<i32>} : memref<256x1152xbf16, #tpu.memory_space<vmem>>, vector<256x128xbf16>,
    %c0_8 = arith.constant 0 : index
    %c10 = arith.constant 10 : index
    %c0_9 = arith.constant 0 : index
    %9 = vector.load %arg1[%c0_8, %c10, %c0_9] : memref<1x336x128xbf16, #tpu.memory_space<vmem>>, vector<1x256x128xbf16>
    %10 = vector.shape_cast %9 : vector<1x256x128xbf16> to vector<256x128xbf16>
    %c0_10 = arith.constant 0 : index
    %c0_11 = arith.constant 0 : index
    %11 = vector.load %arg4[%c0_10, %c0_11] : memref<256x1xbf16, #tpu.memory_space<vmem>>, vector<256x1xbf16>
    %12 = vector.broadcast %11 : vector<256x1xbf16> to vector<256x128xbf16>
    %13 = arith.mulf %10, %12 : vector<256x128xbf16>
    %c0_12 = arith.constant 0 : index
    %c256 = arith.constant 256 : index
    %14 = vector.load %arg7[%c0_12, %c256] : memref<256x1152xbf16, #tpu.memory_space<vmem>>, vector<256x128xbf16>
    tpu.vector_store %arg7[%c0_12, %c256], %13 {strides = array<i32>} : memref<256x1152xbf16, #tpu.memory_space<vmem>>, vector<256x128xbf16>,
    %c0_13 = arith.constant 0 : index
    %c38 = arith.constant 38 : index
    %c0_14 = arith.constant 0 : index
    %15 = vector.load %arg1[%c0_13, %c38, %c0_14] : memref<1x336x128xbf16, #tpu.memory_space<vmem>>, vector<1x256x128xbf16>
    %16 = vector.shape_cast %15 : vector<1x256x128xbf16> to vector<256x128xbf16>
    %c0_15 = arith.constant 0 : index
    %c0_16 = arith.constant 0 : index
    %17 = vector.load %arg3[%c0_15, %c0_16] : memref<256x1xbf16, #tpu.memory_space<vmem>>, vector<256x1xbf16>
    %18 = vector.broadcast %17 : vector<256x1xbf16> to vector<256x128xbf16>
    %19 = arith.mulf %16, %18 : vector<256x128xbf16>
    %c0_17 = arith.constant 0 : index
    %c384 = arith.constant 384 : index
    %20 = vector.load %arg7[%c0_17, %c384] : memref<256x1152xbf16, #tpu.memory_space<vmem>>, vector<256x128xbf16>
    tpu.vector_store %arg7[%c0_17, %c384], %19 {strides = array<i32>} : memref<256x1152xbf16, #tpu.memory_space<vmem>>, vector<256x128xbf16>,
    %c0_18 = arith.constant 0 : index
    %c40 = arith.constant 40 : index
    %c0_19 = arith.constant 0 : index
    %21 = vector.load %arg1[%c0_18, %c40, %c0_19] : memref<1x336x128xbf16, #tpu.memory_space<vmem>>, vector<1x256x128xbf16>
    %22 = vector.shape_cast %21 : vector<1x256x128xbf16> to vector<256x128xbf16>
    %c0_20 = arith.constant 0 : index
    %c512 = arith.constant 512 : index
    %23 = vector.load %arg7[%c0_20, %c512] : memref<256x1152xbf16, #tpu.memory_space<vmem>>, vector<256x128xbf16>
    tpu.vector_store %arg7[%c0_20, %c512], %22 {strides = array<i32>} : memref<256x1152xbf16, #tpu.memory_space<vmem>>, vector<256x128xbf16>,
    %c0_21 = arith.constant 0 : index
    %c42 = arith.constant 42 : index
    %c0_22 = arith.constant 0 : index
    %24 = vector.load %arg1[%c0_21, %c42, %c0_22] : memref<1x336x128xbf16, #tpu.memory_space<vmem>>, vector<1x256x128xbf16>
    %25 = vector.shape_cast %24 : vector<1x256x128xbf16> to vector<256x128xbf16>
    %c0_23 = arith.constant 0 : index
    %c0_24 = arith.constant 0 : index
    %26 = vector.load %arg4[%c0_23, %c0_24] : memref<256x1xbf16, #tpu.memory_space<vmem>>, vector<256x1xbf16>
    %27 = vector.broadcast %26 : vector<256x1xbf16> to vector<256x128xbf16>
    %28 = arith.mulf %25, %27 : vector<256x128xbf16>
    %c0_25 = arith.constant 0 : index
    %c640 = arith.constant 640 : index
    %29 = vector.load %arg7[%c0_25, %c640] : memref<256x1152xbf16, #tpu.memory_space<vmem>>, vector<256x128xbf16>
    tpu.vector_store %arg7[%c0_25, %c640], %28 {strides = array<i32>} : memref<256x1152xbf16, #tpu.memory_space<vmem>>, vector<256x128xbf16>,
    %c0_26 = arith.constant 0 : index
    %c70 = arith.constant 70 : index
    %c0_27 = arith.constant 0 : index
    %30 = vector.load %arg1[%c0_26, %c70, %c0_27] : memref<1x336x128xbf16, #tpu.memory_space<vmem>>, vector<1x256x128xbf16>
    %31 = vector.shape_cast %30 : vector<1x256x128xbf16> to vector<256x128xbf16>
    %c0_28 = arith.constant 0 : index
    %c0_29 = arith.constant 0 : index
    %32 = vector.load %arg3[%c0_28, %c0_29] : memref<256x1xbf16, #tpu.memory_space<vmem>>, vector<256x1xbf16>
    %33 = vector.broadcast %32 : vector<256x1xbf16> to vector<256x128xbf16>
    %34 = arith.mulf %31, %33 : vector<256x128xbf16>
    %c0_30 = arith.constant 0 : index
    %c768 = arith.constant 768 : index
    %35 = vector.load %arg7[%c0_30, %c768] : memref<256x1152xbf16, #tpu.memory_space<vmem>>, vector<256x128xbf16>
    tpu.vector_store %arg7[%c0_30, %c768], %34 {strides = array<i32>} : memref<256x1152xbf16, #tpu.memory_space<vmem>>, vector<256x128xbf16>,
    %c0_31 = arith.constant 0 : index
    %c72 = arith.constant 72 : index
    %c0_32 = arith.constant 0 : index
    %36 = vector.load %arg1[%c0_31, %c72, %c0_32] : memref<1x336x128xbf16, #tpu.memory_space<vmem>>, vector<1x256x128xbf16>
    %37 = vector.shape_cast %36 : vector<1x256x128xbf16> to vector<256x128xbf16>
    %c0_33 = arith.constant 0 : index
    %c896 = arith.constant 896 : index
    %38 = vector.load %arg7[%c0_33, %c896] : memref<256x1152xbf16, #tpu.memory_space<vmem>>, vector<256x128xbf16>
    tpu.vector_store %arg7[%c0_33, %c896], %37 {strides = array<i32>} : memref<256x1152xbf16, #tpu.memory_space<vmem>>, vector<256x128xbf16>,
    %c0_34 = arith.constant 0 : index
    %c74 = arith.constant 74 : index
    %c0_35 = arith.constant 0 : index
    %39 = vector.load %arg1[%c0_34, %c74, %c0_35] : memref<1x336x128xbf16, #tpu.memory_space<vmem>>, vector<1x256x128xbf16>
    %40 = vector.shape_cast %39 : vector<1x256x128xbf16> to vector<256x128xbf16>
    %c0_36 = arith.constant 0 : index
    %c0_37 = arith.constant 0 : index
    %41 = vector.load %arg4[%c0_36, %c0_37] : memref<256x1xbf16, #tpu.memory_space<vmem>>, vector<256x1xbf16>
    %42 = vector.broadcast %41 : vector<256x1xbf16> to vector<256x128xbf16>
    %43 = arith.mulf %40, %42 : vector<256x128xbf16>
    %c0_38 = arith.constant 0 : index
    %c1024 = arith.constant 1024 : index
    %44 = vector.load %arg7[%c0_38, %c1024] : memref<256x1152xbf16, #tpu.memory_space<vmem>>, vector<256x128xbf16>
    tpu.vector_store %arg7[%c0_38, %c1024], %43 {strides = array<i32>} : memref<256x1152xbf16, #tpu.memory_space<vmem>>, vector<256x128xbf16>,
    %c0_39 = arith.constant 0 : index
    %c0_40 = arith.constant 0 : index
    %45 = vector.load %arg7[%c0_39, %c0_40] : memref<256x1152xbf16, #tpu.memory_space<vmem>>, vector<256x1152xbf16>
    %c0_41 = arith.constant 0 : index
    %c0_42 = arith.constant 0 : index
    %46 = vector.load %arg2[%c0_41, %c0_42] : memref<1152x128xbf16, #tpu.memory_space<vmem>>, vector<1152x128xbf16>
    %cst = arith.constant dense<0.000000e+00> : vector<256x128xf32>
    %47 = tpu.matmul %45, %46, %cst {dimension_numbers = #tpu.dot_dimension_numbers<[1], [0], [0], [1], [0, 0, 1, 1], [], []>} : vector<256x1152xbf16>, vector<1152x128xbf16>, vector<256x128xf32> -> vector<256x128xf32>
    %cst_43 = arith.constant dense<0.000000e+00> : vector<128xf32>
    %48 = vector.multi_reduction <add>, %47, %cst_43 [0] : vector<256x128xf32> to vector<128xf32>
    %49 = vector.shape_cast %48 : vector<128xf32> to vector<1x128xf32>
    %c0_44 = arith.constant 0 : index
    %c0_45 = arith.constant 0 : index
    %c0_46 = arith.constant 0 : index
    %50 = vector.load %arg6[%c0_44, %c0_45, %c0_46] : memref<1x2x128xf32, #tpu.memory_space<vmem>>, vector<1x1x128xf32>
    %51 = vector.shape_cast %50 : vector<1x1x128xf32> to vector<1x128xf32>
    %52 = vector.shape_cast %49 : vector<1x128xf32> to vector<1x1x128xf32>
    tpu.vector_store %arg6[%c0_44, %c0_45, %c0_46], %52 {strides = array<i32>} : memref<1x2x128xf32, #tpu.memory_space<vmem>>, vector<1x1x128xf32>,
    %53 = arith.mulf %47, %47 : vector<256x128xf32>
    %cst_47 = arith.constant dense<0.000000e+00> : vector<128xf32>
    %54 = vector.multi_reduction <add>, %53, %cst_47 [0] : vector<256x128xf32> to vector<128xf32>
    %55 = vector.shape_cast %54 : vector<128xf32> to vector<1x128xf32>
    %c0_48 = arith.constant 0 : index
    %c1 = arith.constant 1 : index
    %c0_49 = arith.constant 0 : index
    %56 = vector.load %arg6[%c0_48, %c1, %c0_49] : memref<1x2x128xf32, #tpu.memory_space<vmem>>, vector<1x1x128xf32>
    %57 = vector.shape_cast %56 : vector<1x1x128xf32> to vector<1x128xf32>
    %58 = vector.shape_cast %55 : vector<1x128xf32> to vector<1x1x128xf32>
    tpu.vector_store %arg6[%c0_48, %c1, %c0_49], %58 {strides = array<i32>} : memref<1x2x128xf32, #tpu.memory_space<vmem>>, vector<1x1x128xf32>,
    %c0_50 = arith.constant 0 : index
    %c0_51 = arith.constant 0 : index
    %c0_52 = arith.constant 0 : index
    %59 = vector.load %arg5[%c0_50, %c0_51, %c0_52] : memref<1x256x128xf32, #tpu.memory_space<vmem>>, vector<1x256x128xf32>
    %60 = vector.shape_cast %59 : vector<1x256x128xf32> to vector<256x128xf32>
    %61 = vector.shape_cast %47 : vector<256x128xf32> to vector<1x256x128xf32>
    tpu.vector_store %arg5[%c0_50, %c0_51, %c0_52], %61 {strides = array<i32>} : memref<1x256x128xf32, #tpu.memory_space<vmem>>, vector<1x256x128xf32>,
    return
  }
  func.func @transform_0(%arg0: i32) -> (i32, i32, i32) {
    %c0_i32 = arith.constant 0 : i32
    %c0_i32_0 = arith.constant 0 : i32
    %c0_i32_1 = arith.constant 0 : i32
    return %arg0, %c0_i32, %c0_i32_0 : i32, i32, i32
  }
  func.func @transform_1(%arg0: i32) -> (i32, i32) {
    %c0_i32 = arith.constant 0 : i32
    %c0_i32_0 = arith.constant 0 : i32
    %c0_i32_1 = arith.constant 0 : i32
    return %c0_i32, %c0_i32_0 : i32, i32
  }
  func.func @transform_2(%arg0: i32) -> (i32, i32) {
    %c0_i32 = arith.constant 0 : i32
    %c0_i32_0 = arith.constant 0 : i32
    %c0_i32_1 = arith.constant 0 : i32
    return %c0_i32, %c0_i32_0 : i32, i32
  }
  func.func @transform_3(%arg0: i32) -> (i32, i32) {
    %c0_i32 = arith.constant 0 : i32
    %c0_i32_0 = arith.constant 0 : i32
    %c0_i32_1 = arith.constant 0 : i32
    return %c0_i32, %c0_i32_0 : i32, i32
  }
  func.func @transform_4(%arg0: i32) -> (i32, i32, i32) {
    %c0_i32 = arith.constant 0 : i32
    %c0_i32_0 = arith.constant 0 : i32
    %c0_i32_1 = arith.constant 0 : i32
    return %arg0, %c0_i32, %c0_i32_0 : i32, i32, i32
  }
  func.func @transform_5(%arg0: i32) -> (i32, i32, i32) {
    %c0_i32 = arith.constant 0 : i32
    %c0_i32_0 = arith.constant 0 : i32
    %c0_i32_1 = arith.constant 0 : i32
    return %arg0, %c0_i32, %c0_i32_0 : i32, i32, i32
  }
}

module attributes {stable_mosaic.version = 11 : i64} {
  func.func @_bnrelu_conv_stats_kernel(%arg0: i32, %arg1: memref<1x256x128xf32, #tpu.memory_space<vmem>>, %arg2: memref<1x32x128xbf16, #tpu.memory_space<vmem>>, %arg3: memref<1x32x128xbf16, #tpu.memory_space<vmem>>, %arg4: memref<1x128xf32, #tpu.memory_space<vmem>>, %arg5: memref<1x128xf32, #tpu.memory_space<vmem>>, %arg6: memref<1152x128xbf16, #tpu.memory_space<vmem>>, %arg7: memref<256x1xbf16, #tpu.memory_space<vmem>>, %arg8: memref<256x1xbf16, #tpu.memory_space<vmem>>, %arg9: memref<1x256x128xf32, #tpu.memory_space<vmem>>, %arg10: memref<1x2x128xf32, #tpu.memory_space<vmem>>, %arg11: memref<336x128xbf16, #tpu.memory_space<vmem>>, %arg12: memref<256x1152xbf16, #tpu.memory_space<vmem>>) attributes {dimension_semantics = [#tpu.dimension_semantics<parallel>], iteration_bounds = array<i64: 2>, scalar_prefetch = 0 : i64, scratch_operands = 2 : i64, tpu.core_type = #tpu.core_type<tc>, window_params = [{transform_indices = @transform_0, window_bounds = array<i64: 1, 256, 128>}, {transform_indices = @transform_1, window_bounds = array<i64: 1, 32, 128>}, {transform_indices = @transform_2, window_bounds = array<i64: 1, 32, 128>}, {pipeline_mode = #tpu.pipeline_mode<synchronous>, transform_indices = @transform_3, window_bounds = array<i64: 1, 128>}, {pipeline_mode = #tpu.pipeline_mode<synchronous>, transform_indices = @transform_4, window_bounds = array<i64: 1, 128>}, {pipeline_mode = #tpu.pipeline_mode<synchronous>, transform_indices = @transform_5, window_bounds = array<i64: 1152, 128>}, {pipeline_mode = #tpu.pipeline_mode<synchronous>, transform_indices = @transform_6, window_bounds = array<i64: 256, 1>}, {pipeline_mode = #tpu.pipeline_mode<synchronous>, transform_indices = @transform_7, window_bounds = array<i64: 256, 1>}, {transform_indices = @transform_8, window_bounds = array<i64: 1, 256, 128>}, {transform_indices = @transform_9, window_bounds = array<i64: 1, 2, 128>}]} {
    %cst = arith.constant 0.000000e+00 : bf16
    %0 = vector.broadcast %cst : bf16 to vector<8x128xbf16>
    %c0 = arith.constant 0 : index
    %c0_0 = arith.constant 0 : index
    %1 = vector.load %arg11[%c0, %c0_0] : memref<336x128xbf16, #tpu.memory_space<vmem>>, vector<8x128xbf16>
    tpu.vector_store %arg11[%c0, %c0_0], %0 {strides = array<i32>} : memref<336x128xbf16, #tpu.memory_space<vmem>>, vector<8x128xbf16>,
    %c328 = arith.constant 328 : index
    %c0_1 = arith.constant 0 : index
    %2 = vector.load %arg11[%c328, %c0_1] : memref<336x128xbf16, #tpu.memory_space<vmem>>, vector<8x128xbf16>
    tpu.vector_store %arg11[%c328, %c0_1], %0 {strides = array<i32>} : memref<336x128xbf16, #tpu.memory_space<vmem>>, vector<8x128xbf16>,
    %c0_2 = arith.constant 0 : index
    %c0_3 = arith.constant 0 : index
    %c0_4 = arith.constant 0 : index
    %3 = vector.load %arg2[%c0_2, %c0_3, %c0_4] : memref<1x32x128xbf16, #tpu.memory_space<vmem>>, vector<1x32x128xbf16>
    %4 = vector.shape_cast %3 : vector<1x32x128xbf16> to vector<32x128xbf16>
    %c8 = arith.constant 8 : index
    %c0_5 = arith.constant 0 : index
    %5 = vector.load %arg11[%c8, %c0_5] : memref<336x128xbf16, #tpu.memory_space<vmem>>, vector<32x128xbf16>
    tpu.vector_store %arg11[%c8, %c0_5], %4 {strides = array<i32>} : memref<336x128xbf16, #tpu.memory_space<vmem>>, vector<32x128xbf16>,
    %c0_6 = arith.constant 0 : index
    %c0_7 = arith.constant 0 : index
    %c0_8 = arith.constant 0 : index
    %6 = vector.load %arg3[%c0_6, %c0_7, %c0_8] : memref<1x32x128xbf16, #tpu.memory_space<vmem>>, vector<1x32x128xbf16>
    %7 = vector.shape_cast %6 : vector<1x32x128xbf16> to vector<32x128xbf16>
    %c296 = arith.constant 296 : index
    %c0_9 = arith.constant 0 : index
    %8 = vector.load %arg11[%c296, %c0_9] : memref<336x128xbf16, #tpu.memory_space<vmem>>, vector<32x128xbf16>
    tpu.vector_store %arg11[%c296, %c0_9], %7 {strides = array<i32>} : memref<336x128xbf16, #tpu.memory_space<vmem>>, vector<32x128xbf16>,
    %c0_10 = arith.constant 0 : index
    %c0_11 = arith.constant 0 : index
    %c0_12 = arith.constant 0 : index
    %9 = vector.load %arg1[%c0_10, %c0_11, %c0_12] : memref<1x256x128xf32, #tpu.memory_space<vmem>>, vector<1x256x128xf32>
    %10 = vector.shape_cast %9 : vector<1x256x128xf32> to vector<256x128xf32>
    %c0_13 = arith.constant 0 : index
    %c0_14 = arith.constant 0 : index
    %11 = vector.load %arg4[%c0_13, %c0_14] : memref<1x128xf32, #tpu.memory_space<vmem>>, vector<1x128xf32>
    %12 = vector.broadcast %11 : vector<1x128xf32> to vector<256x128xf32>
    %13 = arith.mulf %10, %12 : vector<256x128xf32>
    %c0_15 = arith.constant 0 : index
    %c0_16 = arith.constant 0 : index
    %14 = vector.load %arg5[%c0_15, %c0_16] : memref<1x128xf32, #tpu.memory_space<vmem>>, vector<1x128xf32>
    %15 = vector.broadcast %14 : vector<1x128xf32> to vector<256x128xf32>
    %16 = arith.addf %13, %15 : vector<256x128xf32>
    %cst_17 = arith.constant 0.000000e+00 : f32
    %17 = vector.broadcast %cst_17 : f32 to vector<256x128xf32>
    %18 = arith.maximumf %16, %17 : vector<256x128xf32>
    %19 = arith.truncf %18 : vector<256x128xf32> to vector<256x128xbf16>
    %c40 = arith.constant 40 : index
    %c0_18 = arith.constant 0 : index
    %20 = vector.load %arg11[%c40, %c0_18] : memref<336x128xbf16, #tpu.memory_space<vmem>>, vector<256x128xbf16>
    tpu.vector_store %arg11[%c40, %c0_18], %19 {strides = array<i32>} : memref<336x128xbf16, #tpu.memory_space<vmem>>, vector<256x128xbf16>,
    %c6 = arith.constant 6 : index
    %c0_19 = arith.constant 0 : index
    %21 = vector.load %arg11[%c6, %c0_19] : memref<336x128xbf16, #tpu.memory_space<vmem>>, vector<256x128xbf16>
    %c0_20 = arith.constant 0 : index
    %c0_21 = arith.constant 0 : index
    %22 = vector.load %arg7[%c0_20, %c0_21] : memref<256x1xbf16, #tpu.memory_space<vmem>>, vector<256x1xbf16>
    %23 = vector.broadcast %22 : vector<256x1xbf16> to vector<256x128xbf16>
    %24 = arith.mulf %21, %23 : vector<256x128xbf16>
    %c0_22 = arith.constant 0 : index
    %c0_23 = arith.constant 0 : index
    %25 = vector.load %arg12[%c0_22, %c0_23] : memref<256x1152xbf16, #tpu.memory_space<vmem>>, vector<256x128xbf16>
    tpu.vector_store %arg12[%c0_22, %c0_23], %24 {strides = array<i32>} : memref<256x1152xbf16, #tpu.memory_space<vmem>>, vector<256x128xbf16>,
    %c8_24 = arith.constant 8 : index
    %c0_25 = arith.constant 0 : index
    %26 = vector.load %arg11[%c8_24, %c0_25] : memref<336x128xbf16, #tpu.memory_space<vmem>>, vector<256x128xbf16>
    %c0_26 = arith.constant 0 : index
    %c128 = arith.constant 128 : index
    %27 = vector.load %arg12[%c0_26, %c128] : memref<256x1152xbf16, #tpu.memory_space<vmem>>, vector<256x128xbf16>
    tpu.vector_store %arg12[%c0_26, %c128], %26 {strides = array<i32>} : memref<256x1152xbf16, #tpu.memory_space<vmem>>, vector<256x128xbf16>,
    %c10 = arith.constant 10 : index
    %c0_27 = arith.constant 0 : index
    %28 = vector.load %arg11[%c10, %c0_27] : memref<336x128xbf16, #tpu.memory_space<vmem>>, vector<256x128xbf16>
    %c0_28 = arith.constant 0 : index
    %c0_29 = arith.constant 0 : index
    %29 = vector.load %arg8[%c0_28, %c0_29] : memref<256x1xbf16, #tpu.memory_space<vmem>>, vector<256x1xbf16>
    %30 = vector.broadcast %29 : vector<256x1xbf16> to vector<256x128xbf16>
    %31 = arith.mulf %28, %30 : vector<256x128xbf16>
    %c0_30 = arith.constant 0 : index
    %c256 = arith.constant 256 : index
    %32 = vector.load %arg12[%c0_30, %c256] : memref<256x1152xbf16, #tpu.memory_space<vmem>>, vector<256x128xbf16>
    tpu.vector_store %arg12[%c0_30, %c256], %31 {strides = array<i32>} : memref<256x1152xbf16, #tpu.memory_space<vmem>>, vector<256x128xbf16>,
    %c38 = arith.constant 38 : index
    %c0_31 = arith.constant 0 : index
    %33 = vector.load %arg11[%c38, %c0_31] : memref<336x128xbf16, #tpu.memory_space<vmem>>, vector<256x128xbf16>
    %c0_32 = arith.constant 0 : index
    %c0_33 = arith.constant 0 : index
    %34 = vector.load %arg7[%c0_32, %c0_33] : memref<256x1xbf16, #tpu.memory_space<vmem>>, vector<256x1xbf16>
    %35 = vector.broadcast %34 : vector<256x1xbf16> to vector<256x128xbf16>
    %36 = arith.mulf %33, %35 : vector<256x128xbf16>
    %c0_34 = arith.constant 0 : index
    %c384 = arith.constant 384 : index
    %37 = vector.load %arg12[%c0_34, %c384] : memref<256x1152xbf16, #tpu.memory_space<vmem>>, vector<256x128xbf16>
    tpu.vector_store %arg12[%c0_34, %c384], %36 {strides = array<i32>} : memref<256x1152xbf16, #tpu.memory_space<vmem>>, vector<256x128xbf16>,
    %c40_35 = arith.constant 40 : index
    %c0_36 = arith.constant 0 : index
    %38 = vector.load %arg11[%c40_35, %c0_36] : memref<336x128xbf16, #tpu.memory_space<vmem>>, vector<256x128xbf16>
    %c0_37 = arith.constant 0 : index
    %c512 = arith.constant 512 : index
    %39 = vector.load %arg12[%c0_37, %c512] : memref<256x1152xbf16, #tpu.memory_space<vmem>>, vector<256x128xbf16>
    tpu.vector_store %arg12[%c0_37, %c512], %38 {strides = array<i32>} : memref<256x1152xbf16, #tpu.memory_space<vmem>>, vector<256x128xbf16>,
    %c42 = arith.constant 42 : index
    %c0_38 = arith.constant 0 : index
    %40 = vector.load %arg11[%c42, %c0_38] : memref<336x128xbf16, #tpu.memory_space<vmem>>, vector<256x128xbf16>
    %c0_39 = arith.constant 0 : index
    %c0_40 = arith.constant 0 : index
    %41 = vector.load %arg8[%c0_39, %c0_40] : memref<256x1xbf16, #tpu.memory_space<vmem>>, vector<256x1xbf16>
    %42 = vector.broadcast %41 : vector<256x1xbf16> to vector<256x128xbf16>
    %43 = arith.mulf %40, %42 : vector<256x128xbf16>
    %c0_41 = arith.constant 0 : index
    %c640 = arith.constant 640 : index
    %44 = vector.load %arg12[%c0_41, %c640] : memref<256x1152xbf16, #tpu.memory_space<vmem>>, vector<256x128xbf16>
    tpu.vector_store %arg12[%c0_41, %c640], %43 {strides = array<i32>} : memref<256x1152xbf16, #tpu.memory_space<vmem>>, vector<256x128xbf16>,
    %c70 = arith.constant 70 : index
    %c0_42 = arith.constant 0 : index
    %45 = vector.load %arg11[%c70, %c0_42] : memref<336x128xbf16, #tpu.memory_space<vmem>>, vector<256x128xbf16>
    %c0_43 = arith.constant 0 : index
    %c0_44 = arith.constant 0 : index
    %46 = vector.load %arg7[%c0_43, %c0_44] : memref<256x1xbf16, #tpu.memory_space<vmem>>, vector<256x1xbf16>
    %47 = vector.broadcast %46 : vector<256x1xbf16> to vector<256x128xbf16>
    %48 = arith.mulf %45, %47 : vector<256x128xbf16>
    %c0_45 = arith.constant 0 : index
    %c768 = arith.constant 768 : index
    %49 = vector.load %arg12[%c0_45, %c768] : memref<256x1152xbf16, #tpu.memory_space<vmem>>, vector<256x128xbf16>
    tpu.vector_store %arg12[%c0_45, %c768], %48 {strides = array<i32>} : memref<256x1152xbf16, #tpu.memory_space<vmem>>, vector<256x128xbf16>,
    %c72 = arith.constant 72 : index
    %c0_46 = arith.constant 0 : index
    %50 = vector.load %arg11[%c72, %c0_46] : memref<336x128xbf16, #tpu.memory_space<vmem>>, vector<256x128xbf16>
    %c0_47 = arith.constant 0 : index
    %c896 = arith.constant 896 : index
    %51 = vector.load %arg12[%c0_47, %c896] : memref<256x1152xbf16, #tpu.memory_space<vmem>>, vector<256x128xbf16>
    tpu.vector_store %arg12[%c0_47, %c896], %50 {strides = array<i32>} : memref<256x1152xbf16, #tpu.memory_space<vmem>>, vector<256x128xbf16>,
    %c74 = arith.constant 74 : index
    %c0_48 = arith.constant 0 : index
    %52 = vector.load %arg11[%c74, %c0_48] : memref<336x128xbf16, #tpu.memory_space<vmem>>, vector<256x128xbf16>
    %c0_49 = arith.constant 0 : index
    %c0_50 = arith.constant 0 : index
    %53 = vector.load %arg8[%c0_49, %c0_50] : memref<256x1xbf16, #tpu.memory_space<vmem>>, vector<256x1xbf16>
    %54 = vector.broadcast %53 : vector<256x1xbf16> to vector<256x128xbf16>
    %55 = arith.mulf %52, %54 : vector<256x128xbf16>
    %c0_51 = arith.constant 0 : index
    %c1024 = arith.constant 1024 : index
    %56 = vector.load %arg12[%c0_51, %c1024] : memref<256x1152xbf16, #tpu.memory_space<vmem>>, vector<256x128xbf16>
    tpu.vector_store %arg12[%c0_51, %c1024], %55 {strides = array<i32>} : memref<256x1152xbf16, #tpu.memory_space<vmem>>, vector<256x128xbf16>,
    %c0_52 = arith.constant 0 : index
    %c0_53 = arith.constant 0 : index
    %57 = vector.load %arg12[%c0_52, %c0_53] : memref<256x1152xbf16, #tpu.memory_space<vmem>>, vector<256x1152xbf16>
    %c0_54 = arith.constant 0 : index
    %c0_55 = arith.constant 0 : index
    %58 = vector.load %arg6[%c0_54, %c0_55] : memref<1152x128xbf16, #tpu.memory_space<vmem>>, vector<1152x128xbf16>
    %cst_56 = arith.constant dense<0.000000e+00> : vector<256x128xf32>
    %59 = tpu.matmul %57, %58, %cst_56 {dimension_numbers = #tpu.dot_dimension_numbers<[1], [0], [0], [1], [0, 0, 1, 1], [], []>} : vector<256x1152xbf16>, vector<1152x128xbf16>, vector<256x128xf32> -> vector<256x128xf32>
    %cst_57 = arith.constant dense<0.000000e+00> : vector<128xf32>
    %60 = vector.multi_reduction <add>, %59, %cst_57 [0] : vector<256x128xf32> to vector<128xf32>
    %61 = vector.shape_cast %60 : vector<128xf32> to vector<1x128xf32>
    %c0_58 = arith.constant 0 : index
    %c0_59 = arith.constant 0 : index
    %c0_60 = arith.constant 0 : index
    %62 = vector.load %arg10[%c0_58, %c0_59, %c0_60] : memref<1x2x128xf32, #tpu.memory_space<vmem>>, vector<1x1x128xf32>
    %63 = vector.shape_cast %62 : vector<1x1x128xf32> to vector<1x128xf32>
    %64 = vector.shape_cast %61 : vector<1x128xf32> to vector<1x1x128xf32>
    tpu.vector_store %arg10[%c0_58, %c0_59, %c0_60], %64 {strides = array<i32>} : memref<1x2x128xf32, #tpu.memory_space<vmem>>, vector<1x1x128xf32>,
    %65 = arith.mulf %59, %59 : vector<256x128xf32>
    %cst_61 = arith.constant dense<0.000000e+00> : vector<128xf32>
    %66 = vector.multi_reduction <add>, %65, %cst_61 [0] : vector<256x128xf32> to vector<128xf32>
    %67 = vector.shape_cast %66 : vector<128xf32> to vector<1x128xf32>
    %c0_62 = arith.constant 0 : index
    %c1 = arith.constant 1 : index
    %c0_63 = arith.constant 0 : index
    %68 = vector.load %arg10[%c0_62, %c1, %c0_63] : memref<1x2x128xf32, #tpu.memory_space<vmem>>, vector<1x1x128xf32>
    %69 = vector.shape_cast %68 : vector<1x1x128xf32> to vector<1x128xf32>
    %70 = vector.shape_cast %67 : vector<1x128xf32> to vector<1x1x128xf32>
    tpu.vector_store %arg10[%c0_62, %c1, %c0_63], %70 {strides = array<i32>} : memref<1x2x128xf32, #tpu.memory_space<vmem>>, vector<1x1x128xf32>,
    %c0_64 = arith.constant 0 : index
    %c0_65 = arith.constant 0 : index
    %c0_66 = arith.constant 0 : index
    %71 = vector.load %arg9[%c0_64, %c0_65, %c0_66] : memref<1x256x128xf32, #tpu.memory_space<vmem>>, vector<1x256x128xf32>
    %72 = vector.shape_cast %71 : vector<1x256x128xf32> to vector<256x128xf32>
    %73 = vector.shape_cast %59 : vector<256x128xf32> to vector<1x256x128xf32>
    tpu.vector_store %arg9[%c0_64, %c0_65, %c0_66], %73 {strides = array<i32>} : memref<1x256x128xf32, #tpu.memory_space<vmem>>, vector<1x256x128xf32>,
    return
  }
  func.func @transform_0(%arg0: i32) -> (i32, i32, i32) {
    %c0_i32 = arith.constant 0 : i32
    %c0_i32_0 = arith.constant 0 : i32
    %c0_i32_1 = arith.constant 0 : i32
    return %arg0, %c0_i32, %c0_i32_0 : i32, i32, i32
  }
  func.func @transform_1(%arg0: i32) -> (i32, i32, i32) {
    %c0_i32 = arith.constant 0 : i32
    %c0_i32_0 = arith.constant 0 : i32
    %c0_i32_1 = arith.constant 0 : i32
    return %arg0, %c0_i32, %c0_i32_0 : i32, i32, i32
  }
  func.func @transform_2(%arg0: i32) -> (i32, i32, i32) {
    %c0_i32 = arith.constant 0 : i32
    %c0_i32_0 = arith.constant 0 : i32
    %c0_i32_1 = arith.constant 0 : i32
    return %arg0, %c0_i32, %c0_i32_0 : i32, i32, i32
  }
  func.func @transform_3(%arg0: i32) -> (i32, i32) {
    %c0_i32 = arith.constant 0 : i32
    %c0_i32_0 = arith.constant 0 : i32
    %c0_i32_1 = arith.constant 0 : i32
    return %c0_i32, %c0_i32_0 : i32, i32
  }
  func.func @transform_4(%arg0: i32) -> (i32, i32) {
    %c0_i32 = arith.constant 0 : i32
    %c0_i32_0 = arith.constant 0 : i32
    %c0_i32_1 = arith.constant 0 : i32
    return %c0_i32, %c0_i32_0 : i32, i32
  }
  func.func @transform_5(%arg0: i32) -> (i32, i32) {
    %c0_i32 = arith.constant 0 : i32
    %c0_i32_0 = arith.constant 0 : i32
    %c0_i32_1 = arith.constant 0 : i32
    return %c0_i32, %c0_i32_0 : i32, i32
  }
  func.func @transform_6(%arg0: i32) -> (i32, i32) {
    %c0_i32 = arith.constant 0 : i32
    %c0_i32_0 = arith.constant 0 : i32
    %c0_i32_1 = arith.constant 0 : i32
    return %c0_i32, %c0_i32_0 : i32, i32
  }
  func.func @transform_7(%arg0: i32) -> (i32, i32) {
    %c0_i32 = arith.constant 0 : i32
    %c0_i32_0 = arith.constant 0 : i32
    %c0_i32_1 = arith.constant 0 : i32
    return %c0_i32, %c0_i32_0 : i32, i32
  }
  func.func @transform_8(%arg0: i32) -> (i32, i32, i32) {
    %c0_i32 = arith.constant 0 : i32
    %c0_i32_0 = arith.constant 0 : i32
    %c0_i32_1 = arith.constant 0 : i32
    return %arg0, %c0_i32, %c0_i32_0 : i32, i32, i32
  }
  func.func @transform_9(%arg0: i32) -> (i32, i32, i32) {
    %c0_i32 = arith.constant 0 : i32
    %c0_i32_0 = arith.constant 0 : i32
    %c0_i32_1 = arith.constant 0 : i32
    return %arg0, %c0_i32, %c0_i32_0 : i32, i32, i32
  }
}

module attributes {stable_mosaic.version = 11 : i64} {
  func.func @_bn_residual_kernel(%arg0: i32, %arg1: memref<1x256x128xf32, #tpu.memory_space<vmem>>, %arg2: memref<1x256x128xf32, #tpu.memory_space<vmem>>, %arg3: memref<1x128xf32, #tpu.memory_space<vmem>>, %arg4: memref<1x128xf32, #tpu.memory_space<vmem>>, %arg5: memref<1x256x128xf32, #tpu.memory_space<vmem>>) attributes {dimension_semantics = [#tpu.dimension_semantics<parallel>], iteration_bounds = array<i64: 2>, scalar_prefetch = 0 : i64, scratch_operands = 0 : i64, tpu.core_type = #tpu.core_type<tc>, window_params = [{transform_indices = @transform_0, window_bounds = array<i64: 1, 256, 128>}, {transform_indices = @transform_1, window_bounds = array<i64: 1, 256, 128>}, {pipeline_mode = #tpu.pipeline_mode<synchronous>, transform_indices = @transform_2, window_bounds = array<i64: 1, 128>}, {pipeline_mode = #tpu.pipeline_mode<synchronous>, transform_indices = @transform_3, window_bounds = array<i64: 1, 128>}, {transform_indices = @transform_4, window_bounds = array<i64: 1, 256, 128>}]} {
    %c0 = arith.constant 0 : index
    %c0_0 = arith.constant 0 : index
    %c0_1 = arith.constant 0 : index
    %0 = vector.load %arg1[%c0, %c0_0, %c0_1] : memref<1x256x128xf32, #tpu.memory_space<vmem>>, vector<1x256x128xf32>
    %1 = vector.shape_cast %0 : vector<1x256x128xf32> to vector<256x128xf32>
    %c0_2 = arith.constant 0 : index
    %c0_3 = arith.constant 0 : index
    %2 = vector.load %arg3[%c0_2, %c0_3] : memref<1x128xf32, #tpu.memory_space<vmem>>, vector<1x128xf32>
    %3 = vector.broadcast %2 : vector<1x128xf32> to vector<256x128xf32>
    %4 = arith.mulf %1, %3 : vector<256x128xf32>
    %c0_4 = arith.constant 0 : index
    %c0_5 = arith.constant 0 : index
    %5 = vector.load %arg4[%c0_4, %c0_5] : memref<1x128xf32, #tpu.memory_space<vmem>>, vector<1x128xf32>
    %6 = vector.broadcast %5 : vector<1x128xf32> to vector<256x128xf32>
    %7 = arith.addf %4, %6 : vector<256x128xf32>
    %c0_6 = arith.constant 0 : index
    %c0_7 = arith.constant 0 : index
    %c0_8 = arith.constant 0 : index
    %8 = vector.load %arg2[%c0_6, %c0_7, %c0_8] : memref<1x256x128xf32, #tpu.memory_space<vmem>>, vector<1x256x128xf32>
    %9 = vector.shape_cast %8 : vector<1x256x128xf32> to vector<256x128xf32>
    %10 = arith.addf %7, %9 : vector<256x128xf32>
    %c0_9 = arith.constant 0 : index
    %c0_10 = arith.constant 0 : index
    %c0_11 = arith.constant 0 : index
    %11 = vector.load %arg5[%c0_9, %c0_10, %c0_11] : memref<1x256x128xf32, #tpu.memory_space<vmem>>, vector<1x256x128xf32>
    %12 = vector.shape_cast %11 : vector<1x256x128xf32> to vector<256x128xf32>
    %13 = vector.shape_cast %10 : vector<256x128xf32> to vector<1x256x128xf32>
    tpu.vector_store %arg5[%c0_9, %c0_10, %c0_11], %13 {strides = array<i32>} : memref<1x256x128xf32, #tpu.memory_space<vmem>>, vector<1x256x128xf32>,
    return
  }
  func.func @transform_0(%arg0: i32) -> (i32, i32, i32) {
    %c0_i32 = arith.constant 0 : i32
    %c0_i32_0 = arith.constant 0 : i32
    %c0_i32_1 = arith.constant 0 : i32
    return %arg0, %c0_i32, %c0_i32_0 : i32, i32, i32
  }
  func.func @transform_1(%arg0: i32) -> (i32, i32, i32) {
    %c0_i32 = arith.constant 0 : i32
    %c0_i32_0 = arith.constant 0 : i32
    %c0_i32_1 = arith.constant 0 : i32
    return %arg0, %c0_i32, %c0_i32_0 : i32, i32, i32
  }
  func.func @transform_2(%arg0: i32) -> (i32, i32) {
    %c0_i32 = arith.constant 0 : i32
    %c0_i32_0 = arith.constant 0 : i32
    %c0_i32_1 = arith.constant 0 : i32
    return %c0_i32, %c0_i32_0 : i32, i32
  }
  func.func @transform_3(%arg0: i32) -> (i32, i32) {
    %c0_i32 = arith.constant 0 : i32
    %c0_i32_0 = arith.constant 0 : i32
    %c0_i32_1 = arith.constant 0 : i32
    return %c0_i32, %c0_i32_0 : i32, i32
  }
  func.func @transform_4(%arg0: i32) -> (i32, i32, i32) {
    %c0_i32 = arith.constant 0 : i32
    %c0_i32_0 = arith.constant 0 : i32
    %c0_i32_1 = arith.constant 0 : i32
    return %arg0, %c0_i32, %c0_i32_0 : i32, i32, i32
  }
}

</mosaic_0001>

<bundles_post_ra>
// kernel: resblock_forward.5
= control target key start
LH: loop header
LB: loop body
LE: loop exit
PB: predicated region body
PF: predicated region fallthrough
CT: control target
= control target key end

     0   :  { %s550_s15 = smov 0   ;;  %s746_s0 = inlined_call_operand.vmem [shape: f32[2,256,128], index: 0, kind: input, shape index: {}]   ;;  %s747_s1 = inlined_call_operand.vmem [shape: f32[2,256,128], index: 1, kind: input, shape index: {}]   ;;  %s748_s2 = inlined_call_operand.vmem [shape: f32[1,128], index: 2, kind: input, shape index: {}]   ;;  %s749_s3 = inlined_call_operand.vmem [shape: f32[1,128], index: 3, kind: input, shape index: {}]   ;;  %s750_s4 = inlined_call_operand.vmem [shape: f32[2,256,128], index: 4, kind: output, shape index: {}]  }
   0x1 LB: > { %s491_s16 = sadd.s32 4294967295, %s523_s15   ;;  %p495_p0 = scmp.ge.s32.totalorder %s523_s15, 1  ;;  %s523_s15 = sphi %s550_s15, %s14_s15  }
   0x2   : > { %p172_p1 = scmp.lt.s32.totalorder %s523_s15, 3 }
   0x4   : > { %p173_p2 = pnand %p495_p0, %p172_p1 }
   0x5   : > { %p203_p3 = scmp.lt.s32.totalorder (!%p173_p2), %s491_s16, 1  ;;  %v561_v0 = vld [vmem:[%s748_s2] ss:$0 sm:$0xff] (!%p173_p2) }
   0x6   : > { %176 = sbr.rel (%p173_p2) target bundleno = 49 (0x31), region = 36  ;;  %v577_v2 = vld [vmem:[%s749_s3] ss:$0 sm:$0xff] (!%p173_p2) }
   0xd   : > { %s752_s16 = smov (!%p203_p3, %s491_s16), 1 }
   0xe   : > { %s506_s17 = sshll.u32 %s752_s16, 8 }
   0xf   : > { %s566_s22 = scalar_lea.vmem %s746_s0, %s506_s17  ;;  %s571_s25 = scalar_lea.vmem %s747_s1, %s506_s17 }
  0x10   : > { %v218_v1 = vld [vmem:[%s566_s22] sm:$0xff]  ;;  %v219_v3 = vld [vmem:[%s566_s22 + $0x8] sm:$0xff]  ;;  %v220_v7 = vld [vmem:[%s566_s22 + $0x10] sm:$0xff]  ;;  %s598_s30 = scalar_lea.vmem %s750_s4, %s506_s17 }
  0x11   : > { %v257_v4 = vmul.f32 %v561_v0, %v218_v1  ;;  %v328_v5 = vld [vmem:[%s571_s25] sm:$0xff]  ;;  %v258_v6 = vmul.f32 %v561_v0, %v219_v3  ;;  %v329_v8 = vld [vmem:[%s571_s25 + $0x8] sm:$0xff]  ;;  %v259_v9 = vmul.f32 %v561_v0, %v220_v7  ;;  %v221_v10 = vld [vmem:[%s566_s22 + $0x18] sm:$0xff] }
  0x12   : > { %v222_v11 = vld [vmem:[%s566_s22 + $0x20] sm:$0xff]  ;;  %v330_v14 = vld [vmem:[%s571_s25 + $0x10] sm:$0xff]  ;;  %v260_v15 = vmul.f32 %v561_v0, %v221_v10  ;;  %v331_v16 = vld [vmem:[%s571_s25 + $0x18] sm:$0xff] }
  0x13   : > { %v296_v12 = vadd.f32 %v577_v2, %v257_v4  ;;  %v297_v13 = vadd.f32 %v577_v2, %v258_v6  ;;  %v261_v17 = vmul.f32 %v561_v0, %v222_v11  ;;  %v223_v18 = vld [vmem:[%s566_s22 + $0x28] sm:$0xff]  ;;  %v298_v19 = vadd.f32 %v577_v2, %v259_v9  ;;  %v332_v20 = vld [vmem:[%s571_s25 + $0x20] sm:$0xff]  ;;  %v224_v22 = vld [vmem:[%s566_s22 + $0x30] sm:$0xff] }
  0x14   : > { %v262_v21 = vmul.f32 %v561_v0, %v223_v18  ;;  %v225_v23 = vld [vmem:[%s566_s22 + $0x38] sm:$0xff]  ;;  %v299_v26 = vadd.f32 %v577_v2, %v260_v15  ;;  %v333_v28 = vld [vmem:[%s571_s25 + $0x28] sm:$0xff]  ;;  %v226_v29 = vld [vmem:[%s566_s22 + $0x40] sm:$0xff]  ;;  %v263_v32 = vmul.f32 %v561_v0, %v224_v22 }
  0x15   : > { %v360_v24 = vadd.f32 %v328_v5, %v296_v12  ;;  %v361_v25 = vadd.f32 %v329_v8, %v297_v13  ;;  %v300_v27 = vadd.f32 %v577_v2, %v261_v17  ;;  %v362_v30 = vadd.f32 %v330_v14, %v298_v19  ;;  %v334_v33 = vld [vmem:[%s571_s25 + $0x30] sm:$0xff]  ;;  %v227_v35 = vld [vmem:[%s566_s22 + $0x48] sm:$0xff]  ;;  %v335_v39 = vld [vmem:[%s571_s25 + $0x38] sm:$0xff] }
  0x16   : > { %v301_v31 = vadd.f32 %v577_v2, %v262_v21  ;;  %v264_v34 = vmul.f32 %v561_v0, %v225_v23  ;;  %v228_v36 = vld [vmem:[%s566_s22 + $0x50] sm:$0xff]  ;;  %v363_v37 = vadd.f32 %v331_v16, %v299_v26  ;;  %v265_v40 = vmul.f32 %v561_v0, %v226_v29  ;;  %v336_v41 = vld [vmem:[%s571_s25 + $0x40] sm:$0xff]  ;;  %v229_v43 = vld [vmem:[%s566_s22 + $0x58] sm:$0xff] }
  0x17   : > { %392 = vst [vmem:[%s598_s30] sm:$0xff] %v360_v24  ;;  %393 = vst [vmem:[%s598_s30 + $0x8] sm:$0xff] %v361_v25  ;;  %v364_v38 = vadd.f32 %v332_v20, %v300_v27  ;;  %v266_v42 = vmul.f32 %v561_v0, %v227_v35  ;;  %v302_v45 = vadd.f32 %v577_v2, %v263_v32  ;;  %v337_v47 = vld [vmem:[%s571_s25 + $0x48] sm:$0xff]  ;;  %v230_v49 = vld [vmem:[%s566_s22 + $0x60] sm:$0xff] }
  0x18   : > { %394 = vst [vmem:[%s598_s30 + $0x10] sm:$0xff] %v362_v30  ;;  %v365_v44 = vadd.f32 %v333_v28, %v301_v31  ;;  %v303_v46 = vadd.f32 %v577_v2, %v264_v34  ;;  %v267_v48 = vmul.f32 %v561_v0, %v228_v36  ;;  %v231_v50 = vld [vmem:[%s566_s22 + $0x68] sm:$0xff]  ;;  %395 = vst [vmem:[%s598_s30 + $0x18] sm:$0xff] %v363_v37  ;;  %v338_v53 = vld [vmem:[%s571_s25 + $0x50] sm:$0xff] }
  0x19   : > { %396 = vst [vmem:[%s598_s30 + $0x20] sm:$0xff] %v364_v38  ;;  %v304_v51 = vadd.f32 %v577_v2, %v265_v40  ;;  %v305_v52 = vadd.f32 %v577_v2, %v266_v42  ;;  %v268_v54 = vmul.f32 %v561_v0, %v229_v43  ;;  %v339_v55 = vld [vmem:[%s571_s25 + $0x58] sm:$0xff]  ;;  %v269_v56 = vmul.f32 %v561_v0, %v230_v49  ;;  %v232_v57 = vld [vmem:[%s566_s22 + $0x70] sm:$0xff]  ;;  %v340_v61 = vld [vmem:[%s571_s25 + $0x60] sm:$0xff] }
  0x1a   : > { %397 = vst [vmem:[%s598_s30 + $0x28] sm:$0xff] %v365_v44  ;;  %v366_v58 = vadd.f32 %v334_v33, %v302_v45  ;;  %v367_v59 = vadd.f32 %v335_v39, %v303_v46  ;;  %v306_v60 = vadd.f32 %v577_v2, %v267_v48  ;;  %v270_v62 = vmul.f32 %v561_v0, %v231_v50  ;;  %v233_v63 = vld [vmem:[%s566_s22 + $0x78] sm:$0xff]  ;;  %v234_v1 = vld [vmem:[%s566_s22 + $0x80] sm:$0xff]  ;;  %v341_v7 = vld [vmem:[%s571_s25 + $0x68] sm:$0xff] }
  0x1b   : > { %v368_v3 = vadd.f32 %v336_v41, %v304_v51  ;;  %v369_v4 = vadd.f32 %v337_v47, %v305_v52  ;;  %v307_v5 = vadd.f32 %v577_v2, %v268_v54  ;;  %v308_v6 = vadd.f32 %v577_v2, %v269_v56  ;;  %v235_v8 = vld [vmem:[%s566_s22 + $0x88] sm:$0xff]  ;;  %v342_v12 = vld [vmem:[%s571_s25 + $0x70] sm:$0xff]  ;;  %v237_v15 = vld [vmem:[%s566_s22 + $0x98] sm:$0xff] }
  0x1c   : > { %398 = vst [vmem:[%s598_s30 + $0x30] sm:$0xff] %v366_v58  ;;  %399 = vst [vmem:[%s598_s30 + $0x38] sm:$0xff] %v367_v59  ;;  %v370_v9 = vadd.f32 %v338_v53, %v306_v60  ;;  %v309_v10 = vadd.f32 %v577_v2, %v270_v62  ;;  %v271_v11 = vmul.f32 %v561_v0, %v232_v57  ;;  %v236_v14 = vld [vmem:[%s566_s22 + $0x90] sm:$0xff]  ;;  %v343_v18 = vld [vmem:[%s571_s25 + $0x78] sm:$0xff] }
  0x1d   : > { %v272_v13 = vmul.f32 %v561_v0, %v233_v63  ;;  %400 = vst [vmem:[%s598_s30 + $0x40] sm:$0xff] %v368_v3  ;;  %401 = vst [vmem:[%s598_s30 + $0x48] sm:$0xff] %v369_v4  ;;  %v371_v16 = vadd.f32 %v339_v55, %v307_v5  ;;  %v372_v17 = vadd.f32 %v340_v61, %v308_v6  ;;  %v344_v20 = vld [vmem:[%s571_s25 + $0x80] sm:$0xff]  ;;  %v345_v26 = vld [vmem:[%s571_s25 + $0x88] sm:$0xff] }
  0x1e   : > { %v273_v19 = vmul.f32 %v561_v0, %v234_v1  ;;  %v274_v21 = vmul.f32 %v561_v0, %v235_v8  ;;  %v238_v22 = vld [vmem:[%s566_s22 + $0xa0] sm:$0xff]  ;;  %402 = vst [vmem:[%s598_s30 + $0x50] sm:$0xff] %v370_v9  ;;  %v373_v23 = vadd.f32 %v341_v7, %v309_v10  ;;  %v310_v24 = vadd.f32 %v577_v2, %v271_v11  ;;  %v346_v28 = vld [vmem:[%s571_s25 + $0x90] sm:$0xff]  ;;  %v239_v29 = vld [vmem:[%s566_s22 + $0xa8] sm:$0xff] }
  0x1f   : > { %v311_v25 = vadd.f32 %v577_v2, %v272_v13  ;;  %v275_v27 = vmul.f32 %v561_v0, %v236_v14  ;;  %403 = vst [vmem:[%s598_s30 + $0x58] sm:$0xff] %v371_v16  ;;  %404 = vst [vmem:[%s598_s30 + $0x60] sm:$0xff] %v372_v17  ;;  %v276_v32 = vmul.f32 %v561_v0, %v237_v15  ;;  %v347_v33 = vld [vmem:[%s571_s25 + $0x98] sm:$0xff]  ;;  %v240_v35 = vld [vmem:[%s566_s22 + $0xb0] sm:$0xff] }
  0x20   : > { %v312_v30 = vadd.f32 %v577_v2, %v273_v19  ;;  %v313_v31 = vadd.f32 %v577_v2, %v274_v21  ;;  %v277_v34 = vmul.f32 %v561_v0, %v238_v22  ;;  %v241_v36 = vld [vmem:[%s566_s22 + $0xb8] sm:$0xff]  ;;  %405 = vst [vmem:[%s598_s30 + $0x68] sm:$0xff] %v373_v23  ;;  %v374_v37 = vadd.f32 %v342_v12, %v310_v24  ;;  %v348_v40 = vld [vmem:[%s571_s25 + $0xa0] sm:$0xff]  ;;  %v243_v43 = vld [vmem:[%s566_s22 + $0xc8] sm:$0xff] }
  0x21   : > { %v375_v38 = vadd.f32 %v343_v18, %v311_v25  ;;  %v314_v39 = vadd.f32 %v577_v2, %v275_v27  ;;  %v278_v41 = vmul.f32 %v561_v0, %v239_v29  ;;  %v242_v42 = vld [vmem:[%s566_s22 + $0xc0] sm:$0xff]  ;;  %v315_v46 = vadd.f32 %v577_v2, %v276_v32  ;;  %v349_v48 = vld [vmem:[%s571_s25 + $0xa8] sm:$0xff]  ;;  %v244_v49 = vld [vmem:[%s566_s22 + $0xd0] sm:$0xff] }
  0x22   : > { %v376_v44 = vadd.f32 %v344_v20, %v312_v30  ;;  %v377_v45 = vadd.f32 %v345_v26, %v313_v31  ;;  %v316_v47 = vadd.f32 %v577_v2, %v277_v34  ;;  %406 = vst [vmem:[%s598_s30 + $0x70] sm:$0xff] %v374_v37  ;;  %v279_v52 = vmul.f32 %v561_v0, %v240_v35  ;;  %v245_v54 = vld [vmem:[%s566_s22 + $0xd8] sm:$0xff]  ;;  %v246_v55 = vld [vmem:[%s566_s22 + $0xe0] sm:$0xff]  ;;  %v350_v58 = vld [vmem:[%s571_s25 + $0xb0] sm:$0xff] }
  0x23   : > { %407 = vst [vmem:[%s598_s30 + $0x78] sm:$0xff] %v375_v38  ;;  %v378_v50 = vadd.f32 %v346_v28, %v314_v39  ;;  %v317_v51 = vadd.f32 %v577_v2, %v278_v41  ;;  %v280_v53 = vmul.f32 %v561_v0, %v241_v36  ;;  %v379_v56 = vadd.f32 %v347_v33, %v315_v46  ;;  %v351_v59 = vld [vmem:[%s571_s25 + $0xb8] sm:$0xff]  ;;  %v247_v62 = vld [vmem:[%s566_s22 + $0xe8] sm:$0xff]  ;;  %v352_v4 = vld [vmem:[%s571_s25 + $0xc0] sm:$0xff] }
  0x24   : > { %408 = vst [vmem:[%s598_s30 + $0x80] sm:$0xff] %v376_v44  ;;  %409 = vst [vmem:[%s598_s30 + $0x88] sm:$0xff] %v377_v45  ;;  %v380_v57 = vadd.f32 %v348_v40, %v316_v47  ;;  %v281_v60 = vmul.f32 %v561_v0, %v242_v42  ;;  %v282_v61 = vmul.f32 %v561_v0, %v243_v43  ;;  %v353_v5 = vld [vmem:[%s571_s25 + $0xc8] sm:$0xff]  ;;  %v354_v9 = vld [vmem:[%s571_s25 + $0xd0] sm:$0xff] }
  0x25   : > { %410 = vst [vmem:[%s598_s30 + $0x90] sm:$0xff] %v378_v50  ;;  %v381_v63 = vadd.f32 %v349_v48, %v317_v51  ;;  %v318_v1 = vadd.f32 %v577_v2, %v279_v52  ;;  %v319_v3 = vadd.f32 %v577_v2, %v280_v53  ;;  %v283_v6 = vmul.f32 %v561_v0, %v244_v49  ;;  %v248_v12 = vld [vmem:[%s566_s22 + $0xf0] sm:$0xff]  ;;  %v249_v13 = vld [vmem:[%s566_s22 + $0xf8] sm:$0xff]  ;;  %v356_v18 = vld [vmem:[%s571_s25 + $0xe0] sm:$0xff] }
  0x26   : > { %411 = vst [vmem:[%s598_s30 + $0x98] sm:$0xff] %v379_v56  ;;  %412 = vst [vmem:[%s598_s30 + $0xa0] sm:$0xff] %v380_v57  ;;  %v320_v7 = vadd.f32 %v577_v2, %v281_v60  ;;  %v321_v8 = vadd.f32 %v577_v2, %v282_v61  ;;  %v284_v10 = vmul.f32 %v561_v0, %v245_v54  ;;  %v355_v17 = vld [vmem:[%s571_s25 + $0xd8] sm:$0xff]  ;;  %v357_v24 = vld [vmem:[%s571_s25 + $0xe8] sm:$0xff] }
  0x27   : > { %v285_v11 = vmul.f32 %v561_v0, %v246_v55  ;;  %413 = vst [vmem:[%s598_s30 + $0xa8] sm:$0xff] %v381_v63  ;;  %v382_v14 = vadd.f32 %v350_v58, %v318_v1  ;;  %v383_v15 = vadd.f32 %v351_v59, %v319_v3  ;;  %v322_v16 = vadd.f32 %v577_v2, %v283_v6  ;;  %v358_v31 = vld [vmem:[%s571_s25 + $0xf0] sm:$0xff]  ;;  %v359_v32 = vld [vmem:[%s571_s25 + $0xf8] sm:$0xff] }
  0x28   : > { %v286_v19 = vmul.f32 %v561_v0, %v247_v62  ;;  %v384_v20 = vadd.f32 %v352_v4, %v320_v7  ;;  %v385_v21 = vadd.f32 %v353_v5, %v321_v8  ;;  %v323_v22 = vadd.f32 %v577_v2, %v284_v10 }
  0x29   : > { %v324_v23 = vadd.f32 %v577_v2, %v285_v11  ;;  %414 = vst [vmem:[%s598_s30 + $0xb0] sm:$0xff] %v382_v14  ;;  %415 = vst [vmem:[%s598_s30 + $0xb8] sm:$0xff] %v383_v15  ;;  %v386_v25 = vadd.f32 %v354_v9, %v322_v16  ;;  %v287_v27 = vmul.f32 %v561_v0, %v248_v12 }
  0x2a   : > { %v325_v26 = vadd.f32 %v577_v2, %v286_v19  ;;  %v288_v28 = vmul.f32 %v561_v0, %v249_v13  ;;  %416 = vst [vmem:[%s598_s30 + $0xc0] sm:$0xff] %v384_v20  ;;  %417 = vst [vmem:[%s598_s30 + $0xc8] sm:$0xff] %v385_v21  ;;  %v387_v29 = vadd.f32 %v355_v17, %v323_v22 }
  0x2b   : > { %v388_v30 = vadd.f32 %v356_v18, %v324_v23  ;;  %418 = vst [vmem:[%s598_s30 + $0xd0] sm:$0xff] %v386_v25  ;;  %v326_v34 = vadd.f32 %v577_v2, %v287_v27 }
  0x2c   : > { %v389_v33 = vadd.f32 %v357_v24, %v325_v26  ;;  %v327_v35 = vadd.f32 %v577_v2, %v288_v28  ;;  %419 = vst [vmem:[%s598_s30 + $0xd8] sm:$0xff] %v387_v29 }
  0x2d   : > { %420 = vst [vmem:[%s598_s30 + $0xe0] sm:$0xff] %v388_v30  ;;  %v390_v36 = vadd.f32 %v358_v31, %v326_v34 }
  0x2e   : > { %421 = vst [vmem:[%s598_s30 + $0xe8] sm:$0xff] %v389_v33  ;;  %v391_v37 = vadd.f32 %v359_v32, %v327_v35 }
  0x2f   : > { %422 = vst [vmem:[%s598_s30 + $0xf0] sm:$0xff] %v390_v36 }
  0x30   : > { %423 = vst [vmem:[%s598_s30 + $0xf8] sm:$0xff] %v391_v37 }
  0x31 PF: > { %s14_s15 = sadd.s32 1, %s523_s15  }
  0x32   : > { %p11_p4 = scmp.ge.s32.totalorder %s14_s15, 4  }
  0x34   :  { %13 = sbr.rel (!%p11_p4) target bundleno = 1 (0x1), region = 69 }

// kernel: resblock_forward.3
= control target key start
LH: loop header
LB: loop body
LE: loop exit
PB: predicated region body
PF: predicated region fallthrough
CT: control target
= control target key end

     0   :  { %s8111_s18 = smov 0   ;;  %s11139_s0 = inlined_call_operand.vmem [shape: bf16[2,336,128], index: 0, kind: input, shape index: {}]   ;;  %s11140_s1 = inlined_call_operand.vmem [shape: bf16[1152,128], index: 1, kind: input, shape index: {}]   ;;  %s11141_s2 = inlined_call_operand.vmem [shape: bf16[256,1], index: 2, kind: input, shape index: {}]   ;;  %s11142_s3 = inlined_call_operand.vmem [shape: bf16[256,1], index: 3, kind: input, shape index: {}]   ;;  %s11143_s4 = inlined_call_operand.vmem [shape: f32[2,256,128], index: 4, kind: output, shape index: {0}]   ;;  %s11144_s5 = inlined_call_operand.vmem [shape: f32[2,2,128], index: 5, kind: output, shape index: {1}]  }
   0x1 LB: > { %s7168_s19 = sadd.s32 4294967295, %s8077_s18   ;;  %p7172_p0 = scmp.ge.s32.totalorder %s8077_s18, 1  ;;  %s8077_s18 = sphi %s8111_s18, %s16_s18  }
   0x2   : > { %p190_p1 = scmp.lt.s32.totalorder %s8077_s18, 3 }
   0x4   : > { %p191_p2 = pnand %p7172_p0, %p190_p1 }
   0x6   : > { %194 = sbr.rel (%p191_p2) target bundleno = 786 (0x312), region = 36 }
   0xd   : > { %v272_v0 = vld [vmem:[%s11141_s2 + $0x8] sm:$0xf]  ;;  %v270_v1 = vld [vmem:[%s11141_s2] sm:$0xf]  ;;  %v8079_v3 = vmov 0   ;;  %v7955_v19 = vld [vmem:[%s11140_s1 + $0x50] sm:$0xff]  }
   0xe   : > { %v7951_v2 = vld [vmem:[%s11140_s1 + $0x40] sm:$0xff]   ;;  %7950 = vset.pattern.permute.xlu1 %v8079_v3  ;;  %7949 = vset.pattern.permute.xlu0 %v8079_v3  ;;  %v273_v4 = vld [vmem:[%s11141_s2 + $0xc] sm:$0xf]  ;;  %v275_v6 = vld [vmem:[%s11141_s2 + $0x14] sm:$0xf]  ;;  %p222_p3 = scmp.lt.s32.totalorder %s7168_s19, 1 }
   0xf   : > { %328 = vperm.xlu1 %7950, %v272_v0   ;;  %304 = vperm.xlu0 %7949, %v270_v1   ;;  %v271_v5 = vld [vmem:[%s11141_s2 + $0x4] sm:$0xf]  ;;  %v274_v7 = vld [vmem:[%s11141_s2 + $0x10] sm:$0xf]  ;;  %v277_v8 = vld [vmem:[%s11141_s2 + $0x1c] sm:$0xf] }
  0x10   : > { %7402 = vmatprep.subr.bf16.mxu0 %v7951_v2  ;;  %7922 = vmatprep.subr.bf16.mxu1 %v7951_v2  ;;  %v276_v9 = vld [vmem:[%s11141_s2 + $0x18] sm:$0xf]  ;;  %v279_v10 = vld [vmem:[%s11141_s2 + $0x24] sm:$0xf]  ;;  %v278_v11 = vld [vmem:[%s11141_s2 + $0x20] sm:$0xf] }
  0x11   : > { %v281_v12 = vld [vmem:[%s11141_s2 + $0x2c] sm:$0xf]  ;;  %v280_v13 = vld [vmem:[%s11141_s2 + $0x28] sm:$0xf]  ;;  %v283_v14 = vld [vmem:[%s11141_s2 + $0x34] sm:$0xf] }
  0x12   : > { %v282_v15 = vld [vmem:[%s11141_s2 + $0x30] sm:$0xf]  ;;  %v7952_v16 = vld [vmem:[%s11140_s1] sm:$0xff]   ;;  %v7953_v17 = vld [vmem:[%s11140_s1 + $0x48] sm:$0xff]   ;;  %s11183_s19 = smov (!%p222_p3, %s7168_s19), 1  ;;  %vm718_vm0 = vcmask 1042432  }
  0x13   : > { %340 = vperm.xlu1 %7950, %v273_v4   ;;  %316 = vperm.xlu0 %7949, %v271_v5   ;;  %v7954_v18 = vld [vmem:[%s11140_s1 + $0x8] sm:$0xff]   ;;  %v285_v20 = vld [vmem:[%s11141_s2 + $0x3c] sm:$0xf]  ;;  %v284_v21 = vld [vmem:[%s11141_s2 + $0x38] sm:$0xf]  ;;  %s7938_s11 = smul.u32 168, %s11183_s19 }
  0x14   : > { %7403 = vmatpush3.bf16.msra.mxu0 %v7952_v16  ;;  %7930 = vmatpush3.bf16.msra.mxu1 %v7952_v16  ;;  %v7956_v22 = vld [vmem:[%s11140_s1 + $0x10] sm:$0xff]   ;;  %v7957_v23 = vld [vmem:[%s11140_s1 + $0x58] sm:$0xff]   ;;  %v287_v24 = vld [vmem:[%s11141_s2 + $0x44] sm:$0xf]  ;;  %v8080_v16 = vmov 839922192  }
  0x15   : > { %7404 = vmatprep.subr.bf16.mxu0 %v7953_v17  ;;  %7923 = vmatprep.subr.bf16.mxu1 %v7953_v17  ;;  %v286_v25 = vld [vmem:[%s11141_s2 + $0x40] sm:$0xf]  ;;  %v7958_v26 = vld [vmem:[%s11140_s1 + $0x18] sm:$0xff]   ;;  %v289_v28 = vld [vmem:[%s11141_s2 + $0x4c] sm:$0xf]  ;;  %s8240_s28 = scalar_lea.vmem %s11139_s0, %s7938_s11  ;;  %v308_v17 = vunpack.c.l.s4 %v8080_v16  ;;  %vm719_vm1 = vcmask 1046532  }
  0x16   : > { %v7959_v27 = vld [vmem:[%s11140_s1 + $0x60] sm:$0xff]   ;;  %v288_v29 = vld [vmem:[%s11141_s2 + $0x48] sm:$0xf]  ;;  %v291_v32 = vld [vmem:[%s11141_s2 + $0x54] sm:$0xf]  ;;  %vm965_vm3 = vcmask 1044480  }
  0x17   : > { %364 = vperm.xlu1 %7950, %v275_v6   ;;  %352 = vperm.xlu0 %7949, %v274_v7   ;;  %v7960_v30 = vld [vmem:[%s11140_s1 + $0x20] sm:$0xff]   ;;  %v7961_v31 = vld [vmem:[%s11140_s1 + $0x68] sm:$0xff]   ;;  %v290_v33 = vld [vmem:[%s11141_s2 + $0x50] sm:$0xf]  ;;  %vm1656_vm4 = vcmask 1040384   ;;  %vm1657_vm5 = vcmask 1044484  }
  0x18   : > { %7405 = vmatpush3.bf16.msra.mxu0 %v7954_v18  ;;  %7931 = vmatpush3.bf16.msra.mxu1 %v7954_v18  ;;  %v7962_v34 = vld [vmem:[%s11140_s1 + $0x28] sm:$0xff]   ;;  %v7963_v35 = vld [vmem:[%s11140_s1 + $0x70] sm:$0xff]   ;;  %v293_v36 = vld [vmem:[%s11141_s2 + $0x5c] sm:$0xf]  ;;  %v310_v18 = vlaneseq  ;;  %vm1903_vm7 = vcmask 1046528   ;;  %s7176_s23 = sshll.u32 %s11183_s19, 1 }
  0x19   : > { %7406 = vmatprep.subr.bf16.mxu0 %v7955_v19  ;;  %7924 = vmatprep.subr.bf16.mxu1 %v7955_v19  ;;  %v292_v37 = vld [vmem:[%s11141_s2 + $0x58] sm:$0xf]  ;;  %v7964_v38 = vld [vmem:[%s11140_s1 + $0x30] sm:$0xff]   ;;  %v7967_v39 = vld [vmem:[%s8240_s28 + $0x4] sm:$0xff]   ;;  %s235_s26 = scalar_lea.vmem %s11144_s5, %s7176_s23 }
  0x1a   : > { %v7965_v40 = vld [vmem:[%s11140_s1 + $0x78] sm:$0xff]   ;;  %6169 = vmatprep.mubr.bf16.mxu0 %v7967_v39  ;;  %v295_v41 = vld [vmem:[%s11141_s2 + $0x64] sm:$0xf]  ;;  %v294_v42 = vld [vmem:[%s11141_s2 + $0x60] sm:$0xf] }
  0x1b   : > { %388 = vperm.xlu1 %7950, %v277_v8   ;;  %376 = vperm.xlu0 %7949, %v276_v9   ;;  %v7966_v43 = vld [vmem:[%s11140_s1 + $0x38] sm:$0xff]   ;;  %v297_v44 = vld [vmem:[%s11141_s2 + $0x6c] sm:$0xf]  ;;  %v296_v45 = vld [vmem:[%s11141_s2 + $0x68] sm:$0xf] }
  0x1c   : > { %7407 = vmatpush3.bf16.msra.mxu0 %v7956_v22  ;;  %7932 = vmatpush3.bf16.msra.mxu1 %v7956_v22  ;;  %v299_v46 = vld [vmem:[%s11141_s2 + $0x74] sm:$0xf]  ;;  %v298_v47 = vld [vmem:[%s11141_s2 + $0x70] sm:$0xf]  ;;  %v301_v48 = vld [vmem:[%s11141_s2 + $0x7c] sm:$0xf]  ;;  %v309_v22 = vunpack.c.0.s8 %v308_v17 }
  0x1d   : > { %7408 = vmatprep.subr.bf16.mxu0 %v7957_v23  ;;  %7925 = vmatprep.subr.bf16.mxu1 %v7957_v23  ;;  %v300_v49 = vld [vmem:[%s11141_s2 + $0x78] sm:$0xf]  ;;  %v1209_v50 = vld [vmem:[%s11142_s3 + $0x4] sm:$0xf]  ;;  %v1208_v51 = vld [vmem:[%s11142_s3] sm:$0xf] }
  0x1e   : > { %v1211_v52 = vld [vmem:[%s11142_s3 + $0xc] sm:$0xf]  ;;  %v1210_v53 = vld [vmem:[%s11142_s3 + $0x8] sm:$0xf]  ;;  %v1213_v54 = vld [vmem:[%s11142_s3 + $0x14] sm:$0xf] }
  0x1f   : > { %412 = vperm.xlu1 %7950, %v279_v10   ;;  %400 = vperm.xlu0 %7949, %v278_v11   ;;  %v1212_v55 = vld [vmem:[%s11142_s3 + $0x10] sm:$0xf]  ;;  %v7974_v56 = vld [vmem:[%s8240_s28 + $0x64] sm:$0xff]   ;;  %v1215_v57 = vld [vmem:[%s11142_s3 + $0x1c] sm:$0xf]  ;;  %v311_v23 = vshrl.u32 %v310_v18, 7 }
  0x20   : > { %7409 = vmatpush3.bf16.msra.mxu0 %v7958_v26  ;;  %7933 = vmatpush3.bf16.msra.mxu1 %v7958_v26  ;;  %v1214_v58 = vld [vmem:[%s11142_s3 + $0x18] sm:$0xf]  ;;  %v1217_v59 = vld [vmem:[%s11142_s3 + $0x24] sm:$0xf]  ;;  %v1216_v60 = vld [vmem:[%s11142_s3 + $0x20] sm:$0xf] }
  0x21   : > { %7410 = vmatprep.subr.bf16.mxu0 %v7959_v27  ;;  %7926 = vmatprep.subr.bf16.mxu1 %v7959_v27  ;;  %v1219_v61 = vld [vmem:[%s11142_s3 + $0x2c] sm:$0xf]  ;;  %v1218_v62 = vld [vmem:[%s11142_s3 + $0x28] sm:$0xf]  ;;  %v1221_v63 = vld [vmem:[%s11142_s3 + $0x34] sm:$0xf]  ;;  %v8379_v26 = vsub.s32 %v309_v22, %v311_v23 }
  0x22   : > { %6265 = vmatprep.mubr.bf16.mxu1 %v7974_v56  ;;  %v1220_v0 = vld [vmem:[%s11142_s3 + $0x30] sm:$0xf]  ;;  %v1223_v1 = vld [vmem:[%s11142_s3 + $0x3c] sm:$0xf]  ;;  %v1222_v2 = vld [vmem:[%s11142_s3 + $0x38] sm:$0xf] }
  0x23   : > { %436 = vperm.xlu1 %7950, %v281_v12   ;;  %424 = vperm.xlu0 %7949, %v280_v13   ;;  %v1225_v3 = vld [vmem:[%s11142_s3 + $0x44] sm:$0xf]  ;;  %v1224_v5 = vld [vmem:[%s11142_s3 + $0x40] sm:$0xf]  ;;  %v1226_v7 = vld [vmem:[%s11142_s3 + $0x48] sm:$0xf] }
  0x24   : > { %7411 = vmatpush3.bf16.msra.mxu0 %v7960_v30  ;;  %7934 = vmatpush3.bf16.msra.mxu1 %v7960_v30  ;;  %v7981_v4 = vld [vmem:[%s11140_s1 + $0xc0] sm:$0xff]   ;;  %v2004_v8 = vld [vmem:[%s11141_s2 + $0x8] sm:$0xf]  ;;  %v2006_v10 = vld [vmem:[%s11141_s2 + $0x10] sm:$0xf] }
  0x25   : > { %7412 = vmatprep.subr.bf16.mxu0 %v7961_v31  ;;  %7927 = vmatprep.subr.bf16.mxu1 %v7961_v31  ;;  %v2002_v6 = vld [vmem:[%s11141_s2] sm:$0xf]  ;;  %v2003_v9 = vld [vmem:[%s11141_s2 + $0x4] sm:$0xf]  ;;  %v2005_v11 = vld [vmem:[%s11141_s2 + $0xc] sm:$0xf] }
  0x26   : > { %v2008_v12 = vld [vmem:[%s11141_s2 + $0x18] sm:$0xf]  ;;  %v2007_v13 = vld [vmem:[%s11141_s2 + $0x14] sm:$0xf]  ;;  %v2012_v19 = vld [vmem:[%s11141_s2 + $0x28] sm:$0xf] }
  0x27   : > { %460 = vperm.xlu1 %7950, %v283_v14   ;;  %448 = vperm.xlu0 %7949, %v282_v15   ;;  %v2010_v14 = vld [vmem:[%s11141_s2 + $0x20] sm:$0xf]  ;;  %v2009_v15 = vld [vmem:[%s11141_s2 + $0x1c] sm:$0xf]  ;;  %v2016_v27 = vld [vmem:[%s11141_s2 + $0x38] sm:$0xf] }
  0x28   : > { %7413 = vmatpush3.bf16.msra.mxu0 %v7962_v34  ;;  %7935 = vmatpush3.bf16.msra.mxu1 %v7962_v34  ;;  %v2017_v34 = vld [vmem:[%s11141_s2 + $0x3c] sm:$0xf]  ;;  %vm8404_vm2 = vmor %vm718_vm0, %vm719_vm1  ;;  %v2936_v56 = vld [vmem:[%s11142_s3] sm:$0xf] }
  0x29   : > { %7414 = vmatprep.subr.bf16.mxu0 %v7963_v35  ;;  %7928 = vmatprep.subr.bf16.mxu1 %v7963_v35  ;;  %vm8933_vm6 = vmor %vm1656_vm4, %vm1657_vm5 }
  0x2b   : > { %484 = vperm.xlu1 %7950, %v285_v20   ;;  %472 = vperm.xlu0 %7949, %v284_v21   ;;  %v2011_v20 = vld [vmem:[%s11141_s2 + $0x24] sm:$0xf] }
  0x2c   : > { %7415 = vmatpush3.bf16.msra.mxu0 %v7964_v38  ;;  %7936 = vmatpush3.bf16.msra.mxu1 %v7964_v38  ;;  %v7997_v21 = vld [vmem:[%s11140_s1 + $0x140] sm:$0xff]  }
  0x2d   : > { %7416 = vmatprep.subr.bf16.mxu0 %v7965_v40  ;;  %7929 = vmatprep.subr.bf16.mxu1 %v7965_v40  ;;  %v2020_v40 = vld [vmem:[%s11141_s2 + $0x48] sm:$0xf] }
  0x2f   : > { %508 = vperm.xlu1 %7950, %v287_v24   ;;  %496 = vperm.xlu0 %7949, %v286_v25   ;;  %v2014_v24 = vld [vmem:[%s11141_s2 + $0x30] sm:$0xf]  ;;  %v2013_v25 = vld [vmem:[%s11141_s2 + $0x2c] sm:$0xf] }
  0x30   : > { %7417 = vmatpush3.bf16.msra.mxu0 %v7966_v43  ;;  %7937 = vmatpush3.bf16.msra.mxu1 %v7966_v43  ;;  %v237_v43 = vld [vmem:[%s8240_s28] sm:$0x8] }
  0x31   : > { %7514 = vmatprep.subr.bf16.mxu1 %v7981_v4  ;;  %7626 = vmatprep.subr.bf16.mxu0 %v7997_v21 }
  0x33   : > { %532 = vperm.xlu1 %7950, %v289_v28   ;;  %520 = vperm.xlu0 %7949, %v288_v29   ;;  %v2015_v28 = vld [vmem:[%s11141_s2 + $0x34] sm:$0xf] }
  0x37   : > { %556 = vperm.xlu1 %7950, %v291_v32   ;;  %544 = vperm.xlu0 %7949, %v290_v33   ;;  %v2018_v33 = vld [vmem:[%s11141_s2 + $0x40] sm:$0xf] }
  0x3b   : > { %580 = vperm.xlu1 %7950, %v293_v36   ;;  %568 = vperm.xlu0 %7949, %v292_v37  }
  0x3f   : > { %604 = vperm.xlu1 %7950, %v295_v41   ;;  %592 = vperm.xlu0 %7949, %v294_v42   ;;  %v2019_v42 = vld [vmem:[%s11141_s2 + $0x44] sm:$0xf] }
  0x43   : > { %628 = vperm.xlu1 %7950, %v297_v44   ;;  %616 = vperm.xlu0 %7949, %v296_v45  }
  0x47   : > { %652 = vperm.xlu1 %7950, %v299_v46   ;;  %640 = vperm.xlu0 %7949, %v298_v47   ;;  %v238_v47 = vld [vmem:[%s8240_s28 + $0x4] sm:$0xf] }
  0x4b   : > { %676 = vperm.xlu1 %7950, %v301_v48   ;;  %664 = vperm.xlu0 %7949, %v300_v49  }
  0x4f   : > { %1254 = vperm.xlu1 %7950, %v1209_v50   ;;  %1242 = vperm.xlu0 %7949, %v1208_v51  }
  0x53   : > { %1278 = vperm.xlu1 %7950, %v1211_v52   ;;  %1266 = vperm.xlu0 %7949, %v1210_v53   ;;  %v240_v52 = vld [vmem:[%s8240_s28 + $0xc] sm:$0xf] }
  0x57   : > { %1302 = vperm.xlu1 %7950, %v1213_v54   ;;  %1290 = vperm.xlu0 %7949, %v1212_v55   ;;  %v2937_v55 = vld [vmem:[%s11142_s3 + $0x4] sm:$0xf] }
  0x5b   : > { %1326 = vperm.xlu1 %7950, %v1215_v57   ;;  %1314 = vperm.xlu0 %7949, %v1214_v58  }
  0x5f   : > { %1350 = vperm.xlu1 %7950, %v1217_v59   ;;  %1338 = vperm.xlu0 %7949, %v1216_v60   ;;  %v239_v59 = vld [vmem:[%s8240_s28 + $0x8] sm:$0xf] }
  0x63   : > { %1374 = vperm.xlu1 %7950, %v1219_v61   ;;  %1362 = vperm.xlu0 %7949, %v1218_v62  }
  0x67   : > { %1398 = vperm.xlu1 %7950, %v1221_v63   ;;  %1386 = vperm.xlu0 %7949, %v1220_v0  }
  0x6b   : > { %1422 = vperm.xlu1 %7950, %v1223_v1   ;;  %1410 = vperm.xlu0 %7949, %v1222_v2  }
  0x6f   : > { %1446 = vperm.xlu1 %7950, %v1225_v3   ;;  %1434 = vperm.xlu0 %7949, %v1224_v5  }
  0x73   : > { %2036 = vperm.xlu1 %7950, %v2002_v6   ;;  %1458 = vperm.xlu0 %7949, %v1226_v7   ;;  %v242_v6 = vld [vmem:[%s8240_s28 + $0x14] sm:$0xf] }
  0x77   : > { %2060 = vperm.xlu1 %7950, %v2004_v8   ;;  %2048 = vperm.xlu0 %7949, %v2003_v9   ;;  %v2021_v9 = vld [vmem:[%s11141_s2 + $0x4c] sm:$0xf] }
  0x7b   : > { %2084 = vperm.xlu1 %7950, %v2006_v10   ;;  %2072 = vperm.xlu0 %7949, %v2005_v11   ;;  %v2938_v10 = vld [vmem:[%s11142_s3 + $0x8] sm:$0xf] }
  0x7f   : > { %2108 = vperm.xlu1 %7950, %v2008_v12   ;;  %2096 = vperm.xlu0 %7949, %v2007_v13   ;;  %v241_v13 = vld [vmem:[%s8240_s28 + $0x10] sm:$0xf] }
  0x83   : > { %2132 = vperm.xlu1 %7950, %v2010_v14   ;;  %2120 = vperm.xlu0 %7949, %v2009_v15  }
  0x87   : > { %2156 = vperm.xlu1 %7950, %v2012_v19   ;;  %2144 = vperm.xlu0 %7949, %v2011_v20  }
  0x8b   : > { %2180 = vperm.xlu1 %7950, %v2014_v24   ;;  %2168 = vperm.xlu0 %7949, %v2013_v25  }
  0x8e   : > { %v329_v29 = vpop.permute.xlu1 %328  ;;  %v305_v30 = vpop.permute.xlu0 %304 }
  0x8f   : > { %v337_v31 = vrot.slane %v329_v29, %v8379_v26  ;;  %v313_v32 = vrot.slane %v305_v30, %v8379_v26  ;;  %2204 = vperm.xlu1 %7950, %v2016_v27   ;;  %2192 = vperm.xlu0 %7949, %v2015_v28   ;;  %v1227_v28 = vld [vmem:[%s11142_s3 + $0x4c] sm:$0xf] }
  0x90   : > { %v7968_v29 = vld [vmem:[%s8240_s28 + $0xc] sm:$0xff]  }
  0x91   : > { %v721_v35 = vrot.slane %v313_v32, 5  ;;  %v726_v38 = vrot.slane %v337_v31, 5  ;;  %v2939_v31 = vld [vmem:[%s11142_s3 + $0xc] sm:$0xf]  ;;  %v7998_v32 = vld [vmem:[%s11140_s1 + $0x100] sm:$0xff]  }
  0x92   : > { %v341_v36 = vpop.permute.xlu1 %340  ;;  %v317_v37 = vpop.permute.xlu0 %316 }
  0x93   : > { %v349_v39 = vrot.slane %v341_v36, %v8379_v26  ;;  %2228 = vperm.xlu1 %7950, %v2018_v33   ;;  %2216 = vperm.xlu0 %7949, %v2017_v34   ;;  %v325_v41 = vrot.slane %v317_v37, %v8379_v26  ;;  %v722_v46 = vrot.slane %v721_v35, 4  ;;  %v728_v51 = vrot.slane %v726_v38, 4 }
  0x94   : > { %v849_v63 = vmul.bf16 %v721_v35, %v237_v43  ;;  %v2940_v43 = vld [vmem:[%s11142_s3 + $0x10] sm:$0xf] }
  0x95   : > { %v729_v45 = vrot.slane %v349_v39, 5  ;;  %v723_v48 = vrot.slane %v325_v41, 5  ;;  %v244_v41 = vld [vmem:[%s8240_s28 + $0x1c] sm:$0xf] }
  0x96   : > { %v365_v49 = vpop.permute.xlu1 %364  ;;  %v353_v50 = vpop.permute.xlu0 %352 }
  0x97   : > { %v373_v53 = vrot.slane %v365_v49, %v8379_v26  ;;  %v361_v54 = vrot.slane %v353_v50, %v8379_v26  ;;  %2252 = vperm.xlu1 %7950, %v2020_v40   ;;  %2240 = vperm.xlu0 %7949, %v2019_v42   ;;  %v724_v57 = vsel %vm8404_vm2, %v722_v46, %v723_v48  ;;  %v725_v58 = vrot.slane %v723_v48, 4  ;;  %v8002_v48 = vld [vmem:[%s11140_s1 + $0x108] sm:$0xff]  }
  0x98   : > { %v730_v60 = vsel %vm8404_vm2, %v728_v51, %v729_v45  ;;  %v850_v61 = vmul.bf16 %v724_v57, %v238_v47  ;;  %v731_v3 = vrot.slane %v729_v45, 4  ;;  %v243_v45 = vld [vmem:[%s8240_s28 + $0x18] sm:$0xf]  ;;  %v2022_v47 = vld [vmem:[%s11141_s2 + $0x50] sm:$0xf] }
  0x99   : > { %v732_v62 = vrot.slane %v361_v54, 5  ;;  %v727_v0 = vsel %vm8404_vm2, %v725_v58, %v726_v38  ;;  %v735_v4 = vrot.slane %v373_v53, 5  ;;  %v852_v7 = vmul.bf16 %v730_v60, %v240_v52  ;;  %v8001_v38 = vld [vmem:[%s11140_s1 + $0x148] sm:$0xff]   ;;  %v8003_v54 = vld [vmem:[%s11140_s1 + $0x150] sm:$0xff]  }
  0x9a   : > { %v389_v1 = vpop.permute.xlu1 %388  ;;  %v377_v2 = vpop.permute.xlu0 %376  ;;  %v851_v11 = vmul.bf16 %v727_v0, %v239_v59  ;;  %v7177_v12 = vcombine.low %v849_v63, %v850_v61  ;;  %v7969_v59 = vld [vmem:[%s8240_s28 + $0x14] sm:$0xff]   ;;  %v1228_v60 = vld [vmem:[%s11142_s3 + $0x50] sm:$0xf] }
  0x9b   : > { %v734_v5 = vrot.slane %v732_v62, 4  ;;  %2982 = vperm.xlu1 %7950, %v2937_v55   ;;  %2970 = vperm.xlu0 %7949, %v2936_v56   ;;  %v385_v8 = vrot.slane %v377_v2, %v8379_v26  ;;  %v733_v14 = vsel %vm8404_vm2, %v731_v3, %v732_v62  ;;  %v397_v16 = vrot.slane %v389_v1, %v8379_v26  ;;  %v2023_v56 = vld [vmem:[%s11141_s2 + $0x54] sm:$0xf] }
  0x9c   : > { %v7178_v20 = vcombine.low %v851_v11, %v852_v7  ;;  %v853_v23 = vmul.bf16 %v733_v14, %v241_v13  ;;  %v966_v25 = vrot.slane %v7177_v12, 3  ;;  %v737_v39 = vrot.slane %v735_v4, 4  ;;  %v8004_v61 = vld [vmem:[%s11140_s1 + $0x110] sm:$0xff]   ;;  %v245_v7 = vld [vmem:[%s8240_s28 + $0x20] sm:$0xf]  ;;  %v8006_v13 = vld [vmem:[%s11140_s1 + $0x118] sm:$0xff]  }
  0x9d   : > { %v736_v15 = vsel %vm8404_vm2, %v734_v5, %v735_v4  ;;  %v738_v17 = vrot.slane %v385_v8, 5  ;;  %v741_v30 = vrot.slane %v397_v16, 5  ;;  %v246_v4 = vld [vmem:[%s8240_s28 + $0x24] sm:$0xf]  ;;  %v8005_v5 = vld [vmem:[%s11140_s1 + $0x158] sm:$0xff]  }
  0x9e   : > { %v413_v18 = vpop.permute.xlu1 %412  ;;  %v401_v19 = vpop.permute.xlu0 %400  ;;  %v854_v21 = vmul.bf16 %v736_v15, %v242_v6  ;;  %v967_v27 = vrot.slane %v7178_v20, 3  ;;  %v2941_v11 = vld [vmem:[%s11142_s3 + $0x14] sm:$0xf] }
  0x9f   : > { %v409_v22 = vrot.slane %v401_v19, %v8379_v26  ;;  %2264 = vperm.xlu1 %7950, %v2021_v9   ;;  %2994 = vperm.xlu0 %7949, %v2938_v10   ;;  %v740_v24 = vrot.slane %v738_v17, 4  ;;  %v421_v42 = vrot.slane %v413_v18, %v8379_v26  ;;  %v739_v46 = vsel %vm8404_vm2, %v737_v39, %v738_v17  ;;  %v1229_v9 = vld [vmem:[%s11142_s3 + $0x54] sm:$0xf]  ;;  %v8007_v18 = vld [vmem:[%s11140_s1 + $0x160] sm:$0xff]  }
  0xa0   : > { %v968_v34 = vsel %vm965_vm3, %v966_v25, %v967_v27  ;;  %v8453_v37 = vcombine.low %v853_v23, %v854_v21  ;;  %v855_v57 = vmul.bf16 %v739_v46, %v243_v45  ;;  %v743_v62 = vrot.slane %v741_v30, 4  ;;  %v2942_v21 = vld [vmem:[%s11142_s3 + $0x18] sm:$0xf] }
  0xa1   : > { %v744_v33 = vrot.slane %v409_v22, 5  ;;  %v742_v40 = vsel %vm8404_vm2, %v740_v24, %v741_v30  ;;  %6170 = vmatmul.mubr.bf16.vlgmr.msra.gmra.mrb[0].mxu0 %v968_v34  ;;  %v8484_v58 = vrot.slane %v421_v42, 5  ;;  %v7970_v22 = vld [vmem:[%s8240_s28 + $0x1c] sm:$0xff]   ;;  %v2024_v24 = vld [vmem:[%s11141_s2 + $0x58] sm:$0xf]  ;;  %v8012_v42 = vld [vmem:[%s11140_s1 + $0x128] sm:$0xff]  }
  0xa2   : > { %v8451_v35 = vpop.permute.xlu1 %436  ;;  %v425_v36 = vpop.permute.xlu0 %424  ;;  %6177 = vmatprep.mubr.bf16.mxu0 %v7968_v29  ;;  %7627 = vmatpush3.bf16.msra.mxu0 %v7998_v32  ;;  %v969_v52 = vrot.slane %v8453_v37, 3  ;;  %v856_v53 = vmul.bf16 %v742_v40, %v244_v41  ;;  %v8011_v32 = vld [vmem:[%s11140_s1 + $0x168] sm:$0xff]   ;;  %v1230_v40 = vld [vmem:[%s11142_s3 + $0x58] sm:$0xf] }
  0xa3   : > { %1470 = vperm.xlu1 %7950, %v1227_v28   ;;  %3006 = vperm.xlu0 %7949, %v2939_v31   ;;  %v746_v49 = vrot.slane %v744_v33, 4  ;;  %v433_v55 = vrot.slane %v425_v36, %v8379_v26  ;;  %v745_v8 = vsel %vm8404_vm2, %v743_v62, %v744_v33  ;;  %v445_v10 = vrot.slane %v8451_v35, %v8379_v26  ;;  %v248_v35 = vld [vmem:[%s8240_s28 + $0x2c] sm:$0xf]  ;;  %v247_v36 = vld [vmem:[%s8240_s28 + $0x28] sm:$0xf] }
  0xa4   : > { %7628 = vmatprep.subr.bf16.mxu0 %v8001_v38  ;;  %v970_v0 = vsel %vm965_vm3, %v967_v27, %v969_v52  ;;  %v8501_v3 = vcombine.low %v855_v57, %v856_v53  ;;  %v857_v19 = vmul.bf16 %v745_v8, %v245_v7  ;;  %v8008_v27 = vld [vmem:[%s11140_s1 + $0x120] sm:$0xff]   ;;  %v749_v33 = vrot.slane %v8484_v58, 4  ;;  %v2025_v38 = vld [vmem:[%s11141_s2 + $0x5c] sm:$0xf]  ;;  %v8014_v57 = vld [vmem:[%s11140_s1 + $0x130] sm:$0xff]  }
  0xa5   : > { %v748_v63 = vsel %vm8404_vm2, %v746_v49, %v8484_v58  ;;  %v750_v6 = vrot.slane %v433_v55, 5  ;;  %v753_v23 = vrot.slane %v445_v10, 5  ;;  %v7971_v53 = vld [vmem:[%s8240_s28 + $0x24] sm:$0xff]   ;;  %v2944_v7 = vld [vmem:[%s11142_s3 + $0x20] sm:$0xf] }
  0xa6   : > { %v8474_v50 = vpop.permute.xlu1 %460  ;;  %v449_v51 = vpop.permute.xlu0 %448  ;;  %7629 = vmatpush3.bf16.msra.mxu0 %v8002_v48  ;;  %v858_v12 = vmul.bf16 %v748_v63, %v246_v4  ;;  %v971_v17 = vrot.slane %v8501_v3, 3  ;;  %v8013_v48 = vld [vmem:[%s11140_s1 + $0x170] sm:$0xff]  }
  0xa7   : > { %3018 = vperm.xlu1 %7950, %v2940_v43   ;;  %2276 = vperm.xlu0 %7949, %v2022_v47   ;;  %v457_v14 = vrot.slane %v449_v51, %v8379_v26  ;;  %v752_v20 = vrot.slane %v750_v6, 4  ;;  %v469_v37 = vrot.slane %v8474_v50, %v8379_v26  ;;  %v751_v39 = vsel %vm8404_vm2, %v749_v33, %v750_v6  ;;  %v250_v63 = vld [vmem:[%s8240_s28 + $0x34] sm:$0xf] }
  0xa8   : > { %7630 = vmatprep.subr.bf16.mxu0 %v8003_v54  ;;  %v8537_v25 = vcombine.low %v857_v19, %v858_v12  ;;  %v972_v29 = vsel %vm965_vm3, %v969_v52, %v971_v17  ;;  %v859_v50 = vmul.bf16 %v751_v39, %v247_v36  ;;  %v1231_v52 = vld [vmem:[%s11142_s3 + $0x5c] sm:$0xf]  ;;  %v755_v54 = vrot.slane %v753_v23, 4  ;;  %v1233_v36 = vld [vmem:[%s11142_s3 + $0x64] sm:$0xf] }
  0xa9   : > { %6178 = vmatmul.mubr.bf16.gmra.mrb[4].mxu0 %v970_v0  ;;  %v756_v28 = vrot.slane %v457_v14, 5  ;;  %v754_v34 = vsel %vm8404_vm2, %v752_v20, %v753_v23  ;;  %v8578_v51 = vrot.slane %v469_v37, 5  ;;  %v8015_v0 = vld [vmem:[%s11140_s1 + $0x178] sm:$0xff]   ;;  %v2027_v20 = vld [vmem:[%s11141_s2 + $0x64] sm:$0xf]  ;;  %v7972_v23 = vld [vmem:[%s8240_s28 + $0x2c] sm:$0xff]  }
  0xaa   : > { %v8497_v1 = vpop.permute.xlu1 %484  ;;  %v8499_v2 = vpop.permute.xlu0 %472  ;;  %6185 = vmatprep.mubr.bf16.mxu0 %v7969_v59  ;;  %7631 = vmatpush3.bf16.msra.mxu0 %v8004_v61  ;;  %v973_v41 = vrot.slane %v8537_v25, 3  ;;  %v860_v47 = vmul.bf16 %v754_v34, %v248_v35  ;;  %v251_v37 = vld [vmem:[%s8240_s28 + $0x38] sm:$0xf]  ;;  %v252_v25 = vld [vmem:[%s8240_s28 + $0x3c] sm:$0xf] }
  0xab   : > { %2288 = vperm.xlu1 %7950, %v2023_v56   ;;  %1482 = vperm.xlu0 %7949, %v1228_v60   ;;  %v758_v43 = vrot.slane %v756_v28, 4  ;;  %v481_v49 = vrot.slane %v8499_v2, %v8379_v26  ;;  %v2943_v56 = vld [vmem:[%s11142_s3 + $0x1c] sm:$0xf]  ;;  %v249_v2 = vld [vmem:[%s8240_s28 + $0x30] sm:$0xf]  ;;  %v757_v3 = vsel %vm8404_vm2, %v755_v54, %v756_v28 }
  0xac   : > { %7632 = vmatprep.subr.bf16.mxu0 %v8005_v5  ;;  %v974_v59 = vsel %vm965_vm3, %v971_v17, %v973_v41  ;;  %v8600_v62 = vcombine.low %v859_v50, %v860_v47  ;;  %v493_v5 = vrot.slane %v8497_v1, %v8379_v26  ;;  %v8016_v1 = vld [vmem:[%s11140_s1 + $0x138] sm:$0xff]   ;;  %v2945_v54 = vld [vmem:[%s11142_s3 + $0x24] sm:$0xf] }
  0xad   : > { %v760_v58 = vsel %vm8404_vm2, %v758_v43, %v8578_v51  ;;  %v762_v4 = vrot.slane %v481_v49, 5  ;;  %v261_v49 = vld [vmem:[%s8240_s28 + $0x60] sm:$0xf] }
  0xae   : > { %v8522_v15 = vpop.permute.xlu1 %508  ;;  %v8524_v16 = vpop.permute.xlu0 %496  ;;  %7633 = vmatpush3.bf16.msra.mxu0 %v8006_v13  ;;  %v862_v10 = vmul.bf16 %v760_v58, %v250_v63  ;;  %v975_v14 = vrot.slane %v8600_v62, 3 }
  0xaf   : > { %1494 = vperm.xlu1 %7950, %v1229_v9   ;;  %3030 = vperm.xlu0 %7949, %v2941_v11   ;;  %v505_v55 = vrot.slane %v8524_v16, %v8379_v26  ;;  %v2026_v9 = vld [vmem:[%s11141_s2 + $0x60] sm:$0xf]  ;;  %v861_v11 = vmul.bf16 %v757_v3, %v249_v2  ;;  %v764_v16 = vrot.slane %v762_v4, 4  ;;  %v517_v17 = vrot.slane %v8522_v15, %v8379_v26 }
  0xb0   : > { %7634 = vmatprep.subr.bf16.mxu0 %v8007_v18  ;;  %v1232_v15 = vld [vmem:[%s11142_s3 + $0x60] sm:$0xf]  ;;  %v976_v33 = vsel %vm965_vm3, %v973_v41, %v975_v14  ;;  %v262_v41 = vld [vmem:[%s8240_s28 + $0x64] sm:$0xf] }
  0xb1   : > { %6186 = vmatmul.mubr.bf16.gmra.mrb[8].mxu0 %v972_v29  ;;  %v8615_v8 = vrot.slane %v505_v55, 5  ;;  %v8638_v28 = vcombine.low %v861_v11, %v862_v10  ;;  %v761_v29 = vrot.slane %v8578_v51, 4  ;;  %v8652_v39 = vrot.slane %v517_v17, 5  ;;  %v7973_v11 = vld [vmem:[%s8240_s28 + $0x34] sm:$0xff]   ;;  %v264_v17 = vld [vmem:[%s8240_s28 + $0x6c] sm:$0xf] }
  0xb2   : > { %v8543_v30 = vpop.permute.xlu1 %532  ;;  %v8545_v31 = vpop.permute.xlu0 %520  ;;  %6193 = vmatprep.mubr.bf16.mxu0 %v7970_v22  ;;  %7635 = vmatpush3.bf16.msra.mxu0 %v8008_v27 }
  0xb3   : > { %3042 = vperm.xlu1 %7950, %v2942_v21   ;;  %2300 = vperm.xlu0 %7949, %v2024_v24   ;;  %v765_v21 = vrot.slane %v493_v5, 5  ;;  %v770_v24 = vrot.slane %v8615_v8, 4  ;;  %v763_v47 = vsel %vm8404_vm2, %v761_v29, %v762_v4  ;;  %v977_v55 = vrot.slane %v8638_v28, 3  ;;  %v254_v5 = vld [vmem:[%s8240_s28 + $0x44] sm:$0xf] }
  0xb4   : > { %7636 = vmatprep.subr.bf16.mxu0 %v8011_v32  ;;  %v266_v29 = vld [vmem:[%s8240_s28 + $0x74] sm:$0xf] }
  0xb5   : > { %v767_v43 = vrot.slane %v765_v21, 4  ;;  %v8665_v51 = vsel %vm8404_vm2, %v770_v24, %v8652_v39 }
  0xb6   : > { %v8569_v45 = vpop.permute.xlu1 %556  ;;  %v8571_v46 = vpop.permute.xlu0 %544  ;;  %7637 = vmatpush3.bf16.msra.mxu0 %v8012_v42  ;;  %v866_v62 = vmul.bf16 %v8665_v51, %v254_v5 }
  0xb7   : > { %2312 = vperm.xlu1 %7950, %v2025_v38   ;;  %1506 = vperm.xlu0 %7949, %v1230_v40   ;;  %v766_v38 = vsel %vm8404_vm2, %v764_v16, %v765_v21 }
  0xb8   : > { %7638 = vmatprep.subr.bf16.mxu0 %v8013_v48  ;;  %v864_v63 = vmul.bf16 %v766_v38, %v252_v25  ;;  %v265_v38 = vld [vmem:[%s8240_s28 + $0x70] sm:$0xf] }
  0xb9   : > { %6194 = vmatmul.mubr.bf16.gmra.mrb[12].mxu0 %v974_v59 }
  0xba   : > { %v581_v60 = vpop.permute.xlu1 %580  ;;  %v8598_v61 = vpop.permute.xlu0 %568  ;;  %6201 = vmatprep.mubr.bf16.mxu0 %v7971_v53  ;;  %7639 = vmatpush3.bf16.msra.mxu0 %v8014_v57 }
  0xbb   : > { %1518 = vperm.xlu1 %7950, %v1231_v52   ;;  %v589_v6 = vrot.slane %v581_v60, %v8379_v26  ;;  %3054 = vperm.xlu0 %7949, %v2943_v56   ;;  %v529_v52 = vrot.slane %v8545_v31, %v8379_v26 }
  0xbc   : > { %7640 = vmatprep.subr.bf16.mxu0 %v8015_v0  ;;  %v263_v0 = vld [vmem:[%s8240_s28 + $0x68] sm:$0xf] }
  0xbd   : > { %v8631_v22 = vrot.slane %v589_v6, 5  ;;  %v863_v6 = vmul.bf16 %v763_v47, %v251_v37  ;;  %v553_v37 = vrot.slane %v8571_v46, %v8379_v26 }
  0xbe   : > { %v605_v12 = vpop.permute.xlu1 %604  ;;  %v593_v13 = vpop.permute.xlu0 %592  ;;  %7641 = vmatpush3.bf16.msra.mxu0 %v8016_v1  ;;  %v2946_v1 = vld [vmem:[%s11142_s3 + $0x28] sm:$0xf] }
  0xbf   : > { %v613_v18 = vrot.slane %v605_v12, %v8379_v26  ;;  %v601_v19 = vrot.slane %v593_v13, %v8379_v26  ;;  %3066 = vperm.xlu1 %7950, %v2944_v7   ;;  %2324 = vperm.xlu0 %7949, %v2026_v9   ;;  %v791_v48 = vrot.slane %v8631_v22, 4  ;;  %v769_v7 = vsel %vm8404_vm2, %v767_v43, %v8615_v8 }
  0xc0   : > { %v541_v9 = vrot.slane %v8543_v30, %v8379_v26  ;;  %v978_v8 = vsel %vm965_vm3, %v975_v14, %v977_v55  ;;  %v2028_v30 = vld [vmem:[%s11141_s2 + $0x68] sm:$0xf]  ;;  %v8756_v5 = vrot.slane %v553_v37, 5  ;;  %v1236_v37 = vld [vmem:[%s11142_s3 + $0x70] sm:$0xf] }
  0xc1   : > { %v792_v27 = vrot.slane %v601_v19, 5  ;;  %v795_v32 = vrot.slane %v613_v18, 5  ;;  %6202 = vmatmul.mubr.bf16.gmra.mrb[16].mxu0 %v976_v33  ;;  %v8701_v18 = vrot.slane %v529_v52, 5 }
  0xc2   : > { %v629_v34 = vpop.permute.xlu1 %628  ;;  %v617_v35 = vpop.permute.xlu0 %616  ;;  %6209 = vmatprep.mubr.bf16.mxu0 %v7972_v23  ;;  %v8705_v23 = vcombine.low %v863_v6, %v864_v63  ;;  %v773_v63 = vrot.slane %v8652_v39, 4 }
  0xc3   : > { %v794_v40 = vrot.slane %v792_v27, 4  ;;  %v637_v42 = vrot.slane %v629_v34, %v8379_v26  ;;  %2336 = vperm.xlu1 %7950, %v2027_v20   ;;  %v625_v50 = vrot.slane %v617_v35, %v8379_v26  ;;  %1530 = vperm.xlu0 %7949, %v1232_v15   ;;  %v797_v56 = vrot.slane %v795_v32, 4  ;;  %v2029_v35 = vld [vmem:[%s11141_s2 + $0x6c] sm:$0xf] }
  0xc4   : > { %v793_v57 = vsel %vm8404_vm2, %v791_v48, %v792_v27  ;;  %v979_v46 = vrot.slane %v8705_v23, 3  ;;  %v776_v52 = vrot.slane %v8701_v18, 4  ;;  %v258_v23 = vld [vmem:[%s8240_s28 + $0x54] sm:$0xf] }
  0xc5   : > { %v796_v53 = vsel %vm8404_vm2, %v794_v40, %v795_v32  ;;  %v798_v58 = vrot.slane %v625_v50, 5  ;;  %v801_v31 = vrot.slane %v637_v42, 5  ;;  %v873_v12 = vmul.bf16 %v793_v57, %v261_v49  ;;  %v253_v32 = vld [vmem:[%s8240_s28 + $0x40] sm:$0xf] }
  0xc6   : > { %v653_v59 = vpop.permute.xlu1 %652  ;;  %v641_v60 = vpop.permute.xlu0 %640  ;;  %v874_v4 = vmul.bf16 %v796_v53, %v262_v41  ;;  %v1234_v41 = vld [vmem:[%s11142_s3 + $0x68] sm:$0xf]  ;;  %v865_v51 = vmul.bf16 %v769_v7, %v253_v32  ;;  %v1235_v53 = vld [vmem:[%s11142_s3 + $0x6c] sm:$0xf]  ;;  %v980_v6 = vsel %vm965_vm3, %v977_v55, %v979_v46  ;;  %v577_v55 = vrot.slane %v8598_v61, %v8379_v26  ;;  %v2948_v61 = vld [vmem:[%s11142_s3 + $0x30] sm:$0xf] }
  0xc7   : > { %v661_v2 = vrot.slane %v653_v59, %v8379_v26  ;;  %v649_v3 = vrot.slane %v641_v60, %v8379_v26  ;;  %1542 = vperm.xlu1 %7950, %v1233_v36   ;;  %v800_v10 = vrot.slane %v798_v58, 4  ;;  %3078 = vperm.xlu0 %7949, %v2945_v54   ;;  %v799_v13 = vsel %vm8404_vm2, %v797_v56, %v798_v58  ;;  %v2947_v54 = vld [vmem:[%s11142_s3 + $0x2c] sm:$0xf]  ;;  %v7975_v60 = vld [vmem:[%s8240_s28 + $0x3c] sm:$0xff]  }
  0xc8   : > { %v803_v24 = vrot.slane %v801_v31, 4  ;;  %v8710_v15 = vcombine.low %v873_v12, %v874_v4  ;;  %v875_v33 = vmul.bf16 %v799_v13, %v263_v0  ;;  %v256_v4 = vld [vmem:[%s8240_s28 + $0x4c] sm:$0xf]  ;;  %v267_v13 = vld [vmem:[%s8240_s28 + $0x78] sm:$0xf]  ;;  %v782_v32 = vrot.slane %v8756_v5, 4 }
  0xc9   : > { %v804_v16 = vrot.slane %v649_v3, 5  ;;  %v802_v19 = vsel %vm8404_vm2, %v800_v10, %v801_v31  ;;  %v8708_v14 = vrot.slane %v661_v2, 5  ;;  %6210 = vmatmul.mubr.bf16.gmra.mrb[20].mxu0 %v978_v8  ;;  %v8748_v31 = vrot.slane %v541_v9, 5  ;;  %v7976_v2 = vld [vmem:[%s8240_s28 + $0x6c] sm:$0xff]   ;;  %v268_v8 = vld [vmem:[%s8240_s28 + $0x7c] sm:$0xf] }
  0xca   : > { %v677_v20 = vpop.permute.xlu1 %676  ;;  %v665_v21 = vpop.permute.xlu0 %664  ;;  %6217 = vmatprep.mubr.bf16.mxu0 %v7973_v11  ;;  %v876_v36 = vmul.bf16 %v802_v19, %v264_v17  ;;  %v989_v58 = vrot.slane %v8710_v15, 3  ;;  %v8753_v3 = vcombine.low %v865_v51, %v866_v62  ;;  %v255_v11 = vld [vmem:[%s8240_s28 + $0x48] sm:$0xf]  ;;  %v775_v17 = vsel %vm8404_vm2, %v773_v63, %v8701_v18  ;;  %v7987_v63 = vld [vmem:[%s11140_s1 + $0x90] sm:$0xff]  }
  0xcb   : > { %v806_v27 = vrot.slane %v804_v16, 4  ;;  %3090 = vperm.xlu1 %7950, %v2946_v1   ;;  %v673_v34 = vrot.slane %v665_v21, %v8379_v26  ;;  %2348 = vperm.xlu0 %7949, %v2028_v30   ;;  %v805_v40 = vsel %vm8404_vm2, %v803_v24, %v804_v16  ;;  %v685_v25 = vrot.slane %v677_v20, %v8379_v26  ;;  %v7982_v1 = vld [vmem:[%s11140_s1 + $0x80] sm:$0xff]   ;;  %v7983_v30 = vld [vmem:[%s11140_s1 + $0xc8] sm:$0xff]   ;;  %v2030_v21 = vld [vmem:[%s11141_s2 + $0x70] sm:$0xf] }
  0xcc   : > { %v8735_v49 = vcombine.low %v875_v33, %v876_v36  ;;  %v877_v56 = vmul.bf16 %v805_v40, %v265_v38  ;;  %v778_v28 = vsel %vm8404_vm2, %v776_v52, %v8748_v31  ;;  %v809_v12 = vrot.slane %v8708_v14, 4  ;;  %v2031_v36 = vld [vmem:[%s11141_s2 + $0x74] sm:$0xf] }
  0xcd   : > { %v808_v42 = vsel %vm8404_vm2, %v806_v27, %v8708_v14  ;;  %v810_v43 = vrot.slane %v673_v34, 5  ;;  %v8750_v0 = vrot.slane %v685_v25, 5  ;;  %v565_v19 = vrot.slane %v8569_v45, %v8379_v26  ;;  %v7978_v25 = vld [vmem:[%s8240_s28 + $0x74] sm:$0xff]  }
  0xce   : > { %v8730_v47 = vpop.permute.xlu1 %1254  ;;  %v8732_v48 = vpop.permute.xlu0 %1242  ;;  %v878_v50 = vmul.bf16 %v808_v42, %v266_v29  ;;  %v991_v59 = vrot.slane %v8735_v49, 3  ;;  %v981_v62 = vrot.slane %v8753_v3, 3  ;;  %v868_v27 = vmul.bf16 %v778_v28, %v256_v4  ;;  %v7984_v29 = vld [vmem:[%s11140_s1 + $0x88] sm:$0xff]   ;;  %v260_v28 = vld [vmem:[%s8240_s28 + $0x5c] sm:$0xf] }
  0xcf   : > { %2360 = vperm.xlu1 %7950, %v2029_v35   ;;  %v812_v57 = vrot.slane %v810_v43, 4  ;;  %1554 = vperm.xlu0 %7949, %v1234_v41   ;;  %v811_v20 = vsel %vm8404_vm2, %v809_v12, %v810_v43  ;;  %v786_v33 = vrot.slane %v577_v55, 5  ;;  %v867_v34 = vmul.bf16 %v775_v17, %v255_v11  ;;  %v7977_v42 = vld [vmem:[%s8240_s28 + $0x44] sm:$0xff]   ;;  %v269_v41 = vld [vmem:[%s8240_s28 + $0x80] sm:$0x7] }
  0xd0   : > { %v992_v39 = vsel %vm965_vm3, %v989_v58, %v991_v59  ;;  %v8770_v10 = vcombine.low %v877_v56, %v878_v50  ;;  %v879_v35 = vmul.bf16 %v811_v20, %v267_v13  ;;  %v783_v38 = vrot.slane %v565_v19, 5  ;;  %v257_v56 = vld [vmem:[%s8240_s28 + $0x50] sm:$0xf]  ;;  %v2950_v12 = vld [vmem:[%s11142_s3 + $0x38] sm:$0xf]  ;;  %v7980_v19 = vld [vmem:[%s8240_s28 + $0x7c] sm:$0xff]  }
  0xd1   : > { %v814_v16 = vsel %vm8404_vm2, %v812_v57, %v8750_v0  ;;  %6218 = vmatmul.mubr.bf16.gmra.mrb[24].mxu0 %v980_v6  ;;  %6266 = vmatmul.mubr.bf16.vlgmr.msra.gmra.mrb[0].mxu1 %v992_v39  ;;  %v982_v40 = vsel %vm965_vm3, %v979_v46, %v981_v62  ;;  %v815_v43 = vrot.slane %v8750_v0, 4  ;;  %v8835_v52 = vcombine.low %v867_v34, %v868_v27  ;;  %v7986_v46 = vld [vmem:[%s11140_s1 + $0xd0] sm:$0xff]   ;;  %v2032_v13 = vld [vmem:[%s11141_s2 + $0x78] sm:$0xf] }
  0xd2   : > { %v8766_v7 = vpop.permute.xlu1 %1278  ;;  %v8768_v9 = vpop.permute.xlu0 %1266  ;;  %6225 = vmatprep.mubr.bf16.mxu0 %v7975_v60  ;;  %6273 = vmatprep.mubr.bf16.mxu1 %v7976_v2  ;;  %v993_v18 = vrot.slane %v8770_v10, 3  ;;  %v880_v45 = vmul.bf16 %v814_v16, %v268_v8  ;;  %v784_v57 = vsel %vm8404_vm2, %v782_v32, %v783_v38  ;;  %v1237_v60 = vld [vmem:[%s11142_s3 + $0x74] sm:$0xf]  ;;  %v7988_v2 = vld [vmem:[%s11140_s1 + $0xd8] sm:$0xff]   ;;  %v785_v55 = vrot.slane %v783_v38, 4  ;;  %v7991_v10 = vld [vmem:[%s11140_s1 + $0xe0] sm:$0xff]  }
  0xd3   : > { %1566 = vperm.xlu1 %7950, %v1235_v53   ;;  %3102 = vperm.xlu0 %7949, %v2947_v54   ;;  %v779_v54 = vrot.slane %v8748_v31, 4  ;;  %v2949_v0 = vld [vmem:[%s11142_s3 + $0x34] sm:$0xf]  ;;  %v881_v4 = vmul.bf16 %v815_v43, %v269_v41  ;;  %v870_v11 = vmul.bf16 %v784_v57, %v258_v23  ;;  %v1251_v17 = vrot.slane %v8732_v48, %v8379_v26  ;;  %v259_v20 = vld [vmem:[%s8240_s28 + $0x58] sm:$0xf]  ;;  %v7993_v23 = vld [vmem:[%s11140_s1 + $0xe8] sm:$0xff]  }
  0xd4   : > { %7515 = vmatpush3.bf16.msra.mxu1 %v7982_v1  ;;  %v994_v49 = vsel %vm965_vm3, %v991_v59, %v993_v18  ;;  %v8837_v53 = vcombine.low %v879_v35, %v880_v45  ;;  %v788_v59 = vrot.slane %v786_v33, 4  ;;  %v983_v1 = vrot.slane %v8835_v52, 3  ;;  %v7989_v48 = vld [vmem:[%s11140_s1 + $0x98] sm:$0xff]   ;;  %v7992_v35 = vld [vmem:[%s11140_s1 + $0xa0] sm:$0xff]  }
  0xd5   : > { %7516 = vmatprep.subr.bf16.mxu1 %v7983_v30  ;;  %v781_v31 = vsel %vm8404_vm2, %v779_v54, %v8756_v5  ;;  %v7979_v30 = vld [vmem:[%s8240_s28 + $0x4c] sm:$0xff]   ;;  %v7193_v32 = vcombine.low %v881_v4, %v881_v4  ;;  %v1238_v34 = vld [vmem:[%s11142_s3 + $0x78] sm:$0xf] }
  0xd6   : > { %v8804_v24 = vpop.permute.xlu1 %1302  ;;  %v8806_v14 = vpop.permute.xlu0 %1290  ;;  %v995_v5 = vrot.slane %v8837_v53, 3  ;;  %v869_v16 = vmul.bf16 %v781_v31, %v257_v56  ;;  %v790_v8 = vsel %vm8404_vm2, %v788_v59, %v8631_v22  ;;  %v7985_v53 = vld [vmem:[%s8240_s28 + $0x54] sm:$0xff]   ;;  %v8950_v31 = vld [vmem:[%s8240_s28 + $0x8] sm:$0xf] }
  0xd7   : > { %3114 = vperm.xlu1 %7950, %v2948_v61   ;;  %2372 = vperm.xlu0 %7949, %v2030_v21   ;;  %v787_v61 = vsel %vm8404_vm2, %v785_v55, %v786_v33  ;;  %v984_v21 = vsel %vm965_vm3, %v981_v62, %v983_v1  ;;  %v872_v3 = vmul.bf16 %v790_v8, %v260_v28  ;;  %v2033_v33 = vld [vmem:[%s11141_s2 + $0x7c] sm:$0xf]  ;;  %v7995_v4 = vld [vmem:[%s11140_s1 + $0xf0] sm:$0xff]   ;;  %v2953_v28 = vld [vmem:[%s11142_s3 + $0x44] sm:$0xf] }
  0xd8   : > { %7517 = vmatpush3.bf16.msra.mxu1 %v7984_v29  ;;  %v996_v22 = vsel %vm965_vm3, %v993_v18, %v995_v5  ;;  %v8895_v29 = vcombine.low %v869_v16, %v870_v11  ;;  %v871_v62 = vmul.bf16 %v787_v61, %v259_v20  ;;  %v8903_v18 = vrot.slane %v1251_v17, 7  ;;  %v2952_v55 = vld [vmem:[%s11142_s3 + $0x40] sm:$0xf]  ;;  %v7996_v20 = vld [vmem:[%s11140_s1 + $0xb0] sm:$0xff]  }
  0xd9   : > { %6226 = vmatmul.mubr.bf16.gmra.mrb[28].mxu0 %v982_v40  ;;  %6274 = vmatmul.mubr.bf16.gmra.mrb[4].mxu1 %v994_v49  ;;  %v997_v40 = vrot.slane %v7193_v32, 3  ;;  %v2951_v49 = vld [vmem:[%s11142_s3 + $0x3c] sm:$0xf]  ;;  %v1287_v8 = vrot.slane %v8766_v7, %v8379_v26 }
  0xda   : > { %v8831_v50 = vpop.permute.xlu1 %1326  ;;  %v8833_v51 = vpop.permute.xlu0 %1314  ;;  %6233 = vmatprep.mubr.bf16.mxu0 %v7977_v42  ;;  %6281 = vmatprep.mubr.bf16.mxu1 %v7978_v25  ;;  %v985_v38 = vrot.slane %v8895_v29, 3  ;;  %v1263_v42 = vrot.slane %v8730_v47, %v8379_v26  ;;  %v1239_v25 = vld [vmem:[%s11142_s3 + $0x7c] sm:$0xf]  ;;  %v7188_v41 = vcombine.low %v871_v62, %v872_v3  ;;  %v1660_v52 = vrot.slane %v8903_v18, 4  ;;  %v2954_v29 = vld [vmem:[%s11142_s3 + $0x48] sm:$0xf] }
  0xdb   : > { %2384 = vperm.xlu1 %7950, %v2031_v36   ;;  %1578 = vperm.xlu0 %7949, %v1236_v37   ;;  %v1275_v47 = vrot.slane %v8768_v9, %v8379_v26  ;;  %v998_v56 = vsel %vm965_vm3, %v995_v5, %v997_v40  ;;  %v7994_v9 = vld [vmem:[%s11140_s1 + $0xa8] sm:$0xff]   ;;  %v7990_v40 = vld [vmem:[%s8240_s28 + $0x5c] sm:$0xff]  }
  0xdc   : > { %7518 = vmatprep.subr.bf16.mxu1 %v7986_v46  ;;  %v986_v54 = vsel %vm965_vm3, %v983_v1, %v985_v38  ;;  %v1175_v1 = vld [vmem:[%s8240_s28 + $0x4] sm:$0xe] }
  0xdd   : > { %7519 = vmatpush3.bf16.msra.mxu1 %v7987_v63  ;;  %v8947_v63 = vrot.slane %v1263_v42, 7  ;;  %v1787_v15 = vmul.bf16 %v8903_v18, %v1175_v1  ;;  %v1667_v42 = vrot.slane %v1287_v8, 7 }
  0xde   : > { %v8862_v6 = vpop.permute.xlu1 %1350  ;;  %v8864_v39 = vpop.permute.xlu0 %1338  ;;  %7520 = vmatprep.subr.bf16.mxu1 %v7988_v2  ;;  %v987_v2 = vrot.slane %v7188_v41, 3 }
  0xdf   : > { %1590 = vperm.xlu1 %7950, %v1237_v60   ;;  %3126 = vperm.xlu0 %7949, %v2949_v0   ;;  %v8945_v60 = vld [vmem:[%s11140_s1 + $0x200] sm:$0xff]   ;;  %v1663_v3 = vrot.slane %v8947_v63, 4 }
  0xe0   : > { %7874 = vmatprep.subr.bf16.mxu0 %v8945_v60  ;;  %v988_v7 = vsel %vm965_vm3, %v985_v38, %v987_v2  ;;  %v8989_v32 = vsel %vm965_vm3, %v987_v2, %v989_v58  ;;  %v1311_v2 = vrot.slane %v8804_v24, %v8379_v26  ;;  %v3727_v24 = vld [vmem:[%s11141_s2 + $0x4] sm:$0xf] }
  0xe1   : > { %6234 = vmatmul.mubr.bf16.gmra.mrb[32].mxu0 %v984_v21  ;;  %6282 = vmatmul.mubr.bf16.gmra.mrb[8].mxu1 %v996_v22 }
  0xe2   : > { %v8891_v27 = vpop.permute.xlu1 %1374  ;;  %v8893_v45 = vpop.permute.xlu0 %1362  ;;  %6241 = vmatprep.mubr.bf16.mxu0 %v7979_v30  ;;  %6289 = vmatprep.mubr.bf16.mxu1 %v7980_v19  ;;  %v1299_v30 = vrot.slane %v8806_v14, %v8379_v26  ;;  %v3726_v14 = vld [vmem:[%s11141_s2] sm:$0xf] }
  0xe3   : > { %3138 = vperm.xlu1 %7950, %v2950_v12   ;;  %2396 = vperm.xlu0 %7949, %v2032_v13   ;;  %v1662_v12 = vsel %vm8933_vm6, %v1660_v52, %v8947_v63  ;;  %v1664_v13 = vrot.slane %v1275_v47, 7  ;;  %v8000_v47 = vld [vmem:[%s11140_s1 + $0xb8] sm:$0xff]  }
  0xe4   : > { %7521 = vmatpush3.bf16.msra.mxu1 %v7989_v48  ;;  %v7999_v48 = vld [vmem:[%s11140_s1 + $0xf8] sm:$0xff]   ;;  %v1670_v41 = vrot.slane %v1299_v30, 7 }
  0xe5   : > { %7522 = vmatprep.subr.bf16.mxu1 %v7991_v10  ;;  %v1788_v10 = vmul.bf16 %v1662_v12, %v8950_v31  ;;  %v1666_v58 = vrot.slane %v1664_v13, 4  ;;  %v1178_v31 = vld [vmem:[%s8240_s28 + $0x10] sm:$0xf] }
  0xe6   : > { %v1399_v36 = vpop.permute.xlu1 %1398  ;;  %v8914_v37 = vpop.permute.xlu0 %1386  ;;  %v1672_v12 = vrot.slane %v1670_v41, 4 }
  0xe7   : > { %v1407_v43 = vrot.slane %v1399_v36, %v8379_v26  ;;  %2408 = vperm.xlu1 %7950, %v2033_v33   ;;  %1602 = vperm.xlu0 %7949, %v1238_v34   ;;  %v1191_v36 = vld [vmem:[%s8240_s28 + $0x44] sm:$0xf]  ;;  %v9023_v63 = vcombine.low %v1787_v15, %v1788_v10  ;;  %v1323_v10 = vrot.slane %v8833_v51, %v8379_v26  ;;  %v3729_v15 = vld [vmem:[%s11141_s2 + $0xc] sm:$0xf] }
  0xe8   : > { %7523 = vmatpush3.bf16.msra.mxu1 %v7992_v35  ;;  %v1189_v35 = vld [vmem:[%s8240_s28 + $0x3c] sm:$0xf] }
  0xe9   : > { %6242 = vmatmul.mubr.bf16.gmra.mrb[36].mxu0 %v986_v54  ;;  %6290 = vmatmul.mubr.bf16.gmra.mrb[12].mxu1 %v998_v56  ;;  %v8957_v5 = vrot.slane %v1407_v43, 7 }
  0xea   : > { %v1423_v57 = vpop.permute.xlu1 %1422  ;;  %v1411_v59 = vpop.permute.xlu0 %1410  ;;  %6249 = vmatprep.mubr.bf16.mxu0 %v7985_v53  ;;  %7524 = vmatprep.subr.bf16.mxu1 %v7993_v23  ;;  %v1190_v53 = vld [vmem:[%s8240_s28 + $0x40] sm:$0xf] }
  0xeb   : > { %v1431_v0 = vrot.slane %v1423_v57, %v8379_v26  ;;  %v1419_v11 = vrot.slane %v1411_v59, %v8379_v26  ;;  %1614 = vperm.xlu1 %7950, %v1239_v25   ;;  %3150 = vperm.xlu0 %7949, %v2951_v49   ;;  %v1699_v62 = vrot.slane %v8957_v5, 4  ;;  %v9002_v25 = vld [vmem:[%s8240_s28 + $0xc] sm:$0xf]  ;;  %v8009_v59 = vld [vmem:[%s11140_s1 + $0x1c0] sm:$0xff]  }
  0xec   : > { %7525 = vmatpush3.bf16.msra.mxu1 %v7994_v9  ;;  %v1192_v9 = vld [vmem:[%s8240_s28 + $0x48] sm:$0xf] }
  0xed   : > { %v1703_v16 = vrot.slane %v1431_v0, 7  ;;  %v1700_v61 = vrot.slane %v1419_v11, 7  ;;  %7526 = vmatprep.subr.bf16.mxu1 %v7995_v4  ;;  %v1665_v0 = vsel %vm8933_vm6, %v1663_v3, %v1664_v13  ;;  %v1668_v4 = vsel %vm8933_vm6, %v1666_v58, %v1667_v42  ;;  %v2955_v58 = vld [vmem:[%s11142_s3 + $0x4c] sm:$0xf] }
  0xee   : > { %v1447_v17 = vpop.permute.xlu1 %1446  ;;  %v1435_v19 = vpop.permute.xlu0 %1434 }
  0xef   : > { %v1455_v21 = vrot.slane %v1447_v17, %v8379_v26  ;;  %v1443_v22 = vrot.slane %v1435_v19, %v8379_v26  ;;  %v1702_v33 = vrot.slane %v1700_v61, 4  ;;  %3174 = vperm.xlu1 %7950, %v2953_v28   ;;  %3162 = vperm.xlu0 %7949, %v2952_v55   ;;  %v1705_v34 = vrot.slane %v1703_v16, 4  ;;  %v3728_v28 = vld [vmem:[%s11141_s2 + $0x8] sm:$0xf] }
  0xf0   : > { %v1701_v43 = vsel %vm8933_vm6, %v1699_v62, %v1700_v61  ;;  %7527 = vmatpush3.bf16.msra.mxu1 %v7996_v20  ;;  %v1669_v17 = vrot.slane %v1667_v42, 4  ;;  %v1789_v19 = vmul.bf16 %v1665_v0, %v9002_v25  ;;  %v1970_v42 = vld [vmem:[%s8240_s28 + $0x14] sm:$0xf]  ;;  %v2956_v0 = vld [vmem:[%s11142_s3 + $0x50] sm:$0xf] }
  0xf1   : > { %v1706_v38 = vrot.slane %v1443_v22, 7  ;;  %v1704_v49 = vsel %vm8933_vm6, %v1702_v33, %v1703_v16  ;;  %v9014_v23 = vrot.slane %v1455_v21, 7  ;;  %6250 = vmatmul.mubr.bf16.gmra.mrb[40].mxu0 %v988_v7  ;;  %7528 = vmatprep.subr.bf16.mxu1 %v7999_v48  ;;  %v1801_v13 = vmul.bf16 %v1701_v43, %v1189_v35 }
  0xf2   : > { %v2037_v18 = vpop.permute.xlu1 %2036  ;;  %v9008_v52 = vpop.permute.xlu0 %1458  ;;  %6257 = vmatprep.mubr.bf16.mxu0 %v7990_v40  ;;  %v1802_v55 = vmul.bf16 %v1704_v49, %v1190_v53  ;;  %v1790_v22 = vmul.bf16 %v1668_v4, %v1178_v31  ;;  %v9046_v7 = vrot.slane %v1311_v2, 7  ;;  %v9057_v3 = vsel %vm8933_vm6, %v1669_v17, %v1670_v41  ;;  %v1180_v49 = vld [vmem:[%s8240_s28 + $0x18] sm:$0xf]  ;;  %v3730_v31 = vld [vmem:[%s11141_s2 + $0x10] sm:$0xf] }
  0xf3   : > { %v1707_v54 = vsel %vm8933_vm6, %v1705_v34, %v1706_v38  ;;  %v1708_v56 = vrot.slane %v1706_v38, 4  ;;  %v2045_v57 = vrot.slane %v2037_v18, %v8379_v26  ;;  %3760 = vperm.xlu1 %7950, %v3726_v14   ;;  %3186 = vperm.xlu0 %7949, %v2954_v29   ;;  %v9049_v14 = vld [vmem:[%s8240_s28 + $0x14] sm:$0xf]  ;;  %v1904_v34 = vrot.slane %v9023_v63, 1 }
  0xf4   : > { %v1803_v16 = vmul.bf16 %v1707_v54, %v1191_v36  ;;  %7529 = vmatpush3.bf16.msra.mxu1 %v8000_v47  ;;  %v9051_v29 = vcombine.low %v1801_v13, %v1802_v55  ;;  %v1674_v35 = vsel %vm8933_vm6, %v1672_v12, %v9046_v7  ;;  %v9080_v47 = vcombine.low %v1789_v19, %v1790_v22 }
  0xf5   : > { %v1710_v1 = vsel %vm8933_vm6, %v1708_v56, %v9014_v23  ;;  %v9035_v11 = vrot.slane %v2045_v57, 5  ;;  %7738 = vmatprep.subr.bf16.mxu1 %v8009_v59  ;;  %v1675_v53 = vrot.slane %v9046_v7, 4  ;;  %v1791_v54 = vmul.bf16 %v9057_v3, %v9049_v14  ;;  %v1969_v56 = vld [vmem:[%s8240_s28 + $0x10] sm:$0x8] }
  0xf6   : > { %v2061_v8 = vpop.permute.xlu1 %2060  ;;  %v2049_v30 = vpop.permute.xlu0 %2048  ;;  %v1804_v61 = vmul.bf16 %v1710_v1, %v1192_v9  ;;  %v1917_v18 = vrot.slane %v9051_v29, 1  ;;  %v9089_v59 = vrot.slane %v1323_v10, 7  ;;  %v1972_v1 = vld [vmem:[%s8240_s28 + $0x1c] sm:$0xf]  ;;  %v1792_v12 = vmul.bf16 %v1674_v35, %v1180_v49 }
  0xf7   : > { %v2069_v20 = vrot.slane %v2061_v8, %v8379_v26  ;;  %v2057_v21 = vrot.slane %v2049_v30, %v8379_v26  ;;  %3784 = vperm.xlu1 %7950, %v3728_v28   ;;  %3772 = vperm.xlu0 %7949, %v3727_v24   ;;  %v2451_v62 = vrot.slane %v9035_v11, 4  ;;  %v1347_v13 = vrot.slane %v8864_v39, %v8379_v26  ;;  %v3731_v39 = vld [vmem:[%s11141_s2 + $0x14] sm:$0xf] }
  0xf8   : > { %v9053_v48 = vcombine.low %v1803_v16, %v1804_v61  ;;  %v1971_v61 = vld [vmem:[%s8240_s28 + $0x18] sm:$0xf]  ;;  %v2578_v17 = vmul.bf16 %v9035_v11, %v1969_v56  ;;  %v1905_v22 = vrot.slane %v9080_v47, 1  ;;  %v1678_v14 = vrot.slane %v9089_v59, 4  ;;  %v2957_v11 = vld [vmem:[%s11142_s3 + $0x54] sm:$0xf] }
  0xf9   : > { %v2452_v33 = vrot.slane %v2057_v21, 5  ;;  %v2455_v51 = vrot.slane %v2069_v20, 5  ;;  %6258 = vmatmul.mubr.bf16.gmra.mrb[44].mxu0 %v8989_v32  ;;  %v1335_v32 = vrot.slane %v8831_v50, %v8379_v26  ;;  %v1974_v21 = vld [vmem:[%s8240_s28 + $0x24] sm:$0xf] }
  0xfa   : > { %v2085_v36 = vpop.permute.xlu1 %2084  ;;  %v2073_v38 = vpop.permute.xlu0 %2072  ;;  %v1919_v40 = vrot.slane %v9053_v48, 1  ;;  %v3735_v47 = vld [vmem:[%s11141_s2 + $0x24] sm:$0xf] }
  0xfb   : > { %v2453_v25 = vsel %vm8404_vm2, %v2451_v62, %v2452_v33  ;;  %v2454_v41 = vrot.slane %v2452_v33, 4  ;;  %v2093_v43 = vrot.slane %v2085_v36, %v8379_v26  ;;  %v2081_v57 = vrot.slane %v2073_v38, %v8379_v26  ;;  %3796 = vperm.xlu1 %7950, %v3729_v15   ;;  %3198 = vperm.xlu0 %7949, %v2955_v58   ;;  %v1973_v38 = vld [vmem:[%s8240_s28 + $0x20] sm:$0xf] }
  0xfc   : > { %v9102_v2 = vsel %vm1903_vm7, %v1917_v18, %v1919_v40  ;;  %v2457_v50 = vrot.slane %v2455_v51, 4  ;;  %v2579_v4 = vmul.bf16 %v2453_v25, %v1970_v42  ;;  %v9132_v49 = vrot.slane %v1335_v32, 7 }
  0xfd   : > { %v2461_v9 = vrot.slane %v2093_v43, 5  ;;  %v2458_v28 = vrot.slane %v2081_v57, 5  ;;  %v2456_v16 = vsel %vm8404_vm2, %v2454_v41, %v2455_v51  ;;  %v9130_v43 = vcombine.low %v1791_v54, %v1792_v12  ;;  %v2958_v54 = vld [vmem:[%s11142_s3 + $0x58] sm:$0xf] }
  0xfe   : > { %v2109_v24 = vpop.permute.xlu1 %2108  ;;  %v2097_v55 = vpop.permute.xlu0 %2096  ;;  %v2580_v51 = vmul.bf16 %v2456_v16, %v1971_v61  ;;  %v7227_v36 = vcombine.low %v2578_v17, %v2579_v4  ;;  %v1906_v32 = vsel %vm1903_vm7, %v1904_v34, %v1905_v22  ;;  %v9160_v61 = vld [vmem:[%s8240_s28 + $0x20] sm:$0xf] }
  0xff   : > { %v2117_v8 = vrot.slane %v2109_v24, %v8379_v26  ;;  %v2105_v30 = vrot.slane %v2097_v55, %v8379_v26  ;;  %v2459_v19 = vsel %vm8404_vm2, %v2457_v50, %v2458_v28  ;;  %v2460_v20 = vrot.slane %v2458_v28, 4  ;;  %3808 = vperm.xlu1 %7950, %v3730_v31   ;;  %3210 = vperm.xlu0 %7949, %v2956_v0   ;;  %v3732_v50 = vld [vmem:[%s11141_s2 + $0x18] sm:$0xf]  ;;  %v1976_v28 = vld [vmem:[%s8240_s28 + $0x2c] sm:$0xf]  ;;  %v8010_v17 = vld [vmem:[%s11140_s1 + $0x180] sm:$0xff]  }
 0x100   : > { %v2463_v3 = vrot.slane %v2461_v9, 4  ;;  %v2581_v10 = vmul.bf16 %v2459_v19, %v1972_v1  ;;  %v9135_v31 = vrot.slane %v1347_v13, 7  ;;  %v2694_v13 = vrot.slane %v7227_v36, 3 }
 0x101   : > { %v2464_v62 = vrot.slane %v2105_v30, 5  ;;  %v2462_v33 = vsel %vm8404_vm2, %v2460_v20, %v2461_v9  ;;  %v2467_v15 = vrot.slane %v2117_v8, 5  ;;  %v9152_v8 = vsel %vm8933_vm6, %v1678_v14, %v9132_v49  ;;  %v3733_v14 = vld [vmem:[%s11141_s2 + $0x1c] sm:$0xf] }
 0x102   : > { %v2133_v58 = vpop.permute.xlu1 %2132  ;;  %v2121_v35 = vpop.permute.xlu0 %2120  ;;  %v7228_v9 = vcombine.low %v2580_v51, %v2581_v10  ;;  %v2582_v4 = vmul.bf16 %v2462_v33, %v1973_v38  ;;  %v2959_v33 = vld [vmem:[%s11142_s3 + $0x5c] sm:$0xf]  ;;  %v1371_v51 = vrot.slane %v8893_v45, %v8379_v26 }
 0x103   : > { %v2465_v42 = vsel %vm8404_vm2, %v2463_v3, %v2464_v62  ;;  %v2466_v25 = vrot.slane %v2464_v62, 4  ;;  %v2141_v41 = vrot.slane %v2133_v58, %v8379_v26  ;;  %v2129_v57 = vrot.slane %v2121_v35, %v8379_v26  ;;  %3820 = vperm.xlu1 %7950, %v3731_v39   ;;  %3222 = vperm.xlu0 %7949, %v2957_v11   ;;  %v1975_v3 = vld [vmem:[%s8240_s28 + $0x28] sm:$0xf] }
 0x104   : > { %v2583_v56 = vmul.bf16 %v2465_v42, %v1974_v21  ;;  %v2469_v1 = vrot.slane %v2467_v15, 4  ;;  %v2695_v16 = vrot.slane %v7228_v9, 3  ;;  %v8018_v58 = vld [vmem:[%s11140_s1 + $0x1c8] sm:$0xff]   ;;  %v1359_v35 = vrot.slane %v8862_v6, %v8379_v26  ;;  %v1181_v42 = vld [vmem:[%s8240_s28 + $0x1c] sm:$0xf] }
 0x105   : > { %v2473_v0 = vrot.slane %v2141_v41, 5  ;;  %v2470_v24 = vrot.slane %v2129_v57, 5  ;;  %v2468_v30 = vsel %vm8404_vm2, %v2466_v25, %v2467_v15  ;;  %v1677_v25 = vsel %vm8933_vm6, %v1675_v53, %v9089_v59  ;;  %v1978_v41 = vld [vmem:[%s8240_s28 + $0x34] sm:$0xf]  ;;  %v8019_v57 = vld [vmem:[%s11140_s1 + $0x188] sm:$0xff]  }
 0x106   : > { %v2157_v55 = vpop.permute.xlu1 %2156  ;;  %v2145_v12 = vpop.permute.xlu0 %2144  ;;  %v9157_v34 = vcombine.low %v2582_v4, %v2583_v56  ;;  %v2696_v39 = vsel %vm965_vm3, %v2694_v13, %v2695_v16  ;;  %v1907_v56 = vrot.slane %v9130_v43, 1  ;;  %v2584_v45 = vmul.bf16 %v2468_v30, %v1975_v3  ;;  %v3734_v53 = vld [vmem:[%s11141_s2 + $0x20] sm:$0xf]  ;;  %v2961_v3 = vld [vmem:[%s11142_s3 + $0x64] sm:$0xf] }
 0x107   : > { %v2153_v63 = vrot.slane %v2145_v12, %v8379_v26  ;;  %v2475_v19 = vrot.slane %v2473_v0, 4  ;;  %v2471_v20 = vsel %vm8404_vm2, %v2469_v1, %v2470_v24  ;;  %v2165_v21 = vrot.slane %v2157_v55, %v8379_v26  ;;  %3832 = vperm.xlu1 %7950, %v3732_v50   ;;  %3234 = vperm.xlu0 %7949, %v2958_v54   ;;  %v1977_v50 = vld [vmem:[%s8240_s28 + $0x30] sm:$0xf]  ;;  %v2960_v1 = vld [vmem:[%s11142_s3 + $0x60] sm:$0xf] }
 0x108   : > { %v2472_v10 = vrot.slane %v2470_v24, 4  ;;  %v2585_v62 = vmul.bf16 %v2471_v20, %v1976_v28  ;;  %6330 = vmatprep.mubr.bf16.mxu1 %v2696_v39  ;;  %v2697_v15 = vrot.slane %v9157_v34, 3  ;;  %v1794_v59 = vmul.bf16 %v9152_v8, %v9160_v61  ;;  %v8021_v24 = vld [vmem:[%s11140_s1 + $0x1d0] sm:$0xff]   ;;  %v2963_v43 = vld [vmem:[%s11142_s3 + $0x6c] sm:$0xf] }
 0x109   : > { %v9173_v11 = vrot.slane %v2153_v63, 5  ;;  %6331 = vmatmul.mubr.bf16.vlgmr.msra.gmra.mrb[16].mxu1 %v1906_v32  ;;  %v1684_v54 = vrot.slane %v9135_v31, 4  ;;  %v2479_v4 = vrot.slane %v2165_v21, 5  ;;  %v1793_v55 = vmul.bf16 %v1677_v25, %v1181_v42  ;;  %v1184_v21 = vld [vmem:[%s8240_s28 + $0x28] sm:$0xf] }
 0x10a   : > { %v9186_v36 = vpop.permute.xlu1 %2180  ;;  %v2169_v38 = vpop.permute.xlu0 %2168  ;;  %7739 = vmatpush3.bf16.msra.mxu1 %v8010_v17  ;;  %v2698_v7 = vsel %vm965_vm3, %v2695_v16, %v2697_v15  ;;  %v2474_v32 = vsel %vm8404_vm2, %v2472_v10, %v2473_v0  ;;  %v9216_v28 = vcombine.low %v2584_v45, %v2585_v62  ;;  %v9221_v12 = vrot.slane %v1359_v35, 7  ;;  %v8022_v17 = vld [vmem:[%s11140_s1 + $0x190] sm:$0xff]   ;;  %v8024_v10 = vld [vmem:[%s11140_s1 + $0x1d8] sm:$0xff]   ;;  %v1183_v62 = vld [vmem:[%s8240_s28 + $0x24] sm:$0xf] }
 0x10b   : > { %v2477_v6 = vsel %vm8404_vm2, %v2475_v19, %v9173_v11  ;;  %v2177_v9 = vrot.slane %v2169_v38, %v8379_v26  ;;  %3844 = vperm.xlu1 %7950, %v3733_v14   ;;  %3246 = vperm.xlu0 %7949, %v2959_v33   ;;  %v1688_v13 = vrot.slane %v1371_v51, 7  ;;  %v1383_v30 = vrot.slane %v8891_v27, %v8379_v26  ;;  %v1980_v38 = vld [vmem:[%s8240_s28 + $0x3c] sm:$0xf] }
 0x10c   : > { %6338 = vmatprep.mubr.bf16.mxu1 %v2698_v7  ;;  %7740 = vmatprep.subr.bf16.mxu1 %v8018_v58  ;;  %v2587_v16 = vmul.bf16 %v2477_v6, %v1978_v41  ;;  %v1908_v34 = vsel %vm1903_vm7, %v1905_v22, %v1907_v56  ;;  %v2699_v61 = vrot.slane %v9216_v28, 3  ;;  %v1681_v19 = vrot.slane %v9132_v49, 4  ;;  %v1979_v41 = vld [vmem:[%s8240_s28 + $0x38] sm:$0xf]  ;;  %v8034_v28 = vld [vmem:[%s11140_s1 + $0x1a8] sm:$0xff]  }
 0x10d   : > { %v9227_v63 = vrot.slane %v2177_v9, 5  ;;  %v1395_v27 = vrot.slane %v8914_v37, %v8379_v26  ;;  %v9244_v22 = vcombine.low %v1793_v55, %v1794_v59  ;;  %v2586_v20 = vmul.bf16 %v2474_v32, %v1977_v50  ;;  %v2962_v50 = vld [vmem:[%s11142_s3 + $0x68] sm:$0xf] }
 0x10e   : > { %v9223_v0 = vpop.permute.xlu1 %2204  ;;  %v2193_v8 = vpop.permute.xlu0 %2192  ;;  %7741 = vmatpush3.bf16.msra.mxu1 %v8019_v57  ;;  %v1686_v39 = vsel %vm8933_vm6, %v1684_v54, %v9221_v12  ;;  %v2481_v14 = vrot.slane %v2479_v4, 4  ;;  %v2478_v49 = vrot.slane %v9173_v11, 4  ;;  %v2189_v37 = vrot.slane %v9186_v36, %v8379_v26  ;;  %v8028_v54 = vld [vmem:[%s11140_s1 + $0x1e0] sm:$0xff]  }
 0x10f   : > { %3856 = vperm.xlu1 %7950, %v3734_v53   ;;  %3258 = vperm.xlu0 %7949, %v2960_v1   ;;  %v1690_v33 = vrot.slane %v1688_v13, 4  ;;  %v2700_v11 = vsel %vm965_vm3, %v2697_v15, %v2699_v61  ;;  %v9267_v51 = vcombine.low %v2586_v20, %v2587_v16  ;;  %v1683_v36 = vsel %vm8933_vm6, %v1681_v19, %v9135_v31  ;;  %v8025_v15 = vld [vmem:[%s11140_s1 + $0x198] sm:$0xff]   ;;  %v3736_v31 = vld [vmem:[%s11141_s2 + $0x28] sm:$0xf]  ;;  %v1186_v16 = vld [vmem:[%s8240_s28 + $0x30] sm:$0xf] }
 0x110   : > { %7742 = vmatprep.subr.bf16.mxu1 %v8021_v24  ;;  %v2483_v42 = vsel %vm8404_vm2, %v2481_v14, %v9227_v63  ;;  %v2201_v25 = vrot.slane %v2193_v8, %v8379_v26  ;;  %v1691_v6 = vrot.slane %v1383_v30, 7  ;;  %v1694_v45 = vrot.slane %v1395_v27, 7 }
 0x111   : > { %6339 = vmatmul.mubr.bf16.gmra.mrb[20].mxu1 %v1908_v34  ;;  %v1909_v57 = vrot.slane %v9244_v22, 1  ;;  %v1796_v9 = vmul.bf16 %v1686_v39, %v1184_v21  ;;  %v1687_v7 = vrot.slane %v9221_v12, 4  ;;  %v2480_v53 = vsel %vm8404_vm2, %v2478_v49, %v2479_v4  ;;  %v8030_v34 = vld [vmem:[%s11140_s1 + $0x1a0] sm:$0xff]   ;;  %v8032_v49 = vld [vmem:[%s11140_s1 + $0x1e8] sm:$0xff]  }
 0x112   : > { %v9263_v58 = vpop.permute.xlu1 %2228  ;;  %v9265_v35 = vpop.permute.xlu0 %2216  ;;  %6346 = vmatprep.mubr.bf16.mxu1 %v2700_v11  ;;  %7743 = vmatpush3.bf16.msra.mxu1 %v8022_v17  ;;  %v2485_v59 = vrot.slane %v2189_v37, 5  ;;  %v1795_v32 = vmul.bf16 %v1683_v36, %v1183_v62  ;;  %v1692_v1 = vsel %vm8933_vm6, %v1690_v33, %v1691_v6  ;;  %v2589_v24 = vmul.bf16 %v2483_v42, %v1980_v38  ;;  %v1185_v17 = vld [vmem:[%s8240_s28 + $0x2c] sm:$0xf]  ;;  %v9337_v33 = vld [vmem:[%s8240_s28 + $0x34] sm:$0xf] }
 0x113   : > { %3868 = vperm.xlu1 %7950, %v3735_v47   ;;  %3270 = vperm.xlu0 %7949, %v2961_v3   ;;  %v2701_v4 = vrot.slane %v9267_v51, 3  ;;  %v1689_v8 = vsel %vm8933_vm6, %v1687_v7, %v1688_v13  ;;  %v9304_v30 = vrot.slane %v2201_v25, 5  ;;  %v1696_v19 = vrot.slane %v1694_v45, 4  ;;  %v3737_v13 = vld [vmem:[%s11141_s2 + $0x2c] sm:$0xf]  ;;  %v8041_v51 = vld [vmem:[%s11140_s1 + $0x1b8] sm:$0xff]  }
 0x114   : > { %7744 = vmatprep.subr.bf16.mxu1 %v8024_v10  ;;  %v1910_v27 = vsel %vm1903_vm7, %v1907_v56, %v1909_v57  ;;  %v9318_v47 = vcombine.low %v1795_v32, %v1796_v9  ;;  %v2588_v20 = vmul.bf16 %v2480_v53, %v1979_v41  ;;  %v2487_v21 = vrot.slane %v2485_v59, 4  ;;  %v1982_v11 = vld [vmem:[%s8240_s28 + $0x44] sm:$0xf]  ;;  %v8037_v53 = vld [vmem:[%s11140_s1 + $0x1f0] sm:$0xff]  }
 0x115   : > { %v2484_v39 = vrot.slane %v9227_v63, 4  ;;  %v2213_v14 = vrot.slane %v9223_v0, %v8379_v26  ;;  %v1798_v56 = vmul.bf16 %v1692_v1, %v1186_v16  ;;  %v1693_v37 = vrot.slane %v1691_v6, 4 }
 0x116   : > { %v9296_v55 = vpop.permute.xlu1 %2252  ;;  %v9298_v12 = vpop.permute.xlu0 %2240  ;;  %7745 = vmatpush3.bf16.msra.mxu1 %v8025_v15  ;;  %v2702_v63 = vsel %vm965_vm3, %v2699_v61, %v2701_v4  ;;  %v9334_v10 = vcombine.low %v2588_v20, %v2589_v24  ;;  %v1797_v62 = vmul.bf16 %v1689_v8, %v1185_v17  ;;  %v2489_v36 = vsel %vm8404_vm2, %v2487_v21, %v9304_v30  ;;  %v1188_v15 = vld [vmem:[%s8240_s28 + $0x38] sm:$0xf] }
 0x117   : > { %3880 = vperm.xlu1 %7950, %v3736_v31   ;;  %3282 = vperm.xlu0 %7949, %v2962_v50   ;;  %v2225_v38 = vrot.slane %v9265_v35, %v8379_v26  ;;  %v1695_v61 = vsel %vm8933_vm6, %v1693_v37, %v1694_v45  ;;  %v1698_v42 = vsel %vm8933_vm6, %v1696_v19, %v8957_v5  ;;  %v1911_v41 = vrot.slane %v9318_v47, 1  ;;  %v1981_v35 = vld [vmem:[%s8240_s28 + $0x40] sm:$0xf]  ;;  %v3738_v45 = vld [vmem:[%s11141_s2 + $0x30] sm:$0xf] }
 0x118   : > { %7746 = vmatprep.subr.bf16.mxu1 %v8028_v54  ;;  %v2486_v6 = vsel %vm8404_vm2, %v2484_v39, %v2485_v59  ;;  %v2491_v31 = vrot.slane %v2213_v14, 5  ;;  %v2237_v9 = vrot.slane %v9263_v58, %v8379_v26  ;;  %v2964_v5 = vld [vmem:[%s11142_s3 + $0x70] sm:$0xf]  ;;  %v9367_v7 = vcombine.low %v1797_v62, %v1798_v56  ;;  %v2965_v14 = vld [vmem:[%s11142_s3 + $0x74] sm:$0xf] }
 0x119   : > { %6347 = vmatmul.mubr.bf16.gmra.mrb[24].mxu1 %v1910_v27  ;;  %v2591_v59 = vmul.bf16 %v2489_v36, %v1982_v11  ;;  %v2703_v1 = vrot.slane %v9334_v10, 3  ;;  %v1799_v24 = vmul.bf16 %v1695_v61, %v9337_v33  ;;  %v9379_v16 = vrot.slane %v2225_v38, 5  ;;  %v3739_v27 = vld [vmem:[%s11141_s2 + $0x34] sm:$0xf]  ;;  %v1984_v37 = vld [vmem:[%s8240_s28 + $0x4c] sm:$0xf] }
 0x11a   : > { %v2983_v3 = vpop.permute.xlu1 %2982  ;;  %v2971_v0 = vpop.permute.xlu0 %2970  ;;  %6354 = vmatprep.mubr.bf16.mxu1 %v2702_v63  ;;  %7747 = vmatpush3.bf16.msra.mxu1 %v8030_v34  ;;  %v8038_v34 = vld [vmem:[%s11140_s1 + $0x1b0] sm:$0xff]   ;;  %v1912_v19 = vsel %vm1903_vm7, %v1909_v57, %v1911_v41  ;;  %v1800_v47 = vmul.bf16 %v1698_v42, %v1188_v15  ;;  %v2493_v20 = vrot.slane %v2491_v31, 4  ;;  %v2490_v21 = vrot.slane %v9304_v30, 4  ;;  %v8040_v57 = vld [vmem:[%s11140_s1 + $0x1f8] sm:$0xff]   ;;  %v1983_v36 = vld [vmem:[%s8240_s28 + $0x48] sm:$0xf] }
 0x11b   : > { %v2979_v25 = vrot.slane %v2971_v0, %v8379_v26  ;;  %3892 = vperm.xlu1 %7950, %v3737_v13   ;;  %3294 = vperm.xlu0 %7949, %v2963_v43   ;;  %v2991_v50 = vrot.slane %v2983_v3, %v8379_v26  ;;  %v2590_v13 = vmul.bf16 %v2486_v6, %v1981_v35  ;;  %v1913_v22 = vrot.slane %v9367_v7, 1  ;;  %v2904_v62 = vld [vmem:[%s8240_s28 + $0x18] sm:$0xf] }
 0x11c   : > { %7748 = vmatprep.subr.bf16.mxu1 %v8032_v49  ;;  %v2249_v39 = vrot.slane %v9298_v12, %v8379_v26  ;;  %v2497_v43 = vrot.slane %v2237_v9, 5  ;;  %v2704_v12 = vsel %vm965_vm3, %v2701_v4, %v2703_v1  ;;  %v2495_v63 = vsel %vm8404_vm2, %v2493_v20, %v9379_v16  ;;  %v2966_v42 = vld [vmem:[%s11142_s3 + $0x78] sm:$0xf]  ;;  %v3741_v20 = vld [vmem:[%s11141_s2 + $0x3c] sm:$0xf] }
 0x11d   : > { %v9373_v54 = vrot.slane %v2979_v25, 7  ;;  %v3386_v56 = vrot.slane %v2991_v50, 7  ;;  %v9409_v49 = vcombine.low %v2590_v13, %v2591_v59  ;;  %v1467_v4 = vrot.slane %v9008_v52, %v8379_v26  ;;  %v3740_v52 = vld [vmem:[%s11141_s2 + $0x38] sm:$0xf]  ;;  %v2906_v50 = vld [vmem:[%s8240_s28 + $0x20] sm:$0xf] }
 0x11e   : > { %v9375_v58 = vpop.permute.xlu1 %2264  ;;  %v2995_v32 = vpop.permute.xlu0 %2994  ;;  %7749 = vmatpush3.bf16.msra.mxu1 %v8034_v28  ;;  %v9423_v11 = vcombine.low %v1799_v24, %v1800_v47  ;;  %v2492_v38 = vsel %vm8404_vm2, %v2490_v21, %v2491_v31  ;;  %v9428_v28 = vrot.slane %v2249_v39, 5  ;;  %v1914_v25 = vsel %vm1903_vm7, %v1911_v41, %v1913_v22  ;;  %v2903_v31 = vld [vmem:[%s8240_s28 + $0x14] sm:$0xe]  ;;  %v2967_v21 = vld [vmem:[%s11142_s3 + $0x7c] sm:$0xf] }
 0x11f   : > { %v3003_v8 = vrot.slane %v2995_v32, %v8379_v26  ;;  %v3385_v17 = vrot.slane %v9373_v54, 4  ;;  %3904 = vperm.xlu1 %7950, %v3738_v45   ;;  %3306 = vperm.xlu0 %7949, %v2964_v5   ;;  %v2499_v35 = vrot.slane %v2497_v43, 4  ;;  %v2593_v15 = vmul.bf16 %v2495_v63, %v1984_v37 }
 0x120   : > { %7750 = vmatprep.subr.bf16.mxu1 %v8037_v53  ;;  %v3388_v6 = vrot.slane %v3386_v56, 4  ;;  %v2705_v45 = vrot.slane %v9409_v49, 3  ;;  %v2496_v5 = vrot.slane %v9379_v16, 4  ;;  %v2261_v41 = vrot.slane %v9296_v55, %v8379_v26 }
 0x121   : > { %6355 = vmatmul.mubr.bf16.gmra.mrb[28].mxu1 %v1912_v19  ;;  %v3389_v3 = vrot.slane %v3003_v8, 7  ;;  %v3387_v33 = vsel %vm8933_vm6, %v3385_v17, %v3386_v56  ;;  %v2905_v8 = vld [vmem:[%s8240_s28 + $0x1c] sm:$0xf]  ;;  %v1915_v17 = vrot.slane %v9423_v11, 1  ;;  %v2592_v19 = vmul.bf16 %v2492_v38, %v1983_v36 }
 0x122   : > { %v9407_v30 = vpop.permute.xlu1 %1470  ;;  %6362 = vmatprep.mubr.bf16.mxu1 %v2704_v12  ;;  %v3007_v0 = vpop.permute.xlu0 %3006  ;;  %7751 = vmatpush3.bf16.msra.mxu1 %v8038_v34  ;;  %v3513_v53 = vmul.bf16 %v3387_v33, %v2904_v62  ;;  %v2501_v16 = vsel %vm8404_vm2, %v2499_v35, %v9428_v28  ;;  %v3512_v13 = vmul.bf16 %v9373_v54, %v2903_v31  ;;  %v8017_v31 = vld [vmem:[%s8240_s28 + $0x14] sm:$0xff]  }
 0x123   : > { %3916 = vperm.xlu1 %7950, %v3739_v27   ;;  %3318 = vperm.xlu0 %7949, %v2965_v14   ;;  %v3015_v61 = vrot.slane %v3007_v0, %v8379_v26  ;;  %v3391_v59 = vrot.slane %v3389_v3, 4  ;;  %v3390_v34 = vsel %vm8933_vm6, %v3388_v6, %v3389_v3  ;;  %v1986_v27 = vld [vmem:[%s8240_s28 + $0x54] sm:$0xf]  ;;  %v2273_v39 = vrot.slane %v9375_v58, %v8379_v26  ;;  %v1985_v58 = vld [vmem:[%s8240_s28 + $0x50] sm:$0xf] }
 0x124   : > { %7752 = vmatprep.subr.bf16.mxu1 %v8040_v57  ;;  %v2706_v54 = vsel %vm965_vm3, %v2703_v1, %v2705_v45  ;;  %v9471_v56 = vcombine.low %v2592_v19, %v2593_v15  ;;  %v2498_v12 = vsel %vm8404_vm2, %v2496_v5, %v2497_v43  ;;  %v7260_v37 = vcombine.low %v3512_v13, %v3513_v53  ;;  %v2907_v5 = vld [vmem:[%s8240_s28 + $0x24] sm:$0xf] }
 0x125   : > { %v3392_v32 = vrot.slane %v3015_v61, 7  ;;  %v3514_v63 = vmul.bf16 %v3390_v34, %v2905_v8  ;;  %v1711_v0 = vrot.slane %v9014_v23, 4  ;;  %v2595_v62 = vmul.bf16 %v2501_v16, %v1986_v27  ;;  %v3743_v23 = vld [vmem:[%s11141_s2 + $0x44] sm:$0xf]  ;;  %v4660_v8 = vld [vmem:[%s11142_s3] sm:$0xf] }
 0x126   : > { %v3019_v9 = vpop.permute.xlu1 %3018  ;;  %v2277_v24 = vpop.permute.xlu0 %2276  ;;  %7753 = vmatpush3.bf16.msra.mxu1 %v8041_v51  ;;  %v9479_v51 = vrot.slane %v1467_v4, 7  ;;  %v1916_v10 = vsel %vm1903_vm7, %v1913_v22, %v1915_v17  ;;  %v2503_v1 = vrot.slane %v2261_v41, 5  ;;  %v3742_v4 = vld [vmem:[%s11141_s2 + $0x40] sm:$0xf]  ;;  %v9495_v38 = vrot.slane %v2273_v39, 5 }
 0x127   : > { %3928 = vperm.xlu1 %7950, %v3740_v52   ;;  %3330 = vperm.xlu0 %7949, %v2966_v42   ;;  %v3393_v55 = vsel %vm8933_vm6, %v3391_v59, %v3392_v32  ;;  %v3027_v47 = vrot.slane %v3019_v9, %v8379_v26  ;;  %v2285_v33 = vrot.slane %v2277_v24, %v8379_v26  ;;  %v2707_v61 = vrot.slane %v9471_v56, 3  ;;  %v2908_v27 = vld [vmem:[%s8240_s28 + $0x28] sm:$0xf] }
 0x128   : > { %v3515_v14 = vmul.bf16 %v3393_v55, %v2906_v50  ;;  %v1479_v7 = vrot.slane %v9407_v30, %v8379_v26  ;;  %v2594_v52 = vmul.bf16 %v2498_v12, %v1985_v58  ;;  %v3394_v42 = vrot.slane %v3392_v32, 4 }
 0x129   : > { %6363 = vmatmul.mubr.bf16.gmra.mrb[32].mxu1 %v1914_v25  ;;  %v3395_v43 = vrot.slane %v3027_v47, 7  ;;  %v3628_v15 = vrot.slane %v7260_v37, 1  ;;  %v9508_v9 = vsel %vm8933_vm6, %v1711_v0, %v9479_v51  ;;  %v2502_v30 = vrot.slane %v9428_v28, 4  ;;  %v4661_v28 = vld [vmem:[%s11142_s3 + $0x4] sm:$0xf]  ;;  %v8033_v47 = vld [vmem:[%s11140_s1 + $0x208] sm:$0xff]  }
 0x12a   : > { %v2289_v57 = vpop.permute.xlu1 %2288  ;;  %6370 = vmatprep.mubr.bf16.mxu1 %v2706_v54  ;;  %v9475_v3 = vpop.permute.xlu0 %1482  ;;  %v9493_v36 = vcombine.low %v3514_v63, %v3515_v14  ;;  %v9513_v59 = vcombine.low %v2594_v52, %v2595_v62  ;;  %v2505_v50 = vrot.slane %v2503_v1, 4  ;;  %v2509_v24 = vrot.slane %v2285_v33, 5  ;;  %v1987_v63 = vld [vmem:[%s8240_s28 + $0x58] sm:$0xf]  ;;  %v3744_v62 = vld [vmem:[%s11141_s2 + $0x48] sm:$0xf] }
 0x12b   : > { %3940 = vperm.xlu1 %7950, %v3741_v20   ;;  %3342 = vperm.xlu0 %7949, %v2967_v21   ;;  %v2297_v25 = vrot.slane %v2289_v57, %v8379_v26  ;;  %v3396_v32 = vsel %vm8933_vm6, %v3394_v42, %v3395_v43  ;;  %v3397_v34 = vrot.slane %v3395_v43, 4  ;;  %v1491_v19 = vrot.slane %v9475_v3, %v8379_v26  ;;  %v1988_v21 = vld [vmem:[%s8240_s28 + $0x5c] sm:$0xf]  ;;  %v1193_v52 = vld [vmem:[%s8240_s28 + $0x4c] sm:$0xf] }
 0x12c   : > { %v3629_v6 = vrot.slane %v9493_v36, 1  ;;  %v2708_v13 = vsel %vm965_vm3, %v2705_v45, %v2707_v61  ;;  %v1714_v20 = vrot.slane %v9479_v51, 4  ;;  %v2507_v39 = vsel %vm8404_vm2, %v2505_v50, %v9495_v38  ;;  %v1989_v42 = vld [vmem:[%s8240_s28 + $0x60] sm:$0xf]  ;;  %v4663_v50 = vld [vmem:[%s11142_s3 + $0xc] sm:$0xf] }
 0x12d   : > { %v9544_v14 = vrot.slane %v1479_v7, 7  ;;  %v9546_v54 = vrot.slane %v2297_v25, 5  ;;  %v2504_v45 = vsel %vm8404_vm2, %v2502_v30, %v2503_v1  ;;  %v3516_v57 = vmul.bf16 %v3396_v32, %v2907_v5  ;;  %v8039_v7 = vld [vmem:[%s11140_s1 + $0x210] sm:$0xff]  }
 0x12e   : > { %v9499_v22 = vpop.permute.xlu1 %1494  ;;  %v3031_v35 = vpop.permute.xlu0 %3030  ;;  %v3630_v41 = vsel %vm1903_vm7, %v3628_v15, %v3629_v6  ;;  %v2709_v37 = vrot.slane %v9513_v59, 3  ;;  %v2511_v3 = vrot.slane %v2509_v24, 4  ;;  %v2508_v1 = vrot.slane %v9495_v38, 4  ;;  %v9581_v38 = vld [vmem:[%s8240_s28 + $0x64] sm:$0xf] }
 0x12f   : > { %v3039_v53 = vrot.slane %v3031_v35, %v8379_v26  ;;  %3964 = vperm.xlu1 %7950, %v3743_v23   ;;  %3952 = vperm.xlu0 %7949, %v3742_v4   ;;  %v1503_v58 = vrot.slane %v9499_v22, %v8379_v26  ;;  %v2597_v43 = vmul.bf16 %v2507_v39, %v1988_v21  ;;  %v9566_v33 = vrot.slane %v1491_v19, 7  ;;  %v1194_v22 = vld [vmem:[%s8240_s28 + $0x50] sm:$0xf] }
 0x130   : > { %6491 = vmatprep.mubr.bf16.mxu0 %v3630_v41  ;;  %v1918_v4 = vsel %vm1903_vm7, %v1915_v17, %v1917_v18  ;;  %v9586_v29 = vsel %vm8404_vm2, %v2511_v3, %v9546_v54  ;;  %v2510_v25 = vsel %vm8404_vm2, %v2508_v1, %v2509_v24  ;;  %v2710_v35 = vsel %vm965_vm3, %v2707_v61, %v2709_v37  ;;  %v4664_v15 = vld [vmem:[%s11142_s3 + $0x10] sm:$0xf]  ;;  %v1195_v1 = vld [vmem:[%s8240_s28 + $0x54] sm:$0xf] }
 0x131   : > { %v9529_v16 = vrot.slane %v3039_v53, 7  ;;  %6371 = vmatmul.mubr.bf16.gmra.mrb[36].mxu1 %v1916_v10  ;;  %6492 = vmatmul.mubr.bf16.vlgmr.msra.gmra.mrb[48].mxu0 %v8017_v31  ;;  %v4662_v10 = vld [vmem:[%s11142_s3 + $0x8] sm:$0xf]  ;;  %v2596_v31 = vmul.bf16 %v2504_v45, %v1987_v63  ;;  %v9603_v30 = vrot.slane %v1503_v58, 7  ;;  %v2599_v61 = vmul.bf16 %v9586_v29, %v9581_v38  ;;  %v2910_v3 = vld [vmem:[%s8240_s28 + $0x30] sm:$0xf] }
 0x132   : > { %v3043_v55 = vpop.permute.xlu1 %3042  ;;  %6378 = vmatprep.mubr.bf16.mxu1 %v2708_v13  ;;  %v2301_v49 = vpop.permute.xlu0 %2300  ;;  %7875 = vmatpush3.bf16.msra.mxu0 %v8945_v60  ;;  %v1716_v60 = vsel %vm8933_vm6, %v1714_v20, %v9544_v14  ;;  %v1720_v24 = vrot.slane %v9566_v33, 4  ;;  %v1805_v20 = vmul.bf16 %v9508_v9, %v1193_v52  ;;  %v1717_v21 = vrot.slane %v9544_v14, 4  ;;  %v4665_v14 = vld [vmem:[%s11142_s3 + $0x14] sm:$0xf] }
 0x133   : > { %v3399_v12 = vsel %vm8933_vm6, %v3397_v34, %v9529_v16  ;;  %4706 = vperm.xlu1 %7950, %v4661_v28   ;;  %4694 = vperm.xlu0 %7949, %v4660_v8   ;;  %v3051_v51 = vrot.slane %v3043_v55, %v8379_v26  ;;  %v2309_v11 = vrot.slane %v2301_v49, %v8379_v26  ;;  %v8020_v28 = vld [vmem:[%s8240_s28 + $0x1c] sm:$0xff]   ;;  %v3400_v19 = vrot.slane %v9529_v16, 4  ;;  %v9629_v49 = vld [vmem:[%s8240_s28 + $0x58] sm:$0xf]  ;;  %v2909_v16 = vld [vmem:[%s8240_s28 + $0x2c] sm:$0xf] }
 0x134   : > { %v3517_v0 = vmul.bf16 %v3399_v12, %v2908_v27  ;;  %7876 = vmatprep.subr.bf16.mxu0 %v8033_v47  ;;  %v1806_v56 = vmul.bf16 %v1716_v60, %v1194_v22  ;;  %v9614_v8 = vcombine.low %v2596_v31, %v2597_v43  ;;  %v8046_v34 = vld [vmem:[%s11140_s1 + $0x218] sm:$0xff]   ;;  %v2598_v39 = vmul.bf16 %v2510_v25, %v1989_v42  ;;  %v3745_v12 = vld [vmem:[%s11141_s2 + $0x4c] sm:$0xf]  ;;  %v3746_v25 = vld [vmem:[%s11141_s2 + $0x50] sm:$0xf] }
 0x135   : > { %v3401_v5 = vrot.slane %v3051_v51, 7  ;;  %v2515_v27 = vrot.slane %v2309_v11, 5  ;;  %v1719_v43 = vsel %vm8933_vm6, %v1717_v21, %v9566_v33  ;;  %v2514_v60 = vrot.slane %v9546_v54, 4  ;;  %v1992_v11 = vld [vmem:[%s8240_s28 + $0x6c] sm:$0xf] }
 0x136   : > { %v2313_v23 = vpop.permute.xlu1 %2312  ;;  %v1507_v18 = vpop.permute.xlu0 %1506  ;;  %v9589_v17 = vcombine.low %v3516_v57, %v3517_v0  ;;  %7877 = vmatpush3.bf16.msra.mxu0 %v8033_v47  ;;  %v1722_v57 = vsel %vm8933_vm6, %v1720_v24, %v9603_v30  ;;  %v2711_v51 = vrot.slane %v9614_v8, 3  ;;  %v9660_v22 = vcombine.low %v2598_v39, %v2599_v61  ;;  %v1991_v61 = vld [vmem:[%s8240_s28 + $0x68] sm:$0xf]  ;;  %v4667_v21 = vld [vmem:[%s11142_s3 + $0x1c] sm:$0xf] }
 0x137   : > { %3976 = vperm.xlu1 %7950, %v3744_v62   ;;  %4718 = vperm.xlu0 %7949, %v4662_v10   ;;  %v2321_v53 = vrot.slane %v2313_v23, %v8379_v26  ;;  %v1515_v13 = vrot.slane %v1507_v18, %v8379_v26  ;;  %v3402_v36 = vsel %vm8933_vm6, %v3400_v19, %v3401_v5  ;;  %v3403_v63 = vrot.slane %v3401_v5, 4  ;;  %v8051_v10 = vld [vmem:[%s11140_s1 + $0x220] sm:$0xff]  }
 0x138   : > { %v3631_v32 = vrot.slane %v9589_v17, 1  ;;  %7878 = vmatprep.subr.bf16.mxu0 %v8039_v7  ;;  %v9651_v62 = vcombine.low %v1805_v20, %v1806_v56  ;;  %v2517_v23 = vrot.slane %v2515_v27, 4  ;;  %v1808_v38 = vmul.bf16 %v1722_v57, %v9629_v49  ;;  %v8056_v56 = vld [vmem:[%s11140_s1 + $0x228] sm:$0xff]   ;;  %v1198_v19 = vld [vmem:[%s8240_s28 + $0x60] sm:$0xf] }
 0x139   : > { %6379 = vmatmul.mubr.bf16.gmra.mrb[40].mxu1 %v1918_v4  ;;  %v1724_v4 = vrot.slane %v1515_v13, 7  ;;  %v3518_v29 = vmul.bf16 %v3402_v36, %v2909_v16  ;;  %v2712_v5 = vsel %vm965_vm3, %v2709_v37, %v2711_v51  ;;  %v2516_v24 = vsel %vm8404_vm2, %v2514_v60, %v2515_v27  ;;  %v8023_v36 = vld [vmem:[%s8240_s28 + $0x24] sm:$0xff]  }
 0x13a   : > { %v1519_v41 = vpop.permute.xlu1 %1518  ;;  %6386 = vmatprep.mubr.bf16.mxu1 %v2710_v35  ;;  %v3055_v55 = vpop.permute.xlu0 %3054  ;;  %v3632_v47 = vsel %vm1903_vm7, %v3629_v6, %v3631_v32  ;;  %v9638_v6 = vrot.slane %v2321_v53, 5  ;;  %7879 = vmatpush3.bf16.msra.mxu0 %v8039_v7  ;;  %v4666_v35 = vld [vmem:[%s11142_s3 + $0x18] sm:$0xf]  ;;  %v1723_v37 = vrot.slane %v9603_v30, 4  ;;  %v2713_v13 = vrot.slane %v9660_v22, 3 }
 0x13b   : > { %v3063_v45 = vrot.slane %v3055_v55, %v8379_v26  ;;  %4742 = vperm.xlu1 %7950, %v4664_v15   ;;  %4730 = vperm.xlu0 %7949, %v4663_v50   ;;  %v1527_v9 = vrot.slane %v1519_v41, %v8379_v26  ;;  %v1807_v15 = vmul.bf16 %v1719_v43, %v1195_v1  ;;  %v1921_v50 = vrot.slane %v9651_v62, 1  ;;  %v4668_v30 = vld [vmem:[%s11142_s3 + $0x20] sm:$0xf]  ;;  %v4669_v1 = vld [vmem:[%s11142_s3 + $0x24] sm:$0xf] }
 0x13c   : > { %6499 = vmatprep.mubr.bf16.mxu0 %v3632_v47  ;;  %7880 = vmatprep.subr.bf16.mxu0 %v8046_v34  ;;  %v2519_v33 = vsel %vm8404_vm2, %v2517_v23, %v9638_v6  ;;  %v1726_v41 = vrot.slane %v1724_v4, 4  ;;  %v2600_v49 = vmul.bf16 %v2516_v24, %v1991_v61  ;;  %v2714_v17 = vsel %vm965_vm3, %v2711_v51, %v2713_v13 }
 0x13d   : > { %v9648_v58 = vrot.slane %v3063_v45, 7  ;;  %6500 = vmatmul.mubr.bf16.gmra.mrb[52].mxu0 %v8020_v28  ;;  %v9671_v52 = vrot.slane %v1527_v9, 7  ;;  %v9700_v55 = vcombine.low %v1807_v15, %v1808_v38  ;;  %v1922_v57 = vsel %vm1903_vm7, %v1919_v40, %v1921_v50  ;;  %v1197_v9 = vld [vmem:[%s8240_s28 + $0x5c] sm:$0xf]  ;;  %v2911_v38 = vld [vmem:[%s8240_s28 + $0x34] sm:$0xf] }
 0x13e   : > { %v3067_v0 = vpop.permute.xlu1 %3066  ;;  %v2325_v7 = vpop.permute.xlu0 %2324  ;;  %7881 = vmatpush3.bf16.msra.mxu0 %v8046_v34  ;;  %v2601_v34 = vmul.bf16 %v2519_v33, %v1992_v11  ;;  %v2912_v11 = vld [vmem:[%s8240_s28 + $0x38] sm:$0xf]  ;;  %v2520_v33 = vrot.slane %v9638_v6, 4  ;;  %v1993_v15 = vld [vmem:[%s8240_s28 + $0x70] sm:$0xf] }
 0x13f   : > { %v3405_v18 = vsel %vm8933_vm6, %v3403_v63, %v9648_v58  ;;  %4754 = vperm.xlu1 %7950, %v4665_v14   ;;  %3988 = vperm.xlu0 %7949, %v3745_v12   ;;  %v2333_v54 = vrot.slane %v2325_v7, %v8379_v26  ;;  %v3075_v31 = vrot.slane %v3067_v0, %v8379_v26  ;;  %v3406_v40 = vrot.slane %v9648_v58, 4  ;;  %v8061_v7 = vld [vmem:[%s11140_s1 + $0x230] sm:$0xff]  }
 0x140   : > { %v3519_v42 = vmul.bf16 %v3405_v18, %v2910_v3  ;;  %7882 = vmatprep.subr.bf16.mxu0 %v8051_v10  ;;  %v1728_v27 = vsel %vm8933_vm6, %v1726_v41, %v9671_v52  ;;  %v1725_v14 = vsel %vm8933_vm6, %v1723_v37, %v1724_v4  ;;  %v9735_v43 = vcombine.low %v2600_v49, %v2601_v34  ;;  %v8062_v37 = vld [vmem:[%s11140_s1 + $0x238] sm:$0xff]  }
 0x141   : > { %6387 = vmatmul.mubr.bf16.gmra.mrb[44].mxu1 %v9102_v2  ;;  %v2521_v47 = vrot.slane %v2333_v54, 5  ;;  %v3407_v16 = vrot.slane %v3075_v31, 7  ;;  %v1810_v48 = vmul.bf16 %v1728_v27, %v1198_v19  ;;  %v1923_v58 = vrot.slane %v9700_v55, 1 }
 0x142   : > { %v2337_v53 = vpop.permute.xlu1 %2336  ;;  %6394 = vmatprep.mubr.bf16.mxu1 %v2712_v5  ;;  %v1531_v28 = vpop.permute.xlu0 %1530  ;;  %v9695_v59 = vcombine.low %v3518_v29, %v3519_v42  ;;  %7883 = vmatpush3.bf16.msra.mxu0 %v8051_v10  ;;  %v1809_v60 = vmul.bf16 %v1725_v14, %v1197_v9  ;;  %v1994_v42 = vld [vmem:[%s8240_s28 + $0x74] sm:$0xf]  ;;  %v2715_v6 = vrot.slane %v9735_v43, 3  ;;  %v1729_v34 = vrot.slane %v9671_v52, 4  ;;  %v4672_v9 = vld [vmem:[%s11142_s3 + $0x30] sm:$0xf] }
 0x143   : > { %v2345_v2 = vrot.slane %v2337_v53, %v8379_v26  ;;  %4000 = vperm.xlu1 %7950, %v3746_v25   ;;  %4766 = vperm.xlu0 %7949, %v4666_v35   ;;  %v1539_v20 = vrot.slane %v1531_v28, %v8379_v26  ;;  %v2523_v23 = vrot.slane %v2521_v47, 4  ;;  %v3408_v8 = vsel %vm8933_vm6, %v3406_v40, %v3407_v16  ;;  %v4670_v28 = vld [vmem:[%s11142_s3 + $0x28] sm:$0xf] }
 0x144   : > { %v3633_v39 = vrot.slane %v9695_v59, 1  ;;  %7884 = vmatprep.subr.bf16.mxu0 %v8056_v56  ;;  %v3409_v29 = vrot.slane %v3407_v16, 4  ;;  %v9768_v53 = vcombine.low %v1809_v60, %v1810_v48  ;;  %v2522_v61 = vsel %vm8404_vm2, %v2520_v33, %v2521_v47  ;;  %v4671_v48 = vld [vmem:[%s11142_s3 + $0x2c] sm:$0xf]  ;;  %v4673_v59 = vld [vmem:[%s11142_s3 + $0x34] sm:$0xf] }
 0x145   : > { %v9722_v12 = vrot.slane %v2345_v2, 5  ;;  %v1730_v4 = vrot.slane %v1539_v20, 7  ;;  %v3748_v2 = vld [vmem:[%s11141_s2 + $0x58] sm:$0xf]  ;;  %v1924_v20 = vsel %vm1903_vm7, %v1921_v50, %v1923_v58  ;;  %v2716_v50 = vsel %vm965_vm3, %v2713_v13, %v2715_v6 }
 0x146   : > { %v1543_v45 = vpop.permute.xlu1 %1542  ;;  %v3079_v3 = vpop.permute.xlu0 %3078  ;;  %v3634_v0 = vsel %vm1903_vm7, %v3631_v32, %v3633_v39  ;;  %v3747_v32 = vld [vmem:[%s11141_s2 + $0x54] sm:$0xf]  ;;  %7885 = vmatpush3.bf16.msra.mxu0 %v8056_v56  ;;  %v3520_v56 = vmul.bf16 %v3408_v8, %v2911_v38  ;;  %v1925_v14 = vrot.slane %v9768_v53, 1  ;;  %v1995_v8 = vld [vmem:[%s8240_s28 + $0x78] sm:$0xf] }
 0x147   : > { %v1551_v63 = vrot.slane %v1543_v45, %v8379_v26  ;;  %v3087_v10 = vrot.slane %v3079_v3, %v8379_v26  ;;  %4790 = vperm.xlu1 %7950, %v4668_v30   ;;  %4778 = vperm.xlu0 %7949, %v4667_v21   ;;  %v2525_v54 = vsel %vm8404_vm2, %v2523_v23, %v9722_v12  ;;  %v1732_v24 = vrot.slane %v1730_v4, 4  ;;  %v1200_v30 = vld [vmem:[%s8240_s28 + $0x68] sm:$0xf]  ;;  %v8026_v23 = vld [vmem:[%s8240_s28 + $0x2c] sm:$0xff]   ;;  %v1204_v53 = vld [vmem:[%s8240_s28 + $0x78] sm:$0xf] }
 0x148   : > { %6507 = vmatprep.mubr.bf16.mxu0 %v3634_v0  ;;  %7886 = vmatprep.subr.bf16.mxu0 %v8061_v7  ;;  %v2603_v19 = vmul.bf16 %v2525_v54, %v1994_v42  ;;  %v2526_v13 = vrot.slane %v9722_v12, 4  ;;  %v1926_v54 = vsel %vm1903_vm7, %v1923_v58, %v1925_v14 }
 0x149   : > { %v9753_v51 = vrot.slane %v3087_v10, 7  ;;  %6395 = vmatmul.mubr.bf16.gmra.mrb[48].mxu1 %v1922_v57  ;;  %6508 = vmatmul.mubr.bf16.gmra.mrb[56].mxu0 %v8023_v36  ;;  %v9760_v25 = vrot.slane %v1551_v63, 7  ;;  %v2602_v57 = vmul.bf16 %v2522_v61, %v1993_v15  ;;  %v1199_v36 = vld [vmem:[%s8240_s28 + $0x64] sm:$0xf]  ;;  %v1731_v63 = vsel %vm8933_vm6, %v1729_v34, %v1730_v4  ;;  %v1996_v10 = vld [vmem:[%s8240_s28 + $0x7c] sm:$0xf] }
 0x14a   : > { %v3091_v18 = vpop.permute.xlu1 %3090  ;;  %6402 = vmatprep.mubr.bf16.mxu1 %v2714_v17  ;;  %v2349_v35 = vpop.permute.xlu0 %2348  ;;  %7887 = vmatpush3.bf16.msra.mxu0 %v8061_v7  ;;  %v1811_v38 = vmul.bf16 %v1731_v63, %v1199_v36 }
 0x14b   : > { %v3411_v31 = vsel %vm8933_vm6, %v3409_v29, %v9753_v51  ;;  %v2357_v5 = vrot.slane %v2349_v35, %v8379_v26  ;;  %4802 = vperm.xlu1 %7950, %v4669_v1   ;;  %4012 = vperm.xlu0 %7949, %v3747_v32   ;;  %v1734_v21 = vsel %vm8933_vm6, %v1732_v24, %v9760_v25  ;;  %v1202_v35 = vld [vmem:[%s8240_s28 + $0x70] sm:$0xf] }
 0x14c   : > { %v3521_v41 = vmul.bf16 %v3411_v31, %v2912_v11  ;;  %v3099_v49 = vrot.slane %v3091_v18, %v8379_v26  ;;  %7888 = vmatprep.subr.bf16.mxu0 %v8062_v37  ;;  %v1812_v40 = vmul.bf16 %v1734_v21, %v1200_v30  ;;  %v9817_v17 = vcombine.low %v2602_v57, %v2603_v19  ;;  %v3750_v30 = vld [vmem:[%s11141_s2 + $0x60] sm:$0xf]  ;;  %v4674_v21 = vld [vmem:[%s11142_s3 + $0x38] sm:$0xf] }
 0x14d   : > { %v2527_v27 = vrot.slane %v2357_v5, 5  ;;  %v1735_v18 = vrot.slane %v9760_v25, 4 }
 0x14e   : > { %v2361_v47 = vpop.permute.xlu1 %2360  ;;  %v1555_v45 = vpop.permute.xlu0 %1554  ;;  %v9793_v52 = vcombine.low %v3520_v56, %v3521_v41  ;;  %7889 = vmatpush3.bf16.msra.mxu0 %v8062_v37  ;;  %v3413_v4 = vrot.slane %v3099_v49, 7  ;;  %v2717_v31 = vrot.slane %v9817_v17, 3  ;;  %v9848_v5 = vcombine.low %v1811_v38, %v1812_v40  ;;  %v2914_v41 = vld [vmem:[%s8240_s28 + $0x40] sm:$0xf]  ;;  %v2913_v37 = vld [vmem:[%s8240_s28 + $0x3c] sm:$0xf] }
 0x14f   : > { %v2369_v16 = vrot.slane %v2361_v47, %v8379_v26  ;;  %v1563_v62 = vrot.slane %v1555_v45, %v8379_v26  ;;  %4024 = vperm.xlu1 %7950, %v3748_v2   ;;  %4814 = vperm.xlu0 %7949, %v4670_v28   ;;  %v2529_v3 = vrot.slane %v2527_v27, 4  ;;  %v2528_v29 = vsel %vm8404_vm2, %v2526_v13, %v2527_v27  ;;  %v1201_v27 = vld [vmem:[%s8240_s28 + $0x6c] sm:$0xf] }
 0x150   : > { %v3635_v22 = vrot.slane %v9793_v52, 1  ;;  %v3412_v56 = vrot.slane %v9753_v51, 4  ;;  %v3415_v61 = vrot.slane %v3413_v4, 4  ;;  %v2604_v24 = vmul.bf16 %v2528_v29, %v1995_v8  ;;  %v1998_v8 = vld [vmem:[%s8240_s28 + $0x84] sm:$0xf] }
 0x151   : > { %v9808_v0 = vrot.slane %v2369_v16, 5  ;;  %v1736_v1 = vrot.slane %v1563_v62, 7  ;;  %6403 = vmatmul.mubr.bf16.gmra.mrb[52].mxu1 %v1924_v20  ;;  %v2718_v57 = vsel %vm965_vm3, %v2715_v6, %v2717_v31  ;;  %v1927_v36 = vrot.slane %v9848_v5, 1  ;;  %v4676_v6 = vld [vmem:[%s11142_s3 + $0x40] sm:$0xf] }
 0x152   : > { %6410 = vmatprep.mubr.bf16.mxu1 %v2716_v50  ;;  %v1567_v7 = vpop.permute.xlu1 %1566  ;;  %v3103_v60 = vpop.permute.xlu0 %3102  ;;  %v3636_v12 = vsel %vm1903_vm7, %v3633_v39, %v3635_v22  ;;  %v3749_v39 = vld [vmem:[%s11141_s2 + $0x5c] sm:$0xf]  ;;  %v3414_v51 = vsel %vm8933_vm6, %v3412_v56, %v3413_v4  ;;  %v2915_v4 = vld [vmem:[%s8240_s28 + $0x44] sm:$0xf]  ;;  %v8027_v56 = vld [vmem:[%s8240_s28 + $0x34] sm:$0xff]  }
 0x153   : > { %v2531_v32 = vsel %vm8404_vm2, %v2529_v3, %v9808_v0  ;;  %v1575_v11 = vrot.slane %v1567_v7, %v8379_v26  ;;  %4838 = vperm.xlu1 %7950, %v4672_v9   ;;  %4826 = vperm.xlu0 %7949, %v4671_v48   ;;  %v3111_v42 = vrot.slane %v3103_v60, %v8379_v26  ;;  %v1738_v25 = vrot.slane %v1736_v1, 4 }
 0x154   : > { %v2605_v33 = vmul.bf16 %v2531_v32, %v1996_v10  ;;  %6515 = vmatprep.mubr.bf16.mxu0 %v3636_v12  ;;  %v1737_v47 = vsel %vm8933_vm6, %v1735_v18, %v1736_v1  ;;  %v3522_v3 = vmul.bf16 %v3414_v51, %v2913_v37  ;;  %v4675_v10 = vld [vmem:[%s11142_s3 + $0x3c] sm:$0xf]  ;;  %v1928_v7 = vsel %vm1903_vm7, %v1925_v14, %v1927_v36  ;;  %v1203_v51 = vld [vmem:[%s8240_s28 + $0x74] sm:$0xf] }
 0x155   : > { %v9845_v15 = vrot.slane %v1575_v11, 7  ;;  %6516 = vmatmul.mubr.bf16.gmra.mrb[60].mxu0 %v8026_v23  ;;  %v3416_v2 = vrot.slane %v3111_v42, 7  ;;  %v1813_v48 = vmul.bf16 %v1737_v47, %v1201_v27  ;;  %v2532_v23 = vrot.slane %v9808_v0, 4 }
 0x156   : > { %v3115_v28 = vpop.permute.xlu1 %3114  ;;  %v2373_v55 = vpop.permute.xlu0 %2372  ;;  %v9871_v49 = vcombine.low %v2604_v24, %v2605_v33  ;;  %v1997_v33 = vld [vmem:[%s8240_s28 + $0x80] sm:$0xf]  ;;  %v4677_v24 = vld [vmem:[%s11142_s3 + $0x44] sm:$0xf] }
 0x157   : > { %v1740_v58 = vsel %vm8933_vm6, %v1738_v25, %v9845_v15  ;;  %v3123_v34 = vrot.slane %v3115_v28, %v8379_v26  ;;  %v2381_v19 = vrot.slane %v2373_v55, %v8379_v26  ;;  %4850 = vperm.xlu1 %7950, %v4673_v59   ;;  %4036 = vperm.xlu0 %7949, %v3749_v39   ;;  %v3418_v13 = vrot.slane %v3416_v2, 4 }
 0x158   : > { %v3417_v20 = vsel %vm8933_vm6, %v3415_v61, %v3416_v2  ;;  %v1814_v16 = vmul.bf16 %v1740_v58, %v1202_v35  ;;  %v2719_v1 = vrot.slane %v9871_v49, 3  ;;  %v8031_v49 = vld [vmem:[%s8240_s28 + $0x3c] sm:$0xff]  }
 0x159   : > { %v3523_v45 = vmul.bf16 %v3417_v20, %v2914_v41  ;;  %6411 = vmatmul.mubr.bf16.gmra.mrb[56].mxu1 %v1926_v54  ;;  %v3419_v62 = vrot.slane %v3123_v34, 7  ;;  %v2533_v50 = vrot.slane %v2381_v19, 5  ;;  %v1741_v54 = vrot.slane %v9845_v15, 4  ;;  %v2916_v15 = vld [vmem:[%s8240_s28 + $0x48] sm:$0xf] }
 0x15a   : > { %6418 = vmatprep.mubr.bf16.mxu1 %v2718_v57  ;;  %v2385_v9 = vpop.permute.xlu1 %2384  ;;  %v1579_v63 = vpop.permute.xlu0 %1578  ;;  %v9897_v60 = vcombine.low %v1813_v48, %v1814_v16  ;;  %v2720_v61 = vsel %vm965_vm3, %v2717_v31, %v2719_v1  ;;  %v3751_v19 = vld [vmem:[%s11141_s2 + $0x64] sm:$0xf]  ;;  %v4678_v48 = vld [vmem:[%s11142_s3 + $0x48] sm:$0xf] }
 0x15b   : > { %4048 = vperm.xlu1 %7950, %v3750_v30   ;;  %4862 = vperm.xlu0 %7949, %v4674_v21   ;;  %v2393_v40 = vrot.slane %v2385_v9, %v8379_v26  ;;  %v1587_v43 = vrot.slane %v1579_v63, %v8379_v26  ;;  %v9890_v32 = vcombine.low %v3522_v3, %v3523_v45  ;;  %v2535_v38 = vrot.slane %v2533_v50, 4  ;;  %v3752_v45 = vld [vmem:[%s11141_s2 + $0x68] sm:$0xf] }
 0x15c   : > { %v3420_v12 = vsel %vm8933_vm6, %v3418_v13, %v3419_v62  ;;  %v2534_v42 = vsel %vm8404_vm2, %v2532_v23, %v2533_v50  ;;  %v3421_v25 = vrot.slane %v3419_v62, 4  ;;  %v1999_v23 = vld [vmem:[%s8240_s28 + $0x88] sm:$0xf] }
 0x15d   : > { %v2536_v29 = vrot.slane %v2393_v40, 5  ;;  %v1742_v11 = vrot.slane %v1587_v43, 7  ;;  %v3637_v39 = vrot.slane %v9890_v32, 1  ;;  %v3524_v37 = vmul.bf16 %v3420_v12, %v2915_v4  ;;  %v4680_v12 = vld [vmem:[%s11142_s3 + $0x50] sm:$0xf] }
 0x15e   : > { %v1591_v0 = vpop.permute.xlu1 %1590  ;;  %v3127_v18 = vpop.permute.xlu0 %3126  ;;  %v2606_v58 = vmul.bf16 %v2534_v42, %v1997_v33  ;;  %v1206_v32 = vld [vmem:[%s8240_s28 + $0x80] sm:$0xf] }
 0x15f   : > { %v1599_v14 = vrot.slane %v1591_v0, %v8379_v26  ;;  %v3135_v59 = vrot.slane %v3127_v18, %v8379_v26  ;;  %4886 = vperm.xlu1 %7950, %v4676_v6   ;;  %4874 = vperm.xlu0 %7949, %v4675_v10   ;;  %v2537_v35 = vsel %vm8404_vm2, %v2535_v38, %v2536_v29  ;;  %v1744_v2 = vrot.slane %v1742_v11, 4  ;;  %v2001_v18 = vld [vmem:[%s8240_s28 + $0x90] sm:$0x7] }
 0x160   : > { %v2607_v41 = vmul.bf16 %v2537_v35, %v1998_v8  ;;  %v3638_v17 = vsel %vm1903_vm7, %v3635_v22, %v3637_v39  ;;  %v1743_v27 = vsel %vm8933_vm6, %v1741_v54, %v1742_v11  ;;  %v1929_v22 = vrot.slane %v9897_v60, 1  ;;  %v2000_v11 = vld [vmem:[%s8240_s28 + $0x8c] sm:$0xf] }
 0x161   : > { %v9921_v28 = vrot.slane %v1599_v14, 7  ;;  %v3422_v55 = vrot.slane %v3135_v59, 7  ;;  %6419 = vmatmul.mubr.bf16.gmra.mrb[60].mxu1 %v1928_v7  ;;  %6523 = vmatprep.mubr.bf16.mxu0 %v3638_v17  ;;  %v2538_v62 = vrot.slane %v2536_v29, 4  ;;  %v1815_v50 = vmul.bf16 %v1743_v27, %v1203_v51 }
 0x162   : > { %6426 = vmatprep.mubr.bf16.mxu1 %v2720_v61  ;;  %v3139_v31 = vpop.permute.xlu1 %3138  ;;  %v2397_v34 = vpop.permute.xlu0 %2396  ;;  %6524 = vmatmul.mubr.bf16.gmra.mrb[64].mxu0 %v8027_v56  ;;  %v9946_v57 = vcombine.low %v2606_v58, %v2607_v41  ;;  %v1930_v7 = vsel %vm1903_vm7, %v1927_v36, %v1929_v22  ;;  %v4681_v41 = vld [vmem:[%s11142_s3 + $0x54] sm:$0xf]  ;;  %v3753_v58 = vld [vmem:[%s11141_s2 + $0x6c] sm:$0xf] }
 0x163   : > { %v1746_v47 = vsel %vm8933_vm6, %v1744_v2, %v9921_v28  ;;  %v3423_v52 = vsel %vm8933_vm6, %v3421_v25, %v3422_v55  ;;  %4898 = vperm.xlu1 %7950, %v4677_v24   ;;  %v3147_v21 = vrot.slane %v3139_v31, %v8379_v26  ;;  %v2405_v16 = vrot.slane %v2397_v34, %v8379_v26  ;;  %v2918_v34 = vld [vmem:[%s8240_s28 + $0x50] sm:$0xf] }
 0x164   : > { %v1816_v20 = vmul.bf16 %v1746_v47, %v1204_v53  ;;  %v3525_v30 = vmul.bf16 %v3423_v52, %v2916_v15  ;;  %4060 = vperm.xlu0 %7949, %v3751_v19   ;;  %v2721_v10 = vrot.slane %v9946_v57, 3  ;;  %v3424_v8 = vrot.slane %v3422_v55, 4  ;;  %v4679_v53 = vld [vmem:[%s11142_s3 + $0x4c] sm:$0xf] }
 0x165   : > { %v2539_v9 = vrot.slane %v2405_v16, 5  ;;  %v3425_v40 = vrot.slane %v3147_v21, 7  ;;  %v1747_v52 = vrot.slane %v9921_v28, 4 }
 0x166   : > { %v2409_v63 = vpop.permute.xlu1 %2408  ;;  %v1603_v3 = vpop.permute.xlu0 %1602  ;;  %v9951_v13 = vcombine.low %v3524_v37, %v3525_v30  ;;  %v9967_v38 = vcombine.low %v1815_v50, %v1816_v20  ;;  %v2722_v5 = vsel %vm965_vm3, %v2719_v1, %v2721_v10  ;;  %v2917_v1 = vld [vmem:[%s8240_s28 + $0x4c] sm:$0xf]  ;;  %v1207_v30 = vld [vmem:[%s8240_s28 + $0x84] sm:$0x1]  ;;  %v3754_v50 = vld [vmem:[%s11141_s2 + $0x70] sm:$0xf] }
 0x167   : > { %v2417_v43 = vrot.slane %v2409_v63, %v8379_v26  ;;  %v1611_v6 = vrot.slane %v1603_v3, %v8379_v26  ;;  %4072 = vperm.xlu1 %7950, %v3752_v45   ;;  %v2540_v4 = vsel %vm8404_vm2, %v2538_v62, %v2539_v9  ;;  %v2541_v29 = vrot.slane %v2539_v9, 4  ;;  %v1205_v63 = vld [vmem:[%s8240_s28 + $0x7c] sm:$0xf] }
 0x168   : > { %4910 = vperm.xlu0 %7949, %v4678_v48   ;;  %v3639_v14 = vrot.slane %v9951_v13, 1  ;;  %v3426_v59 = vsel %vm8933_vm6, %v3424_v8, %v3425_v40  ;;  %v2608_v54 = vmul.bf16 %v2540_v4, %v1999_v23  ;;  %v1931_v2 = vrot.slane %v9967_v38, 1  ;;  %v10078_v13 = vld [vmem:[%s8240_s28 + $0x5c] sm:$0xf] }
 0x169   : > { %v2542_v0 = vrot.slane %v2417_v43, 5  ;;  %6427 = vmatmul.mubr.bf16.gmra.mrb[64].mxu1 %v1930_v7  ;;  %v1748_v33 = vrot.slane %v1611_v6, 7  ;;  %v3427_v15 = vrot.slane %v3425_v40, 4  ;;  %v3526_v20 = vmul.bf16 %v3426_v59, %v2917_v1  ;;  %v4683_v1 = vld [vmem:[%s11142_s3 + $0x5c] sm:$0xf] }
 0x16a   : > { %v1615_v36 = vpop.permute.xlu1 %1614  ;;  %v3151_v42 = vpop.permute.xlu0 %3150  ;;  %6434 = vmatprep.mubr.bf16.mxu1 %v2722_v5  ;;  %v3640_v37 = vsel %vm1903_vm7, %v3637_v39, %v3639_v14  ;;  %v1932_v28 = vsel %vm1903_vm7, %v1929_v22, %v1931_v2  ;;  %v4682_v22 = vld [vmem:[%s11142_s3 + $0x58] sm:$0xf] }
 0x16b   : > { %v2543_v25 = vsel %vm8404_vm2, %v2541_v29, %v2542_v0  ;;  %v2544_v35 = vrot.slane %v2542_v0, 4  ;;  %4934 = vperm.xlu1 %7950, %v4680_v12   ;;  %v1623_v61 = vrot.slane %v1615_v36, %v8379_v26  ;;  %v3159_v24 = vrot.slane %v3151_v42, %v8379_v26  ;;  %6531 = vmatprep.mubr.bf16.mxu0 %v3640_v37  ;;  %v2920_v0 = vld [vmem:[%s8240_s28 + $0x58] sm:$0xf]  ;;  %v4684_v36 = vld [vmem:[%s11142_s3 + $0x60] sm:$0xf]  ;;  %v8035_v37 = vld [vmem:[%s8240_s28 + $0x44] sm:$0xff]  }
 0x16c   : > { %v2609_v56 = vmul.bf16 %v2543_v25, %v2000_v11  ;;  %4922 = vperm.xlu0 %7949, %v4679_v53   ;;  %v1750_v17 = vrot.slane %v1748_v33, 4  ;;  %6532 = vmatmul.mubr.bf16.gmra.mrb[68].mxu0 %v8031_v49  ;;  %v1749_v3 = vsel %vm8933_vm6, %v1747_v52, %v1748_v33  ;;  %v2919_v42 = vld [vmem:[%s8240_s28 + $0x54] sm:$0xf] }
 0x16d   : > { %v2610_v55 = vmul.bf16 %v2544_v35, %v2001_v18  ;;  %v1751_v31 = vrot.slane %v1623_v61, 7  ;;  %v3428_v19 = vrot.slane %v3159_v24, 7  ;;  %v1817_v11 = vmul.bf16 %v1749_v3, %v1205_v63 }
 0x16e   : > { %v3175_v51 = vpop.permute.xlu1 %3174  ;;  %v3163_v27 = vpop.permute.xlu0 %3162  ;;  %v10001_v47 = vcombine.low %v2608_v54, %v2609_v56 }
 0x16f   : > { %v3183_v39 = vrot.slane %v3175_v51, %v8379_v26  ;;  %v3171_v21 = vrot.slane %v3163_v27, %v8379_v26  ;;  %4946 = vperm.xlu1 %7950, %v4681_v41   ;;  %v1752_v16 = vsel %vm8933_vm6, %v1750_v17, %v1751_v31  ;;  %v1753_v45 = vrot.slane %v1751_v31, 4  ;;  %v4685_v51 = vld [vmem:[%s11142_s3 + $0x64] sm:$0xf]  ;;  %v3693_v27 = vld [vmem:[%s8240_s28 + $0x20] sm:$0x8] }
 0x170   : > { %v3429_v62 = vsel %vm8933_vm6, %v3427_v15, %v3428_v19  ;;  %v7243_v9 = vcombine.low %v2610_v55, %v2610_v55  ;;  %4084 = vperm.xlu0 %7949, %v3753_v58   ;;  %v1818_v40 = vmul.bf16 %v1752_v16, %v1206_v32  ;;  %v2723_v4 = vrot.slane %v10001_v47, 3 }
 0x171   : > { %v3527_v48 = vmul.bf16 %v3429_v62, %v2918_v34  ;;  %6435 = vmatmul.mubr.bf16.gmra.mrb[68].mxu1 %v1932_v28  ;;  %v1819_v43 = vmul.bf16 %v1753_v45, %v1207_v30  ;;  %v3431_v6 = vrot.slane %v3171_v21, 7  ;;  %v3430_v7 = vrot.slane %v3428_v19, 4  ;;  %v3755_v45 = vld [vmem:[%s11141_s2 + $0x74] sm:$0xf] }
 0x172   : > { %v3761_v60 = vpop.permute.xlu1 %3760  ;;  %v3187_v23 = vpop.permute.xlu0 %3186  ;;  %v3434_v12 = vrot.slane %v3183_v39, 7  ;;  %v2724_v5 = vsel %vm965_vm3, %v2721_v10, %v2723_v4  ;;  %v2725_v25 = vrot.slane %v7243_v9, 3  ;;  %v10047_v56 = vcombine.low %v1817_v11, %v1818_v40 }
 0x173   : > { %v3769_v8 = vrot.slane %v3761_v60, %v8379_v26  ;;  %4096 = vperm.xlu1 %7950, %v3754_v50   ;;  %v10028_v29 = vcombine.low %v3526_v20, %v3527_v48  ;;  %v3433_v18 = vrot.slane %v3431_v6, 4  ;;  %v3195_v33 = vrot.slane %v3187_v23, %v8379_v26  ;;  %6442 = vmatprep.mubr.bf16.mxu1 %v2724_v5  ;;  %v3695_v50 = vld [vmem:[%s8240_s28 + $0x28] sm:$0xf] }
 0x174   : > { %v3432_v53 = vsel %vm8933_vm6, %v3430_v7, %v3431_v6  ;;  %4958 = vperm.xlu0 %7949, %v4682_v22   ;;  %v7418_v59 = vpop.f32.mrb[0].mxu0  ;;  %v7226_v35 = vcombine.low %v1819_v43, %v1819_v43  ;;  %v3436_v61 = vrot.slane %v3434_v12, 4  ;;  %v1933_v32 = vrot.slane %v10047_v56, 1  ;;  %v3696_v6 = vld [vmem:[%s8240_s28 + $0x2c] sm:$0xf] }
 0x175   : > { %v3641_v54 = vrot.slane %v10028_v29, 1  ;;  %v3435_v57 = vsel %vm8933_vm6, %v3433_v18, %v3434_v12  ;;  %v7419_v10 = vpop.f32.mrb[1].mxu0  ;;  %v10049_v41 = vrot.slane %v3769_v8, 5  ;;  %v3528_v58 = vmul.bf16 %v3432_v53, %v2919_v42  ;;  %v4686_v8 = vld [vmem:[%s11142_s3 + $0x68] sm:$0xf] }
 0x176   : > { %v3785_v49 = vpop.permute.xlu1 %3784  ;;  %v3529_v24 = vmul.bf16 %v3435_v57, %v2920_v0  ;;  %v3773_v15 = vpop.permute.xlu0 %3772  ;;  %v10052_v17 = vrot.slane %v3195_v33, 7  ;;  %v10054_v31 = vadd.f32 %v7419_v10, %v7418_v59  ;;  %v1935_v30 = vrot.slane %v7226_v35, 1  ;;  %v2922_v18 = vld [vmem:[%s8240_s28 + $0x60] sm:$0xf]  ;;  %v8036_v10 = vld [vmem:[%s8240_s28 + $0x4c] sm:$0xff]  }
 0x177   : > { %v7421_v55 = vpop.f32.mrb[2].mxu0  ;;  %4982 = vperm.xlu1 %7950, %v4684_v36   ;;  %v3793_v34 = vrot.slane %v3785_v49, %v8379_v26  ;;  %v3781_v47 = vrot.slane %v3773_v15, %v8379_v26  ;;  %v3642_v20 = vsel %vm1903_vm7, %v3639_v14, %v3641_v54  ;;  %v2726_v21 = vsel %vm965_vm3, %v2723_v4, %v2725_v25  ;;  %v3694_v14 = vld [vmem:[%s8240_s28 + $0x24] sm:$0xf]  ;;  %v2924_v56 = vld [vmem:[%s8240_s28 + $0x68] sm:$0xf] }
 0x178   : > { %v7422_v19 = vpop.f32.mrb[3].mxu0  ;;  %4970 = vperm.xlu0 %7949, %v4683_v1   ;;  %6539 = vmatprep.mubr.bf16.mxu0 %v3642_v20  ;;  %v10074_v62 = vcombine.low %v3528_v58, %v3529_v24  ;;  %v4175_v28 = vrot.slane %v10049_v41, 4  ;;  %v1934_v63 = vsel %vm1903_vm7, %v1931_v2, %v1933_v32  ;;  %v4302_v40 = vmul.bf16 %v10049_v41, %v3693_v27  ;;  %v3756_v2 = vld [vmem:[%s11141_s2 + $0x78] sm:$0xf]  ;;  %v4688_v24 = vld [vmem:[%s11142_s3 + $0x70] sm:$0xf] }
 0x179   : > { %v10062_v52 = vadd.f32 %v7422_v19, %v7421_v55  ;;  %v4179_v39 = vrot.slane %v3793_v34, 5  ;;  %v4176_v9 = vrot.slane %v3781_v47, 5  ;;  %6540 = vmatmul.mubr.bf16.gmra.mrb[72].mxu0 %v8035_v37  ;;  %v3438_v43 = vsel %vm8933_vm6, %v3436_v61, %v10052_v17  ;;  %6443 = vmatmul.mubr.bf16.gmra.mrb[72].mxu1 %v1934_v63  ;;  %v8042_v58 = vld [vmem:[%s8240_s28 + $0x24] sm:$0xff]   ;;  %v4687_v27 = vld [vmem:[%s11142_s3 + $0x6c] sm:$0xf] }
 0x17a   : > { %v3797_v16 = vpop.permute.xlu1 %3796  ;;  %v3199_v48 = vpop.permute.xlu0 %3198  ;;  %v3643_v38 = vrot.slane %v10074_v62, 1  ;;  %6450 = vmatprep.mubr.bf16.mxu1 %v2726_v21  ;;  %v3439_v11 = vrot.slane %v10052_v17, 4  ;;  %v3530_v29 = vmul.bf16 %v3438_v43, %v10078_v13  ;;  %v1936_v19 = vsel %vm1903_vm7, %v1933_v32, %v1935_v30  ;;  %v4689_v30 = vld [vmem:[%s11142_s3 + $0x74] sm:$0xf] }
 0x17b   : > { %v3805_v3 = vrot.slane %v3797_v16, %v8379_v26  ;;  %4994 = vperm.xlu1 %7950, %v4685_v51   ;;  %v3207_v60 = vrot.slane %v3199_v48, %v8379_v26  ;;  %v4181_v23 = vrot.slane %v4179_v39, 4  ;;  %v4177_v22 = vsel %vm8404_vm2, %v4175_v28, %v4176_v9 }
 0x17c   : > { %v4178_v4 = vrot.slane %v4176_v9, 4  ;;  %4108 = vperm.xlu0 %7949, %v3755_v45   ;;  %v7424_v12 = vpop.f32.mrb[4].mxu0  ;;  %v4303_v0 = vmul.bf16 %v4177_v22, %v3694_v14  ;;  %v3644_v36 = vsel %vm1903_vm7, %v3641_v54, %v3643_v38  ;;  %v3757_v9 = vld [vmem:[%s11141_s2 + $0x7c] sm:$0xf] }
 0x17d   : > { %v10100_v7 = vrot.slane %v3805_v3, 5  ;;  %v3440_v33 = vrot.slane %v3207_v60, 7  ;;  %v7425_v5 = vpop.f32.mrb[5].mxu0  ;;  %6547 = vmatprep.mubr.bf16.mxu0 %v3644_v36  ;;  %v2923_v60 = vld [vmem:[%s8240_s28 + $0x64] sm:$0xf] }
 0x17e   : > { %v3809_v42 = vpop.permute.xlu1 %3808  ;;  %v4180_v53 = vsel %vm8404_vm2, %v4178_v4, %v4179_v39  ;;  %v10117_v25 = vadd.f32 %v7425_v5, %v7424_v12  ;;  %v3211_v35 = vpop.permute.xlu0 %3210  ;;  %v7277_v41 = vcombine.low %v4302_v40, %v4303_v0  ;;  %v8043_v5 = vld [vmem:[%s8240_s28 + $0x54] sm:$0xff]  }
 0x17f   : > { %v4183_v59 = vsel %vm8404_vm2, %v4181_v23, %v10100_v7  ;;  %v7427_v57 = vpop.f32.mrb[6].mxu0  ;;  %4120 = vperm.xlu1 %7950, %v3756_v2   ;;  %v4304_v49 = vmul.bf16 %v4180_v53, %v3695_v50  ;;  %v3441_v1 = vsel %vm8933_vm6, %v3439_v11, %v3440_v33  ;;  %v3817_v55 = vrot.slane %v3809_v42, %v8379_v26  ;;  %v3698_v23 = vld [vmem:[%s8240_s28 + $0x34] sm:$0xf]  ;;  %v4691_v42 = vld [vmem:[%s11142_s3 + $0x7c] sm:$0xf] }
 0x180   : > { %v4305_v54 = vmul.bf16 %v4183_v59, %v3696_v6  ;;  %v7428_v61 = vpop.f32.mrb[7].mxu0  ;;  %v3531_v15 = vmul.bf16 %v3441_v1, %v2922_v18  ;;  %v3219_v37 = vrot.slane %v3211_v35, %v8379_v26  ;;  %5006 = vperm.xlu0 %7949, %v4686_v8   ;;  %v4418_v28 = vrot.slane %v7277_v41, 3  ;;  %v3697_v53 = vld [vmem:[%s8240_s28 + $0x30] sm:$0xf]  ;;  %v3699_v1 = vld [vmem:[%s8240_s28 + $0x38] sm:$0xf] }
 0x181   : > { %v10131_v34 = vadd.f32 %v7428_v61, %v7427_v57  ;;  %v4185_v47 = vrot.slane %v3817_v55, 5  ;;  %6548 = vmatmul.mubr.bf16.gmra.mrb[76].mxu0 %v8036_v10  ;;  %6451 = vmatmul.mubr.bf16.gmra.mrb[76].mxu1 %v1936_v19  ;;  %v4184_v13 = vrot.slane %v10100_v7, 4  ;;  %v3442_v14 = vrot.slane %v3440_v33, 4 }
 0x182   : > { %v10129_v17 = vcombine.low %v4304_v49, %v4305_v54  ;;  %v3821_v51 = vpop.permute.xlu1 %3820  ;;  %v3443_v20 = vrot.slane %v3219_v37, 7  ;;  %v3223_v21 = vpop.permute.xlu0 %3222  ;;  %v10140_v16 = vcombine.low %v3530_v29, %v3531_v15  ;;  %6652 = vmatprep.mubr.bf16.mxu1 %v8042_v58  ;;  %v8044_v29 = vld [vmem:[%s8240_s28 + $0x2c] sm:$0xff]   ;;  %v4690_v15 = vld [vmem:[%s11142_s3 + $0x78] sm:$0xf] }
 0x183   : > { %v3829_v39 = vrot.slane %v3821_v51, %v8379_v26  ;;  %5030 = vperm.xlu1 %7950, %v4688_v24   ;;  %v3231_v32 = vrot.slane %v3223_v21, %v8379_v26  ;;  %v4187_v63 = vrot.slane %v4185_v47, 4  ;;  %v4186_v11 = vsel %vm8404_vm2, %v4184_v13, %v4185_v47  ;;  %v2926_v13 = vld [vmem:[%s8240_s28 + $0x70] sm:$0xf] }
 0x184   : > { %v4419_v45 = vrot.slane %v10129_v17, 3  ;;  %5018 = vperm.xlu0 %7949, %v4687_v27   ;;  %v7430_v50 = vpop.f32.mrb[8].mxu0  ;;  %v3445_v3 = vrot.slane %v3443_v20, 4  ;;  %v3444_v2 = vsel %vm8933_vm6, %v3442_v14, %v3443_v20  ;;  %v3645_v8 = vrot.slane %v10140_v16, 1  ;;  %v2925_v27 = vld [vmem:[%s8240_s28 + $0x6c] sm:$0xf] }
 0x185   : > { %v4188_v48 = vrot.slane %v3829_v39, 5  ;;  %v3446_v40 = vrot.slane %v3231_v32, 7  ;;  %v7431_v43 = vpop.f32.mrb[9].mxu0  ;;  %v3532_v49 = vmul.bf16 %v3444_v2, %v2923_v60  ;;  %v4306_v62 = vmul.bf16 %v4186_v11, %v3697_v53 }
 0x186   : > { %v3833_v6 = vpop.permute.xlu1 %3832  ;;  %v10156_v22 = vadd.f32 %v7431_v43, %v7430_v50  ;;  %v3235_v7 = vpop.permute.xlu0 %3234  ;;  %v4420_v36 = vsel %vm965_vm3, %v4418_v28, %v4419_v45  ;;  %v3646_v24 = vsel %vm1903_vm7, %v3643_v38, %v3645_v8 }
 0x187   : > { %v3841_v4 = vrot.slane %v3833_v6, %v8379_v26  ;;  %v7433_v12 = vpop.f32.mrb[10].mxu0  ;;  %5042 = vperm.xlu1 %7950, %v4689_v30   ;;  %v4189_v0 = vsel %vm8404_vm2, %v4187_v63, %v4188_v48  ;;  %v3447_v18 = vsel %vm8933_vm6, %v3445_v3, %v3446_v40  ;;  %v4190_v59 = vrot.slane %v4188_v48, 4  ;;  %6555 = vmatprep.mubr.bf16.mxu0 %v3646_v24  ;;  %v3702_v24 = vld [vmem:[%s8240_s28 + $0x44] sm:$0xf] }
 0x188   : > { %v7434_v33 = vpop.f32.mrb[11].mxu0  ;;  %v3533_v35 = vmul.bf16 %v3447_v18, %v2924_v56  ;;  %v3243_v10 = vrot.slane %v3235_v7, %v8379_v26  ;;  %4132 = vperm.xlu0 %7949, %v3757_v9   ;;  %v4307_v54 = vmul.bf16 %v4189_v0, %v3698_v23  ;;  %v3448_v55 = vrot.slane %v3446_v40, 4  ;;  %v3700_v56 = vld [vmem:[%s8240_s28 + $0x3c] sm:$0xf] }
 0x189   : > { %v4191_v57 = vrot.slane %v3841_v4, 5  ;;  %v10177_v61 = vadd.f32 %v7434_v33, %v7433_v12  ;;  %6556 = vmatmul.mubr.bf16.gmra.mrb[80].mxu0 %v8043_v5  ;;  %6653 = vmatmul.mubr.bf16.vlgmr.msra.gmra.mrb[80].mxu1 %v4420_v36  ;;  %v8045_v0 = vld [vmem:[%s8240_s28 + $0x5c] sm:$0xff]  }
 0x18a   : > { %v3845_v41 = vpop.permute.xlu1 %3844  ;;  %v3449_v58 = vrot.slane %v3243_v10, 7  ;;  %v3247_v51 = vpop.permute.xlu0 %3246  ;;  %v10192_v47 = vcombine.low %v3532_v49, %v3533_v35  ;;  %6660 = vmatprep.mubr.bf16.mxu1 %v8044_v29  ;;  %v10201_v3 = vcombine.low %v4306_v62, %v4307_v54 }
 0x18b   : > { %v4192_v37 = vsel %vm8404_vm2, %v4190_v59, %v4191_v57  ;;  %v3853_v19 = vrot.slane %v3845_v41, %v8379_v26  ;;  %5066 = vperm.xlu1 %7950, %v4691_v42   ;;  %v3255_v38 = vrot.slane %v3247_v51, %v8379_v26  ;;  %v4193_v20 = vrot.slane %v4191_v57, 4  ;;  %v8047_v59 = vld [vmem:[%s8240_s28 + $0x34] sm:$0xff]   ;;  %v3701_v57 = vld [vmem:[%s8240_s28 + $0x40] sm:$0xf] }
 0x18c   : > { %v4308_v39 = vmul.bf16 %v4192_v37, %v3699_v1  ;;  %v3450_v21 = vsel %vm8933_vm6, %v3448_v55, %v3449_v58  ;;  %5054 = vperm.xlu0 %7949, %v4690_v15   ;;  %v7436_v30 = vpop.f32.mrb[12].mxu0  ;;  %v3451_v28 = vrot.slane %v3449_v58, 4  ;;  %v3647_v63 = vrot.slane %v10192_v47, 1 }
 0x18d   : > { %v4194_v32 = vrot.slane %v3853_v19, 5  ;;  %v10198_v14 = vrot.slane %v3255_v38, 7  ;;  %v7437_v50 = vpop.f32.mrb[13].mxu0  ;;  %v3534_v48 = vmul.bf16 %v3450_v21, %v2925_v27  ;;  %v4421_v42 = vrot.slane %v10201_v3, 3  ;;  %v2928_v38 = vld [vmem:[%s8240_s28 + $0x78] sm:$0xf] }
 0x18e   : > { %v3857_v9 = vpop.permute.xlu1 %3856  ;;  %v10205_v43 = vadd.f32 %v7437_v50, %v7436_v30  ;;  %v3259_v60 = vpop.permute.xlu0 %3258  ;;  %v3648_v36 = vsel %vm1903_vm7, %v3645_v8, %v3647_v63  ;;  %v2927_v50 = vld [vmem:[%s8240_s28 + $0x74] sm:$0xf] }
 0x18f   : > { %v4195_v40 = vsel %vm8404_vm2, %v4193_v20, %v4194_v32  ;;  %v3865_v6 = vrot.slane %v3857_v9, %v8379_v26  ;;  %v7439_v2 = vpop.f32.mrb[14].mxu0  ;;  %v4196_v23 = vrot.slane %v4194_v32, 4  ;;  %v3453_v7 = vsel %vm8933_vm6, %v3451_v28, %v10198_v14  ;;  %6563 = vmatprep.mubr.bf16.mxu0 %v3648_v36 }
 0x190   : > { %v4309_v4 = vmul.bf16 %v4195_v40, %v3700_v56  ;;  %v3267_v12 = vrot.slane %v3259_v60, %v8379_v26  ;;  %v7440_v11 = vpop.f32.mrb[15].mxu0  ;;  %v3535_v18 = vmul.bf16 %v3453_v7, %v2926_v13  ;;  %v4422_v16 = vsel %vm965_vm3, %v4419_v45, %v4421_v42 }
 0x191   : > { %v4197_v33 = vrot.slane %v3865_v6, 5  ;;  %v10213_v5 = vadd.f32 %v7440_v11, %v7439_v2  ;;  %6564 = vmatmul.mubr.bf16.gmra.mrb[84].mxu0 %v8045_v0  ;;  %6661 = vmatmul.mubr.bf16.gmra.mrb[84].mxu1 %v4422_v16  ;;  %v3454_v58 = vrot.slane %v10198_v14, 4  ;;  %v8048_v14 = vld [vmem:[%s8240_s28 + $0x64] sm:$0xff]  }
 0x192   : > { %v3869_v53 = vpop.permute.xlu1 %3868  ;;  %v10220_v35 = vcombine.low %v4308_v39, %v4309_v4  ;;  %v3455_v29 = vrot.slane %v3267_v12, 7  ;;  %v3271_v54 = vpop.permute.xlu0 %3270  ;;  %v10226_v1 = vcombine.low %v3534_v48, %v3535_v18  ;;  %6668 = vmatprep.mubr.bf16.mxu1 %v8047_v59 }
 0x193   : > { %v4198_v10 = vsel %vm8404_vm2, %v4196_v23, %v4197_v33  ;;  %v3877_v49 = vrot.slane %v3869_v53, %v8379_v26  ;;  %v4199_v8 = vrot.slane %v4197_v33, 4  ;;  %v3279_v15 = vrot.slane %v3271_v54, %v8379_v26  ;;  %v3704_v33 = vld [vmem:[%s8240_s28 + $0x4c] sm:$0xf] }
 0x194   : > { %v7442_v55 = vpop.f32.mrb[16].mxu0  ;;  %v3649_v37 = vrot.slane %v10226_v1, 1  ;;  %v4310_v19 = vmul.bf16 %v4198_v10, %v3701_v57  ;;  %v4423_v17 = vrot.slane %v10220_v35, 3  ;;  %v3457_v45 = vrot.slane %v3455_v29, 4  ;;  %v3703_v57 = vld [vmem:[%s8240_s28 + $0x48] sm:$0xf] }
 0x195   : > { %v4200_v41 = vrot.slane %v3877_v49, 5  ;;  %v7443_v51 = vpop.f32.mrb[17].mxu0  ;;  %v3458_v47 = vrot.slane %v3279_v15, 7  ;;  %v3456_v9 = vsel %vm8933_vm6, %v3454_v58, %v3455_v29 }
 0x196   : > { %v3881_v62 = vpop.permute.xlu1 %3880  ;;  %v10239_v20 = vadd.f32 %v7443_v51, %v7442_v55  ;;  %v3283_v39 = vpop.permute.xlu0 %3282  ;;  %v3650_v13 = vsel %vm1903_vm7, %v3647_v63, %v3649_v37  ;;  %v4424_v60 = vsel %vm965_vm3, %v4421_v42, %v4423_v17  ;;  %v8049_v63 = vld [vmem:[%s8240_s28 + $0x3c] sm:$0xff]   ;;  %v3536_v11 = vmul.bf16 %v3456_v9, %v2927_v50 }
 0x197   : > { %v4201_v27 = vsel %vm8404_vm2, %v4199_v8, %v4200_v41  ;;  %v7445_v21 = vpop.f32.mrb[18].mxu0  ;;  %v3889_v32 = vrot.slane %v3881_v62, %v8379_v26  ;;  %v3291_v30 = vrot.slane %v3283_v39, %v8379_v26  ;;  %v3459_v3 = vsel %vm8933_vm6, %v3457_v45, %v3458_v47  ;;  %6571 = vmatprep.mubr.bf16.mxu0 %v3650_v13 }
 0x198   : > { %v4311_v56 = vmul.bf16 %v4201_v27, %v3702_v24  ;;  %v7446_v28 = vpop.f32.mrb[19].mxu0  ;;  %v3537_v40 = vmul.bf16 %v3459_v3, %v2928_v38  ;;  %v4202_v0 = vrot.slane %v4200_v41, 4  ;;  %v3460_v59 = vrot.slane %v3458_v47, 4  ;;  %v2930_v41 = vld [vmem:[%s8240_s28 + $0x80] sm:$0xf]  ;;  %v8050_v47 = vld [vmem:[%s8240_s28 + $0x6c] sm:$0xff]  }
 0x199   : > { %v10252_v48 = vadd.f32 %v7446_v28, %v7445_v21  ;;  %v4203_v6 = vrot.slane %v3889_v32, 5  ;;  %v3461_v4 = vrot.slane %v3291_v30, 7  ;;  %6572 = vmatmul.mubr.bf16.gmra.mrb[88].mxu0 %v8048_v14  ;;  %6669 = vmatmul.mubr.bf16.gmra.mrb[88].mxu1 %v4424_v60  ;;  %v2929_v21 = vld [vmem:[%s8240_s28 + $0x7c] sm:$0xf]  ;;  %v8052_v3 = vld [vmem:[%s8240_s28 + $0x44] sm:$0xff]  }
 0x19a   : > { %v3893_v2 = vpop.permute.xlu1 %3892  ;;  %v10258_v23 = vcombine.low %v4310_v19, %v4311_v56  ;;  %v3295_v12 = vpop.permute.xlu0 %3294  ;;  %v10266_v54 = vcombine.low %v3536_v11, %v3537_v40  ;;  %6676 = vmatprep.mubr.bf16.mxu1 %v8049_v63 }
 0x19b   : > { %v3901_v7 = vrot.slane %v3893_v2, %v8379_v26  ;;  %v4205_v18 = vrot.slane %v4203_v6, 4  ;;  %v3303_v53 = vrot.slane %v3295_v12, %v8379_v26  ;;  %v4204_v10 = vsel %vm8404_vm2, %v4202_v0, %v4203_v6  ;;  %v3705_v0 = vld [vmem:[%s8240_s28 + $0x50] sm:$0xf] }
 0x19c   : > { %v7448_v42 = vpop.f32.mrb[20].mxu0  ;;  %v4425_v16 = vrot.slane %v10258_v23, 3  ;;  %v3463_v8 = vrot.slane %v3461_v4, 4  ;;  %v3651_v38 = vrot.slane %v10266_v54, 1  ;;  %v4312_v39 = vmul.bf16 %v4204_v10, %v3703_v57  ;;  %v2932_v10 = vld [vmem:[%s8240_s28 + $0x88] sm:$0xf] }
 0x19d   : > { %v4206_v36 = vrot.slane %v3901_v7, 5  ;;  %v7449_v29 = vpop.f32.mrb[21].mxu0  ;;  %v3464_v15 = vrot.slane %v3303_v53, 7  ;;  %v3462_v56 = vsel %vm8933_vm6, %v3460_v59, %v3461_v4  ;;  %v3706_v4 = vld [vmem:[%s8240_s28 + $0x54] sm:$0xf] }
 0x19e   : > { %v3905_v49 = vpop.permute.xlu1 %3904  ;;  %v10272_v55 = vadd.f32 %v7449_v29, %v7448_v42  ;;  %v3307_v58 = vpop.permute.xlu0 %3306  ;;  %v3652_v14 = vsel %vm1903_vm7, %v3649_v37, %v3651_v38  ;;  %v4426_v50 = vsel %vm965_vm3, %v4423_v17, %v4425_v16  ;;  %v3538_v63 = vmul.bf16 %v3462_v56, %v2929_v21 }
 0x19f   : > { %v4207_v24 = vsel %vm8404_vm2, %v4205_v18, %v4206_v36  ;;  %v7451_v19 = vpop.f32.mrb[22].mxu0  ;;  %v3913_v62 = vrot.slane %v3905_v49, %v8379_v26  ;;  %v3315_v45 = vrot.slane %v3307_v58, %v8379_v26  ;;  %v3465_v32 = vsel %vm8933_vm6, %v3463_v8, %v3464_v15  ;;  %6579 = vmatprep.mubr.bf16.mxu0 %v3652_v14 }
 0x1a0   : > { %v4313_v51 = vmul.bf16 %v4207_v24, %v3704_v33  ;;  %v7452_v27 = vpop.f32.mrb[23].mxu0  ;;  %v3539_v28 = vmul.bf16 %v3465_v32, %v2930_v41  ;;  %v4208_v1 = vrot.slane %v4206_v36, 4  ;;  %v3466_v11 = vrot.slane %v3464_v15, 4 }
 0x1a1   : > { %v10283_v30 = vadd.f32 %v7452_v27, %v7451_v19  ;;  %v4209_v13 = vrot.slane %v3913_v62, 5  ;;  %v3467_v40 = vrot.slane %v3315_v45, 7  ;;  %6580 = vmatmul.mubr.bf16.gmra.mrb[92].mxu0 %v8050_v47  ;;  %6677 = vmatmul.mubr.bf16.gmra.mrb[92].mxu1 %v4426_v50  ;;  %v2931_v27 = vld [vmem:[%s8240_s28 + $0x84] sm:$0xf] }
 0x1a2   : > { %v3917_v9 = vpop.permute.xlu1 %3916  ;;  %v3319_v60 = vpop.permute.xlu0 %3318  ;;  %v10297_v2 = vcombine.low %v4312_v39, %v4313_v51  ;;  %v10306_v42 = vcombine.low %v3538_v63, %v3539_v28  ;;  %6684 = vmatprep.mubr.bf16.mxu1 %v8052_v3  ;;  %v8053_v28 = vld [vmem:[%s8240_s28 + $0x74] sm:$0xff]   ;;  %v8054_v3 = vld [vmem:[%s8240_s28 + $0x4c] sm:$0xff]  }
 0x1a3   : > { %v3925_v6 = vrot.slane %v3917_v9, %v8379_v26  ;;  %v4211_v37 = vrot.slane %v4209_v13, 4  ;;  %v3327_v17 = vrot.slane %v3319_v60, %v8379_v26  ;;  %v4210_v18 = vsel %vm8404_vm2, %v4208_v1, %v4209_v13 }
 0x1a4   : > { %v7454_v7 = vpop.f32.mrb[24].mxu0  ;;  %v7490_v12 = vpop.f32.mrb[0].mxu1  ;;  %v4427_v36 = vrot.slane %v10297_v2, 3  ;;  %v3469_v59 = vrot.slane %v3467_v40, 4  ;;  %v4314_v45 = vmul.bf16 %v4210_v18, %v3705_v0  ;;  %v3468_v47 = vsel %vm8933_vm6, %v3466_v11, %v3467_v40 }
 0x1a5   : > { %v10300_v35 = vrot.slane %v3925_v6, 5  ;;  %v7455_v33 = vpop.f32.mrb[25].mxu0  ;;  %v7491_v53 = vpop.f32.mrb[1].mxu1  ;;  %v3470_v29 = vrot.slane %v3327_v17, 7  ;;  %v3653_v32 = vrot.slane %v10306_v42, 1 }
 0x1a6   : > { %v10313_v49 = vadd.f32 %v7455_v33, %v7454_v7  ;;  %v3929_v8 = vpop.permute.xlu1 %3928  ;;  %v3331_v24 = vpop.permute.xlu0 %3330  ;;  %v10315_v15 = vadd.f32 %v7491_v53, %v7490_v12  ;;  %v4428_v9 = vsel %vm965_vm3, %v4425_v16, %v4427_v36 }
 0x1a7   : > { %v4213_v57 = vsel %vm8404_vm2, %v4211_v37, %v10300_v35  ;;  %v3937_v58 = vrot.slane %v3929_v8, %v8379_v26  ;;  %v3339_v19 = vrot.slane %v3331_v24, %v8379_v26  ;;  %v7457_v51 = vpop.f32.mrb[26].mxu0  ;;  %v7493_v62 = vpop.f32.mrb[2].mxu1  ;;  %v3471_v39 = vsel %vm8933_vm6, %v3469_v59, %v3470_v29 }
 0x1a8   : > { %v4315_v41 = vmul.bf16 %v4213_v57, %v3706_v4  ;;  %v7458_v21 = vpop.f32.mrb[27].mxu0  ;;  %v7494_v56 = vpop.f32.mrb[3].mxu1  ;;  %v3541_v13 = vmul.bf16 %v3471_v39, %v2932_v10  ;;  %v3654_v60 = vsel %vm1903_vm7, %v3651_v38, %v3653_v32  ;;  %v3540_v4 = vmul.bf16 %v3468_v47, %v2931_v27  ;;  %v2933_v38 = vld [vmem:[%s8240_s28 + $0x8c] sm:$0xf]  ;;  %v3708_v57 = vld [vmem:[%s8240_s28 + $0x5c] sm:$0xf] }
 0x1a9   : > { %v3473_v14 = vrot.slane %v3339_v19, 7  ;;  %v10326_v50 = vadd.f32 %v7458_v21, %v7457_v51  ;;  %v4215_v40 = vrot.slane %v3937_v58, 5  ;;  %v10334_v6 = vadd.f32 %v7494_v56, %v7493_v62  ;;  %6587 = vmatprep.mubr.bf16.mxu0 %v3654_v60  ;;  %6685 = vmatmul.mubr.bf16.gmra.mrb[96].mxu1 %v4428_v9  ;;  %v3707_v47 = vld [vmem:[%s8240_s28 + $0x58] sm:$0xf] }
 0x1aa   : > { %v3941_v63 = vpop.permute.xlu1 %3940  ;;  %v3343_v1 = vpop.permute.xlu0 %3342  ;;  %v10341_v37 = vcombine.low %v4314_v45, %v4315_v41  ;;  %v3472_v17 = vrot.slane %v3470_v29, 4  ;;  %6588 = vmatmul.mubr.bf16.gmra.mrb[96].mxu0 %v8053_v28  ;;  %v4214_v54 = vrot.slane %v10300_v35, 4  ;;  %v10350_v53 = vcombine.low %v3540_v4, %v3541_v13  ;;  %6692 = vmatprep.mubr.bf16.mxu1 %v8054_v3  ;;  %v2934_v29 = vld [vmem:[%s8240_s28 + $0x90] sm:$0xf]  ;;  %v2935_v28 = vld [vmem:[%s8240_s28 + $0x94] sm:$0x1] }
 0x1ab   : > { %v3949_v23 = vrot.slane %v3941_v63, %v8379_v26  ;;  %v3351_v0 = vrot.slane %v3343_v1, %v8379_v26  ;;  %v4217_v59 = vrot.slane %v4215_v40, 4  ;;  %v3475_v58 = vrot.slane %v3473_v14, 4  ;;  %v8055_v1 = vld [vmem:[%s8240_s28 + $0x7c] sm:$0xff]   ;;  %v8057_v4 = vld [vmem:[%s8240_s28 + $0x54] sm:$0xff]  }
 0x1ac   : > { %v7460_v16 = vpop.f32.mrb[28].mxu0  ;;  %v7496_v7 = vpop.f32.mrb[4].mxu1  ;;  %v4429_v12 = vrot.slane %v10341_v37, 3  ;;  %v3474_v11 = vsel %vm8933_vm6, %v3472_v17, %v3473_v14  ;;  %v3655_v27 = vrot.slane %v10350_v53, 1  ;;  %v4216_v39 = vsel %vm8404_vm2, %v4214_v54, %v4215_v40 }
 0x1ad   : > { %v7461_v18 = vpop.f32.mrb[29].mxu0  ;;  %v7497_v33 = vpop.f32.mrb[5].mxu1  ;;  %v10353_v10 = vrot.slane %v3949_v23, 5  ;;  %v3476_v19 = vrot.slane %v3351_v0, 7  ;;  %v3542_v21 = vmul.bf16 %v3474_v11, %v2933_v38  ;;  %v4316_v2 = vmul.bf16 %v4216_v39, %v3707_v47 }
 0x1ae   : > { %v10356_v8 = vadd.f32 %v7461_v18, %v7460_v16  ;;  %v10358_v35 = vadd.f32 %v7497_v33, %v7496_v7  ;;  %v3965_v24 = vpop.permute.xlu1 %3964  ;;  %v3953_v41 = vpop.permute.xlu0 %3952  ;;  %v4430_v9 = vsel %vm965_vm3, %v4427_v36, %v4429_v12  ;;  %v3656_v36 = vsel %vm1903_vm7, %v3653_v32, %v3655_v27 }
 0x1af   : > { %v3961_v51 = vrot.slane %v3953_v41, %v8379_v26  ;;  %v7463_v62 = vpop.f32.mrb[30].mxu0  ;;  %v7499_v45 = vpop.f32.mrb[6].mxu1  ;;  %v4219_v56 = vsel %vm8404_vm2, %v4217_v59, %v10353_v10  ;;  %v3477_v60 = vsel %vm8933_vm6, %v3475_v58, %v3476_v19  ;;  %v3478_v63 = vrot.slane %v3476_v19, 4  ;;  %6595 = vmatprep.mubr.bf16.mxu0 %v3656_v36 }
 0x1b0   : > { %11156 = vst [vmem:[#allocation3_spill] sm:$0xff] %v10358_v35  ;;  %v7464_v13 = vpop.f32.mrb[31].mxu0  ;;  %v7500_v14 = vpop.f32.mrb[7].mxu1  ;;  %v4317_v3 = vmul.bf16 %v4219_v56, %v3708_v57  ;;  %v3973_v40 = vrot.slane %v3965_v24, %v8379_v26  ;;  %v3543_v17 = vmul.bf16 %v3477_v60, %v2934_v29  ;;  %v4220_v32 = vrot.slane %v10353_v10, 4  ;;  %v3709_v56 = vld [vmem:[%s8240_s28 + $0x60] sm:$0xf] }
 0x1b1   : > { %v4221_v23 = vrot.slane %v3961_v51, 5  ;;  %v10379_v16 = vadd.f32 %v7464_v13, %v7463_v62  ;;  %v10381_v7 = vadd.f32 %v7500_v14, %v7499_v45  ;;  %v3544_v11 = vmul.bf16 %v3478_v63, %v2935_v28  ;;  %6693 = vmatmul.mubr.bf16.gmra.mrb[100].mxu1 %v4430_v9  ;;  %v3710_v28 = vld [vmem:[%s8240_s28 + $0x64] sm:$0xf] }
 0x1b2   : > { %v4707_v54 = vpop.permute.xlu1 %4706  ;;  %v4695_v38 = vpop.permute.xlu0 %4694  ;;  %v7275_v29 = vcombine.low %v3542_v21, %v3543_v17  ;;  %v4224_v41 = vrot.slane %v3973_v40, 5  ;;  %6596 = vmatmul.mubr.bf16.gmra.mrb[100].mxu0 %v8055_v1  ;;  %6700 = vmatprep.mubr.bf16.mxu1 %v8057_v4  ;;  %v10390_v42 = vcombine.low %v4316_v2, %v4317_v3  ;;  %v10407_v63 = vld [vmem:[%s8240_s28 + $0x24] sm:$0xe] }
 0x1b3   : > { %11157 = vst [vmem:[#allocation4_spill] sm:$0xff] %v10381_v7  ;;  %v4715_v0 = vrot.slane %v4707_v54, %v8379_v26  ;;  %v4223_v18 = vrot.slane %v4221_v23, 4  ;;  %v4703_v33 = vrot.slane %v4695_v38, %v8379_v26  ;;  %v7276_v24 = vcombine.low %v3544_v11, %v3544_v11  ;;  %v10412_v38 = vld [vmem:[%s8240_s28 + $0x28] sm:$0xf]  ;;  %v3721_v7 = vld [vmem:[%s8240_s28 + $0x90] sm:$0xf] }
 0x1b4   : > { %v7466_v59 = vpop.f32.mrb[32].mxu0  ;;  %v7502_v57 = vpop.f32.mrb[8].mxu1  ;;  %v4222_v60 = vsel %vm8404_vm2, %v4220_v32, %v4221_v23  ;;  %v3657_v54 = vrot.slane %v7275_v29, 1  ;;  %v11145_v23 = vrot.slane %v10390_v42, 3 }
 0x1b5   : > { %v7467_v58 = vpop.f32.mrb[33].mxu0  ;;  %v7503_v19 = vpop.f32.mrb[9].mxu1  ;;  %v10393_v51 = vrot.slane %v4703_v33, 7  ;;  %v3659_v21 = vrot.slane %v7276_v24, 1  ;;  %v4225_v13 = vsel %vm8404_vm2, %v4223_v18, %v4224_v41  ;;  %v5110_v14 = vrot.slane %v4715_v0, 7  ;;  %v8058_v0 = vld [vmem:[%s8240_s28 + $0x84] sm:$0xff]  }
 0x1b6   : > { %v10395_v62 = vadd.f32 %v7467_v58, %v7466_v59  ;;  %v10397_v45 = vadd.f32 %v7503_v19, %v7502_v57  ;;  %v3977_v47 = vpop.permute.xlu1 %3976  ;;  %v4719_v39 = vpop.permute.xlu0 %4718  ;;  %v8059_v18 = vld [vmem:[%s8240_s28 + $0x5c] sm:$0xff]   ;;  %v4319_v33 = vmul.bf16 %v4225_v13, %v3710_v28  ;;  %v3658_v29 = vsel %vm1903_vm7, %v3655_v27, %v3657_v54 }
 0x1b7   : > { %v3985_v9 = vrot.slane %v3977_v47, %v8379_v26  ;;  %v7469_v10 = vpop.f32.mrb[34].mxu0  ;;  %v7505_v3 = vpop.f32.mrb[10].mxu1  ;;  %v5109_v40 = vrot.slane %v10393_v51, 4  ;;  %v4727_v1 = vrot.slane %v4719_v39, %v8379_v26  ;;  %v4226_v19 = vrot.slane %v4224_v41, 4  ;;  %6603 = vmatprep.mubr.bf16.mxu0 %v3658_v29 }
 0x1b8   : > { %11158 = vst [vmem:[#allocation5_spill] sm:$0xff] %v10397_v45  ;;  %v7470_v4 = vpop.f32.mrb[35].mxu0  ;;  %v7506_v17 = vpop.f32.mrb[11].mxu1  ;;  %v5112_v32 = vrot.slane %v5110_v14, 4  ;;  %v4432_v47 = vsel %vm965_vm3, %v4429_v12, %v11145_v23  ;;  %v3660_v39 = vsel %vm1903_vm7, %v3657_v54, %v3659_v21  ;;  %v4318_v28 = vmul.bf16 %v4222_v60, %v3709_v56  ;;  %v4630_v60 = vld [vmem:[%s8240_s28 + $0x30] sm:$0xf] }
 0x1b9   : > { %v10414_v2 = vrot.slane %v3985_v9, 5  ;;  %v10416_v11 = vadd.f32 %v7470_v4, %v7469_v10  ;;  %v10418_v36 = vadd.f32 %v7506_v17, %v7505_v3  ;;  %v10425_v59 = vsel %vm8933_vm6, %v5109_v40, %v5110_v14  ;;  %6701 = vmatmul.mubr.bf16.gmra.mrb[104].mxu1 %v4432_v47  ;;  %v10442_v9 = vld [vmem:[%s8240_s28 + $0x68] sm:$0xf]  ;;  %v4629_v10 = vld [vmem:[%s8240_s28 + $0x2c] sm:$0xf] }
 0x1ba   : > { %v5113_v57 = vrot.slane %v4727_v1, 7  ;;  %v4743_v24 = vpop.permute.xlu1 %4742  ;;  %v4731_v58 = vpop.permute.xlu0 %4730  ;;  %v5236_v53 = vmul.bf16 %v10393_v51, %v10407_v63  ;;  %v5237_v27 = vmul.bf16 %v10425_v59, %v10412_v38  ;;  %6604 = vmatmul.mubr.bf16.gmra.mrb[104].mxu0 %v8058_v0  ;;  %6708 = vmatprep.mubr.bf16.mxu1 %v8059_v18  ;;  %v10458_v17 = vcombine.low %v4318_v28, %v4319_v33  ;;  %v4631_v38 = vld [vmem:[%s8240_s28 + $0x34] sm:$0xf]  ;;  %v4632_v59 = vld [vmem:[%s8240_s28 + $0x38] sm:$0xf] }
 0x1bb   : > { %11159 = vst [vmem:[#allocation6_spill] sm:$0xff] %v10418_v36  ;;  %v4751_v41 = vrot.slane %v4743_v24, %v8379_v26  ;;  %v10447_v37 = vsel %vm8404_vm2, %v4226_v19, %v10414_v2  ;;  %v4739_v51 = vrot.slane %v4731_v58, %v8379_v26  ;;  %6611 = vmatprep.mubr.bf16.mxu0 %v3660_v39  ;;  %v4229_v19 = vrot.slane %v10414_v2, 4 }
 0x1bc   : > { %v7472_v13 = vpop.f32.mrb[36].mxu0  ;;  %v7508_v14 = vpop.f32.mrb[12].mxu1  ;;  %v5114_v12 = vsel %vm8933_vm6, %v5112_v32, %v5113_v57  ;;  %v5115_v54 = vrot.slane %v5113_v57, 4  ;;  %v4320_v32 = vmul.bf16 %v10447_v37, %v10442_v9  ;;  %v8060_v57 = vld [vmem:[%s8240_s28 + $0x8c] sm:$0xff]  }
 0x1bd   : > { %v7473_v21 = vpop.f32.mrb[37].mxu0  ;;  %v7509_v56 = vpop.f32.mrb[13].mxu1  ;;  %v5119_v3 = vrot.slane %v4751_v41, 7  ;;  %v5116_v0 = vrot.slane %v4739_v51, 7  ;;  %v3712_v51 = vld [vmem:[%s8240_s28 + $0x6c] sm:$0xf] }
 0x1be   : > { %v10454_v63 = vadd.f32 %v7473_v21, %v7472_v13  ;;  %v10456_v40 = vadd.f32 %v7509_v56, %v7508_v14  ;;  %v4755_v1 = vpop.permute.xlu1 %4754  ;;  %v3989_v4 = vpop.permute.xlu0 %3988  ;;  %v8063_v56 = vld [vmem:[%s8240_s28 + $0x64] sm:$0xff]  }
 0x1bf   : > { %v4763_v18 = vrot.slane %v4755_v1, %v8379_v26  ;;  %v3997_v29 = vrot.slane %v3989_v4, %v8379_v26  ;;  %v7475_v24 = vpop.f32.mrb[38].mxu0  ;;  %v7511_v58 = vpop.f32.mrb[14].mxu1  ;;  %v5121_v47 = vrot.slane %v5119_v3, 4  ;;  %v5117_v41 = vsel %vm8933_vm6, %v5115_v54, %v5116_v0 }
 0x1c0   : > { %11160 = vst [vmem:[#allocation7_spill] sm:$0xff] %v10456_v40  ;;  %v7476_v33 = vpop.f32.mrb[39].mxu0  ;;  %v7512_v39 = vpop.f32.mrb[15].mxu1  ;;  %v5118_v13 = vrot.slane %v5116_v0, 4  ;;  %v5238_v1 = vmul.bf16 %v5114_v12, %v4629_v10  ;;  %v5239_v4 = vmul.bf16 %v5117_v41, %v4630_v60  ;;  %v11162_v0 = vrot.slane %v10458_v17, 3 }
 0x1c1   : > { %v5122_v14 = vrot.slane %v4763_v18, 7  ;;  %v4230_v21 = vrot.slane %v3997_v29, 5  ;;  %v10473_v2 = vadd.f32 %v7476_v33, %v7475_v24  ;;  %v10475_v23 = vadd.f32 %v7512_v39, %v7511_v58 }
 0x1c2   : > { %v4001_v9 = vpop.permute.xlu1 %4000  ;;  %v4767_v37 = vpop.permute.xlu0 %4766  ;;  %v5120_v40 = vsel %vm8933_vm6, %v5118_v13, %v5119_v3  ;;  %v11163_v12 = vrot.slane %v10390_v42, 3  ;;  %v7310_v60 = vcombine.low %v5236_v53, %v5237_v27  ;;  %6612 = vmatmul.mubr.bf16.gmra.mrb[108].mxu0 %v8060_v57  ;;  %v7311_v39 = vcombine.low %v5238_v1, %v5239_v4 }
 0x1c3   : > { %11161 = vst [vmem:[#allocation8_spill] sm:$0xff] %v10475_v23  ;;  %v5123_v28 = vsel %vm8933_vm6, %v5121_v47, %v5122_v14  ;;  %v4231_v54 = vsel %vm8404_vm2, %v4229_v19, %v4230_v21  ;;  %v5240_v18 = vmul.bf16 %v5120_v40, %v4631_v38  ;;  %v4009_v3 = vrot.slane %v4001_v9, %v8379_v26 }
 0x1c4   : > { %v4434_v10 = vsel %vm965_vm3, %v11163_v12, %v11162_v0  ;;  %v5241_v29 = vmul.bf16 %v5123_v28, %v4632_v59  ;;  %v4321_v24 = vmul.bf16 %v4231_v54, %v3712_v51  ;;  %v7478_v58 = vpop.f32.mrb[40].mxu0  ;;  %v4775_v47 = vrot.slane %v4767_v37, %v8379_v26 }
 0x1c5   : > { %6709 = vmatmul.mubr.bf16.gmra.mrb[108].mxu1 %v4434_v10  ;;  %v7479_v33 = vpop.f32.mrb[41].mxu0  ;;  %v4232_v41 = vrot.slane %v4230_v21, 4  ;;  %v4233_v40 = vrot.slane %v4009_v3, 5  ;;  %v5124_v51 = vrot.slane %v5122_v14, 4  ;;  %v5353_v21 = vrot.slane %v7311_v39, 1 }
 0x1c6   : > { %6716 = vmatprep.mubr.bf16.mxu1 %v8063_v56  ;;  %v10490_v19 = vcombine.low %v5240_v18, %v5241_v29  ;;  %v10492_v42 = vadd.f32 %v7479_v33, %v7478_v58  ;;  %v4791_v13 = vpop.permute.xlu1 %4790  ;;  %v4779_v53 = vpop.permute.xlu0 %4778  ;;  %v10494_v27 = vcombine.low %v4320_v32, %v4321_v24  ;;  %v5125_v38 = vrot.slane %v4775_v47, 7  ;;  %v4634_v14 = vld [vmem:[%s8240_s28 + $0x40] sm:$0xf]  ;;  %v8064_v24 = vld [vmem:[%s8240_s28 + $0x6c] sm:$0xff]   ;;  %v4635_v3 = vld [vmem:[%s8240_s28 + $0x44] sm:$0xf] }
 0x1c7   : > { %v4799_v59 = vrot.slane %v4791_v13, %v8379_v26  ;;  %v4787_v57 = vrot.slane %v4779_v53, %v8379_v26  ;;  %v7481_v28 = vpop.f32.mrb[42].mxu0  ;;  %v5352_v4 = vrot.slane %v7310_v60, 1  ;;  %v4234_v9 = vsel %vm8404_vm2, %v4232_v41, %v4233_v40  ;;  %v3713_v58 = vld [vmem:[%s8240_s28 + $0x70] sm:$0xf]  ;;  %v4633_v60 = vld [vmem:[%s8240_s28 + $0x3c] sm:$0xf] }
 0x1c8   : > { %v7482_v56 = vpop.f32.mrb[43].mxu0  ;;  %v11146_v1 = vrot.slane %v10494_v27, 3  ;;  %v5355_v32 = vrot.slane %v10490_v19, 1  ;;  %v4235_v37 = vrot.slane %v4233_v40, 4  ;;  %v5126_v54 = vsel %vm8933_vm6, %v5124_v51, %v5125_v38 }
 0x1c9   : > { %v5127_v0 = vrot.slane %v5125_v38, 4  ;;  %v5131_v12 = vrot.slane %v4799_v59, 7  ;;  %v5128_v10 = vrot.slane %v4787_v57, 7  ;;  %v10509_v47 = vadd.f32 %v7482_v56, %v7481_v28  ;;  %v4636_v38 = vld [vmem:[%s8240_s28 + $0x48] sm:$0xf] }
 0x1ca   : > { %v4803_v18 = vpop.permute.xlu1 %4802  ;;  %v4013_v29 = vpop.permute.xlu0 %4012  ;;  %v5354_v33 = vsel %vm1903_vm7, %v5352_v4, %v5353_v21  ;;  %v11164_v59 = vrot.slane %v10458_v17, 3  ;;  %v3714_v4 = vld [vmem:[%s8240_s28 + $0x74] sm:$0xf] }
 0x1cb   : > { %v4811_v39 = vrot.slane %v4803_v18, %v8379_v26  ;;  %v4021_v41 = vrot.slane %v4013_v29, %v8379_v26  ;;  %v5133_v13 = vrot.slane %v5131_v12, 4  ;;  %v5129_v53 = vsel %vm8933_vm6, %v5127_v0, %v5128_v10  ;;  %7890 = vmatprep.mubr.bf16.mxu0 %v5354_v33 }
 0x1cc   : > { %v5130_v40 = vrot.slane %v5128_v10, 4  ;;  %v4436_v57 = vsel %vm965_vm3, %v11164_v59, %v11146_v1  ;;  %v7484_v28 = vpop.f32.mrb[44].mxu0  ;;  %v5243_v51 = vmul.bf16 %v5129_v53, %v4634_v14  ;;  %v5356_v29 = vsel %vm1903_vm7, %v5353_v21, %v5355_v32 }
 0x1cd   : > { %v5134_v56 = vrot.slane %v4811_v39, 7  ;;  %v4236_v18 = vrot.slane %v4021_v41, 5  ;;  %6717 = vmatmul.mubr.bf16.gmra.mrb[112].mxu1 %v4436_v57  ;;  %v7485_v0 = vpop.f32.mrb[45].mxu0  ;;  %7891 = vmatmul.mubr.bf16.vlgmr.msra.gmra.mrb[112].mxu0 %v5356_v29  ;;  %v4322_v59 = vmul.bf16 %v4234_v9, %v3713_v58  ;;  %v5242_v14 = vmul.bf16 %v5126_v54, %v4633_v60 }
 0x1ce   : > { %v5132_v10 = vsel %vm8933_vm6, %v5130_v40, %v5131_v12  ;;  %v10528_v33 = vadd.f32 %v7485_v0, %v7484_v28  ;;  %v4025_v17 = vpop.permute.xlu1 %4024  ;;  %v4815_v23 = vpop.permute.xlu0 %4814  ;;  %6724 = vmatprep.mubr.bf16.mxu1 %v8064_v24 }
 0x1cf   : > { %v5135_v39 = vsel %vm8933_vm6, %v5133_v13, %v5134_v56  ;;  %v4237_v41 = vsel %vm8404_vm2, %v4235_v37, %v4236_v18  ;;  %v7487_v53 = vpop.f32.mrb[46].mxu0  ;;  %v5244_v21 = vmul.bf16 %v5132_v10, %v4635_v3  ;;  %v4033_v12 = vrot.slane %v4025_v17, %v8379_v26 }
 0x1d0   : > { %v5245_v57 = vmul.bf16 %v5135_v39, %v4636_v38  ;;  %v4323_v1 = vmul.bf16 %v4237_v41, %v3714_v4  ;;  %v7488_v40 = vpop.f32.mrb[47].mxu0  ;;  %v4823_v28 = vrot.slane %v4815_v23, %v8379_v26  ;;  %v7313_v9 = vcombine.low %v5242_v14, %v5243_v51  ;;  %v4638_v14 = vld [vmem:[%s8240_s28 + $0x50] sm:$0xf] }
 0x1d1   : > { %v10536_v29 = vadd.f32 %v7488_v40, %v7487_v53  ;;  %v4238_v54 = vrot.slane %v4236_v18, 4  ;;  %v4239_v24 = vrot.slane %v4033_v12, 5  ;;  %v8065_v18 = vld [vmem:[%s8240_s28 + $0x74] sm:$0xff]   ;;  %v5136_v10 = vrot.slane %v5134_v56, 4  ;;  %v4637_v40 = vld [vmem:[%s8240_s28 + $0x4c] sm:$0xf] }
 0x1d2   : > { %v4839_v58 = vpop.permute.xlu1 %4838  ;;  %v4827_v60 = vpop.permute.xlu0 %4826  ;;  %v10538_v13 = vcombine.low %v4322_v59, %v4323_v1  ;;  %v10540_v37 = vcombine.low %v5244_v21, %v5245_v57  ;;  %v5137_v3 = vrot.slane %v4823_v28, 7  ;;  %v5357_v23 = vrot.slane %v7313_v9, 1  ;;  %v3715_v12 = vld [vmem:[%s8240_s28 + $0x78] sm:$0xf] }
 0x1d3   : > { %v4847_v38 = vrot.slane %v4839_v58, %v8379_v26  ;;  %v4835_v4 = vrot.slane %v4827_v60, %v8379_v26  ;;  %v4240_v1 = vsel %vm8404_vm2, %v4238_v54, %v4239_v24  ;;  %v11165_v57 = vrot.slane %v10494_v27, 3  ;;  %v4639_v27 = vld [vmem:[%s8240_s28 + $0x54] sm:$0xf] }
 0x1d4   : > { %v11147_v0 = vrot.slane %v10538_v13, 3  ;;  %v11148_v51 = vrot.slane %v10540_v37, 1  ;;  %v5139_v59 = vrot.slane %v5137_v3, 4  ;;  %v5358_v41 = vsel %vm1903_vm7, %v5355_v32, %v5357_v23 }
 0x1d5   : > { %v5143_v17 = vrot.slane %v4847_v38, 7  ;;  %v5140_v39 = vrot.slane %v4835_v4, 7  ;;  %7894 = vmatprep.mubr.bf16.mxu0 %v5358_v41  ;;  %v4241_v32 = vrot.slane %v4239_v24, 4  ;;  %v5138_v54 = vsel %vm8933_vm6, %v5136_v10, %v5137_v3  ;;  %v4640_v38 = vld [vmem:[%s8240_s28 + $0x58] sm:$0xf] }
 0x1d6   : > { %v4851_v53 = vpop.permute.xlu1 %4850  ;;  %v4037_v21 = vpop.permute.xlu0 %4036  ;;  %v4438_v56 = vsel %vm965_vm3, %v11165_v57, %v11147_v0  ;;  %v5360_v19 = vsel %vm1903_vm7, %v5357_v23, %v11148_v51  ;;  %v5246_v3 = vmul.bf16 %v5138_v54, %v4637_v40 }
 0x1d7   : > { %v4859_v28 = vrot.slane %v4851_v53, %v8379_v26  ;;  %v4045_v9 = vrot.slane %v4037_v21, %v8379_v26  ;;  %6725 = vmatmul.mubr.bf16.gmra.mrb[116].mxu1 %v4438_v56  ;;  %v5141_v58 = vsel %vm8933_vm6, %v5139_v59, %v5140_v39  ;;  %v5142_v60 = vrot.slane %v5140_v39, 4  ;;  %7895 = vmatmul.mubr.bf16.gmra.mrb[116].mxu0 %v5360_v19  ;;  %v3716_v21 = vld [vmem:[%s8240_s28 + $0x7c] sm:$0xf] }
 0x1d8   : > { %6732 = vmatprep.mubr.bf16.mxu1 %v8065_v18  ;;  %v5145_v4 = vrot.slane %v5143_v17, 4  ;;  %v5247_v41 = vmul.bf16 %v5141_v58, %v4638_v14  ;;  %v4324_v39 = vmul.bf16 %v4240_v1, %v3715_v12 }
 0x1d9   : > { %v5146_v53 = vrot.slane %v4859_v28, 7  ;;  %v10572_v57 = vrot.slane %v4045_v9, 5  ;;  %v5144_v24 = vsel %vm8933_vm6, %v5142_v60, %v5143_v17 }
 0x1da   : > { %v4049_v23 = vpop.permute.xlu1 %4048  ;;  %v4863_v56 = vpop.permute.xlu0 %4862  ;;  %v5248_v14 = vmul.bf16 %v5144_v24, %v4639_v27  ;;  %v7315_v40 = vcombine.low %v5246_v3, %v5247_v41 }
 0x1db   : > { %v5147_v10 = vsel %vm8933_vm6, %v5145_v4, %v5146_v53  ;;  %v4243_v59 = vsel %vm8404_vm2, %v4241_v32, %v10572_v57  ;;  %v4057_v58 = vrot.slane %v4049_v23, %v8379_v26  ;;  %v4871_v17 = vrot.slane %v4863_v56, %v8379_v26 }
 0x1dc   : > { %v7530_v18 = vpop.f32.mrb[16].mxu1  ;;  %v5249_v28 = vmul.bf16 %v5147_v10, %v4640_v38  ;;  %v4325_v19 = vmul.bf16 %v4243_v59, %v3716_v21  ;;  %v5361_v24 = vrot.slane %v7315_v40, 1  ;;  %v5148_v23 = vrot.slane %v5146_v53, 4  ;;  %v4642_v10 = vld [vmem:[%s8240_s28 + $0x60] sm:$0xf] }
 0x1dd   : > { %v7531_v9 = vpop.f32.mrb[17].mxu1  ;;  %v5149_v32 = vrot.slane %v4871_v17, 7  ;;  %v4245_v41 = vrot.slane %v4057_v58, 5  ;;  %v4641_v17 = vld [vmem:[%s8240_s28 + $0x5c] sm:$0xf] }
 0x1de   : > { %v7532_v60 = vadd.f32 %v7531_v9, %v7530_v18  ;;  %v7533_v0 = vpop.f32.mrb[18].mxu1  ;;  %v4887_v54 = vpop.permute.xlu1 %4886  ;;  %v10583_v51 = vcombine.low %v4324_v39, %v4325_v19  ;;  %v10585_v36 = vcombine.low %v5248_v14, %v5249_v28 }
 0x1df   : > { %v4875_v4 = vpop.permute.xlu0 %4874  ;;  %v4895_v12 = vrot.slane %v4887_v54, %v8379_v26  ;;  %v7534_v38 = vpop.f32.mrb[19].mxu1  ;;  %v5151_v3 = vrot.slane %v5149_v32, 4 }
 0x1e0   : > { %v10588_v1 = vadd.f32 %v7532_v60, %v10054_v31  ;;  %v4883_v27 = vrot.slane %v4875_v4, %v8379_v26  ;;  %v7535_v21 = vadd.f32 %v7534_v38, %v7533_v0  ;;  %v11166_v31 = vrot.slane %v10540_v37, 1 }
 0x1e1   : > { %v5155_v56 = vrot.slane %v4895_v12, 7  ;;  %v4244_v0 = vrot.slane %v10572_v57, 4  ;;  %v4439_v9 = vrot.slane %v10583_v51, 3  ;;  %v5363_v58 = vrot.slane %v10585_v36, 1  ;;  %v4644_v12 = vld [vmem:[%s8240_s28 + $0x68] sm:$0xf] }
 0x1e2   : > { %v5152_v59 = vrot.slane %v4883_v27, 7  ;;  %v10594_v18 = vadd.f32 %v7535_v21, %v10062_v52  ;;  %v5362_v39 = vsel %vm1903_vm7, %v11166_v31, %v5361_v24  ;;  %v4899_v14 = vpop.permute.xlu1 %4898  ;;  %v8066_v52 = vld [vmem:[%s8240_s28 + $0x7c] sm:$0xff]   ;;  %v5150_v37 = vsel %vm8933_vm6, %v5148_v23, %v5149_v32 }
 0x1e3   : > { %7898 = vmatprep.mubr.bf16.mxu0 %v5362_v39  ;;  %v4907_v53 = vrot.slane %v4899_v14, %v8379_v26  ;;  %v4061_v28 = vpop.permute.xlu0 %4060  ;;  %v5157_v4 = vrot.slane %v5155_v56, 4  ;;  %v11167_v36 = vrot.slane %v10538_v13, 3  ;;  %v5364_v32 = vsel %vm1903_vm7, %v5361_v24, %v5363_v58 }
 0x1e4   : > { %v7536_v19 = vpop.f32.mrb[20].mxu1  ;;  %v5153_v60 = vsel %vm8933_vm6, %v5151_v3, %v5152_v59  ;;  %v5154_v40 = vrot.slane %v5152_v59, 4  ;;  %v4069_v57 = vrot.slane %v4061_v28, %v8379_v26  ;;  %v4247_v23 = vrot.slane %v4245_v41, 4  ;;  %v3718_v59 = vld [vmem:[%s8240_s28 + $0x84] sm:$0xf]  ;;  %7899 = vmatmul.mubr.bf16.gmra.mrb[120].mxu0 %v5364_v32 }
 0x1e5   : > { %v7537_v54 = vpop.f32.mrb[21].mxu1  ;;  %v10611_v27 = vrot.slane %v4907_v53, 7  ;;  %v4440_v38 = vsel %vm965_vm3, %v11167_v36, %v4439_v9  ;;  %v5251_v3 = vmul.bf16 %v5153_v60, %v4642_v10  ;;  %v3717_v28 = vld [vmem:[%s8240_s28 + $0x80] sm:$0xf]  ;;  %v4246_v13 = vsel %vm8404_vm2, %v4244_v0, %v4245_v41  ;;  %v4643_v60 = vld [vmem:[%s8240_s28 + $0x64] sm:$0xf] }
 0x1e6   : > { %v7539_v21 = vpop.f32.mrb[22].mxu1  ;;  %v10620_v31 = vrot.slane %v4069_v57, 5  ;;  %6733 = vmatmul.mubr.bf16.gmra.mrb[120].mxu1 %v4440_v38  ;;  %v7538_v39 = vadd.f32 %v7537_v54, %v7536_v19  ;;  %v4073_v14 = vpop.permute.xlu1 %4072  ;;  %v5250_v45 = vmul.bf16 %v5150_v37, %v4641_v17  ;;  %v5156_v57 = vsel %vm8933_vm6, %v5154_v40, %v5155_v56 }
 0x1e7   : > { %v7540_v53 = vpop.f32.mrb[23].mxu1  ;;  %v5159_v24 = vsel %vm8933_vm6, %v5157_v4, %v10611_v27  ;;  %v4081_v36 = vrot.slane %v4073_v14, %v8379_v26  ;;  %v4911_v10 = vpop.permute.xlu0 %4910  ;;  %6740 = vmatprep.mubr.bf16.mxu1 %v8066_v52  ;;  %v4326_v38 = vmul.bf16 %v4246_v13, %v3717_v28  ;;  %v5252_v14 = vmul.bf16 %v5156_v57, %v4643_v60 }
 0x1e8   : > { %v5253_v19 = vmul.bf16 %v5159_v24, %v4644_v12  ;;  %v4249_v54 = vsel %vm8404_vm2, %v4247_v23, %v10620_v31  ;;  %v10636_v41 = vadd.f32 %v7538_v39, %v10117_v25  ;;  %v4919_v37 = vrot.slane %v4911_v10, %v8379_v26 }
 0x1e9   : > { %v4327_v0 = vmul.bf16 %v4249_v54, %v3718_v59  ;;  %v10638_v17 = vrot.slane %v4081_v36, 5  ;;  %v7541_v4 = vadd.f32 %v7540_v53, %v7539_v21  ;;  %v7317_v32 = vcombine.low %v5250_v45, %v5251_v3  ;;  %v4646_v54 = vld [vmem:[%s8240_s28 + $0x70] sm:$0xf] }
 0x1ea   : > { %v4935_v52 = vpop.permute.xlu1 %4934  ;;  %v5160_v56 = vrot.slane %v10611_v27, 4  ;;  %v5161_v40 = vrot.slane %v4919_v37, 7  ;;  %v4250_v25 = vrot.slane %v10620_v31, 4 }
 0x1eb   : > { %v10643_v12 = vadd.f32 %v7541_v4, %v10131_v34  ;;  %v4923_v23 = vpop.permute.xlu0 %4922  ;;  %v4943_v59 = vrot.slane %v4935_v52, %v8379_v26  ;;  %v5365_v21 = vrot.slane %v7317_v32, 1  ;;  %v4253_v45 = vrot.slane %v10638_v17, 4  ;;  %v8067_v52 = vld [vmem:[%s8240_s28 + $0x84] sm:$0xff]   ;;  %v4645_v32 = vld [vmem:[%s8240_s28 + $0x6c] sm:$0xf] }
 0x1ec   : > { %v7542_v24 = vpop.f32.mrb[24].mxu1  ;;  %v4931_v39 = vrot.slane %v4923_v23, %v8379_v26  ;;  %v10649_v27 = vcombine.low %v4326_v38, %v4327_v0  ;;  %v10651_v34 = vcombine.low %v5252_v14, %v5253_v19  ;;  %v5163_v13 = vrot.slane %v5161_v40, 4 }
 0x1ed   : > { %v7543_v53 = vpop.f32.mrb[25].mxu1  ;;  %v5167_v36 = vrot.slane %v4943_v59, 7  ;;  %v5366_v10 = vsel %vm1903_vm7, %v5363_v58, %v5365_v21  ;;  %v5162_v58 = vsel %vm8933_vm6, %v5160_v56, %v5161_v40  ;;  %v4647_v59 = vld [vmem:[%s8240_s28 + $0x74] sm:$0xf] }
 0x1ee   : > { %v7544_v3 = vadd.f32 %v7543_v53, %v7542_v24  ;;  %v7545_v28 = vpop.f32.mrb[26].mxu1  ;;  %v5164_v31 = vrot.slane %v4931_v39, 7  ;;  %v4947_v60 = vpop.permute.xlu1 %4946  ;;  %7902 = vmatprep.mubr.bf16.mxu0 %v5366_v10  ;;  %v4441_v19 = vrot.slane %v10649_v27, 3  ;;  %v4648_v39 = vld [vmem:[%s8240_s28 + $0x78] sm:$0xf]  ;;  %v5367_v10 = vrot.slane %v10651_v34, 1 }
 0x1ef   : > { %v7546_v57 = vpop.f32.mrb[27].mxu1  ;;  %v4955_v0 = vrot.slane %v4947_v60, %v8379_v26  ;;  %v4085_v4 = vpop.permute.xlu0 %4084  ;;  %v5169_v24 = vrot.slane %v5167_v36, 4 }
 0x1f0   : > { %v10656_v37 = vadd.f32 %v7544_v3, %v10156_v22  ;;  %v7547_v38 = vadd.f32 %v7546_v57, %v7545_v28  ;;  %v5165_v14 = vsel %vm8933_vm6, %v5163_v13, %v5164_v31  ;;  %v5166_v23 = vrot.slane %v5164_v31, 4  ;;  %v3720_v13 = vld [vmem:[%s8240_s28 + $0x8c] sm:$0xf]  ;;  %v3719_v57 = vld [vmem:[%s8240_s28 + $0x88] sm:$0xf] }
 0x1f1   : > { %v4093_v22 = vrot.slane %v4085_v4, %v8379_v26  ;;  %v5170_v53 = vrot.slane %v4955_v0, 7  ;;  %v4442_v56 = vsel %vm965_vm3, %v4439_v9, %v4441_v19  ;;  %v5255_v28 = vmul.bf16 %v5165_v14, %v4646_v54 }
 0x1f2   : > { %v10670_v3 = vadd.f32 %v7547_v38, %v10177_v61  ;;  %v5168_v40 = vsel %vm8933_vm6, %v5166_v23, %v5167_v36  ;;  %6741 = vmatmul.mubr.bf16.gmra.mrb[124].mxu1 %v4442_v56  ;;  %v4097_v60 = vpop.permute.xlu1 %4096  ;;  %v4252_v61 = vsel %vm8404_vm2, %v4250_v25, %v10638_v17  ;;  %v5254_v0 = vmul.bf16 %v5162_v58, %v4645_v32 }
 0x1f3   : > { %v4254_v31 = vrot.slane %v4093_v22, 5  ;;  %v5171_v51 = vsel %vm8933_vm6, %v5169_v24, %v5170_v53  ;;  %v4105_v9 = vrot.slane %v4097_v60, %v8379_v26  ;;  %v4959_v4 = vpop.permute.xlu0 %4958  ;;  %6748 = vmatprep.mubr.bf16.mxu1 %v8067_v52  ;;  %v5256_v54 = vmul.bf16 %v5168_v40, %v4647_v59 }
 0x1f4   : > { %v7548_v36 = vpop.f32.mrb[28].mxu1  ;;  %v5257_v38 = vmul.bf16 %v5171_v51, %v4648_v39  ;;  %v5368_v14 = vsel %vm1903_vm7, %v5365_v21, %v5367_v10  ;;  %v4967_v25 = vrot.slane %v4959_v4, %v8379_v26  ;;  %v4328_v24 = vmul.bf16 %v4252_v61, %v3719_v57 }
 0x1f5   : > { %v4255_v34 = vsel %vm8404_vm2, %v4253_v45, %v4254_v31  ;;  %v7549_v23 = vpop.f32.mrb[29].mxu1  ;;  %7903 = vmatmul.mubr.bf16.gmra.mrb[124].mxu0 %v5368_v14  ;;  %v10691_v17 = vrot.slane %v4105_v9, 5  ;;  %v7319_v52 = vcombine.low %v5254_v0, %v5255_v28  ;;  %v4256_v59 = vrot.slane %v4254_v31, 4 }
 0x1f6   : > { %v4329_v22 = vmul.bf16 %v4255_v34, %v3720_v13  ;;  %v7550_v32 = vadd.f32 %v7549_v23, %v7548_v36  ;;  %v7551_v58 = vpop.f32.mrb[30].mxu1  ;;  %v4983_v56 = vpop.permute.xlu1 %4982  ;;  %v5173_v39 = vrot.slane %v4967_v25, 7  ;;  %v10697_v45 = vcombine.low %v5256_v54, %v5257_v38  ;;  %v4650_v38 = vld [vmem:[%s8240_s28 + $0x80] sm:$0xf] }
 0x1f7   : > { %v7552_v60 = vpop.f32.mrb[31].mxu1  ;;  %v4971_v21 = vpop.permute.xlu0 %4970  ;;  %v5172_v13 = vrot.slane %v5170_v53, 4  ;;  %v4991_v51 = vrot.slane %v4983_v56, %v8379_v26  ;;  %v10704_v57 = vsel %vm8404_vm2, %v4256_v59, %v10691_v17  ;;  %v4259_v28 = vrot.slane %v10691_v17, 4 }
 0x1f8   : > { %v10695_v40 = vadd.f32 %v7550_v32, %v10205_v43  ;;  %v4979_v9 = vrot.slane %v4971_v21, %v8379_v26  ;;  %v7553_v4 = vadd.f32 %v7552_v60, %v7551_v58  ;;  %v5369_v43 = vrot.slane %v7319_v52, 1  ;;  %v8068_v32 = vld [vmem:[%s8240_s28 + $0x8c] sm:$0xff]   ;;  %v4649_v58 = vld [vmem:[%s8240_s28 + $0x7c] sm:$0xf]  ;;  %v4652_v21 = vld [vmem:[%s8240_s28 + $0x88] sm:$0xf] }
 0x1f9   : > { %v10707_v31 = vcombine.low %v4328_v24, %v4329_v22  ;;  %v5175_v61 = vrot.slane %v5173_v39, 4  ;;  %v5179_v53 = vrot.slane %v4991_v51, 7  ;;  %v11150_v22 = vrot.slane %v10697_v45, 1  ;;  %v4651_v24 = vld [vmem:[%s8240_s28 + $0x84] sm:$0xf] }
 0x1fa   : > { %v5176_v0 = vrot.slane %v4979_v9, 7  ;;  %v10710_v36 = vadd.f32 %v7553_v4, %v10213_v5  ;;  %v4995_v54 = vpop.permute.xlu1 %4994  ;;  %v5370_v34 = vsel %vm1903_vm7, %v5367_v10, %v5369_v43  ;;  %v5174_v5 = vsel %vm8933_vm6, %v5172_v13, %v5173_v39 }
 0x1fb   : > { %v5003_v14 = vrot.slane %v4995_v54, %v8379_v26  ;;  %v4109_v23 = vpop.permute.xlu0 %4108  ;;  %v11149_v25 = vrot.slane %v10707_v31, 3  ;;  %7906 = vmatprep.mubr.bf16.mxu0 %v5370_v34  ;;  %v5181_v59 = vrot.slane %v5179_v53, 4  ;;  %v5372_v39 = vsel %vm1903_vm7, %v5369_v43, %v11150_v22 }
 0x1fc   : > { %v7554_v17 = vpop.f32.mrb[32].mxu1  ;;  %v5177_v56 = vsel %vm8933_vm6, %v5175_v61, %v5176_v0  ;;  %v5178_v10 = vrot.slane %v5176_v0, 4  ;;  %v4117_v60 = vrot.slane %v4109_v23, %v8379_v26  ;;  %v3722_v0 = vld [vmem:[%s8240_s28 + $0x94] sm:$0xf]  ;;  %v5258_v27 = vmul.bf16 %v5174_v5, %v4649_v58 }
 0x1fd   : > { %v7555_v52 = vpop.f32.mrb[33].mxu1  ;;  %v5182_v51 = vrot.slane %v5003_v14, 7  ;;  %v4444_v9 = vsel %vm965_vm3, %v4441_v19, %v11149_v25  ;;  %v5259_v61 = vmul.bf16 %v5177_v56, %v4650_v38  ;;  %7907 = vmatmul.mubr.bf16.gmra.mrb[128].mxu0 %v5372_v39 }
 0x1fe   : > { %v7557_v13 = vpop.f32.mrb[34].mxu1  ;;  %v5180_v4 = vsel %vm8933_vm6, %v5178_v10, %v5179_v53  ;;  %v4260_v54 = vrot.slane %v4117_v60, 5  ;;  %6749 = vmatmul.mubr.bf16.gmra.mrb[128].mxu1 %v4444_v9  ;;  %v7556_v34 = vadd.f32 %v7555_v52, %v7554_v17  ;;  %v4121_v14 = vpop.permute.xlu1 %4120 }
 0x1ff   : > { %v7558_v23 = vpop.f32.mrb[35].mxu1  ;;  %v5260_v19 = vmul.bf16 %v5180_v4, %v4651_v24  ;;  %v5183_v25 = vsel %vm8933_vm6, %v5181_v59, %v5182_v51  ;;  %v4129_v43 = vrot.slane %v4121_v14, %v8379_v26  ;;  %v5007_v22 = vpop.permute.xlu0 %5006  ;;  %6756 = vmatprep.mubr.bf16.mxu1 %v8068_v32  ;;  %v4330_v24 = vmul.bf16 %v10704_v57, %v3721_v7  ;;  %v10751_v59 = vld [vmem:[%s8240_s28 + $0x98] sm:$0xf] }
 0x200   : > { %v5261_v53 = vmul.bf16 %v5183_v25, %v4652_v21  ;;  %v4261_v38 = vsel %vm8404_vm2, %v4259_v28, %v4260_v54  ;;  %v4262_v56 = vrot.slane %v4260_v54, 4  ;;  %v10744_v17 = vadd.f32 %v7556_v34, %v10239_v20 }
 0x201   : > { %v4331_v10 = vmul.bf16 %v4261_v38, %v3722_v0  ;;  %v10746_v60 = vrot.slane %v4129_v43, 5  ;;  %v5015_v58 = vrot.slane %v5007_v22, %v8379_v26  ;;  %v7559_v5 = vadd.f32 %v7558_v23, %v7557_v13  ;;  %v4654_v43 = vld [vmem:[%s8240_s28 + $0x90] sm:$0xf] }
 0x202   : > { %v5184_v52 = vrot.slane %v5182_v51, 4  ;;  %v5031_v32 = vpop.permute.xlu1 %5030  ;;  %v10753_v25 = vcombine.low %v5258_v27, %v5259_v61  ;;  %v10763_v39 = vcombine.low %v5260_v19, %v5261_v53  ;;  %v11168_v38 = vrot.slane %v10697_v45, 1 }
 0x203   : > { %v10758_v28 = vsel %vm8404_vm2, %v4262_v56, %v10746_v60  ;;  %v5185_v20 = vrot.slane %v5015_v58, 7  ;;  %v10761_v21 = vadd.f32 %v7559_v5, %v10252_v48  ;;  %v5019_v9 = vpop.permute.xlu0 %5018  ;;  %v4265_v7 = vrot.slane %v10746_v60, 4  ;;  %v4653_v5 = vld [vmem:[%s8240_s28 + $0x8c] sm:$0xf] }
 0x204   : > { %v7560_v22 = vpop.f32.mrb[36].mxu1  ;;  %v5039_v57 = vrot.slane %v5031_v32, %v8379_v26  ;;  %v5027_v51 = vrot.slane %v5019_v9, %v8379_v26  ;;  %v7642_v13 = vpop.f32.mrb[48].mxu0  ;;  %v11151_v4 = vrot.slane %v10753_v25, 1  ;;  %v10773_v23 = vcombine.low %v4330_v24, %v4331_v10 }
 0x205   : > { %v7561_v61 = vpop.f32.mrb[37].mxu1  ;;  %v5186_v0 = vsel %vm8933_vm6, %v5184_v52, %v5185_v20  ;;  %v7643_v34 = vpop.f32.mrb[49].mxu0  ;;  %v5187_v27 = vrot.slane %v5185_v20, 4 }
 0x206   : > { %v7562_v54 = vadd.f32 %v7561_v61, %v7560_v22  ;;  %v7563_v14 = vpop.f32.mrb[38].mxu1  ;;  %v5191_v19 = vrot.slane %v5039_v57, 7  ;;  %v5188_v53 = vrot.slane %v5027_v51, 7  ;;  %v5374_v56 = vsel %vm1903_vm7, %v11168_v38, %v11151_v4  ;;  %v7645_v60 = vpop.f32.mrb[50].mxu0  ;;  %v4655_v22 = vld [vmem:[%s8240_s28 + $0x94] sm:$0xf] }
 0x207   : > { %v5043_v58 = vpop.permute.xlu1 %5042  ;;  %7910 = vmatprep.mubr.bf16.mxu0 %v5374_v56  ;;  %v7644_v24 = vadd.f32 %v7643_v34, %v7642_v13  ;;  %v4133_v32 = vpop.permute.xlu0 %4132  ;;  %v4656_v34 = vld [vmem:[%s8240_s28 + $0x98] sm:$0xf]  ;;  %v3724_v4 = vld [vmem:[%s8240_s28 + $0x9c] sm:$0xf] }
 0x208   : > { %v10783_v10 = vadd.f32 %v7562_v54, %v10272_v55  ;;  %v5051_v52 = vrot.slane %v5043_v58, %v8379_v26  ;;  %v7564_v20 = vpop.f32.mrb[39].mxu1  ;;  %v5193_v45 = vrot.slane %v5191_v19, 4  ;;  %v5189_v57 = vsel %vm8933_vm6, %v5187_v27, %v5188_v53  ;;  %v7646_v38 = vpop.f32.mrb[51].mxu0  ;;  %v8069_v55 = vld [vmem:[%s8240_s28 + $0x94] sm:$0xff]  }
 0x209   : > { %v5190_v51 = vrot.slane %v5188_v53, 4  ;;  %v4141_v61 = vrot.slane %v4133_v32, %v8379_v26  ;;  %v5263_v54 = vmul.bf16 %v5189_v57, %v4654_v43  ;;  %v10793_v13 = vadd.f32 %v7644_v24, %v10588_v1  ;;  %v3725_v24 = vld [vmem:[%s8240_s28 + $0xa0] sm:$0x7] }
 0x20a   : > { %11169 = vst [vmem:[#allocation9_spill] sm:$0xff] %v10783_v10  ;;  %v5194_v56 = vrot.slane %v5051_v52, 7  ;;  %v7565_v58 = vadd.f32 %v7564_v20, %v7563_v14  ;;  %v7647_v35 = vadd.f32 %v7646_v38, %v7645_v60  ;;  %v11170_v27 = vrot.slane %v10773_v23, 3 }
 0x20b   : > { %v5192_v48 = vsel %vm8933_vm6, %v5190_v51, %v5191_v19  ;;  %v4266_v9 = vrot.slane %v4141_v61, 5  ;;  %v11171_v53 = vrot.slane %v10707_v31, 3  ;;  %v5067_v10 = vpop.permute.xlu1 %5066  ;;  %v5262_v43 = vmul.bf16 %v5186_v0, %v4653_v5  ;;  %v5055_v19 = vpop.permute.xlu0 %5054 }
 0x20c   : > { %v5264_v57 = vmul.bf16 %v5192_v48, %v4655_v22  ;;  %v5195_v1 = vsel %vm8933_vm6, %v5193_v45, %v5194_v56  ;;  %v10808_v14 = vadd.f32 %v7565_v58, %v10283_v30  ;;  %v7566_v52 = vpop.f32.mrb[40].mxu1  ;;  %v10813_v51 = vadd.f32 %v7647_v35, %v10594_v18  ;;  %v4659_v58 = vld [vmem:[%s8240_s28 + $0xa4] sm:$0x1] }
 0x20d   : > { %v4446_v32 = vsel %vm965_vm3, %v11171_v53, %v11170_v27  ;;  %v5265_v60 = vmul.bf16 %v5195_v1, %v4656_v34  ;;  %v4267_v20 = vsel %vm8404_vm2, %v4265_v7, %v4266_v9  ;;  %v4268_v31 = vrot.slane %v4266_v9, 4  ;;  %v7567_v0 = vpop.f32.mrb[41].mxu1 }
 0x20e   : > { %6757 = vmatmul.mubr.bf16.gmra.mrb[132].mxu1 %v4446_v32  ;;  %v4333_v48 = vmul.bf16 %v4267_v20, %v3724_v4  ;;  %v5375_v5 = vrot.slane %v10763_v39, 1  ;;  %v5075_v30 = vrot.slane %v5067_v10, %v8379_v26  ;;  %v5063_v45 = vrot.slane %v5055_v19, %v8379_v26  ;;  %v7569_v22 = vpop.f32.mrb[42].mxu1  ;;  %v4657_v10 = vld [vmem:[%s8240_s28 + $0x9c] sm:$0xf] }
 0x20f   : > { %6764 = vmatprep.mubr.bf16.mxu1 %v8069_v55  ;;  %v5196_v61 = vrot.slane %v5194_v56, 4  ;;  %v4334_v38 = vmul.bf16 %v4268_v31, %v3725_v24  ;;  %v7568_v44 = vadd.f32 %v7567_v0, %v7566_v52  ;;  %v7570_v7 = vpop.f32.mrb[43].mxu1  ;;  %v7323_v9 = vcombine.low %v5262_v43, %v5263_v54  ;;  %v4658_v43 = vld [vmem:[%s8240_s28 + $0xa0] sm:$0xf] }
 0x210   : > { %v11172_v35 = vrot.slane %v10753_v25, 1  ;;  %v5200_v4 = vrot.slane %v5075_v30, 7  ;;  %v5197_v55 = vrot.slane %v5063_v45, 7  ;;  %v7571_v34 = vadd.f32 %v7570_v7, %v7569_v22  ;;  %v7648_v39 = vpop.f32.mrb[52].mxu0 }
 0x211   : > { %v10824_v26 = vadd.f32 %v7568_v44, %v10313_v49  ;;  %v5377_v56 = vrot.slane %v7323_v9, 1  ;;  %v7649_v27 = vpop.f32.mrb[53].mxu0  ;;  %v11173_v53 = vmul.bf16 %v10758_v28, %v10751_v59  ;;  %v7324_v32 = vcombine.low %v5264_v57, %v5265_v60 }
 0x212   : > { %v5376_v18 = vsel %vm1903_vm7, %v11172_v35, %v5375_v5  ;;  %v5202_v25 = vrot.slane %v5200_v4, 4  ;;  %v5198_v1 = vsel %vm8933_vm6, %v5196_v61, %v5197_v55  ;;  %v5199_v24 = vrot.slane %v5197_v55, 4  ;;  %v7651_v52 = vpop.f32.mrb[54].mxu0 }
 0x213   : > { %7911 = vmatmul.mubr.bf16.gmra.mrb[132].mxu0 %v5376_v18  ;;  %v7292_v54 = vcombine.low %v11173_v53, %v4333_v48  ;;  %v10833_v19 = vadd.f32 %v7571_v34, %v10326_v50  ;;  %v5378_v49 = vsel %vm1903_vm7, %v5375_v5, %v5377_v56  ;;  %v7650_v20 = vadd.f32 %v7649_v27, %v7648_v39  ;;  %v7652_v31 = vpop.f32.mrb[55].mxu0  ;;  %v8070_v48 = vld [vmem:[%s8240_s28 + $0x9c] sm:$0xff]   ;;  %s7401_s28 = sshll.u32 %s11183_s19, 8 }
 0x214   : > { %v5268_v0 = vmul.bf16 %v5202_v25, %v4659_v58  ;;  %v5201_v59 = vsel %vm8933_vm6, %v5199_v24, %v5200_v4  ;;  %7914 = vmatprep.mubr.bf16.mxu0 %v5378_v49  ;;  %v7653_v28 = vadd.f32 %v7652_v31, %v7651_v52  ;;  %v7572_v57 = vpop.f32.mrb[44].mxu1  ;;  %v5266_v30 = vmul.bf16 %v5198_v1, %v4657_v10  ;;  %s11042_s22 = scalar_lea.vmem %s11143_s4, %s7401_s28 }
 0x215   : > { %v4447_v60 = vrot.slane %v7292_v54, 3  ;;  %v5267_v45 = vmul.bf16 %v5201_v59, %v4658_v43  ;;  %v10840_v22 = vadd.f32 %v7650_v20, %v10636_v41  ;;  %v5379_v50 = vrot.slane %v7324_v32, 1  ;;  %v7573_v61 = vpop.f32.mrb[45].mxu1 }
 0x216   : > { %v7293_v44 = vcombine.low %v4334_v38, %v4334_v38  ;;  %v10843_v5 = vadd.f32 %v7653_v28, %v10643_v12  ;;  %v11174_v7 = vrot.slane %v10773_v23, 3  ;;  %v7574_v9 = vadd.f32 %v7573_v61, %v7572_v57  ;;  %v7575_v35 = vpop.f32.mrb[46].mxu1 }
 0x217   : > { %v7326_v18 = vcombine.low %v5268_v0, %v5268_v0  ;;  %v5380_v4 = vsel %vm1903_vm7, %v5377_v56, %v5379_v50  ;;  %v7576_v55 = vpop.f32.mrb[47].mxu1  ;;  %v7325_v34 = vcombine.low %v5266_v30, %v5267_v45 }
 0x218   : > { %v4448_v46 = vsel %vm965_vm3, %v11174_v7, %v4447_v60  ;;  %v10850_v41 = vadd.f32 %v7574_v9, %v10356_v8  ;;  %v7577_v39 = vadd.f32 %v7576_v55, %v7575_v35  ;;  %v4449_v38 = vrot.slane %v7293_v44, 3 }
 0x219   : > { %6765 = vmatmul.mubr.bf16.gmra.mrb[136].mxu1 %v4448_v46  ;;  %v5381_v12 = vrot.slane %v7325_v34, 1  ;;  %v5383_v58 = vrot.slane %v7326_v18, 1 }
 0x21a   : > { %6772 = vmatprep.mubr.bf16.mxu1 %v8070_v48  ;;  %v10853_v23 = vadd.f32 %v7577_v39, %v10379_v16  ;;  %v4450_v32 = vsel %vm965_vm3, %v4447_v60, %v4449_v38 }
 0x21b   : > { %7915 = vmatmul.mubr.bf16.gmra.mrb[136].mxu0 %v5380_v4  ;;  %v5382_v10 = vsel %vm1903_vm7, %v5379_v50, %v5381_v12  ;;  %v5384_v24 = vsel %vm1903_vm7, %v5381_v12, %v5383_v58 }
 0x21c   : > { %7918 = vmatprep.mubr.bf16.mxu0 %v5382_v10  ;;  %v7578_v27 = vpop.f32.mrb[48].mxu1  ;;  %v7654_v53 = vpop.f32.mrb[56].mxu0 }
 0x21d   : > { %v7579_v56 = vpop.f32.mrb[49].mxu1  ;;  %v7655_v54 = vpop.f32.mrb[57].mxu0 }
 0x21e   : > { %v7580_v8 = vadd.f32 %v7579_v56, %v7578_v27  ;;  %v7656_v25 = vadd.f32 %v7655_v54, %v7654_v53  ;;  %v7581_v43 = vpop.f32.mrb[50].mxu1  ;;  %v7657_v1 = vpop.f32.mrb[58].mxu0 }
 0x21f   : > { %v7582_v52 = vpop.f32.mrb[51].mxu1  ;;  %v7658_v16 = vpop.f32.mrb[59].mxu0 }
 0x220   : > { %v10859_v49 = vadd.f32 %v7580_v8, %v10395_v62  ;;  %v10862_v20 = vadd.f32 %v7656_v25, %v10656_v37  ;;  %v7583_v31 = vadd.f32 %v7582_v52, %v7581_v43  ;;  %v7659_v0 = vadd.f32 %v7658_v16, %v7657_v1 }
 0x221   : > { %6773 = vmatmul.mubr.bf16.gmra.mrb[140].mxu1 %v4450_v32 }
 0x222   : > { %v10865_v59 = vadd.f32 %v7583_v31, %v10416_v11  ;;  %v10868_v28 = vadd.f32 %v7659_v0, %v10670_v3 }
 0x223   : > { %7919 = vmatmul.mubr.bf16.gmra.mrb[140].mxu0 %v5384_v24 }
 0x224   : > { %v7584_v57 = vpop.f32.mrb[52].mxu1 }
 0x225   : > { %v7585_v60 = vpop.f32.mrb[53].mxu1 }
 0x226   : > { %v7586_v48 = vadd.f32 %v7585_v60, %v7584_v57  ;;  %v7587_v30 = vpop.f32.mrb[54].mxu1 }
 0x227   : > { %v7588_v45 = vpop.f32.mrb[55].mxu1 }
 0x228   : > { %v10871_v62 = vadd.f32 %v7586_v48, %v10454_v63  ;;  %v7589_v50 = vadd.f32 %v7588_v45, %v7587_v30  ;;  %v7660_v37 = vpop.f32.mrb[60].mxu0 }
 0x229   : > { %v7661_v61 = vpop.f32.mrb[61].mxu0 }
 0x22a   : > { %v10874_v44 = vadd.f32 %v7589_v50, %v10473_v2  ;;  %v7662_v7 = vadd.f32 %v7661_v61, %v7660_v37  ;;  %v7663_v11 = vpop.f32.mrb[62].mxu0 }
 0x22b   : > { %v7664_v46 = vpop.f32.mrb[63].mxu0 }
 0x22c   : > { %v10877_v3 = vadd.f32 %v7662_v7, %v10695_v40  ;;  %v7665_v9 = vadd.f32 %v7664_v46, %v7663_v11  ;;  %v7590_v35 = vpop.f32.mrb[56].mxu1 }
 0x22d   : > { %v7591_v18 = vpop.f32.mrb[57].mxu1 }
 0x22e   : > { %v10880_v4 = vadd.f32 %v7665_v9, %v10710_v36  ;;  %v7592_v63 = vadd.f32 %v7591_v18, %v7590_v35  ;;  %v7593_v55 = vpop.f32.mrb[58].mxu1  ;;  %v11176_v35 = vld [vmem:[#allocation3_spill] sm:$0xff] }
 0x22f   : > { %v7594_v34 = vpop.f32.mrb[59].mxu1 }
 0x230   : > { %v10883_v39 = vadd.f32 %v7592_v63, %v10492_v42  ;;  %v7595_v2 = vadd.f32 %v7594_v34, %v7593_v55  ;;  %v11177_v63 = vld [vmem:[#allocation4_spill] sm:$0xff] }
 0x232   : > { %v10886_v12 = vadd.f32 %v7595_v2, %v10509_v47 }
 0x234   : > { %v7596_v38 = vpop.f32.mrb[60].mxu1 }
 0x235   : > { %v7597_v58 = vpop.f32.mrb[61].mxu1  ;;  %v7666_v27 = vpop.f32.mrb[64].mxu0 }
 0x236   : > { %v7598_v40 = vadd.f32 %v7597_v58, %v7596_v38  ;;  %v7599_v10 = vpop.f32.mrb[62].mxu1  ;;  %v7667_v36 = vpop.f32.mrb[65].mxu0 }
 0x237   : > { %v7600_v53 = vpop.f32.mrb[63].mxu1  ;;  %v7668_v32 = vadd.f32 %v7667_v36, %v7666_v27  ;;  %v7669_v8 = vpop.f32.mrb[66].mxu0 }
 0x238   : > { %v10889_v56 = vadd.f32 %v7598_v40, %v10528_v33  ;;  %v7601_v54 = vadd.f32 %v7600_v53, %v7599_v10  ;;  %v7670_v25 = vpop.f32.mrb[67].mxu0 }
 0x239   : > { %v10895_v47 = vadd.f32 %v7668_v32, %v10744_v17  ;;  %v7671_v43 = vadd.f32 %v7670_v25, %v7669_v8  ;;  %v11178_v8 = vld [vmem:[#allocation5_spill] sm:$0xff] }
 0x23a   : > { %v10892_v42 = vadd.f32 %v7601_v54, %v10536_v29 }
 0x23b   : > { %v10898_v24 = vadd.f32 %v7671_v43, %v10761_v21  ;;  %v11175_v21 = vld [vmem:[#allocation9_spill] sm:$0xff] }
 0x23c   : > { %v7602_v1 = vpop.f32.mrb[64].mxu1 }
 0x23d   : > { %v7603_v52 = vpop.f32.mrb[65].mxu1 }
 0x23e   : > { %v7604_v16 = vadd.f32 %v7603_v52, %v7602_v1  ;;  %v7605_v33 = vpop.f32.mrb[66].mxu1  ;;  %v11179_v52 = vld [vmem:[#allocation6_spill] sm:$0xff] }
 0x23f   : > { %v7606_v31 = vpop.f32.mrb[67].mxu1  ;;  %v7672_v60 = vpop.f32.mrb[68].mxu0 }
 0x240   : > { %v10901_v0 = vadd.f32 %v7604_v16, %v10315_v15  ;;  %v7607_v57 = vadd.f32 %v7606_v31, %v7605_v33  ;;  %v7673_v48 = vpop.f32.mrb[69].mxu0 }
 0x241   : > { %v7674_v17 = vadd.f32 %v7673_v48, %v7672_v60  ;;  %v7675_v30 = vpop.f32.mrb[70].mxu0 }
 0x242   : > { %v10904_v29 = vadd.f32 %v7607_v57, %v10334_v6  ;;  %v7676_v50 = vpop.f32.mrb[71].mxu0 }
 0x243   : > { %v10907_v61 = vadd.f32 %v7674_v17, %v11175_v21  ;;  %v7677_v7 = vadd.f32 %v7676_v50, %v7675_v30 }
 0x244   : > { %v7608_v45 = vpop.f32.mrb[68].mxu1 }
 0x245   : > { %v7609_v37 = vpop.f32.mrb[69].mxu1  ;;  %v10910_v15 = vadd.f32 %v7677_v7, %v10808_v14  ;;  %v11180_v7 = vld [vmem:[#allocation7_spill] sm:$0xff] }
 0x246   : > { %v7610_v11 = vadd.f32 %v7609_v37, %v7608_v45  ;;  %v7611_v46 = vpop.f32.mrb[70].mxu1 }
 0x247   : > { %v7612_v9 = vpop.f32.mrb[71].mxu1 }
 0x248   : > { %v10913_v6 = vadd.f32 %v7610_v11, %v11176_v35  ;;  %v7613_v18 = vadd.f32 %v7612_v9, %v7611_v46  ;;  %v11181_v9 = vld [vmem:[#allocation8_spill] sm:$0xff] }
 0x24a   : > { %v10916_v55 = vadd.f32 %v7613_v18, %v11177_v63 }
 0x24c   : > { %v7678_v34 = vpop.f32.mrb[72].mxu0  ;;  %v7614_v2 = vpop.f32.mrb[72].mxu1 }
 0x24d   : > { %v7679_v38 = vpop.f32.mrb[73].mxu0  ;;  %v7615_v58 = vpop.f32.mrb[73].mxu1 }
 0x24e   : > { %v7680_v40 = vadd.f32 %v7679_v38, %v7678_v34  ;;  %v7681_v10 = vpop.f32.mrb[74].mxu0  ;;  %v7616_v27 = vadd.f32 %v7615_v58, %v7614_v2  ;;  %v7617_v53 = vpop.f32.mrb[74].mxu1 }
 0x24f   : > { %v7682_v36 = vpop.f32.mrb[75].mxu0  ;;  %v7618_v14 = vpop.f32.mrb[75].mxu1 }
 0x250   : > { %v10919_v54 = vadd.f32 %v7680_v40, %v10824_v26  ;;  %v7683_v32 = vadd.f32 %v7682_v36, %v7681_v10  ;;  %v10922_v25 = vadd.f32 %v7616_v27, %v11178_v8  ;;  %v7619_v43 = vadd.f32 %v7618_v14, %v7617_v53 }
 0x252   : > { %v10925_v1 = vadd.f32 %v7683_v32, %v10833_v19  ;;  %v10928_v16 = vadd.f32 %v7619_v43, %v11179_v52 }
 0x254   : > { %v7684_v33 = vpop.f32.mrb[76].mxu0  ;;  %v7620_v31 = vpop.f32.mrb[76].mxu1 }
 0x255   : > { %v7685_v57 = vpop.f32.mrb[77].mxu0  ;;  %v7621_v60 = vpop.f32.mrb[77].mxu1 }
 0x256   : > { %v7686_v48 = vadd.f32 %v7685_v57, %v7684_v33  ;;  %v7687_v17 = vpop.f32.mrb[78].mxu0  ;;  %v7622_v26 = vadd.f32 %v7621_v60, %v7620_v31  ;;  %v7623_v30 = vpop.f32.mrb[78].mxu1 }
 0x257   : > { %v7688_v45 = vpop.f32.mrb[79].mxu0  ;;  %v7624_v37 = vpop.f32.mrb[79].mxu1 }
 0x258   : > { %v10931_v50 = vadd.f32 %v7686_v48, %v10850_v41  ;;  %v7689_v21 = vadd.f32 %v7688_v45, %v7687_v17  ;;  %v10934_v19 = vadd.f32 %v7622_v26, %v11180_v7  ;;  %v7625_v11 = vadd.f32 %v7624_v37, %v7623_v30 }
 0x25a   : > { %v10937_v46 = vadd.f32 %v7689_v21, %v10853_v23  ;;  %v10940_v35 = vadd.f32 %v7625_v11, %v11181_v9 }
 0x25c   : > { %v7690_v18 = vpop.f32.mrb[80].mxu0  ;;  %v7754_v63 = vpop.f32.mrb[80].mxu1 }
 0x25d   : > { %v7691_v34 = vpop.f32.mrb[81].mxu0  ;;  %v7755_v2 = vpop.f32.mrb[81].mxu1 }
 0x25e   : > { %v7692_v38 = vadd.f32 %v7691_v34, %v7690_v18  ;;  %v7756_v58 = vadd.f32 %v7755_v2, %v7754_v63  ;;  %v7693_v41 = vpop.f32.mrb[82].mxu0  ;;  %v7757_v40 = vpop.f32.mrb[82].mxu1 }
 0x25f   : > { %v7694_v10 = vpop.f32.mrb[83].mxu0  ;;  %v7758_v27 = vpop.f32.mrb[83].mxu1 }
 0x260   : > { %v10943_v53 = vadd.f32 %v7692_v38, %v10859_v49  ;;  %v7695_v36 = vadd.f32 %v7694_v10, %v7693_v41  ;;  %v7759_v14 = vadd.f32 %v7758_v27, %v7757_v40  ;;  %v10946_v23 = vadd.f32 %v7756_v58, %v10793_v13 }
 0x262   : > { %v10949_v32 = vadd.f32 %v7695_v36, %v10865_v59  ;;  %v10952_v8 = vadd.f32 %v7759_v14, %v10813_v51 }
 0x264   : > { %v7696_v43 = vpop.f32.mrb[84].mxu0  ;;  %v7760_v52 = vpop.f32.mrb[84].mxu1 }
 0x265   : > { %v7697_v33 = vpop.f32.mrb[85].mxu0  ;;  %v7761_v57 = vpop.f32.mrb[85].mxu1 }
 0x266   : > { %v7698_v31 = vadd.f32 %v7697_v33, %v7696_v43  ;;  %v7699_v60 = vpop.f32.mrb[86].mxu0  ;;  %v7762_v48 = vadd.f32 %v7761_v57, %v7760_v52  ;;  %v7763_v49 = vpop.f32.mrb[86].mxu1 }
 0x267   : > { %v7700_v17 = vpop.f32.mrb[87].mxu0  ;;  %v7764_v30 = vpop.f32.mrb[87].mxu1 }
 0x268   : > { %v10955_v26 = vadd.f32 %v7698_v31, %v10871_v62  ;;  %v7701_v13 = vadd.f32 %v7700_v17, %v7699_v60  ;;  %v7765_v45 = vadd.f32 %v7764_v30, %v7763_v49  ;;  %v10958_v59 = vadd.f32 %v7762_v48, %v10840_v22 }
 0x26a   : > { %v10961_v51 = vadd.f32 %v7701_v13, %v10874_v44  ;;  %v10964_v37 = vadd.f32 %v7765_v45, %v10843_v5 }
 0x26c   : > { %v7702_v21 = vpop.f32.mrb[88].mxu0  ;;  %v7766_v7 = vpop.f32.mrb[88].mxu1 }
 0x26d   : > { %v7703_v11 = vpop.f32.mrb[89].mxu0  ;;  %v7767_v18 = vpop.f32.mrb[89].mxu1 }
 0x26e   : > { %v7704_v9 = vadd.f32 %v7703_v11, %v7702_v21  ;;  %v7705_v63 = vpop.f32.mrb[90].mxu0  ;;  %v7768_v62 = vadd.f32 %v7767_v18, %v7766_v7  ;;  %v7769_v34 = vpop.f32.mrb[90].mxu1 }
 0x26f   : > { %v7706_v2 = vpop.f32.mrb[91].mxu0  ;;  %v7770_v58 = vpop.f32.mrb[91].mxu1 }
 0x270   : > { %v10967_v38 = vadd.f32 %v7704_v9, %v10883_v39  ;;  %v7707_v22 = vadd.f32 %v7706_v2, %v7705_v63  ;;  %v7771_v41 = vadd.f32 %v7770_v58, %v7769_v34  ;;  %v10970_v44 = vadd.f32 %v7768_v62, %v10862_v20 }
 0x272   : > { %v10973_v5 = vadd.f32 %v7707_v22, %v10886_v12  ;;  %v10976_v40 = vadd.f32 %v7771_v41, %v10868_v28 }
 0x274   : > { %v7708_v10 = vpop.f32.mrb[92].mxu0  ;;  %v7772_v27 = vpop.f32.mrb[92].mxu1 }
 0x275   : > { %v7709_v36 = vpop.f32.mrb[93].mxu0  ;;  %v7773_v43 = vpop.f32.mrb[93].mxu1 }
 0x276   : > { %v7710_v14 = vadd.f32 %v7709_v36, %v7708_v10  ;;  %v7711_v52 = vpop.f32.mrb[94].mxu0  ;;  %v7774_v39 = vadd.f32 %v7773_v43, %v7772_v27  ;;  %v7775_v33 = vpop.f32.mrb[94].mxu1 }
 0x277   : > { %v7712_v31 = vpop.f32.mrb[95].mxu0  ;;  %v7776_v60 = vpop.f32.mrb[95].mxu1 }
 0x278   : > { %v10979_v57 = vadd.f32 %v7710_v14, %v10889_v56  ;;  %v7713_v20 = vadd.f32 %v7712_v31, %v7711_v52  ;;  %v7777_v48 = vadd.f32 %v7776_v60, %v7775_v33  ;;  %v10982_v12 = vadd.f32 %v7774_v39, %v10877_v3 }
 0x27a   : > { %v10985_v28 = vadd.f32 %v7713_v20, %v10892_v42  ;;  %v10988_v49 = vadd.f32 %v7777_v48, %v10880_v4 }
 0x27c   : > { %v7778_v13 = vpop.f32.mrb[96].mxu1 }
 0x27d   : > { %v7714_v17 = vpop.f32.mrb[96].mxu0  ;;  %v7779_v45 = vpop.f32.mrb[97].mxu1 }
 0x27e   : > { %v7715_v30 = vpop.f32.mrb[97].mxu0  ;;  %v7780_v7 = vadd.f32 %v7779_v45, %v7778_v13  ;;  %v7781_v11 = vpop.f32.mrb[98].mxu1 }
 0x27f   : > { %v7716_v21 = vadd.f32 %v7715_v30, %v7714_v17  ;;  %v7717_v56 = vpop.f32.mrb[98].mxu0  ;;  %v7782_v18 = vpop.f32.mrb[99].mxu1 }
 0x280   : > { %v7718_v9 = vpop.f32.mrb[99].mxu0  ;;  %v7783_v62 = vadd.f32 %v7782_v18, %v7781_v11  ;;  %v10994_v42 = vadd.f32 %v7780_v7, %v10895_v47 }
 0x281   : > { %v10991_v63 = vadd.f32 %v7716_v21, %v10901_v0  ;;  %v7719_v3 = vadd.f32 %v7718_v9, %v7717_v56 }
 0x282   : > { %v11000_v34 = vadd.f32 %v7783_v62, %v10898_v24 }
 0x283   : > { %v10997_v4 = vadd.f32 %v7719_v3, %v10904_v29 }
 0x284   : > { %v7784_v2 = vpop.f32.mrb[100].mxu1 }
 0x285   : > { %v7720_v22 = vpop.f32.mrb[100].mxu0  ;;  %v7785_v58 = vpop.f32.mrb[101].mxu1 }
 0x286   : > { %v7721_v41 = vpop.f32.mrb[101].mxu0  ;;  %v7786_v10 = vadd.f32 %v7785_v58, %v7784_v2  ;;  %v7787_v27 = vpop.f32.mrb[102].mxu1 }
 0x287   : > { %v7722_v36 = vadd.f32 %v7721_v41, %v7720_v22  ;;  %v7723_v0 = vpop.f32.mrb[102].mxu0  ;;  %v7788_v14 = vpop.f32.mrb[103].mxu1 }
 0x288   : > { %v7724_v43 = vpop.f32.mrb[103].mxu0  ;;  %v7789_v52 = vadd.f32 %v7788_v14, %v7787_v27  ;;  %v11003_v47 = vadd.f32 %v7786_v10, %v10907_v61 }
 0x289   : > { %v11006_v29 = vadd.f32 %v7722_v36, %v10913_v6  ;;  %v7725_v39 = vadd.f32 %v7724_v43, %v7723_v0 }
 0x28a   : > { %v11009_v24 = vadd.f32 %v7789_v52, %v10910_v15 }
 0x28b   : > { %v11012_v33 = vadd.f32 %v7725_v39, %v10916_v55 }
 0x28c   : > { %v7790_v31 = vpop.f32.mrb[104].mxu1 }
 0x28d   : > { %v7726_v20 = vpop.f32.mrb[104].mxu0  ;;  %v7791_v60 = vpop.f32.mrb[105].mxu1 }
 0x28e   : > { %v7727_v48 = vpop.f32.mrb[105].mxu0  ;;  %v7792_v17 = vadd.f32 %v7791_v60, %v7790_v31  ;;  %v7793_v13 = vpop.f32.mrb[106].mxu1 }
 0x28f   : > { %v7728_v30 = vadd.f32 %v7727_v48, %v7726_v20  ;;  %v7729_v45 = vpop.f32.mrb[106].mxu0  ;;  %v7794_v61 = vpop.f32.mrb[107].mxu1 }
 0x290   : > { %v7730_v21 = vpop.f32.mrb[107].mxu0  ;;  %v7795_v7 = vadd.f32 %v7794_v61, %v7793_v13  ;;  %v11015_v6 = vadd.f32 %v7792_v17, %v10919_v54 }
 0x291   : > { %v11018_v15 = vadd.f32 %v7728_v30, %v10922_v25  ;;  %v7731_v56 = vadd.f32 %v7730_v21, %v7729_v45 }
 0x292   : > { %v11021_v55 = vadd.f32 %v7795_v7, %v10925_v1 }
 0x293   : > { %v11024_v11 = vadd.f32 %v7731_v56, %v10928_v16 }
 0x295   : > { %v7732_v18 = vpop.f32.mrb[108].mxu0 }
 0x296   : > { %v7733_v62 = vpop.f32.mrb[109].mxu0 }
 0x297   : > { %v7734_v58 = vadd.f32 %v7733_v62, %v7732_v18  ;;  %v7735_v54 = vpop.f32.mrb[110].mxu0 }
 0x298   : > { %v7796_v9 = vpop.f32.mrb[108].mxu1  ;;  %v7736_v10 = vpop.f32.mrb[111].mxu0 }
 0x299   : > { %v7797_v3 = vpop.f32.mrb[109].mxu1  ;;  %v11030_v1 = vadd.f32 %v7734_v58, %v10934_v19  ;;  %v7737_v16 = vadd.f32 %v7736_v10, %v7735_v54 }
 0x29a   : > { %v7798_v2 = vadd.f32 %v7797_v3, %v7796_v9  ;;  %v7799_v22 = vpop.f32.mrb[110].mxu1 }
 0x29b   : > { %v7800_v41 = vpop.f32.mrb[111].mxu1  ;;  %v11036_v0 = vadd.f32 %v7737_v16, %v10940_v35 }
 0x29c   : > { %v7801_v25 = vadd.f32 %v7800_v41, %v7799_v22  ;;  %v11027_v27 = vadd.f32 %v7798_v2, %v10931_v50 }
 0x29e   : > { %v11033_v36 = vadd.f32 %v7801_v25, %v10937_v46 }
 0x2a0   : > { %v7802_v14 = vpop.f32.mrb[112].mxu1  ;;  %v7892_v50 = vpop.f32.mrb[112].mxu0 }
 0x2a1   : > { %v7803_v19 = vpop.f32.mrb[113].mxu1  ;;  %v6824_v43 = vadd.f32 %v7892_v50, %v10958_v59  ;;  %v6815_v46 = vpop.f32.mrb[113].mxu0 }
 0x2a2   : > { %v7804_v52 = vadd.f32 %v7803_v19, %v7802_v14  ;;  %v7805_v39 = vpop.f32.mrb[114].mxu1  ;;  %v6816_v35 = vadd.f32 %v6815_v46, %v10946_v23  ;;  %v7893_v31 = vpop.f32.mrb[114].mxu0 }
 0x2a3   : > { %v7806_v20 = vpop.f32.mrb[115].mxu1  ;;  %7052 = vst [vmem:[%s11042_s22 + $0x10] sm:$0xff] %v6824_v43  ;;  %v6827_v60 = vadd.f32 %v7893_v31, %v10964_v37  ;;  %v6818_v17 = vpop.f32.mrb[115].mxu0  ;;  %v6982_v21 = vmul.f32 %v6824_v43, %v6824_v43 }
 0x2a4   : > { %v7807_v48 = vadd.f32 %v7806_v20, %v7805_v39  ;;  %v11049_v13 = vadd.f32 %v7804_v52, %v10943_v53  ;;  %7050 = vst [vmem:[%s11042_s22] sm:$0xff] %v6816_v35  ;;  %v6819_v30 = vadd.f32 %v6818_v17, %v10952_v8  ;;  %v6980_v45 = vmul.f32 %v6816_v35, %v6816_v35 }
 0x2a5   : > { %7053 = vst [vmem:[%s11042_s22 + $0x18] sm:$0xff] %v6827_v60  ;;  %v6983_v9 = vmul.f32 %v6827_v60, %v6827_v60 }
 0x2a6   : > { %v11055_v59 = vadd.f32 %v7807_v48, %v10949_v32  ;;  %v6942_v61 = vadd.f32 %v6819_v30, %v6816_v35  ;;  %v6981_v23 = vmul.f32 %v6819_v30, %v6819_v30  ;;  %7051 = vst [vmem:[%s11042_s22 + $0x8] sm:$0xff] %v6819_v30 }
 0x2a8   : > { %v6943_v7 = vadd.f32 %v6942_v61, %v6824_v43  ;;  %v7012_v37 = vadd.f32 %v6981_v23, %v6980_v45 }
 0x2aa   : > { %v7808_v56 = vpop.f32.mrb[116].mxu1  ;;  %v7013_v18 = vadd.f32 %v7012_v37, %v6982_v21  ;;  %v7896_v53 = vpop.f32.mrb[116].mxu0  ;;  %v6944_v62 = vadd.f32 %v6943_v7, %v6827_v60 }
 0x2ab   : > { %v7809_v3 = vpop.f32.mrb[117].mxu1  ;;  %v6840_v8 = vadd.f32 %v7896_v53, %v10982_v12  ;;  %v6831_v32 = vpop.f32.mrb[117].mxu0 }
 0x2ac   : > { %v7810_v2 = vadd.f32 %v7809_v3, %v7808_v56  ;;  %v7811_v22 = vpop.f32.mrb[118].mxu1  ;;  %v6832_v58 = vadd.f32 %v6831_v32, %v10970_v44  ;;  %v7014_v54 = vadd.f32 %v7013_v18, %v6983_v9  ;;  %v7897_v41 = vpop.f32.mrb[118].mxu0 }
 0x2ad   : > { %v7812_v10 = vpop.f32.mrb[119].mxu1  ;;  %7056 = vst [vmem:[%s11042_s22 + $0x30] sm:$0xff] %v6840_v8  ;;  %v6843_v25 = vadd.f32 %v7897_v41, %v10988_v49  ;;  %v6834_v14 = vpop.f32.mrb[119].mxu0  ;;  %v6986_v35 = vmul.f32 %v6840_v8, %v6840_v8 }
 0x2ae   : > { %v7813_v16 = vadd.f32 %v7812_v10, %v7811_v22  ;;  %v11063_v50 = vadd.f32 %v7810_v2, %v10955_v26  ;;  %v6945_v19 = vadd.f32 %v6944_v62, %v6832_v58  ;;  %v6984_v12 = vmul.f32 %v6832_v58, %v6832_v58  ;;  %7054 = vst [vmem:[%s11042_s22 + $0x20] sm:$0xff] %v6832_v58 }
 0x2af   : > { %v6835_v43 = vadd.f32 %v6834_v14, %v10976_v40  ;;  %7057 = vst [vmem:[%s11042_s22 + $0x38] sm:$0xff] %v6843_v25  ;;  %v6987_v20 = vmul.f32 %v6843_v25, %v6843_v25 }
 0x2b0   : > { %v11069_v44 = vadd.f32 %v7813_v16, %v10961_v51  ;;  %v7015_v52 = vadd.f32 %v7014_v54, %v6984_v12 }
 0x2b1   : > { %v6946_v46 = vadd.f32 %v6945_v19, %v6835_v43  ;;  %v6985_v39 = vmul.f32 %v6835_v43, %v6835_v43  ;;  %7055 = vst [vmem:[%s11042_s22 + $0x28] sm:$0xff] %v6835_v43 }
 0x2b3   : > { %v6947_v49 = vadd.f32 %v6946_v46, %v6840_v8  ;;  %v7016_v31 = vadd.f32 %v7015_v52, %v6985_v39 }
 0x2b5   : > { %v7017_v26 = vadd.f32 %v7016_v31, %v6986_v35  ;;  %v6948_v60 = vadd.f32 %v6947_v49, %v6843_v25 }
 0x2b7   : > { %v7018_v48 = vadd.f32 %v7017_v26, %v6987_v20  ;;  %v7900_v30 = vpop.f32.mrb[120].mxu0 }
 0x2b8   : > { %v6856_v40 = vadd.f32 %v7900_v30, %v11003_v47  ;;  %v6847_v45 = vpop.f32.mrb[121].mxu0 }
 0x2b9   : > { %v7814_v17 = vpop.f32.mrb[120].mxu1  ;;  %v6848_v23 = vadd.f32 %v6847_v45, %v10994_v42  ;;  %v7901_v7 = vpop.f32.mrb[122].mxu0 }
 0x2ba   : > { %v7815_v51 = vpop.f32.mrb[121].mxu1  ;;  %7060 = vst [vmem:[%s11042_s22 + $0x50] sm:$0xff] %v6856_v40  ;;  %v6859_v37 = vadd.f32 %v7901_v7, %v11009_v24  ;;  %v6850_v9 = vpop.f32.mrb[123].mxu0  ;;  %v6990_v24 = vmul.f32 %v6856_v40, %v6856_v40 }
 0x2bb   : > { %v7816_v61 = vadd.f32 %v7815_v51, %v7814_v17  ;;  %v7817_v21 = vpop.f32.mrb[122].mxu1  ;;  %v6949_v18 = vadd.f32 %v6948_v60, %v6848_v23  ;;  %v6988_v53 = vmul.f32 %v6848_v23, %v6848_v23  ;;  %7058 = vst [vmem:[%s11042_s22 + $0x40] sm:$0xff] %v6848_v23  ;;  %v6851_v47 = vadd.f32 %v6850_v9, %v11000_v34 }
 0x2bc   : > { %v7818_v56 = vpop.f32.mrb[123].mxu1  ;;  %7061 = vst [vmem:[%s11042_s22 + $0x58] sm:$0xff] %v6859_v37  ;;  %v6991_v54 = vmul.f32 %v6859_v37, %v6859_v37 }
 0x2bd   : > { %v7819_v3 = vadd.f32 %v7818_v56, %v7817_v21  ;;  %v11080_v62 = vadd.f32 %v7816_v61, %v10967_v38  ;;  %v7019_v8 = vadd.f32 %v7018_v48, %v6988_v53  ;;  %v6950_v42 = vadd.f32 %v6949_v18, %v6851_v47  ;;  %7059 = vst [vmem:[%s11042_s22 + $0x48] sm:$0xff] %v6851_v47 }
 0x2be   : > { %v6989_v2 = vmul.f32 %v6851_v47, %v6851_v47 }
 0x2bf   : > { %v11084_v32 = vadd.f32 %v7819_v3, %v10973_v5  ;;  %v6951_v22 = vadd.f32 %v6950_v42, %v6856_v40 }
 0x2c0   : > { %v7020_v58 = vadd.f32 %v7019_v8, %v6989_v2 }
 0x2c1   : > { %v6952_v10 = vadd.f32 %v6951_v22, %v6859_v37 }
 0x2c2   : > { %v7021_v41 = vadd.f32 %v7020_v58, %v6990_v24 }
 0x2c4   : > { %v7022_v34 = vadd.f32 %v7021_v41, %v6991_v54 }
 0x2c5   : > { %v7820_v25 = vpop.f32.mrb[124].mxu1 }
 0x2c6   : > { %v7821_v16 = vpop.f32.mrb[125].mxu1 }
 0x2c7   : > { %v7822_v14 = vadd.f32 %v7821_v16, %v7820_v25  ;;  %v7823_v38 = vpop.f32.mrb[126].mxu1 }
 0x2c8   : > { %v7904_v19 = vpop.f32.mrb[124].mxu0  ;;  %v7824_v12 = vpop.f32.mrb[127].mxu1 }
 0x2c9   : > { %v6872_v43 = vadd.f32 %v7904_v19, %v11027_v27  ;;  %v6863_v5 = vpop.f32.mrb[125].mxu0  ;;  %v7825_v52 = vadd.f32 %v7824_v12, %v7823_v38  ;;  %v11088_v46 = vadd.f32 %v7822_v14, %v10979_v57 }
 0x2ca   : > { %v6864_v39 = vadd.f32 %v6863_v5, %v11015_v6  ;;  %v7905_v35 = vpop.f32.mrb[126].mxu0 }
 0x2cb   : > { %7064 = vst [vmem:[%s11042_s22 + $0x70] sm:$0xff] %v6872_v43  ;;  %v6875_v49 = vadd.f32 %v7905_v35, %v11033_v36  ;;  %v6866_v31 = vpop.f32.mrb[127].mxu0  ;;  %v11094_v20 = vadd.f32 %v7825_v52, %v10985_v28  ;;  %v6994_v6 = vmul.f32 %v6872_v43, %v6872_v43 }
 0x2cc   : > { %v6953_v26 = vadd.f32 %v6952_v10, %v6864_v39  ;;  %v6992_v60 = vmul.f32 %v6864_v39, %v6864_v39  ;;  %7062 = vst [vmem:[%s11042_s22 + $0x60] sm:$0xff] %v6864_v39  ;;  %v6867_v27 = vadd.f32 %v6866_v31, %v11021_v55 }
 0x2cd   : > { %7065 = vst [vmem:[%s11042_s22 + $0x78] sm:$0xff] %v6875_v49  ;;  %v6995_v45 = vmul.f32 %v6875_v49, %v6875_v49 }
 0x2ce   : > { %v7023_v48 = vadd.f32 %v7022_v34, %v6992_v60  ;;  %v6954_v17 = vadd.f32 %v6953_v26, %v6867_v27  ;;  %v6993_v57 = vmul.f32 %v6867_v27, %v6867_v27  ;;  %7063 = vst [vmem:[%s11042_s22 + $0x68] sm:$0xff] %v6867_v27 }
 0x2d0   : > { %v6955_v30 = vadd.f32 %v6954_v17, %v6872_v43  ;;  %v7024_v40 = vadd.f32 %v7023_v48, %v6993_v57  ;;  %v7908_v36 = vpop.f32.mrb[128].mxu0 }
 0x2d1   : > { %v7826_v51 = vpop.f32.mrb[128].mxu1  ;;  %v6888_v28 = vadd.f32 %v7908_v36, %v11063_v50  ;;  %v6879_v21 = vpop.f32.mrb[129].mxu0 }
 0x2d2   : > { %v7025_v61 = vadd.f32 %v7024_v40, %v6994_v6  ;;  %v7827_v23 = vpop.f32.mrb[129].mxu1  ;;  %v6956_v55 = vadd.f32 %v6955_v30, %v6875_v49  ;;  %v6880_v37 = vadd.f32 %v6879_v21, %v11049_v13  ;;  %v7909_v9 = vpop.f32.mrb[130].mxu0 }
 0x2d3   : > { %v7828_v7 = vadd.f32 %v7827_v23, %v7826_v51  ;;  %v7829_v56 = vpop.f32.mrb[130].mxu1  ;;  %7068 = vst [vmem:[%s11042_s22 + $0x90] sm:$0xff] %v6888_v28  ;;  %v6891_v53 = vadd.f32 %v7909_v9, %v11069_v44  ;;  %v6882_v47 = vpop.f32.mrb[131].mxu0  ;;  %v6998_v41 = vmul.f32 %v6888_v28, %v6888_v28 }
 0x2d4   : > { %v7026_v18 = vadd.f32 %v7025_v61, %v6995_v45  ;;  %v7830_v3 = vpop.f32.mrb[131].mxu1  ;;  %v6957_v8 = vadd.f32 %v6956_v55, %v6880_v37  ;;  %v6996_v42 = vmul.f32 %v6880_v37, %v6880_v37  ;;  %7066 = vst [vmem:[%s11042_s22 + $0x80] sm:$0xff] %v6880_v37  ;;  %v6883_v2 = vadd.f32 %v6882_v47, %v11055_v59 }
 0x2d5   : > { %v7831_v50 = vadd.f32 %v7830_v3, %v7829_v56  ;;  %7069 = vst [vmem:[%s11042_s22 + $0x98] sm:$0xff] %v6891_v53  ;;  %v6751_v24 = vadd.f32 %v7828_v7, %v10991_v63  ;;  %v6999_v25 = vmul.f32 %v6891_v53, %v6891_v53 }
 0x2d6   : > { %v7027_v22 = vadd.f32 %v7026_v18, %v6996_v42  ;;  %v6958_v13 = vadd.f32 %v6957_v8, %v6883_v2  ;;  %v6997_v58 = vmul.f32 %v6883_v2, %v6883_v2  ;;  %7067 = vst [vmem:[%s11042_s22 + $0x88] sm:$0xff] %v6883_v2 }
 0x2d7   : > { %v6754_v54 = vadd.f32 %v7831_v50, %v10997_v4 }
 0x2d8   : > { %v6959_v10 = vadd.f32 %v6958_v13, %v6888_v28  ;;  %v7028_v44 = vadd.f32 %v7027_v22, %v6997_v58 }
 0x2da   : > { %v7029_v34 = vadd.f32 %v7028_v44, %v6998_v41  ;;  %v6960_v16 = vadd.f32 %v6959_v10, %v6891_v53 }
 0x2dc   : > { %v7030_v14 = vadd.f32 %v7029_v34, %v6999_v25 }
 0x2e1   : > { %v7832_v38 = vpop.f32.mrb[132].mxu1 }
 0x2e2   : > { %v7833_v19 = vpop.f32.mrb[133].mxu1 }
 0x2e3   : > { %v7834_v59 = vadd.f32 %v7833_v19, %v7832_v38  ;;  %v7835_v12 = vpop.f32.mrb[134].mxu1 }
 0x2e4   : > { %v7836_v63 = vpop.f32.mrb[135].mxu1 }
 0x2e5   : > { %v7837_v43 = vadd.f32 %v7836_v63, %v7835_v12  ;;  %v6759_v5 = vadd.f32 %v7834_v59, %v11006_v29 }
 0x2e6   : > { %v7912_v52 = vpop.f32.mrb[132].mxu0 }
 0x2e7   : > { %v6904_v4 = vadd.f32 %v7912_v52, %v11088_v46  ;;  %v6895_v39 = vpop.f32.mrb[133].mxu0  ;;  %v6762_v35 = vadd.f32 %v7837_v43, %v11012_v33 }
 0x2e8   : > { %v6896_v49 = vadd.f32 %v6895_v39, %v11080_v62  ;;  %v7913_v31 = vpop.f32.mrb[134].mxu0 }
 0x2e9   : > { %7072 = vst [vmem:[%s11042_s22 + $0xb0] sm:$0xff] %v6904_v4  ;;  %v6907_v26 = vadd.f32 %v7913_v31, %v11094_v20  ;;  %v6898_v60 = vpop.f32.mrb[135].mxu0  ;;  %v7002_v33 = vmul.f32 %v6904_v4, %v6904_v4 }
 0x2ea   : > { %v6961_v27 = vadd.f32 %v6960_v16, %v6896_v49  ;;  %v7000_v48 = vmul.f32 %v6896_v49, %v6896_v49  ;;  %7070 = vst [vmem:[%s11042_s22 + $0xa0] sm:$0xff] %v6896_v49  ;;  %v6899_v17 = vadd.f32 %v6898_v60, %v11084_v32 }
 0x2eb   : > { %7073 = vst [vmem:[%s11042_s22 + $0xb8] sm:$0xff] %v6907_v26  ;;  %v7003_v45 = vmul.f32 %v6907_v26, %v6907_v26 }
 0x2ec   : > { %v7031_v29 = vadd.f32 %v7030_v14, %v7000_v48  ;;  %v6962_v57 = vadd.f32 %v6961_v27, %v6899_v17  ;;  %v7001_v46 = vmul.f32 %v6899_v17, %v6899_v17  ;;  %7071 = vst [vmem:[%s11042_s22 + $0xa8] sm:$0xff] %v6899_v17  ;;  %v7838_v6 = vpop.f32.mrb[136].mxu1 }
 0x2ed   : > { %v7839_v30 = vpop.f32.mrb[137].mxu1 }
 0x2ee   : > { %v6963_v62 = vadd.f32 %v6962_v57, %v6904_v4  ;;  %v7032_v40 = vadd.f32 %v7031_v29, %v7001_v46  ;;  %v7916_v51 = vpop.f32.mrb[136].mxu0  ;;  %v7840_v36 = vadd.f32 %v7839_v30, %v7838_v6  ;;  %v7841_v20 = vpop.f32.mrb[138].mxu1 }
 0x2ef   : > { %v6920_v61 = vadd.f32 %v7916_v51, %v6759_v5  ;;  %v6911_v28 = vpop.f32.mrb[137].mxu0  ;;  %v7842_v32 = vpop.f32.mrb[139].mxu1 }
 0x2f0   : > { %v7033_v23 = vadd.f32 %v7032_v40, %v7002_v33  ;;  %v6912_v21 = vadd.f32 %v6911_v28, %v6751_v24  ;;  %v6964_v55 = vadd.f32 %v6963_v62, %v6907_v26  ;;  %v7917_v7 = vpop.f32.mrb[138].mxu0  ;;  %v7843_v37 = vadd.f32 %v7842_v32, %v7841_v20 }
 0x2f1   : > { %7076 = vst [vmem:[%s11042_s22 + $0xd0] sm:$0xff] %v6920_v61  ;;  %v6923_v56 = vadd.f32 %v7917_v7, %v6762_v35  ;;  %v6914_v9 = vpop.f32.mrb[139].mxu0  ;;  %v6767_v18 = vadd.f32 %v7840_v36, %v11018_v15  ;;  %v7006_v58 = vmul.f32 %v6920_v61, %v6920_v61 }
 0x2f2   : > { %v6965_v53 = vadd.f32 %v6964_v55, %v6912_v21  ;;  %v7004_v3 = vmul.f32 %v6912_v21, %v6912_v21  ;;  %v7034_v47 = vadd.f32 %v7033_v23, %v7003_v45  ;;  %7074 = vst [vmem:[%s11042_s22 + $0xc0] sm:$0xff] %v6912_v21  ;;  %v6915_v8 = vadd.f32 %v6914_v9, %v6754_v54 }
 0x2f3   : > { %7077 = vst [vmem:[%s11042_s22 + $0xd8] sm:$0xff] %v6923_v56  ;;  %v6770_v42 = vadd.f32 %v7843_v37, %v11024_v11  ;;  %v7007_v34 = vmul.f32 %v6923_v56, %v6923_v56 }
 0x2f4   : > { %v7035_v50 = vadd.f32 %v7034_v47, %v7004_v3  ;;  %v6966_v2 = vadd.f32 %v6965_v53, %v6915_v8  ;;  %v7005_v24 = vmul.f32 %v6915_v8, %v6915_v8  ;;  %7075 = vst [vmem:[%s11042_s22 + $0xc8] sm:$0xff] %v6915_v8  ;;  %v7844_v22 = vpop.f32.mrb[140].mxu1 }
 0x2f5   : > { %v7845_v13 = vpop.f32.mrb[141].mxu1 }
 0x2f6   : > { %v6967_v41 = vadd.f32 %v6966_v2, %v6920_v61  ;;  %v7036_v10 = vadd.f32 %v7035_v50, %v7005_v24  ;;  %v7920_v44 = vpop.f32.mrb[140].mxu0  ;;  %v7846_v25 = vadd.f32 %v7845_v13, %v7844_v22  ;;  %v7847_v15 = vpop.f32.mrb[142].mxu1 }
 0x2f7   : > { %v6927_v16 = vpop.f32.mrb[141].mxu0  ;;  %v7848_v54 = vpop.f32.mrb[143].mxu1 }
 0x2f8   : > { %v7037_v14 = vadd.f32 %v7036_v10, %v7006_v58  ;;  %v6775_v11 = vadd.f32 %v7846_v25, %v11030_v1  ;;  %v6928_v38 = vadd.f32 %v6927_v16, %v6767_v18  ;;  %v6968_v19 = vadd.f32 %v6967_v41, %v6923_v56  ;;  %v7921_v59 = vpop.f32.mrb[142].mxu0 }
 0x2f9   : > { %v7849_v12 = vadd.f32 %v7848_v54, %v7847_v15  ;;  %v6930_v63 = vpop.f32.mrb[143].mxu0 }
 0x2fa   : > { %v6936_v43 = vadd.f32 %v7920_v44, %v6775_v11  ;;  %v6969_v5 = vadd.f32 %v6968_v19, %v6928_v38  ;;  %v7008_v52 = vmul.f32 %v6928_v38, %v6928_v38  ;;  %v7038_v4 = vadd.f32 %v7037_v14, %v7007_v34  ;;  %7078 = vst [vmem:[%s11042_s22 + $0xe0] sm:$0xff] %v6928_v38 }
 0x2fb   : > { %v6778_v39 = vadd.f32 %v7849_v12, %v11036_v0  ;;  %v6931_v35 = vadd.f32 %v6930_v63, %v6770_v42 }
 0x2fc   : > { %7080 = vst [vmem:[%s11042_s22 + $0xf0] sm:$0xff] %v6936_v43  ;;  %v7039_v49 = vadd.f32 %v7038_v4, %v7008_v52  ;;  %v7010_v31 = vmul.f32 %v6936_v43, %v6936_v43 }
 0x2fd   : > { %v6939_v26 = vadd.f32 %v7921_v59, %v6778_v39  ;;  %v6970_v1 = vadd.f32 %v6969_v5, %v6931_v35  ;;  %v7009_v60 = vmul.f32 %v6931_v35, %v6931_v35  ;;  %7079 = vst [vmem:[%s11042_s22 + $0xe8] sm:$0xff] %v6931_v35 }
 0x2ff   : > { %v7011_v27 = vmul.f32 %v6939_v26, %v6939_v26  ;;  %7081 = vst [vmem:[%s11042_s22 + $0xf8] sm:$0xff] %v6939_v26  ;;  %v6971_v48 = vadd.f32 %v6970_v1, %v6936_v43  ;;  %v7040_v17 = vadd.f32 %v7039_v49, %v7009_v60 }
 0x301   : > { %v6972_v29 = vadd.f32 %v6971_v48, %v6939_v26  ;;  %v7041_v57 = vadd.f32 %v7040_v17, %v7010_v31 }
 0x303   : > { %v6973_v46 = vrot.slane %v6972_v29, 4  ;;  %v7042_v6 = vadd.f32 %v7041_v57, %v7011_v27 }
 0x305   : > { %v6974_v30 = vadd.f32 %v6973_v46, %v6972_v29  ;;  %v7043_v33 = vrot.slane %v7042_v6, 4 }
 0x307   : > { %v6975_v0 = vrot.slane %v6974_v30, 2  ;;  %v7044_v62 = vadd.f32 %v7043_v33, %v7042_v6 }
 0x309   : > { %v6976_v40 = vadd.f32 %v6975_v0, %v6974_v30  ;;  %v7045_v51 = vrot.slane %v7044_v62, 2 }
 0x30b   : > { %v6977_v36 = vrot.slane %v6976_v40, 1  ;;  %v7046_v20 = vadd.f32 %v7045_v51, %v7044_v62 }
 0x30d   : > { %v6978_v45 = vadd.f32 %v6977_v36, %v6976_v40  ;;  %v7047_v61 = vrot.slane %v7046_v20, 1 }
 0x30f   : > { %6979 = vst [vmem:[%s235_s26] sm:$0x1] %v6978_v45  ;;  %v7048_v28 = vadd.f32 %v7047_v61, %v7046_v20 }
 0x311   : > { %7049 = vst [vmem:[%s235_s26 + $0x1] sm:$0x1] %v7048_v28 }
 0x312 PF: > { %s16_s18 = sadd.s32 1, %s8077_s18  }
 0x313   : > { %p13_p4 = scmp.ge.s32.totalorder %s16_s18, 4  }
 0x315   :  { %15 = sbr.rel (!%p13_p4) target bundleno = 1 (0x1), region = 78 }

// kernel: resblock_forward.4
= control target key start
LH: loop header
LB: loop body
LE: loop exit
PB: predicated region body
PF: predicated region fallthrough
CT: control target
= control target key end

     0   :  { %s7594_s30 = smov 0   ;;  %s10247_s0 = inlined_call_operand.vmem [shape: f32[2,256,128], index: 0, kind: input, shape index: {}]   ;;  %s10248_s1 = inlined_call_operand.vmem [shape: bf16[2,32,128], index: 1, kind: input, shape index: {}]   ;;  %s10249_s2 = inlined_call_operand.vmem [shape: bf16[2,32,128], index: 2, kind: input, shape index: {}]   ;;  %s10250_s3 = inlined_call_operand.vmem [shape: f32[1,128], index: 3, kind: input, shape index: {}]   ;;  %s10251_s4 = inlined_call_operand.vmem [shape: f32[1,128], index: 4, kind: input, shape index: {}]   ;;  %s10252_s5 = inlined_call_operand.vmem [shape: bf16[1152,128], index: 5, kind: input, shape index: {}]   ;;  %s10253_s6 = inlined_call_operand.vmem [shape: bf16[256,1], index: 6, kind: input, shape index: {}]   ;;  %s10254_s7 = inlined_call_operand.vmem [shape: bf16[256,1], index: 7, kind: input, shape index: {}]   ;;  %s10255_s8 = inlined_call_operand.vmem [shape: f32[2,256,128], index: 8, kind: output, shape index: {0}]   ;;  %s10256_s9 = inlined_call_operand.vmem [shape: f32[2,2,128], index: 9, kind: output, shape index: {1}]  }
   0x1 LB: > { %s6703_s10 = sadd.s32 4294967295, %s7540_s30   ;;  %p6707_p0 = scmp.ge.s32.totalorder %s7540_s30, 1  ;;  %s7540_s30 = sphi %s7594_s30, %s20_s30  }
   0x2   : > { %p310_p1 = scmp.lt.s32.totalorder %s7540_s30, 3 }
   0x4   : > { %p311_p2 = pnand %p6707_p0, %p310_p1 }
   0x6   : > { %314 = sbr.rel (%p311_p2) target bundleno = 782 (0x30e), region = 52 }
   0xd   : > { %v688_v0 = vld [vmem:[%s10253_s6 + $0x8] sm:$0xf]  ;;  %v686_v1 = vld [vmem:[%s10253_s6] sm:$0xf]  ;;  %v7542_v3 = vmov 0   ;;  %p360_p3 = scmp.lt.s32.totalorder %s6703_s10, 1 }
   0xe   : > { %v7447_v2 = vld [vmem:[%s10252_s5 + $0x40] sm:$0xff]   ;;  %7446 = vset.pattern.permute.xlu1 %v7542_v3  ;;  %385 = vst [vmem:[#allocation2] sm:$0xf] %v7542_v3  ;;  %386 = vst [vmem:[#allocation2 + $0xa0] sm:$0xf0] %v7542_v3  ;;  %7445 = vset.pattern.permute.xlu0 %v7542_v3  ;;  %v7449_v17 = vld [vmem:[%s10252_s5 + $0x48] sm:$0xff]  }
   0xf   : > { %744 = vperm.xlu1 %7446, %v688_v0   ;;  %720 = vperm.xlu0 %7445, %v686_v1   ;;  %v689_v4 = vld [vmem:[%s10253_s6 + $0xc] sm:$0xf]  ;;  %v687_v5 = vld [vmem:[%s10253_s6 + $0x4] sm:$0xf]  ;;  %v691_v6 = vld [vmem:[%s10253_s6 + $0x14] sm:$0xf] }
  0x10   : > { %6899 = vmatprep.subr.bf16.mxu0 %v7447_v2  ;;  %7419 = vmatprep.subr.bf16.mxu1 %v7447_v2  ;;  %v690_v7 = vld [vmem:[%s10253_s6 + $0x10] sm:$0xf]  ;;  %v693_v8 = vld [vmem:[%s10253_s6 + $0x1c] sm:$0xf]  ;;  %v692_v9 = vld [vmem:[%s10253_s6 + $0x18] sm:$0xf] }
  0x11   : > { %v695_v10 = vld [vmem:[%s10253_s6 + $0x24] sm:$0xf]  ;;  %v694_v11 = vld [vmem:[%s10253_s6 + $0x20] sm:$0xf]  ;;  %v697_v12 = vld [vmem:[%s10253_s6 + $0x2c] sm:$0xf] }
  0x12   : > { %v696_v13 = vld [vmem:[%s10253_s6 + $0x28] sm:$0xf]  ;;  %v7448_v14 = vld [vmem:[%s10252_s5] sm:$0xff]   ;;  %v699_v15 = vld [vmem:[%s10253_s6 + $0x34] sm:$0xf]  ;;  %s10262_s10 = smov (!%p360_p3, %s6703_s10), 1 }
  0x13   : > { %756 = vperm.xlu1 %7446, %v689_v4   ;;  %732 = vperm.xlu0 %7445, %v687_v5   ;;  %v698_v16 = vld [vmem:[%s10253_s6 + $0x30] sm:$0xf]  ;;  %v7450_v18 = vld [vmem:[%s10252_s5 + $0x8] sm:$0xff]   ;;  %v701_v20 = vld [vmem:[%s10253_s6 + $0x3c] sm:$0xf]  ;;  %s6896_s17 = sshll.u32 %s10262_s10, 4 }
  0x14   : > { %6900 = vmatpush3.bf16.msra.mxu0 %v7448_v14  ;;  %7427 = vmatpush3.bf16.msra.mxu1 %v7448_v14  ;;  %v7451_v19 = vld [vmem:[%s10252_s5 + $0x50] sm:$0xff]   ;;  %v700_v21 = vld [vmem:[%s10253_s6 + $0x38] sm:$0xf]  ;;  %v703_v24 = vld [vmem:[%s10253_s6 + $0x44] sm:$0xf]  ;;  %s7686_s24 = scalar_lea.vmem %s10248_s1, %s6896_s17  ;;  %s6895_s23 = sshll.u32 %s10262_s10, 8 }
  0x15   : > { %6901 = vmatprep.subr.bf16.mxu0 %v7449_v17  ;;  %7420 = vmatprep.subr.bf16.mxu1 %v7449_v17  ;;  %v7452_v22 = vld [vmem:[%s10252_s5 + $0x10] sm:$0xff]   ;;  %v7453_v23 = vld [vmem:[%s10252_s5 + $0x58] sm:$0xff]   ;;  %v702_v25 = vld [vmem:[%s10253_s6 + $0x40] sm:$0xf]  ;;  %s7728_s14 = scalar_lea.vmem %s10247_s0, %s6895_s23  ;;  %vm603_vm0 = vcmask 1043456   ;;  %vm1182_vm1 = vcmask 1042432   ;;  %s8880_s28 = scalar_lea.vmem %s10249_s2, %s6896_s17 }
  0x16   : > { %v7454_v26 = vld [vmem:[%s10252_s5 + $0x18] sm:$0xff]   ;;  %v7455_v27 = vld [vmem:[%s10252_s5 + $0x60] sm:$0xff]   ;;  %v705_v29 = vld [vmem:[%s10253_s6 + $0x4c] sm:$0xf]  ;;  %vm1265_vm2 = vcmask 1044480   ;;  %s10144_s22 = scalar_lea.vmem %s10255_s8, %s6895_s23  ;;  %s6716_s23 = sshll.u32 %s10262_s10, 1 }
  0x17   : > { %780 = vperm.xlu1 %7446, %v691_v6   ;;  %768 = vperm.xlu0 %7445, %v690_v7   ;;  %v7457_v28 = vld [vmem:[%s7686_s24] ss:$0 sps:$4 sm:$0xff]   ;;  %v704_v30 = vld [vmem:[%s10253_s6 + $0x48] sm:$0xf]  ;;  %v707_v33 = vld [vmem:[%s10253_s6 + $0x54] sm:$0xf]  ;;  %s383_s27 = scalar_lea.vmem %s10256_s9, %s6716_s23 }
  0x18   : > { %6902 = vmatpush3.bf16.msra.mxu0 %v7450_v18  ;;  %7428 = vmatpush3.bf16.msra.mxu1 %v7450_v18  ;;  %405 = vst [vmem:[#allocation2] sm:$0xf0] %v7457_v28  ;;  %v7456_v31 = vld [vmem:[%s10252_s5 + $0x20] sm:$0xff]   ;;  %v7458_v32 = vld [vmem:[%s10252_s5 + $0x68] sm:$0xff]   ;;  %v706_v34 = vld [vmem:[%s10253_s6 + $0x50] sm:$0xf] }
  0x19   : > { %6903 = vmatprep.subr.bf16.mxu0 %v7451_v19  ;;  %7421 = vmatprep.subr.bf16.mxu1 %v7451_v19  ;;  %v7459_v35 = vld [vmem:[%s10252_s5 + $0x28] sm:$0xff]   ;;  %v7460_v36 = vld [vmem:[%s10252_s5 + $0x70] sm:$0xff]   ;;  %v709_v38 = vld [vmem:[%s10253_s6 + $0x5c] sm:$0xf] }
  0x1a   : > { %v7731_v37 = vld [vmem:[%s7686_s24 + $0x4] sm:$0xff]   ;;  %v708_v40 = vld [vmem:[%s10253_s6 + $0x58] sm:$0xf]  ;;  %v7461_v41 = vld [vmem:[%s10252_s5 + $0x30] sm:$0xff]  }
  0x1b   : > { %804 = vperm.xlu1 %7446, %v693_v8   ;;  %792 = vperm.xlu0 %7445, %v692_v9   ;;  %v7462_v42 = vld [vmem:[%s10252_s5 + $0x78] sm:$0xff]   ;;  %406 = vst [vmem:[#allocation2 + $0x8] sm:$0xff] %v7731_v37  ;;  %v1366_v44 = vrot.slane %v7731_v37, 4  ;;  %v7465_v45 = vld [vmem:[%s7686_s24 + $0xc] ss:$0 sps:$4 sm:$0xff]   ;;  %v429_v46 = vld [vmem:[%s7728_s14] sm:$0xff] }
  0x1c   : > { %6904 = vmatpush3.bf16.msra.mxu0 %v7452_v22  ;;  %7429 = vmatpush3.bf16.msra.mxu1 %v7452_v22  ;;  %v430_v48 = vld [vmem:[%s7728_s14 + $0x8] sm:$0xff]  ;;  %v7756_v49 = vld [vmem:[%s10250_s3] ss:$0 sm:$0xff]  ;;  %v711_v51 = vld [vmem:[%s10253_s6 + $0x64] sm:$0xf] }
  0x1d   : > { %6905 = vmatprep.subr.bf16.mxu0 %v7453_v23  ;;  %7422 = vmatprep.subr.bf16.mxu1 %v7453_v23  ;;  %v7761_v50 = vld [vmem:[%s10251_s4] ss:$0 sm:$0xff]  ;;  %407 = vst [vmem:[#allocation2 + $0x10] sm:$0xf] %v7465_v45  ;;  %v468_v53 = vmul.f32 %v7756_v49, %v429_v46  ;;  %v469_v54 = vmul.f32 %v7756_v49, %v430_v48  ;;  %v7463_v55 = vld [vmem:[%s10252_s5 + $0x38] sm:$0xff]   ;;  %v431_v56 = vld [vmem:[%s7728_s14 + $0x10] sm:$0xff] }
  0x1e   : > { %v710_v52 = vld [vmem:[%s10253_s6 + $0x60] sm:$0xf]  ;;  %v432_v57 = vld [vmem:[%s7728_s14 + $0x18] sm:$0xff]  ;;  %v470_v60 = vmul.f32 %v7756_v49, %v431_v56  ;;  %v434_v63 = vld [vmem:[%s7728_s14 + $0x28] sm:$0xff] }
  0x1f   : > { %828 = vperm.xlu1 %7446, %v695_v10   ;;  %816 = vperm.xlu0 %7445, %v694_v11   ;;  %v1331_v39 = vld [vmem:[#allocation2] sm:$0xf0]  ;;  %v507_v58 = vadd.f32 %v7761_v50, %v468_v53  ;;  %v508_v59 = vadd.f32 %v7761_v50, %v469_v54  ;;  %v471_v61 = vmul.f32 %v7756_v49, %v432_v57  ;;  %v713_v4 = vld [vmem:[%s10253_s6 + $0x6c] sm:$0xf]  ;;  %v712_v5 = vld [vmem:[%s10253_s6 + $0x68] sm:$0xf] }
  0x20   : > { %6906 = vmatpush3.bf16.msra.mxu0 %v7454_v26  ;;  %7430 = vmatpush3.bf16.msra.mxu1 %v7454_v26  ;;  %v1365_v43 = vrot.slane %v1331_v39, 4  ;;  %v433_v62 = vld [vmem:[%s7728_s14 + $0x20] sm:$0xff]  ;;  %v509_v2 = vadd.f32 %v7761_v50, %v470_v60  ;;  %v473_v7 = vmul.f32 %v7756_v49, %v434_v63  ;;  %v435_v8 = vld [vmem:[%s7728_s14 + $0x30] sm:$0xff]  ;;  %v438_v18 = vld [vmem:[%s7728_s14 + $0x48] sm:$0xff] }
  0x21   : > { %6907 = vmatprep.subr.bf16.mxu0 %v7455_v27  ;;  %7423 = vmatprep.subr.bf16.mxu1 %v7455_v27  ;;  %v539_v0 = vmax.f32 %v507_v58, 0.0  ;;  %v540_v1 = vmax.f32 %v508_v59, 0.0  ;;  %v510_v3 = vadd.f32 %v7761_v50, %v471_v61  ;;  %v472_v6 = vmul.f32 %v7756_v49, %v433_v62  ;;  %v437_v14 = vld [vmem:[%s7728_s14 + $0x40] sm:$0xff]  ;;  %v456_v26 = vld [vmem:[%s7728_s14 + $0xd8] sm:$0xff]  ;;  %v714_v27 = vld [vmem:[%s10253_s6 + $0x70] sm:$0xf] }
  0x22   : > { %v1367_v47 = vsel %vm603_vm0, %v1365_v43, %v1366_v44  ;;  %v541_v10 = vmax.f32 %v509_v2, 0.0  ;;  %v476_v19 = vmul.f32 %v7756_v49, %v437_v14  ;;  %v439_v48 = vld [vmem:[%s7728_s14 + $0x50] sm:$0xff]  ;;  %v440_v60 = vld [vmem:[%s7728_s14 + $0x58] sm:$0xff]  ;;  %v1448_v61 = vld [vmem:[%s10254_s7 + $0x4] sm:$0xf] }
  0x23   : > { %852 = vperm.xlu1 %7446, %v697_v12   ;;  %840 = vperm.xlu0 %7445, %v696_v13   ;;  %v571_v9 = vpack.c.bf16 %v540_v1, %v539_v0  ;;  %v542_v11 = vmax.f32 %v510_v3, 0.0  ;;  %v436_v12 = vld [vmem:[%s7728_s14 + $0x38] sm:$0xff]  ;;  %v474_v13 = vmul.f32 %v7756_v49, %v435_v8  ;;  %v478_v1 = vmul.f32 %v7756_v49, %v439_v48  ;;  %v1447_v2 = vld [vmem:[%s10254_s7] sm:$0xf]  ;;  %v1450_v14 = vld [vmem:[%s10254_s7 + $0xc] sm:$0xf] }
  0x24   : > { %6908 = vmatpush3.bf16.msra.mxu0 %v7456_v31  ;;  %7431 = vmatpush3.bf16.msra.mxu1 %v7456_v31  ;;  %v475_v17 = vmul.f32 %v7756_v49, %v436_v12  ;;  %v515_v31 = vadd.f32 %v7761_v50, %v476_v19  ;;  %v479_v8 = vmul.f32 %v7756_v49, %v440_v60  ;;  %v1449_v19 = vld [vmem:[%s10254_s7 + $0x8] sm:$0xf]  ;;  %v453_v48 = vld [vmem:[%s7728_s14 + $0xc0] sm:$0xff] }
  0x25   : > { %6909 = vmatprep.subr.bf16.mxu0 %v7458_v32  ;;  %7424 = vmatprep.subr.bf16.mxu1 %v7458_v32  ;;  %v604_v22 = vrot.slane %v571_v9, 4  ;;  %v572_v23 = vpack.c.bf16 %v542_v11, %v541_v10  ;;  %v457_v32 = vld [vmem:[%s7728_s14 + $0xe0] sm:$0xff]  ;;  %v517_v9 = vadd.f32 %v7761_v50, %v478_v1  ;;  %v447_v10 = vld [vmem:[%s7728_s14 + $0x90] sm:$0xff]  ;;  %v448_v11 = vld [vmem:[%s7728_s14 + $0x98] sm:$0xff] }
  0x26   : > { %5680 = vmatprep.mubr.bf16.mxu0 %v1367_v47  ;;  %v496_v46 = vmul.f32 %v7756_v49, %v457_v32 }
  0x27   : > { %876 = vperm.xlu1 %7446, %v699_v15   ;;  %864 = vperm.xlu0 %7445, %v698_v16   ;;  %v511_v15 = vadd.f32 %v7761_v50, %v472_v6  ;;  %v512_v16 = vadd.f32 %v7761_v50, %v473_v7  ;;  %652 = vst [vmem:[#allocation2 + $0x10] sm:$0xf0] %v604_v22 }
  0x28   : > { %6910 = vmatpush3.bf16.msra.mxu0 %v7459_v35  ;;  %7432 = vmatpush3.bf16.msra.mxu1 %v7459_v35  ;;  %v535_v58 = vadd.f32 %v7761_v50, %v496_v46 }
  0x29   : > { %6911 = vmatprep.subr.bf16.mxu0 %v7460_v36  ;;  %7425 = vmatprep.subr.bf16.mxu1 %v7460_v36  ;;  %v543_v28 = vmax.f32 %v511_v15, 0.0 }
  0x2b   : > { %900 = vperm.xlu1 %7446, %v701_v20   ;;  %888 = vperm.xlu0 %7445, %v700_v21   ;;  %v455_v20 = vld [vmem:[%s7728_s14 + $0xd0] sm:$0xff] }
  0x2c   : > { %6912 = vmatpush3.bf16.msra.mxu0 %v7461_v41  ;;  %7433 = vmatpush3.bf16.msra.mxu1 %v7461_v41  ;;  %v715_v21 = vld [vmem:[%s10253_s6 + $0x74] sm:$0xf]  ;;  %v547_v41 = vmax.f32 %v515_v31, 0.0 }
  0x2d   : > { %6913 = vmatprep.subr.bf16.mxu0 %v7462_v42  ;;  %7426 = vmatprep.subr.bf16.mxu1 %v7462_v42  ;;  %v495_v42 = vmul.f32 %v7756_v49, %v456_v26  ;;  %v486_v26 = vmul.f32 %v7756_v49, %v447_v10  ;;  %v1452_v31 = vld [vmem:[%s10254_s7 + $0x14] sm:$0xf] }
  0x2f   : > { %924 = vperm.xlu1 %7446, %v703_v24   ;;  %912 = vperm.xlu0 %7445, %v702_v25   ;;  %v513_v24 = vadd.f32 %v7761_v50, %v474_v13  ;;  %v477_v25 = vmul.f32 %v7756_v49, %v438_v18  ;;  %v534_v57 = vadd.f32 %v7761_v50, %v495_v42  ;;  %v449_v13 = vld [vmem:[%s7728_s14 + $0xa0] sm:$0xff]  ;;  %v450_v18 = vld [vmem:[%s7728_s14 + $0xa8] sm:$0xff] }
  0x30   : > { %6914 = vmatpush3.bf16.msra.mxu0 %v7463_v55  ;;  %7434 = vmatpush3.bf16.msra.mxu1 %v7463_v55 }
  0x31   : > { %v545_v35 = vmax.f32 %v513_v24, 0.0  ;;  %v516_v36 = vadd.f32 %v7761_v50, %v477_v25 }
  0x33   : > { %948 = vperm.xlu1 %7446, %v705_v29   ;;  %936 = vperm.xlu0 %7445, %v704_v30   ;;  %v544_v29 = vmax.f32 %v512_v16, 0.0  ;;  %v514_v30 = vadd.f32 %v7761_v50, %v475_v17  ;;  %v548_v45 = vmax.f32 %v516_v36, 0.0  ;;  %v518_v17 = vadd.f32 %v7761_v50, %v479_v8  ;;  %v1451_v36 = vld [vmem:[%s10254_s7 + $0x10] sm:$0xf] }
  0x35   : > { %v573_v39 = vpack.c.bf16 %v544_v29, %v543_v28  ;;  %v7832_v56 = vpack.c.bf16 %v548_v45, %v547_v41  ;;  %v550_v25 = vmax.f32 %v518_v17, 0.0  ;;  %v488_v28 = vmul.f32 %v7756_v49, %v449_v13  ;;  %v442_v41 = vld [vmem:[%s7728_s14 + $0x68] sm:$0xff] }
  0x36   : > { %v489_v29 = vmul.f32 %v7756_v49, %v450_v18 }
  0x37   : > { %972 = vperm.xlu1 %7446, %v707_v33   ;;  %960 = vperm.xlu0 %7445, %v706_v34   ;;  %v458_v33 = vld [vmem:[%s7728_s14 + $0xe8] sm:$0xff]  ;;  %v605_v34 = vrot.slane %v572_v23, 4  ;;  %v607_v53 = vrot.slane %v573_v39, 4  ;;  %v611_v3 = vrot.slane %v7832_v56, 4  ;;  %v1454_v56 = vld [vmem:[%s10254_s7 + $0x1c] sm:$0xf] }
  0x38   : > { %v497_v47 = vmul.f32 %v7756_v49, %v458_v33  ;;  %v528_v45 = vadd.f32 %v7761_v50, %v489_v29 }
  0x39   : > { %v7819_v43 = vsel %vm603_vm0, %v604_v22, %v605_v34  ;;  %v7842_v62 = vsel %vm603_vm0, %v605_v34, %v607_v53  ;;  %v452_v22 = vld [vmem:[%s7728_s14 + $0xb8] sm:$0xff] }
  0x3a   : > { %653 = vst [vmem:[#allocation2 + $0x18] sm:$0xff] %v7819_v43  ;;  %v536_v59 = vadd.f32 %v7761_v50, %v497_v47  ;;  %654 = vst [vmem:[#allocation2 + $0x20] sm:$0xff] %v7842_v62 }
  0x3b   : > { %996 = vperm.xlu1 %7446, %v709_v38   ;;  %984 = vperm.xlu0 %7445, %v708_v40   ;;  %v494_v38 = vmul.f32 %v7756_v49, %v455_v20  ;;  %v546_v40 = vmax.f32 %v514_v30, 0.0  ;;  %v549_v20 = vmax.f32 %v517_v9, 0.0  ;;  %v441_v30 = vld [vmem:[%s7728_s14 + $0x60] sm:$0xff] }
  0x3c   : > { %v568_v7 = vmax.f32 %v536_v59, 0.0  ;;  %v560_v59 = vmax.f32 %v528_v45, 0.0 }
  0x3d   : > { %v574_v54 = vpack.c.bf16 %v546_v40, %v545_v35  ;;  %v533_v55 = vadd.f32 %v7761_v50, %v494_v38  ;;  %v7892_v33 = vpack.c.bf16 %v550_v25, %v549_v20  ;;  %v491_v35 = vmul.f32 %v7756_v49, %v452_v22  ;;  %v1456_v20 = vld [vmem:[%s10254_s7 + $0x24] sm:$0xf] }
  0x3e   : > { %v525_v38 = vadd.f32 %v7761_v50, %v486_v26  ;;  %v527_v40 = vadd.f32 %v7761_v50, %v488_v28 }
  0x3f   : > { %1020 = vperm.xlu1 %7446, %v711_v51   ;;  %1008 = vperm.xlu0 %7445, %v710_v52   ;;  %v717_v51 = vld [vmem:[%s10253_s6 + $0x7c] sm:$0xf]  ;;  %v716_v52 = vld [vmem:[%s10253_s6 + $0x78] sm:$0xf]  ;;  %v609_v63 = vrot.slane %v574_v54, 4  ;;  %v565_v0 = vmax.f32 %v533_v55, 0.0  ;;  %v530_v47 = vadd.f32 %v7761_v50, %v491_v35  ;;  %v480_v54 = vmul.f32 %v7756_v49, %v441_v30 }
  0x40   : > { %v613_v42 = vrot.slane %v7892_v33, 4  ;;  %v454_v55 = vld [vmem:[%s7728_s14 + $0xc8] sm:$0xff]  ;;  %v1459_v33 = vld [vmem:[%s10254_s7 + $0x30] sm:$0xf] }
  0x41   : > { %v7851_v6 = vsel %vm603_vm0, %v607_v53, %v609_v63  ;;  %v7859_v12 = vsel %vm603_vm0, %v609_v63, %v611_v3  ;;  %v559_v53 = vmax.f32 %v527_v40, 0.0  ;;  %v519_v1 = vadd.f32 %v7761_v50, %v480_v54 }
  0x42   : > { %655 = vst [vmem:[#allocation2 + $0x28] sm:$0xff] %v7851_v6  ;;  %656 = vst [vmem:[#allocation2 + $0x30] sm:$0xff] %v7859_v12  ;;  %v493_v9 = vmul.f32 %v7756_v49, %v454_v55 }
  0x43   : > { %1044 = vperm.xlu1 %7446, %v713_v4   ;;  %1032 = vperm.xlu0 %7445, %v712_v5   ;;  %v566_v4 = vmax.f32 %v534_v57, 0.0  ;;  %v567_v5 = vmax.f32 %v535_v58, 0.0  ;;  %v1453_v57 = vld [vmem:[%s10254_s7 + $0x18] sm:$0xf]  ;;  %v7919_v58 = vsel %vm603_vm0, %v611_v3, %v613_v42  ;;  %v492_v3 = vmul.f32 %v7756_v49, %v453_v48 }
  0x44   : > { %657 = vst [vmem:[#allocation2 + $0x38] sm:$0xff] %v7919_v58  ;;  %v551_v13 = vmax.f32 %v519_v1, 0.0  ;;  %v1461_v1 = vld [vmem:[%s10254_s7 + $0x38] sm:$0xf] }
  0x45   : > { %v7866_v15 = vpack.c.bf16 %v566_v4, %v565_v0  ;;  %v7868_v16 = vpack.c.bf16 %v568_v7, %v567_v5  ;;  %v481_v0 = vmul.f32 %v7756_v49, %v442_v41  ;;  %v444_v4 = vld [vmem:[%s7728_s14 + $0x78] sm:$0xff]  ;;  %v445_v5 = vld [vmem:[%s7728_s14 + $0x80] sm:$0xff]  ;;  %v581_v7 = vpack.c.bf16 %v560_v59, %v559_v53 }
  0x46   : > { %v531_v18 = vadd.f32 %v7761_v50, %v492_v3  ;;  %v483_v26 = vmul.f32 %v7756_v49, %v444_v4  ;;  %v484_v28 = vmul.f32 %v7756_v49, %v445_v5  ;;  %v1463_v3 = vld [vmem:[%s10254_s7 + $0x40] sm:$0xf] }
  0x47   : > { %1068 = vperm.xlu1 %7446, %v715_v21   ;;  %1056 = vperm.xlu0 %7445, %v714_v27   ;;  %v451_v21 = vld [vmem:[%s7728_s14 + $0xb0] sm:$0xff]  ;;  %v629_v23 = vrot.slane %v7866_v15, 4  ;;  %v631_v24 = vrot.slane %v7868_v16, 4  ;;  %v487_v27 = vmul.f32 %v7756_v49, %v448_v11  ;;  %v520_v11 = vadd.f32 %v7761_v50, %v481_v0  ;;  %v1462_v0 = vld [vmem:[%s10254_s7 + $0x3c] sm:$0xf] }
  0x48   : > { %v490_v34 = vmul.f32 %v7756_v49, %v451_v21  ;;  %v1455_v21 = vld [vmem:[%s10254_s7 + $0x20] sm:$0xf]  ;;  %v522_v40 = vadd.f32 %v7761_v50, %v483_v26  ;;  %v523_v45 = vadd.f32 %v7761_v50, %v484_v28 }
  0x49   : > { %v632_v32 = vsel %vm603_vm0, %v629_v23, %v631_v24  ;;  %v526_v39 = vadd.f32 %v7761_v50, %v487_v27  ;;  %v552_v22 = vmax.f32 %v520_v11, 0.0  ;;  %v446_v27 = vld [vmem:[%s7728_s14 + $0x88] sm:$0xff]  ;;  %v2107_v11 = vld [vmem:[%s10253_s6] sm:$0xf] }
  0x4a   : > { %666 = vst [vmem:[#allocation2 + $0x80] sm:$0xff] %v632_v32  ;;  %v529_v46 = vadd.f32 %v7761_v50, %v490_v34  ;;  %v485_v41 = vmul.f32 %v7756_v49, %v446_v27  ;;  %v554_v53 = vmax.f32 %v522_v40, 0.0  ;;  %v2115_v26 = vld [vmem:[%s10253_s6 + $0x20] sm:$0xf]  ;;  %v7543_v27 = vmov 839922192  }
  0x4b   : > { %1092 = vperm.xlu1 %7446, %v717_v51   ;;  %1080 = vperm.xlu0 %7445, %v716_v52   ;;  %v557_v51 = vmax.f32 %v525_v38, 0.0  ;;  %v558_v52 = vmax.f32 %v526_v39, 0.0  ;;  %v724_v28 = vunpack.c.l.s4 %v7543_v27  ;;  %v2119_v40 = vld [vmem:[%s10253_s6 + $0x30] sm:$0xf]  ;;  %v2866_v27 = vld [vmem:[%s10254_s7] sm:$0xf] }
  0x4c   : > { %v561_v60 = vmax.f32 %v529_v46, 0.0  ;;  %v1458_v46 = vld [vmem:[%s10254_s7 + $0x2c] sm:$0xf]  ;;  %v524_v54 = vadd.f32 %v7761_v50, %v485_v41  ;;  %v2882_v16 = vld [vmem:[%s10254_s7 + $0x40] sm:$0xf] }
  0x4d   : > { %v7922_v63 = vpack.c.bf16 %v558_v52, %v557_v51 }
  0x4e   : > { %v556_v15 = vmax.f32 %v524_v54, 0.0 }
  0x4f   : > { %1493 = vperm.xlu1 %7446, %v1448_v61   ;;  %1481 = vperm.xlu0 %7445, %v1447_v2   ;;  %v562_v61 = vmax.f32 %v530_v47, 0.0  ;;  %v443_v2 = vld [vmem:[%s7728_s14 + $0x70] sm:$0xff]  ;;  %v621_v10 = vrot.slane %v7922_v63, 4  ;;  %v1466_v63 = vld [vmem:[%s10254_s7 + $0x4c] sm:$0xf] }
  0x50   : > { %v482_v25 = vmul.f32 %v7756_v49, %v443_v2  ;;  %v1457_v49 = vld [vmem:[%s10254_s7 + $0x28] sm:$0xf]  ;;  %v7466_v2 = vld [vmem:[%s10252_s5 + $0xc0] sm:$0xff]  }
  0x51   : > { %v582_v8 = vpack.c.bf16 %v562_v61, %v561_v60  ;;  %v555_v60 = vmax.f32 %v523_v45, 0.0  ;;  %7011 = vmatprep.subr.bf16.mxu1 %v7466_v2 }
  0x52   : > { %v521_v38 = vadd.f32 %v7761_v50, %v482_v25  ;;  %v2116_v25 = vld [vmem:[%s10253_s6 + $0x24] sm:$0xf] }
  0x53   : > { %1517 = vperm.xlu1 %7446, %v1450_v14   ;;  %1505 = vperm.xlu0 %7445, %v1449_v19   ;;  %v623_v14 = vrot.slane %v581_v7, 4  ;;  %v625_v17 = vrot.slane %v582_v8, 4  ;;  %v532_v19 = vadd.f32 %v7761_v50, %v493_v9  ;;  %v1460_v50 = vld [vmem:[%s10254_s7 + $0x34] sm:$0xf]  ;;  %v579_v61 = vpack.c.bf16 %v556_v15, %v555_v60  ;;  %v1464_v8 = vld [vmem:[%s10254_s7 + $0x44] sm:$0xf] }
  0x54   : > { %v553_v51 = vmax.f32 %v521_v38, 0.0  ;;  %v1465_v9 = vld [vmem:[%s10254_s7 + $0x48] sm:$0xf]  ;;  %v725_v38 = vunpack.c.0.s8 %v724_v28  ;;  %v2124_v60 = vld [vmem:[%s10253_s6 + $0x44] sm:$0xf] }
  0x55   : > { %v7948_v29 = vsel %vm603_vm0, %v621_v10, %v623_v14  ;;  %v7951_v30 = vsel %vm603_vm0, %v623_v14, %v625_v17  ;;  %v564_v32 = vmax.f32 %v532_v19, 0.0  ;;  %v619_v4 = vrot.slane %v579_v61, 4  ;;  %v2109_v14 = vld [vmem:[%s10253_s6 + $0x8] sm:$0xf]  ;;  %v2114_v19 = vld [vmem:[%s10253_s6 + $0x1c] sm:$0xf] }
  0x56   : > { %662 = vst [vmem:[#allocation2 + $0x60] sm:$0xff] %v7948_v29  ;;  %663 = vst [vmem:[#allocation2 + $0x68] sm:$0xff] %v7951_v30  ;;  %v1388_v34 = vrot.slane %v7948_v29, 4  ;;  %v1390_v35 = vrot.slane %v7951_v30, 4  ;;  %v669_v15 = vld [vmem:[#allocation2] sm:$0xf8] }
  0x57   : > { %1541 = vperm.xlu1 %7446, %v1452_v31   ;;  %1529 = vperm.xlu0 %7445, %v1451_v36   ;;  %v563_v31 = vmax.f32 %v531_v18, 0.0  ;;  %v577_v36 = vpack.c.bf16 %v552_v22, %v551_v13  ;;  %v8014_v7 = vsel %vm603_vm0, %v619_v4, %v621_v10  ;;  %v2108_v10 = vld [vmem:[%s10253_s6 + $0x4] sm:$0xf]  ;;  %v2110_v13 = vld [vmem:[%s10253_s6 + $0xc] sm:$0xf] }
  0x58   : > { %v1391_v47 = vsel %vm603_vm0, %v1388_v34, %v1390_v35  ;;  %661 = vst [vmem:[#allocation2 + $0x58] sm:$0xff] %v8014_v7  ;;  %v2111_v18 = vld [vmem:[%s10253_s6 + $0x10] sm:$0xf]  ;;  %v7480_v22 = vld [vmem:[%s10252_s5 + $0x140] sm:$0xff]  }
  0x59   : > { %v583_v39 = vpack.c.bf16 %v564_v32, %v563_v31  ;;  %v615_v48 = vrot.slane %v577_v36, 4  ;;  %5776 = vmatprep.mubr.bf16.mxu1 %v1391_v47  ;;  %7123 = vmatprep.subr.bf16.mxu0 %v7480_v22  ;;  %v2118_v31 = vld [vmem:[%s10253_s6 + $0x2c] sm:$0xf]  ;;  %v2117_v32 = vld [vmem:[%s10253_s6 + $0x28] sm:$0xf] }
  0x5a   : > { %v2122_v47 = vld [vmem:[%s10253_s6 + $0x3c] sm:$0xf] }
  0x5b   : > { %1565 = vperm.xlu1 %7446, %v1454_v56   ;;  %1553 = vperm.xlu0 %7445, %v1453_v57   ;;  %v627_v52 = vrot.slane %v583_v39, 4  ;;  %v7976_v55 = vsel %vm603_vm0, %v613_v42, %v615_v48  ;;  %v578_v57 = vpack.c.bf16 %v554_v53, %v553_v51  ;;  %v2120_v39 = vld [vmem:[%s10253_s6 + $0x34] sm:$0xf] }
  0x5c   : > { %658 = vst [vmem:[#allocation2 + $0x40] sm:$0xff] %v7976_v55 }
  0x5d   : > { %v7980_v56 = vsel %vm603_vm0, %v625_v17, %v627_v52  ;;  %v7985_v59 = vsel %vm603_vm0, %v627_v52, %v629_v23  ;;  %v617_v42 = vrot.slane %v578_v57, 4  ;;  %v2112_v17 = vld [vmem:[%s10253_s6 + $0x14] sm:$0xf] }
  0x5e   : > { %664 = vst [vmem:[#allocation2 + $0x70] sm:$0xff] %v7980_v56  ;;  %665 = vst [vmem:[#allocation2 + $0x78] sm:$0xff] %v7985_v59 }
  0x5f   : > { %1589 = vperm.xlu1 %7446, %v1456_v20   ;;  %1577 = vperm.xlu0 %7445, %v1455_v21   ;;  %v7996_v23 = vsel %vm603_vm0, %v615_v48, %v617_v42  ;;  %v8009_v5 = vsel %vm603_vm0, %v617_v42, %v619_v4  ;;  %v2113_v20 = vld [vmem:[%s10253_s6 + $0x18] sm:$0xf]  ;;  %v726_v21 = vlaneseq }
  0x60   : > { %659 = vst [vmem:[#allocation2 + $0x48] sm:$0xff] %v7996_v23  ;;  %660 = vst [vmem:[#allocation2 + $0x50] sm:$0xff] %v8009_v5  ;;  %v2121_v48 = vld [vmem:[%s10253_s6 + $0x38] sm:$0xf] }
  0x61   : > { %v727_v36 = vshrl.u32 %v726_v21, 7 }
  0x63   : > { %1613 = vperm.xlu1 %7446, %v1458_v46   ;;  %1601 = vperm.xlu0 %7445, %v1457_v49   ;;  %v8075_v41 = vsub.s32 %v725_v38, %v727_v36  ;;  %v7481_v36 = vld [vmem:[%s10252_s5 + $0x100] sm:$0xff]  }
  0x67   : > { %1637 = vperm.xlu1 %7446, %v1460_v50   ;;  %1625 = vperm.xlu0 %7445, %v1459_v33   ;;  %v2123_v50 = vld [vmem:[%s10253_s6 + $0x40] sm:$0xf] }
  0x6b   : > { %1661 = vperm.xlu1 %7446, %v1462_v0   ;;  %1649 = vperm.xlu0 %7445, %v1461_v1  }
  0x6f   : > { %1685 = vperm.xlu1 %7446, %v1464_v8   ;;  %1673 = vperm.xlu0 %7445, %v1463_v3   ;;  %v2126_v3 = vld [vmem:[%s10253_s6 + $0x4c] sm:$0xf] }
  0x73   : > { %1709 = vperm.xlu1 %7446, %v1466_v63   ;;  %1697 = vperm.xlu0 %7445, %v1465_v9   ;;  %v2125_v63 = vld [vmem:[%s10253_s6 + $0x48] sm:$0xf] }
  0x77   : > { %2153 = vperm.xlu1 %7446, %v2108_v10   ;;  %2141 = vperm.xlu0 %7445, %v2107_v11  }
  0x7b   : > { %2177 = vperm.xlu1 %7446, %v2110_v13   ;;  %2165 = vperm.xlu0 %7445, %v2109_v14   ;;  %v1333_v13 = vld [vmem:[#allocation2 + $0x10] sm:$0xff] }
  0x7f   : > { %2201 = vperm.xlu1 %7446, %v2112_v17   ;;  %2189 = vperm.xlu0 %7445, %v2111_v18  }
  0x83   : > { %2225 = vperm.xlu1 %7446, %v2114_v19   ;;  %2213 = vperm.xlu0 %7445, %v2113_v20   ;;  %v1368_v19 = vrot.slane %v1333_v13, 4 }
  0x87   : > { %2249 = vperm.xlu1 %7446, %v2116_v25   ;;  %2237 = vperm.xlu0 %7445, %v2115_v26   ;;  %v2867_v26 = vld [vmem:[%s10254_s7 + $0x4] sm:$0xf] }
  0x8b   : > { %2273 = vperm.xlu1 %7446, %v2118_v31   ;;  %2261 = vperm.xlu0 %7445, %v2117_v32  }
  0x8e   : > { %v745_v45 = vpop.permute.xlu1 %744  ;;  %v721_v46 = vpop.permute.xlu0 %720 }
  0x8f   : > { %2297 = vperm.xlu1 %7446, %v2120_v39   ;;  %2285 = vperm.xlu0 %7445, %v2119_v40   ;;  %v753_v51 = vrot.slane %v745_v45, %v8075_v41  ;;  %v729_v53 = vrot.slane %v721_v46, %v8075_v41  ;;  %v1369_v45 = vsel %vm603_vm0, %v1366_v44, %v1368_v19  ;;  %v7484_v46 = vld [vmem:[%s10252_s5 + $0x148] sm:$0xff]  }
  0x90   : > { %v2868_v44 = vld [vmem:[%s10254_s7 + $0x8] sm:$0xf] }
  0x92   : > { %v757_v49 = vpop.permute.xlu1 %756  ;;  %v733_v52 = vpop.permute.xlu0 %732 }
  0x93   : > { %v765_v54 = vrot.slane %v757_v49, %v8075_v41  ;;  %v741_v57 = vrot.slane %v733_v52, %v8075_v41  ;;  %2321 = vperm.xlu1 %7446, %v2122_v47   ;;  %2309 = vperm.xlu0 %7445, %v2121_v48   ;;  %v7485_v52 = vld [vmem:[%s10252_s5 + $0x108] sm:$0xff]  }
  0x95   : > { %v6726_v33 = vcombine.low %v753_v51, %v765_v54  ;;  %v6725_v42 = vcombine.low %v729_v53, %v741_v57  ;;  %v1370_v57 = vrot.slane %v7819_v43, 4 }
  0x96   : > { %v781_v61 = vpop.permute.xlu1 %780  ;;  %v769_v0 = vpop.permute.xlu0 %768 }
  0x97   : > { %v1184_v1 = vrot.slane %v6726_v33, 5  ;;  %v1183_v2 = vrot.slane %v6725_v42, 5  ;;  %v789_v4 = vrot.slane %v781_v61, %v8075_v41  ;;  %v777_v8 = vrot.slane %v769_v0, %v8075_v41  ;;  %2345 = vperm.xlu1 %7446, %v2124_v60   ;;  %2333 = vperm.xlu0 %7445, %v2123_v50   ;;  %v7486_v60 = vld [vmem:[%s10252_s5 + $0x150] sm:$0xff]  }
  0x98   : > { %v2127_v61 = vld [vmem:[%s10253_s6 + $0x50] sm:$0xf] }
  0x99   : > { %v1231_v9 = vmul.bf16 %v1183_v2, %v669_v15  ;;  %v6727_v10 = vcombine.low %v777_v8, %v789_v4  ;;  %v1185_v11 = vsel %vm1182_vm1, %v1183_v2, %v1184_v1  ;;  %v2128_v15 = vld [vmem:[%s10253_s6 + $0x54] sm:$0xf]  ;;  %v1371_v4 = vsel %vm603_vm0, %v1368_v19, %v1370_v57 }
  0x9a   : > { %v805_v14 = vpop.permute.xlu1 %804  ;;  %v793_v17 = vpop.permute.xlu0 %792  ;;  %v1232_v18 = vmul.bf16 %v7731_v37, %v1185_v11  ;;  %v2869_v37 = vld [vmem:[%s10254_s7 + $0xc] sm:$0xf]  ;;  %v7487_v0 = vld [vmem:[%s10252_s5 + $0x110] sm:$0xff]  }
  0x9b   : > { %v1186_v20 = vrot.slane %v6727_v10, 5  ;;  %v813_v21 = vrot.slane %v805_v14, %v8075_v41  ;;  %v801_v22 = vrot.slane %v793_v17, %v8075_v41  ;;  %2369 = vperm.xlu1 %7446, %v2126_v3   ;;  %2357 = vperm.xlu0 %7445, %v2125_v63   ;;  %v1266_v25 = vrot.slane %v1231_v9, 3  ;;  %v7488_v3 = vld [vmem:[%s10252_s5 + $0x158] sm:$0xff]  }
  0x9c   : > { %v1267_v28 = vrot.slane %v1232_v18, 3  ;;  %v7489_v14 = vld [vmem:[%s10252_s5 + $0x118] sm:$0xff]  }
  0x9d   : > { %v8111_v31 = vcombine.low %v801_v22, %v813_v21  ;;  %v1187_v32 = vsel %vm1182_vm1, %v1184_v1, %v1186_v20  ;;  %v7490_v21 = vld [vmem:[%s10252_s5 + $0x160] sm:$0xff]  }
  0x9e   : > { %v829_v38 = vpop.permute.xlu1 %828  ;;  %v817_v39 = vpop.permute.xlu0 %816  ;;  %v1268_v40 = vsel %vm1265_vm2, %v1266_v25, %v1267_v28  ;;  %v1233_v48 = vmul.bf16 %v1333_v13, %v1187_v32  ;;  %v2870_v13 = vld [vmem:[%s10254_s7 + $0x10] sm:$0xf]  ;;  %v1468_v25 = vld [vmem:[%s10254_s7 + $0x54] sm:$0xf] }
  0x9f   : > { %v1188_v47 = vrot.slane %v8111_v31, 5  ;;  %2912 = vperm.xlu1 %7446, %v2867_v26   ;;  %2900 = vperm.xlu0 %7445, %v2866_v27   ;;  %v837_v51 = vrot.slane %v829_v38, %v8075_v41  ;;  %v825_v49 = vrot.slane %v817_v39, %v8075_v41  ;;  %v1467_v26 = vld [vmem:[%s10254_s7 + $0x50] sm:$0xf]  ;;  %v7494_v39 = vld [vmem:[%s10252_s5 + $0x168] sm:$0xff]  }
  0xa0   : > { %5681 = vmatmul.mubr.bf16.vlgmr.msra.gmra.mrb[0].mxu0 %v1268_v40  ;;  %v1269_v50 = vrot.slane %v1233_v48, 3  ;;  %v2130_v48 = vld [vmem:[%s10253_s6 + $0x5c] sm:$0xf] }
  0xa1   : > { %5688 = vmatprep.mubr.bf16.mxu0 %v1369_v45  ;;  %7124 = vmatpush3.bf16.msra.mxu0 %v7481_v36  ;;  %v1189_v33 = vsel %vm1182_vm1, %v1186_v20, %v1188_v47  ;;  %v8141_v42 = vcombine.low %v825_v49, %v837_v51  ;;  %v1372_v20 = vrot.slane %v7842_v62, 4  ;;  %v2129_v51 = vld [vmem:[%s10253_s6 + $0x58] sm:$0xf]  ;;  %v7495_v49 = vld [vmem:[%s10252_s5 + $0x128] sm:$0xff]  }
  0xa2   : > { %v853_v53 = vpop.permute.xlu1 %852  ;;  %v841_v54 = vpop.permute.xlu0 %840  ;;  %7125 = vmatprep.subr.bf16.mxu0 %v7484_v46  ;;  %v1234_v8 = vmul.bf16 %v1189_v33, %v7819_v43  ;;  %v1270_v10 = vsel %vm1265_vm2, %v1267_v28, %v1269_v50  ;;  %v2871_v43 = vld [vmem:[%s10254_s7 + $0x14] sm:$0xf]  ;;  %v7491_v28 = vld [vmem:[%s10252_s5 + $0x120] sm:$0xff]  }
  0xa3   : > { %2936 = vperm.xlu1 %7446, %v2869_v37   ;;  %2924 = vperm.xlu0 %7445, %v2868_v44   ;;  %v861_v63 = vrot.slane %v853_v53, %v8075_v41  ;;  %v849_v9 = vrot.slane %v841_v54, %v8075_v41  ;;  %v1190_v11 = vrot.slane %v8141_v42, 5  ;;  %v1373_v38 = vsel %vm603_vm0, %v1370_v57, %v1372_v20  ;;  %v7497_v33 = vld [vmem:[%s10252_s5 + $0x130] sm:$0xff]  }
  0xa4   : > { %v1271_v19 = vrot.slane %v1234_v8, 3 }
  0xa5   : > { %7126 = vmatpush3.bf16.msra.mxu0 %v7485_v52  ;;  %v8178_v22 = vcombine.low %v849_v9, %v861_v63  ;;  %v1191_v27 = vsel %vm1182_vm1, %v1188_v47, %v1190_v11  ;;  %v7496_v52 = vld [vmem:[%s10252_s5 + $0x170] sm:$0xff]   ;;  %v1470_v63 = vld [vmem:[%s10254_s7 + $0x5c] sm:$0xf] }
  0xa6   : > { %v877_v1 = vpop.permute.xlu1 %876  ;;  %v865_v2 = vpop.permute.xlu0 %864  ;;  %7127 = vmatprep.subr.bf16.mxu0 %v7486_v60  ;;  %v1272_v36 = vsel %vm1265_vm2, %v1269_v50, %v1271_v19  ;;  %v1235_v47 = vmul.bf16 %v1191_v27, %v7842_v62  ;;  %v1374_v62 = vrot.slane %v7851_v6, 4  ;;  %v2873_v60 = vld [vmem:[%s10254_s7 + $0x1c] sm:$0xf]  ;;  %v2872_v50 = vld [vmem:[%s10254_s7 + $0x18] sm:$0xf] }
  0xa7   : > { %2393 = vperm.xlu1 %7446, %v2128_v15   ;;  %2381 = vperm.xlu0 %7445, %v2127_v61   ;;  %v1192_v40 = vrot.slane %v8178_v22, 5  ;;  %v885_v45 = vrot.slane %v877_v1, %v8075_v41  ;;  %v873_v46 = vrot.slane %v865_v2, %v8075_v41  ;;  %v7499_v9 = vld [vmem:[%s10252_s5 + $0x138] sm:$0xff]  }
  0xa8   : > { %5689 = vmatmul.mubr.bf16.gmra.mrb[4].mxu0 %v1270_v10  ;;  %v1273_v54 = vrot.slane %v1235_v47, 3  ;;  %v1375_v1 = vsel %vm603_vm0, %v1372_v20, %v1374_v62  ;;  %v2132_v20 = vld [vmem:[%s10253_s6 + $0x64] sm:$0xf] }
  0xa9   : > { %5696 = vmatprep.mubr.bf16.mxu0 %v1371_v4  ;;  %7128 = vmatpush3.bf16.msra.mxu0 %v7487_v0  ;;  %v8220_v53 = vcombine.low %v873_v46, %v885_v45  ;;  %v1193_v57 = vsel %vm1182_vm1, %v1190_v11, %v1192_v40  ;;  %v7498_v4 = vld [vmem:[%s10252_s5 + $0x178] sm:$0xff]   ;;  %v2875_v47 = vld [vmem:[%s10254_s7 + $0x24] sm:$0xf] }
  0xaa   : > { %v8170_v17 = vpop.permute.xlu1 %900  ;;  %v8172_v18 = vpop.permute.xlu0 %888  ;;  %7129 = vmatprep.subr.bf16.mxu0 %v7488_v3  ;;  %v1236_v2 = vmul.bf16 %v1193_v57, %v7851_v6  ;;  %v1274_v3 = vsel %vm1265_vm2, %v1271_v19, %v1273_v54  ;;  %v1469_v6 = vld [vmem:[%s10254_s7 + $0x58] sm:$0xf] }
  0xab   : > { %2960 = vperm.xlu1 %7446, %v2871_v43   ;;  %2948 = vperm.xlu0 %7445, %v2870_v13   ;;  %v909_v42 = vrot.slane %v8170_v17, %v8075_v41  ;;  %v897_v15 = vrot.slane %v8172_v18, %v8075_v41  ;;  %v1194_v8 = vrot.slane %v8220_v53, 5 }
  0xac   : > { %v1275_v13 = vrot.slane %v1236_v2, 3 }
  0xad   : > { %7130 = vmatpush3.bf16.msra.mxu0 %v7489_v14  ;;  %v8256_v10 = vcombine.low %v897_v15, %v909_v42  ;;  %v1376_v14 = vrot.slane %v7859_v12, 4  ;;  %v1195_v19 = vsel %vm1182_vm1, %v1192_v40, %v1194_v8 }
  0xae   : > { %v8190_v31 = vpop.permute.xlu1 %924  ;;  %v8192_v32 = vpop.permute.xlu0 %912  ;;  %7131 = vmatprep.subr.bf16.mxu0 %v7490_v21  ;;  %v2131_v21 = vld [vmem:[%s10253_s6 + $0x60] sm:$0xf]  ;;  %v1276_v27 = vsel %vm1265_vm2, %v1273_v54, %v1275_v13 }
  0xaf   : > { %1733 = vperm.xlu1 %7446, %v1468_v25   ;;  %1721 = vperm.xlu0 %7445, %v1467_v26   ;;  %v1196_v22 = vrot.slane %v8256_v10, 5  ;;  %v933_v45 = vrot.slane %v8190_v31, %v8075_v41  ;;  %v921_v46 = vrot.slane %v8192_v32, %v8075_v41  ;;  %v1378_v31 = vrot.slane %v7919_v58, 4  ;;  %v7467_v10 = vld [vmem:[%s10252_s5 + $0x80] sm:$0xff]  }
  0xb0   : > { %5697 = vmatmul.mubr.bf16.gmra.mrb[8].mxu0 %v1272_v36  ;;  %v1237_v36 = vmul.bf16 %v1195_v19, %v7859_v12  ;;  %v2874_v12 = vld [vmem:[%s10254_s7 + $0x20] sm:$0xf] }
  0xb1   : > { %5704 = vmatprep.mubr.bf16.mxu0 %v1373_v38  ;;  %7132 = vmatpush3.bf16.msra.mxu0 %v7491_v28  ;;  %v1377_v28 = vsel %vm603_vm0, %v1374_v62, %v1376_v14  ;;  %v1197_v32 = vsel %vm1182_vm1, %v1194_v8, %v1196_v22 }
  0xb2   : > { %v8212_v37 = vpop.permute.xlu1 %948  ;;  %v8214_v44 = vpop.permute.xlu0 %936  ;;  %7133 = vmatprep.subr.bf16.mxu0 %v7494_v39  ;;  %v8286_v62 = vrot.slane %v1237_v36, 3 }
  0xb3   : > { %2417 = vperm.xlu1 %7446, %v2130_v48   ;;  %2405 = vperm.xlu0 %7445, %v2129_v51  }
  0xb4   : > { %v1278_v8 = vsel %vm1265_vm2, %v1275_v13, %v8286_v62  ;;  %v2134_v13 = vld [vmem:[%s10253_s6 + $0x6c] sm:$0xf] }
  0xb5   : > { %7134 = vmatpush3.bf16.msra.mxu0 %v7495_v49 }
  0xb6   : > { %v8236_v61 = vpop.permute.xlu1 %972  ;;  %v8238_v0 = vpop.permute.xlu0 %960  ;;  %7135 = vmatprep.subr.bf16.mxu0 %v7496_v52 }
  0xb7   : > { %2984 = vperm.xlu1 %7446, %v2873_v60   ;;  %2972 = vperm.xlu0 %7445, %v2872_v50   ;;  %v8295_v60 = vcombine.low %v921_v46, %v933_v45  ;;  %v1472_v50 = vld [vmem:[%s10254_s7 + $0x64] sm:$0xf]  ;;  %v2876_v45 = vld [vmem:[%s10254_s7 + $0x28] sm:$0xf] }
  0xb8   : > { %5705 = vmatmul.mubr.bf16.gmra.mrb[12].mxu0 %v1274_v3  ;;  %v1379_v3 = vsel %vm603_vm0, %v1376_v14, %v1378_v31 }
  0xb9   : > { %5712 = vmatprep.mubr.bf16.mxu0 %v1375_v1  ;;  %7136 = vmatpush3.bf16.msra.mxu0 %v7497_v33  ;;  %v1471_v33 = vld [vmem:[%s10254_s7 + $0x60] sm:$0xf]  ;;  %v957_v1 = vrot.slane %v8212_v37, %v8075_v41  ;;  %v1198_v37 = vrot.slane %v8295_v60, 5 }
  0xba   : > { %v997_v11 = vpop.permute.xlu1 %996  ;;  %v985_v43 = vpop.permute.xlu0 %984  ;;  %7137 = vmatprep.subr.bf16.mxu0 %v7498_v4 }
  0xbb   : > { %v1005_v17 = vrot.slane %v997_v11, %v8075_v41  ;;  %v993_v18 = vrot.slane %v985_v43, %v8075_v41  ;;  %1757 = vperm.xlu1 %7446, %v1470_v63   ;;  %1745 = vperm.xlu0 %7445, %v1469_v6   ;;  %v1238_v63 = vmul.bf16 %v1197_v32, %v7919_v58  ;;  %v2133_v58 = vld [vmem:[%s10253_s6 + $0x68] sm:$0xf] }
  0xbc   : > { %v945_v6 = vrot.slane %v8214_v44, %v8075_v41 }
  0xbd   : > { %7138 = vmatpush3.bf16.msra.mxu0 %v7499_v9  ;;  %v8272_v38 = vcombine.low %v993_v18, %v1005_v17 }
  0xbe   : > { %v1021_v25 = vpop.permute.xlu1 %1020  ;;  %v1009_v26 = vpop.permute.xlu0 %1008 }
  0xbf   : > { %v1029_v39 = vrot.slane %v1021_v25, %v8075_v41  ;;  %v1017_v40 = vrot.slane %v1009_v26, %v8075_v41  ;;  %2441 = vperm.xlu1 %7446, %v2132_v20   ;;  %2429 = vperm.xlu0 %7445, %v2131_v21   ;;  %v1204_v52 = vrot.slane %v8272_v38, 5  ;;  %v8325_v20 = vrot.slane %v1238_v63, 3  ;;  %v2136_v63 = vld [vmem:[%s10253_s6 + $0x74] sm:$0xf]  ;;  %v7477_v38 = vld [vmem:[%s10252_s5 + $0xa8] sm:$0xff]  }
  0xc0   : > { %5713 = vmatmul.mubr.bf16.gmra.mrb[16].mxu0 %v1276_v27  ;;  %v1380_v25 = vrot.slane %v7976_v55, 4  ;;  %v1392_v26 = vrot.slane %v7980_v56, 4  ;;  %v8330_v27 = vcombine.low %v945_v6, %v957_v1  ;;  %v7469_v1 = vld [vmem:[%s10252_s5 + $0x88] sm:$0xff]   ;;  %v2135_v6 = vld [vmem:[%s10253_s6 + $0x70] sm:$0xf] }
  0xc1   : > { %v6737_v48 = vcombine.low %v1017_v40, %v1029_v39  ;;  %5720 = vmatprep.mubr.bf16.mxu0 %v1377_v28  ;;  %v2877_v40 = vld [vmem:[%s10254_s7 + $0x2c] sm:$0xf]  ;;  %v1280_v60 = vsel %vm1265_vm2, %v8286_v62, %v8325_v20  ;;  %v1382_v62 = vrot.slane %v7996_v23, 4 }
  0xc2   : > { %v1045_v51 = vpop.permute.xlu1 %1044  ;;  %v1033_v49 = vpop.permute.xlu0 %1032 }
  0xc3   : > { %v1206_v53 = vrot.slane %v6737_v48, 5  ;;  %v1053_v54 = vrot.slane %v1045_v51, %v8075_v41  ;;  %v1041_v57 = vrot.slane %v1033_v49, %v8075_v41  ;;  %3008 = vperm.xlu1 %7446, %v2875_v47   ;;  %2996 = vperm.xlu0 %7445, %v2874_v12   ;;  %v1199_v12 = vsel %vm1182_vm1, %v1196_v22, %v1198_v37 }
  0xc4   : > { %v1200_v22 = vrot.slane %v8330_v27, 5 }
  0xc5   : > { %v6738_v42 = vcombine.low %v1041_v57, %v1053_v54  ;;  %v1207_v15 = vsel %vm1182_vm1, %v1204_v52, %v1206_v53  ;;  %v1381_v54 = vsel %vm603_vm0, %v1378_v31, %v1380_v25  ;;  %v1393_v57 = vsel %vm603_vm0, %v1390_v35, %v1392_v26 }
  0xc6   : > { %v1069_v2 = vpop.permute.xlu1 %1068  ;;  %v1057_v4 = vpop.permute.xlu0 %1056  ;;  %v1243_v44 = vmul.bf16 %v1207_v15, %v7948_v29  ;;  %v969_v35 = vrot.slane %v8238_v0, %v8075_v41  ;;  %v1394_v15 = vrot.slane %v7985_v59, 4  ;;  %v2884_v29 = vld [vmem:[%s10254_s7 + $0x48] sm:$0xf] }
  0xc7   : > { %v1208_v9 = vrot.slane %v6738_v42, 5  ;;  %v1077_v11 = vrot.slane %v1069_v2, %v8075_v41  ;;  %v1065_v43 = vrot.slane %v1057_v4, %v8075_v41  ;;  %1781 = vperm.xlu1 %7446, %v1472_v50   ;;  %1769 = vperm.xlu0 %7445, %v1471_v33   ;;  %v1239_v50 = vmul.bf16 %v1199_v12, %v7976_v55  ;;  %v1474_v42 = vld [vmem:[%s10254_s7 + $0x6c] sm:$0xf]  ;;  %v1473_v55 = vld [vmem:[%s10254_s7 + $0x68] sm:$0xf] }
  0xc8   : > { %5721 = vmatmul.mubr.bf16.gmra.mrb[20].mxu0 %v1278_v8  ;;  %v8340_v46 = vrot.slane %v1243_v44, 3  ;;  %v1201_v8 = vsel %vm1182_vm1, %v1198_v37, %v1200_v22  ;;  %v1383_v37 = vsel %vm603_vm0, %v1380_v25, %v1382_v62  ;;  %v7470_v44 = vld [vmem:[%s10252_s5 + $0xd0] sm:$0xff]   ;;  %v1347_v25 = vld [vmem:[#allocation2 + $0x80] sm:$0xf] }
  0xc9   : > { %v6739_v14 = vcombine.low %v1065_v43, %v1077_v11  ;;  %5728 = vmatprep.mubr.bf16.mxu0 %v1379_v3  ;;  %v1209_v17 = vsel %vm1182_vm1, %v1206_v53, %v1208_v9  ;;  %v1281_v2 = vrot.slane %v1239_v50, 3 }
  0xca   : > { %v1093_v18 = vpop.permute.xlu1 %1092  ;;  %v1081_v19 = vpop.permute.xlu0 %1080  ;;  %v1244_v21 = vmul.bf16 %v1209_v17, %v7951_v30  ;;  %v981_v30 = vrot.slane %v8236_v61, %v8075_v41 }
  0xcb   : > { %v1210_v28 = vrot.slane %v6739_v14, 5  ;;  %v1101_v36 = vrot.slane %v1093_v18, %v8075_v41  ;;  %v1089_v39 = vrot.slane %v1081_v19, %v8075_v41  ;;  %2465 = vperm.xlu1 %7446, %v2134_v13   ;;  %2453 = vperm.xlu0 %7445, %v2133_v58   ;;  %v1395_v13 = vsel %vm603_vm0, %v1392_v26, %v1394_v15  ;;  %v2879_v18 = vld [vmem:[%s10254_s7 + $0x34] sm:$0xf]  ;;  %v2878_v19 = vld [vmem:[%s10254_s7 + $0x30] sm:$0xf] }
  0xcc   : > { %v1291_v47 = vrot.slane %v1244_v21, 3  ;;  %v8395_v3 = vcombine.low %v969_v35, %v981_v30  ;;  %v1240_v58 = vmul.bf16 %v1201_v8, %v7996_v23  ;;  %v1282_v14 = vsel %vm1265_vm2, %v8325_v20, %v1281_v2  ;;  %v7471_v20 = vld [vmem:[%s10252_s5 + $0x90] sm:$0xff]  }
  0xcd   : > { %v8345_v48 = vcombine.low %v1089_v39, %v1101_v36  ;;  %v1211_v51 = vsel %vm1182_vm1, %v1208_v9, %v1210_v28  ;;  %v460_v36 = vld [vmem:[%s7728_s14 + $0xf8] sm:$0xff]  ;;  %v1476_v30 = vld [vmem:[%s10254_s7 + $0x74] sm:$0xf]  ;;  %v1475_v35 = vld [vmem:[%s10254_s7 + $0x70] sm:$0xf] }
  0xce   : > { %v8348_v49 = vpop.permute.xlu1 %1493  ;;  %v8350_v32 = vpop.permute.xlu0 %1481  ;;  %v1292_v53 = vsel %vm1265_vm2, %v8340_v46, %v1291_v47  ;;  %v1245_v31 = vmul.bf16 %v1211_v51, %v7980_v56  ;;  %v7468_v56 = vld [vmem:[%s10252_s5 + $0xc8] sm:$0xff]   ;;  %v1202_v26 = vrot.slane %v8395_v3, 5  ;;  %v7472_v39 = vld [vmem:[%s10252_s5 + $0xd8] sm:$0xff]   ;;  %v1283_v51 = vrot.slane %v1240_v58, 3 }
  0xcf   : > { %3032 = vperm.xlu1 %7446, %v2877_v40   ;;  %3020 = vperm.xlu0 %7445, %v2876_v45   ;;  %v1212_v33 = vrot.slane %v8345_v48, 5  ;;  %v7525_v40 = vld [vmem:[%s10250_s3] ss:$0 sm:$0xff] }
  0xd0   : > { %5729 = vmatmul.mubr.bf16.gmra.mrb[24].mxu0 %v1280_v60  ;;  %5777 = vmatmul.mubr.bf16.vlgmr.msra.gmra.mrb[0].mxu1 %v1292_v53  ;;  %v8390_v4 = vrot.slane %v1245_v31, 3  ;;  %v1384_v53 = vrot.slane %v8009_v5, 4  ;;  %v7526_v60 = vld [vmem:[%s10251_s4] ss:$0 sm:$0xff] }
  0xd1   : > { %5736 = vmatprep.mubr.bf16.mxu0 %v1381_v54  ;;  %5784 = vmatprep.mubr.bf16.mxu1 %v1393_v57  ;;  %v1213_v9 = vsel %vm1182_vm1, %v1210_v28, %v1212_v33  ;;  %v459_v28 = vld [vmem:[%s7728_s14 + $0xf0] sm:$0xff]  ;;  %v1396_v54 = vrot.slane %v1347_v25, 4  ;;  %v499_v57 = vmul.f32 %v7525_v40, %v460_v36  ;;  %v685_v31 = vld [vmem:[#allocation2 + $0x80] sm:$0x7]  ;;  %v1478_v36 = vld [vmem:[%s10254_s7 + $0x7c] sm:$0xf] }
  0xd2   : > { %v8381_v61 = vpop.permute.xlu1 %1517  ;;  %v8383_v0 = vpop.permute.xlu0 %1505  ;;  %7012 = vmatpush3.bf16.msra.mxu1 %v7467_v10  ;;  %v1294_v17 = vsel %vm1265_vm2, %v1291_v47, %v8390_v4  ;;  %v1246_v21 = vmul.bf16 %v1213_v9, %v7985_v59  ;;  %v498_v45 = vmul.f32 %v7525_v40, %v459_v28  ;;  %v2138_v59 = vld [vmem:[%s10253_s6 + $0x7c] sm:$0xf]  ;;  %v7474_v48 = vld [vmem:[%s10252_s5 + $0xe0] sm:$0xff]   ;;  %v7478_v40 = vld [vmem:[%s10252_s5 + $0xf0] sm:$0xff]  }
  0xd3   : > { %1805 = vperm.xlu1 %7446, %v1474_v42   ;;  %1793 = vperm.xlu0 %7445, %v1473_v55   ;;  %v1203_v42 = vsel %vm1182_vm1, %v1200_v22, %v1202_v26  ;;  %v538_v55 = vadd.f32 %v7526_v60, %v499_v57  ;;  %v1397_v27 = vsel %vm603_vm0, %v1394_v15, %v1396_v54  ;;  %v7473_v22 = vld [vmem:[%s10252_s5 + $0x98] sm:$0xff]  }
  0xd4   : > { %7013 = vmatprep.subr.bf16.mxu1 %v7468_v56  ;;  %v1295_v10 = vrot.slane %v1246_v21, 3  ;;  %v537_v50 = vadd.f32 %v7526_v60, %v498_v45  ;;  %v1241_v23 = vmul.bf16 %v1203_v42, %v8009_v5  ;;  %v7476_v21 = vld [vmem:[%s10252_s5 + $0xe8] sm:$0xff]   ;;  %v8543_v60 = vld [vmem:[%s10252_s5 + $0x200] sm:$0xff]  }
  0xd5   : > { %v570_v9 = vmax.f32 %v538_v55, 0.0  ;;  %7371 = vmatprep.subr.bf16.mxu0 %v8543_v60  ;;  %v7483_v55 = vld [vmem:[%s10252_s5 + $0xb8] sm:$0xff]  }
  0xd6   : > { %v8406_v11 = vpop.permute.xlu1 %1541  ;;  %v8408_v43 = vpop.permute.xlu0 %1529  ;;  %7014 = vmatpush3.bf16.msra.mxu1 %v7469_v1  ;;  %v569_v56 = vmax.f32 %v537_v50, 0.0  ;;  %v2883_v50 = vld [vmem:[%s10254_s7 + $0x44] sm:$0xf] }
  0xd7   : > { %2489 = vperm.xlu1 %7446, %v2136_v63   ;;  %2477 = vperm.xlu0 %7445, %v2135_v6   ;;  %v1284_v63 = vsel %vm1265_vm2, %v1281_v2, %v1283_v51  ;;  %v1385_v6 = vsel %vm603_vm0, %v1382_v62, %v1384_v53  ;;  %v1296_v2 = vsel %vm1265_vm2, %v8390_v4, %v1295_v10  ;;  %v2137_v62 = vld [vmem:[%s10253_s6 + $0x78] sm:$0xf]  ;;  %v1386_v4 = vrot.slane %v8014_v7, 4 }
  0xd8   : > { %5737 = vmatmul.mubr.bf16.gmra.mrb[28].mxu0 %v1282_v14  ;;  %5785 = vmatmul.mubr.bf16.gmra.mrb[4].mxu1 %v1294_v17  ;;  %v2881_v17 = vld [vmem:[%s10254_s7 + $0x3c] sm:$0xf] }
  0xd9   : > { %5744 = vmatprep.mubr.bf16.mxu0 %v1383_v37  ;;  %5792 = vmatprep.mubr.bf16.mxu1 %v1395_v13  ;;  %v1247_v37 = vmul.bf16 %v1212_v33, %v685_v31  ;;  %v586_v33 = vpack.c.bf16 %v570_v9, %v569_v56  ;;  %v7475_v13 = vld [vmem:[%s10252_s5 + $0xa0] sm:$0xff]   ;;  %v1387_v28 = vsel %vm603_vm0, %v1384_v53, %v1386_v4 }
  0xda   : > { %v8443_v47 = vpop.permute.xlu1 %1565  ;;  %v8445_v12 = vpop.permute.xlu0 %1553  ;;  %7015 = vmatprep.subr.bf16.mxu1 %v7470_v44  ;;  %v1285_v44 = vrot.slane %v1241_v23, 3  ;;  %v1389_v42 = vsel %vm603_vm0, %v1386_v4, %v1388_v34  ;;  %v7492_v34 = vld [vmem:[%s10252_s5 + $0x1c0] sm:$0xff]   ;;  %v3529_v4 = vld [vmem:[%s10253_s6 + $0xc] sm:$0xf] }
  0xdb   : > { %3056 = vperm.xlu1 %7446, %v2879_v18   ;;  %3044 = vperm.xlu0 %7445, %v2878_v19   ;;  %v633_v58 = vrot.slane %v586_v33, 4  ;;  %v1297_v14 = vrot.slane %v1247_v37, 3  ;;  %v2880_v18 = vld [vmem:[%s10254_s7 + $0x38] sm:$0xf]  ;;  %v1205_v19 = vsel %vm1182_vm1, %v1202_v26, %v1204_v52  ;;  %v1502_v37 = vrot.slane %v8348_v49, %v8075_v41 }
  0xdc   : > { %7016 = vmatpush3.bf16.msra.mxu1 %v7471_v20  ;;  %v1286_v52 = vsel %vm1265_vm2, %v1283_v51, %v1285_v44  ;;  %v1242_v26 = vmul.bf16 %v1205_v19, %v8014_v7  ;;  %v7479_v7 = vld [vmem:[%s10252_s5 + $0xb0] sm:$0xff]  }
  0xdd   : > { %7017 = vmatprep.subr.bf16.mxu1 %v7472_v39  ;;  %668 = vst [vmem:[#allocation2 + $0x90] sm:$0xf] %v633_v58  ;;  %v1298_v3 = vsel %vm1265_vm2, %v1295_v10, %v1297_v14  ;;  %v1477_v39 = vld [vmem:[%s10254_s7 + $0x78] sm:$0xf]  ;;  %v634_v53 = vsel %vm603_vm0, %v631_v24, %v633_v58 }
  0xde   : > { %v8462_v1 = vpop.permute.xlu1 %1589  ;;  %v8464_v8 = vpop.permute.xlu0 %1577  ;;  %v1287_v10 = vrot.slane %v1242_v26, 3  ;;  %667 = vst [vmem:[#allocation2 + $0x88] sm:$0xff] %v634_v53  ;;  %v7482_v24 = vld [vmem:[%s10252_s5 + $0xf8] sm:$0xff]   ;;  %v2090_v26 = vld [vmem:[#allocation2 + $0x10] sm:$0xf8] }
  0xdf   : > { %1829 = vperm.xlu1 %7446, %v1476_v30   ;;  %1817 = vperm.xlu0 %7445, %v1475_v35  }
  0xe0   : > { %5745 = vmatmul.mubr.bf16.gmra.mrb[32].mxu0 %v1284_v63  ;;  %5793 = vmatmul.mubr.bf16.gmra.mrb[8].mxu1 %v1296_v2  ;;  %v1288_v56 = vsel %vm1265_vm2, %v1285_v44, %v1287_v10  ;;  %v2885_v63 = vld [vmem:[%s10254_s7 + $0x4c] sm:$0xf]  ;;  %v1490_v2 = vrot.slane %v8350_v32, %v8075_v41  ;;  %v1290_v49 = vsel %vm1265_vm2, %v1287_v10, %v8340_v46 }
  0xe1   : > { %5752 = vmatprep.mubr.bf16.mxu0 %v1385_v6  ;;  %5800 = vmatprep.mubr.bf16.mxu1 %v1397_v27  ;;  %v1526_v6 = vrot.slane %v8381_v61, %v8075_v41  ;;  %v1514_v27 = vrot.slane %v8383_v0, %v8075_v41  ;;  %v3527_v61 = vld [vmem:[%s10253_s6 + $0x4] sm:$0xf]  ;;  %v3526_v0 = vld [vmem:[%s10253_s6] sm:$0xf]  ;;  %v1550_v46 = vrot.slane %v8406_v11, %v8075_v41  ;;  %v2886_v11 = vld [vmem:[%s10254_s7 + $0x50] sm:$0xf] }
  0xe2   : > { %v8490_v15 = vpop.permute.xlu1 %1613  ;;  %v8492_v5 = vpop.permute.xlu0 %1601  ;;  %7018 = vmatpush3.bf16.msra.mxu1 %v7473_v22  ;;  %v1538_v44 = vrot.slane %v8408_v43, %v8075_v41  ;;  %v1574_v10 = vrot.slane %v8443_v47, %v8075_v41 }
  0xe3   : > { %2513 = vperm.xlu1 %7446, %v2138_v59   ;;  %2501 = vperm.xlu0 %7445, %v2137_v62   ;;  %v8595_v23 = vcombine.low %v1514_v27, %v1526_v6 }
  0xe4   : > { %7019 = vmatprep.subr.bf16.mxu1 %v7474_v48  ;;  %v6741_v48 = vcombine.low %v1490_v2, %v1502_v37 }
  0xe5   : > { %v1944_v58 = vrot.slane %v8595_v23, 3  ;;  %v2888_v23 = vld [vmem:[%s10254_s7 + $0x58] sm:$0xf] }
  0xe6   : > { %v8512_v25 = vpop.permute.xlu1 %1637  ;;  %v8514_v20 = vpop.permute.xlu0 %1625  ;;  %7020 = vmatpush3.bf16.msra.mxu1 %v7475_v13  ;;  %v3528_v13 = vld [vmem:[%s10253_s6 + $0x8] sm:$0xf]  ;;  %v1943_v19 = vrot.slane %v6741_v48, 3 }
  0xe7   : > { %3080 = vperm.xlu1 %7446, %v2881_v17   ;;  %3068 = vperm.xlu0 %7445, %v2880_v18  }
  0xe8   : > { %5753 = vmatmul.mubr.bf16.gmra.mrb[36].mxu0 %v1286_v52  ;;  %5801 = vmatmul.mubr.bf16.gmra.mrb[12].mxu1 %v1298_v3  ;;  %v2887_v52 = vld [vmem:[%s10254_s7 + $0x54] sm:$0xf]  ;;  %v1945_v43 = vsel %vm1265_vm2, %v1943_v19, %v1944_v58  ;;  %v8621_v3 = vcombine.low %v1538_v44, %v1550_v46  ;;  %v1598_v44 = vrot.slane %v8462_v1, %v8075_v41  ;;  %v3533_v1 = vld [vmem:[%s10253_s6 + $0x1c] sm:$0xf] }
  0xe9   : > { %5760 = vmatprep.mubr.bf16.mxu0 %v1387_v28  ;;  %7021 = vmatprep.subr.bf16.mxu1 %v7476_v21 }
  0xea   : > { %v1662_v45 = vpop.permute.xlu1 %1661  ;;  %v1650_v51 = vpop.permute.xlu0 %1649  ;;  %7022 = vmatpush3.bf16.msra.mxu1 %v7477_v38 }
  0xeb   : > { %v1670_v54 = vrot.slane %v1662_v45, %v8075_v41  ;;  %v1658_v57 = vrot.slane %v1650_v51, %v8075_v41  ;;  %1853 = vperm.xlu1 %7446, %v1478_v36   ;;  %1841 = vperm.xlu0 %7445, %v1477_v39   ;;  %v1430_v45 = vld [vmem:[#allocation2] sm:$0xe0] }
  0xec   : > { %7023 = vmatprep.subr.bf16.mxu1 %v7478_v40  ;;  %v1991_v47 = vmul.bf16 %v1943_v19, %v1430_v45  ;;  %v8683_v45 = vld [vmem:[#allocation2 + $0x28] sm:$0xff] }
  0xed   : > { %v8554_v31 = vcombine.low %v1658_v57, %v1670_v54  ;;  %v7527_v54 = vld [vmem:[#allocation2 + $0x8] sm:$0xff] }
  0xee   : > { %v8557_v30 = vpop.permute.xlu1 %1685  ;;  %v8559_v35 = vpop.permute.xlu0 %1673  ;;  %7024 = vmatpush3.bf16.msra.mxu1 %v7479_v7  ;;  %v1992_v57 = vmul.bf16 %v7527_v54, %v1945_v43  ;;  %v2025_v46 = vrot.slane %v1991_v47, 5 }
  0xef   : > { %3104 = vperm.xlu1 %7446, %v2883_v50   ;;  %3092 = vperm.xlu0 %7445, %v2882_v16   ;;  %v1562_v50 = vrot.slane %v8445_v12, %v8075_v41 }
  0xf0   : > { %5761 = vmatmul.mubr.bf16.gmra.mrb[40].mxu0 %v1288_v56  ;;  %7025 = vmatprep.subr.bf16.mxu1 %v7482_v24  ;;  %v3531_v24 = vld [vmem:[%s10253_s6 + $0x14] sm:$0xf] }
  0xf1   : > { %5768 = vmatprep.mubr.bf16.mxu0 %v1389_v42  ;;  %v3530_v42 = vld [vmem:[%s10253_s6 + $0x10] sm:$0xf] }
  0xf2   : > { %v8581_v22 = vpop.permute.xlu1 %1709  ;;  %v8583_v9 = vpop.permute.xlu0 %1697  ;;  %7026 = vmatpush3.bf16.msra.mxu1 %v7483_v55  ;;  %v1946_v55 = vrot.slane %v8621_v3, 3 }
  0xf3   : > { %3128 = vperm.xlu1 %7446, %v2885_v63   ;;  %3116 = vperm.xlu0 %7445, %v2884_v29   ;;  %v8636_v63 = vld [vmem:[#allocation2 + $0x18] sm:$0xff] }
  0xf4   : > { %7235 = vmatprep.subr.bf16.mxu1 %v7492_v34 }
  0xf6   : > { %v2154_v59 = vpop.permute.xlu1 %2153  ;;  %v2142_v62 = vpop.permute.xlu0 %2141 }
  0xf7   : > { %v2162_v32 = vrot.slane %v2154_v59, %v8075_v41  ;;  %v2150_v33 = vrot.slane %v2142_v62, %v8075_v41  ;;  %3572 = vperm.xlu1 %7446, %v3527_v61   ;;  %3560 = vperm.xlu0 %7445, %v3526_v0   ;;  %v2889_v61 = vld [vmem:[%s10254_s7 + $0x5c] sm:$0xf]  ;;  %v8645_v0 = vcombine.low %v1562_v50, %v1574_v10  ;;  %v7501_v10 = vld [vmem:[%s10252_s5 + $0x188] sm:$0xff]  }
  0xf8   : > { %5769 = vmatmul.mubr.bf16.gmra.mrb[44].mxu0 %v1290_v49  ;;  %v8650_v49 = vrot.slane %v1992_v57, 5 }
  0xf9   : > { %v6757_v14 = vcombine.low %v2150_v33, %v2162_v32  ;;  %v8652_v32 = vld [vmem:[#allocation2 + $0x20] sm:$0xff] }
  0xfa   : > { %v2178_v17 = vpop.permute.xlu1 %2177  ;;  %v2166_v18 = vpop.permute.xlu0 %2165  ;;  %v2027_v43 = vsel %vm1182_vm1, %v2025_v46, %v8650_v49 }
  0xfb   : > { %v2186_v21 = vrot.slane %v2178_v17, %v8075_v41  ;;  %v2174_v28 = vrot.slane %v2166_v18, %v8075_v41  ;;  %3596 = vperm.xlu1 %7446, %v3529_v4   ;;  %3584 = vperm.xlu0 %7445, %v3528_v13   ;;  %v2603_v38 = vrot.slane %v6757_v14, 5  ;;  %v1432_v4 = vld [vmem:[#allocation2 + $0x10] sm:$0xff]  ;;  %v1947_v13 = vsel %vm1265_vm2, %v1944_v58, %v1946_v55 }
  0xfd   : > { %v6758_v36 = vcombine.low %v2174_v28, %v2186_v21  ;;  %v2651_v16 = vmul.bf16 %v2603_v38, %v2090_v26  ;;  %v7493_v21 = vld [vmem:[%s10252_s5 + $0x180] sm:$0xff]   ;;  %v1586_v28 = vrot.slane %v8464_v8, %v8075_v41  ;;  %v3532_v8 = vld [vmem:[%s10253_s6 + $0x18] sm:$0xf] }
  0xfe   : > { %v2202_v39 = vpop.permute.xlu1 %2201  ;;  %v2190_v40 = vpop.permute.xlu0 %2189 }
  0xff   : > { %v2604_v51 = vrot.slane %v6758_v36, 5  ;;  %v2210_v7 = vrot.slane %v2202_v39, %v8075_v41  ;;  %v2198_v53 = vrot.slane %v2190_v40, %v8075_v41  ;;  %3152 = vperm.xlu1 %7446, %v2887_v52   ;;  %3140 = vperm.xlu0 %7445, %v2886_v11   ;;  %v2685_v59 = vrot.slane %v2651_v16, 3  ;;  %v7500_v39 = vld [vmem:[%s10252_s5 + $0x1c8] sm:$0xff]  }
 0x100   : > { %v1948_v11 = vrot.slane %v8645_v0, 3  ;;  %v1993_v36 = vmul.bf16 %v1947_v13, %v1432_v4  ;;  %v8691_v50 = vcombine.low %v1586_v28, %v1598_v44  ;;  %v3535_v4 = vld [vmem:[%s10253_s6 + $0x24] sm:$0xf]  ;;  %v3534_v13 = vld [vmem:[%s10253_s6 + $0x20] sm:$0xf] }
 0x101   : > { %v6759_v56 = vcombine.low %v2198_v53, %v2210_v7  ;;  %v2605_v29 = vsel %vm1182_vm1, %v2603_v38, %v2604_v51 }
 0x102   : > { %v2226_v34 = vpop.permute.xlu1 %2225  ;;  %v2214_v6 = vpop.permute.xlu0 %2213  ;;  %v2652_v12 = vmul.bf16 %v2605_v29, %v8636_v63  ;;  %v2890_v29 = vld [vmem:[%s10254_s7 + $0x60] sm:$0xf]  ;;  %v2028_v47 = vrot.slane %v1993_v36, 5  ;;  %v1950_v3 = vrot.slane %v8691_v50, 3 }
 0x103   : > { %v2606_v27 = vrot.slane %v6759_v56, 5  ;;  %v2234_v37 = vrot.slane %v2226_v34, %v8075_v41  ;;  %v2222_v2 = vrot.slane %v2214_v6, %v8075_v41  ;;  %3620 = vperm.xlu1 %7446, %v3531_v24   ;;  %3608 = vperm.xlu0 %7445, %v3530_v42   ;;  %v2891_v56 = vld [vmem:[%s10254_s7 + $0x64] sm:$0xf]  ;;  %v1949_v34 = vsel %vm1265_vm2, %v1946_v55, %v1948_v11  ;;  %v7502_v6 = vld [vmem:[%s10252_s5 + $0x1d0] sm:$0xff]  }
 0x104   : > { %v2686_v62 = vrot.slane %v2652_v12, 3  ;;  %v1994_v55 = vmul.bf16 %v8636_v63, %v1949_v34  ;;  %v1951_v28 = vsel %vm1265_vm2, %v1948_v11, %v1950_v3 }
 0x105   : > { %v6760_v48 = vcombine.low %v2222_v2, %v2234_v37  ;;  %v2607_v33 = vsel %vm1182_vm1, %v2604_v51, %v2606_v27 }
 0x106   : > { %v2250_v14 = vpop.permute.xlu1 %2249  ;;  %v2238_v17 = vpop.permute.xlu0 %2237  ;;  %v2687_v18 = vsel %vm1265_vm2, %v2685_v59, %v2686_v62  ;;  %v2653_v19 = vmul.bf16 %v2607_v33, %v8652_v32  ;;  %v8718_v59 = vld [vmem:[#allocation2 + $0x30] sm:$0xff]  ;;  %v2029_v33 = vsel %vm1182_vm1, %v8650_v49, %v2028_v47 }
 0x107   : > { %v2608_v38 = vrot.slane %v6760_v48, 5  ;;  %v2258_v58 = vrot.slane %v2250_v14, %v8075_v41  ;;  %v2246_v52 = vrot.slane %v2238_v17, %v8075_v41  ;;  %3176 = vperm.xlu1 %7446, %v2889_v61   ;;  %3164 = vperm.xlu0 %7445, %v2888_v23   ;;  %v7503_v23 = vld [vmem:[%s10252_s5 + $0x190] sm:$0xff]   ;;  %v1610_v48 = vrot.slane %v8492_v5, %v8075_v41 }
 0x108   : > { %5841 = vmatprep.mubr.bf16.mxu1 %v2687_v18  ;;  %v2688_v26 = vrot.slane %v2653_v19, 3  ;;  %v7505_v19 = vld [vmem:[%s10252_s5 + $0x198] sm:$0xff]  }
 0x109   : > { %v8681_v40 = vcombine.low %v2246_v52, %v2258_v58  ;;  %5842 = vmatmul.mubr.bf16.vlgmr.msra.gmra.mrb[16].mxu1 %v2027_v43  ;;  %v2609_v51 = vsel %vm1182_vm1, %v2606_v27, %v2608_v38  ;;  %v2893_v58 = vld [vmem:[%s10254_s7 + $0x6c] sm:$0xf]  ;;  %v2892_v52 = vld [vmem:[%s10254_s7 + $0x68] sm:$0xf]  ;;  %v7506_v43 = vld [vmem:[%s10252_s5 + $0x1e0] sm:$0xff]  }
 0x10a   : > { %v2274_v7 = vpop.permute.xlu1 %2273  ;;  %v2262_v53 = vpop.permute.xlu0 %2261  ;;  %v2689_v54 = vsel %vm1265_vm2, %v2686_v62, %v2688_v26  ;;  %v2654_v57 = vmul.bf16 %v2609_v51, %v8683_v45  ;;  %7236 = vmatpush3.bf16.msra.mxu1 %v7493_v21  ;;  %v1622_v62 = vrot.slane %v8490_v15, %v8075_v41  ;;  %v7504_v15 = vld [vmem:[%s10252_s5 + $0x1d8] sm:$0xff]   ;;  %v2030_v21 = vrot.slane %v1994_v55, 5 }
 0x10b   : > { %v2610_v16 = vrot.slane %v8681_v40, 5  ;;  %v2282_v24 = vrot.slane %v2274_v7, %v8075_v41  ;;  %v2270_v42 = vrot.slane %v2262_v53, %v8075_v41  ;;  %3644 = vperm.xlu1 %7446, %v3533_v1   ;;  %3632 = vperm.xlu0 %7445, %v3532_v8   ;;  %v8773_v51 = vld [vmem:[#allocation2 + $0x38] sm:$0xff]  ;;  %v1646_v53 = vrot.slane %v8512_v25, %v8075_v41 }
 0x10c   : > { %5849 = vmatprep.mubr.bf16.mxu1 %v2689_v54  ;;  %7237 = vmatprep.subr.bf16.mxu1 %v7500_v39  ;;  %v2690_v12 = vrot.slane %v2654_v57, 3  ;;  %v7508_v39 = vld [vmem:[%s10252_s5 + $0x1a0] sm:$0xff]   ;;  %v2031_v40 = vsel %vm1182_vm1, %v2028_v47, %v2030_v21  ;;  %v1634_v54 = vrot.slane %v8514_v20, %v8075_v41 }
 0x10d   : > { %v2611_v27 = vsel %vm1182_vm1, %v2608_v38, %v2610_v16  ;;  %v8711_v37 = vcombine.low %v2270_v42, %v2282_v24  ;;  %v8748_v38 = vcombine.low %v1610_v48, %v1622_v62  ;;  %v7509_v24 = vld [vmem:[%s10252_s5 + $0x1e8] sm:$0xff]  }
 0x10e   : > { %v2298_v2 = vpop.permute.xlu1 %2297  ;;  %v2286_v61 = vpop.permute.xlu0 %2285  ;;  %7238 = vmatpush3.bf16.msra.mxu1 %v7501_v10  ;;  %v2655_v46 = vmul.bf16 %v2611_v27, %v8718_v59  ;;  %v2691_v49 = vsel %vm1265_vm2, %v2688_v26, %v2690_v12  ;;  %v1995_v26 = vmul.bf16 %v8652_v32, %v1951_v28  ;;  %v3537_v10 = vld [vmem:[%s10253_s6 + $0x2c] sm:$0xf]  ;;  %v2895_v27 = vld [vmem:[%s10254_s7 + $0x74] sm:$0xf] }
 0x10f   : > { %3200 = vperm.xlu1 %7446, %v2891_v56   ;;  %3188 = vperm.xlu0 %7445, %v2890_v29   ;;  %v2306_v5 = vrot.slane %v2298_v2, %v8075_v41  ;;  %v2294_v44 = vrot.slane %v2286_v61, %v8075_v41  ;;  %v2612_v14 = vrot.slane %v8711_v37, 5  ;;  %v1952_v7 = vrot.slane %v8748_v38, 3  ;;  %v2894_v37 = vld [vmem:[%s10254_s7 + $0x70] sm:$0xf] }
 0x110   : > { %7239 = vmatprep.subr.bf16.mxu1 %v7502_v6  ;;  %v8756_v1 = vrot.slane %v2655_v46, 3  ;;  %v8799_v34 = vrot.slane %v1995_v26, 5  ;;  %v7511_v6 = vld [vmem:[%s10252_s5 + $0x1a8] sm:$0xff]   ;;  %v7512_v61 = vld [vmem:[%s10252_s5 + $0x1f0] sm:$0xff]   ;;  %v1694_v38 = vrot.slane %v8557_v30, %v8075_v41 }
 0x111   : > { %5850 = vmatmul.mubr.bf16.gmra.mrb[20].mxu1 %v2029_v33  ;;  %v8761_v0 = vcombine.low %v2294_v44, %v2306_v5  ;;  %v2613_v36 = vsel %vm1182_vm1, %v2610_v16, %v2612_v14  ;;  %v3536_v16 = vld [vmem:[%s10253_s6 + $0x28] sm:$0xf]  ;;  %v1953_v2 = vsel %vm1265_vm2, %v1950_v3, %v1952_v7  ;;  %v7513_v3 = vld [vmem:[%s10252_s5 + $0x1b0] sm:$0xff]  }
 0x112   : > { %5857 = vmatprep.mubr.bf16.mxu1 %v2691_v49  ;;  %v2322_v17 = vpop.permute.xlu1 %2321  ;;  %v2310_v18 = vpop.permute.xlu0 %2309  ;;  %7240 = vmatpush3.bf16.msra.mxu1 %v7503_v23  ;;  %v2693_v57 = vsel %vm1265_vm2, %v2690_v12, %v8756_v1  ;;  %v2656_v56 = vmul.bf16 %v2613_v36, %v8773_v51  ;;  %v8804_v12 = vcombine.low %v1634_v54, %v1646_v53  ;;  %v3539_v49 = vld [vmem:[%s10253_s6 + $0x34] sm:$0xf]  ;;  %v2897_v53 = vld [vmem:[%s10254_s7 + $0x7c] sm:$0xf]  ;;  %v2896_v54 = vld [vmem:[%s10254_s7 + $0x78] sm:$0xf] }
 0x113   : > { %3668 = vperm.xlu1 %7446, %v3535_v4   ;;  %3656 = vperm.xlu0 %7445, %v3534_v13   ;;  %v2614_v25 = vrot.slane %v8761_v0, 5  ;;  %v2330_v20 = vrot.slane %v2322_v17, %v8075_v41  ;;  %v2318_v42 = vrot.slane %v2310_v18, %v8075_v41  ;;  %v2033_v50 = vsel %vm1182_vm1, %v2030_v21, %v8799_v34  ;;  %v7528_v17 = vld [vmem:[#allocation2 + $0x40] sm:$0xff] }
 0x114   : > { %7241 = vmatprep.subr.bf16.mxu1 %v7504_v15  ;;  %v8822_v55 = vrot.slane %v2656_v56, 3  ;;  %v1996_v46 = vmul.bf16 %v8683_v45, %v1953_v2  ;;  %v1954_v15 = vrot.slane %v8804_v12, 3  ;;  %v3541_v2 = vld [vmem:[%s10253_s6 + $0x3c] sm:$0xf] }
 0x115   : > { %v8820_v23 = vcombine.low %v2318_v42, %v2330_v20  ;;  %v2615_v62 = vsel %vm1182_vm1, %v2612_v14, %v2614_v25  ;;  %v3538_v14 = vld [vmem:[%s10253_s6 + $0x30] sm:$0xf]  ;;  %v7519_v20 = vld [vmem:[%s8880_s28] ss:$0 sps:$4 sm:$0xff]  }
 0x116   : > { %v8763_v11 = vpop.permute.xlu1 %2345  ;;  %v8765_v8 = vpop.permute.xlu0 %2333  ;;  %7242 = vmatpush3.bf16.msra.mxu1 %v7505_v19  ;;  %v2657_v18 = vmul.bf16 %v7528_v17, %v2615_v62  ;;  %v7515_v19 = vld [vmem:[%s10252_s5 + $0x1f8] sm:$0xff]   ;;  %426 = vst [vmem:[#allocation2 + $0x90] sm:$0xf0] %v7519_v20  ;;  %v7529_v62 = vld [vmem:[#allocation2 + $0x48] sm:$0xff] }
 0x117   : > { %3224 = vperm.xlu1 %7446, %v2893_v58   ;;  %3212 = vperm.xlu0 %7445, %v2892_v52   ;;  %v2354_v5 = vrot.slane %v8763_v11, %v8075_v41  ;;  %v2342_v44 = vrot.slane %v8765_v8, %v8075_v41  ;;  %v2616_v21 = vrot.slane %v8820_v23, 5  ;;  %v2695_v58 = vsel %vm1265_vm2, %v8756_v1, %v8822_v55  ;;  %v7516_v11 = vld [vmem:[%s10252_s5 + $0x1b8] sm:$0xff]   ;;  %v2849_v8 = vld [vmem:[#allocation2 + $0x10] sm:$0xe0] }
 0x118   : > { %7243 = vmatprep.subr.bf16.mxu1 %v7506_v43 }
 0x119   : > { %5858 = vmatmul.mubr.bf16.gmra.mrb[24].mxu1 %v2031_v40  ;;  %v8860_v40 = vcombine.low %v2342_v44, %v2354_v5  ;;  %v2785_v44 = vrot.slane %v8636_v63, 4 }
 0x11a   : > { %5865 = vmatprep.mubr.bf16.mxu1 %v2693_v57  ;;  %v8795_v29 = vpop.permute.xlu1 %2369  ;;  %v8797_v47 = vpop.permute.xlu0 %2357  ;;  %7244 = vmatpush3.bf16.msra.mxu1 %v7508_v39  ;;  %v8858_v39 = vrot.slane %v1996_v46, 5  ;;  %v8868_v57 = vrot.slane %v2657_v18, 3  ;;  %v3542_v18 = vld [vmem:[%s10253_s6 + $0x40] sm:$0xf] }
 0x11b   : > { %3692 = vperm.xlu1 %7446, %v3537_v10   ;;  %3680 = vperm.xlu0 %7445, %v3536_v16   ;;  %v1955_v10 = vsel %vm1265_vm2, %v1952_v7, %v1954_v15  ;;  %v1682_v7 = vrot.slane %v8559_v35, %v8075_v41  ;;  %v2618_v30 = vrot.slane %v8860_v40, 5 }
 0x11c   : > { %7245 = vmatprep.subr.bf16.mxu1 %v7509_v24  ;;  %v2617_v24 = vsel %vm1182_vm1, %v2614_v25, %v2616_v21  ;;  %v1997_v0 = vmul.bf16 %v8718_v59, %v1955_v10  ;;  %v2750_v25 = vld [vmem:[#allocation2 + $0x10] sm:$0xf0]  ;;  %v2035_v35 = vsel %vm1182_vm1, %v8799_v34, %v8858_v39  ;;  %v2697_v34 = vsel %vm1265_vm2, %v8822_v55, %v8868_v57  ;;  %v3543_v55 = vld [vmem:[%s10253_s6 + $0x44] sm:$0xf] }
 0x11d   : > { %v1706_v10 = vrot.slane %v8583_v9, %v8075_v41 }
 0x11e   : > { %v2913_v48 = vpop.permute.xlu1 %2912  ;;  %v2901_v33 = vpop.permute.xlu0 %2900  ;;  %7246 = vmatpush3.bf16.msra.mxu1 %v7511_v6  ;;  %v1956_v6 = vrot.slane %v8554_v31, 3 }
 0x11f   : > { %v2921_v4 = vrot.slane %v2913_v48, %v8075_v41  ;;  %v2909_v13 = vrot.slane %v2901_v33, %v8075_v41  ;;  %3248 = vperm.xlu1 %7446, %v2895_v27   ;;  %3236 = vperm.xlu0 %7445, %v2894_v37   ;;  %v2658_v48 = vmul.bf16 %v7529_v62, %v2617_v24  ;;  %v4288_v62 = vld [vmem:[%s10254_s7 + $0xc] sm:$0xf] }
 0x120   : > { %7247 = vmatprep.subr.bf16.mxu1 %v7512_v61  ;;  %v3540_v61 = vld [vmem:[%s10253_s6 + $0x38] sm:$0xf]  ;;  %v2378_v33 = vrot.slane %v8795_v29, %v8075_v41  ;;  %v2784_v29 = vrot.slane %v2750_v25, 4  ;;  %v1957_v17 = vsel %vm1265_vm2, %v1954_v15, %v1956_v6 }
 0x121   : > { %v6773_v28 = vcombine.low %v2909_v13, %v2921_v4  ;;  %5866 = vmatmul.mubr.bf16.gmra.mrb[28].mxu1 %v2033_v50  ;;  %v2366_v50 = vrot.slane %v8797_v47, %v8075_v41  ;;  %v8921_v4 = vcombine.low %v1682_v7, %v1694_v38  ;;  %v4286_v38 = vld [vmem:[%s10254_s7 + $0x4] sm:$0xf]  ;;  %v4285_v7 = vld [vmem:[%s10254_s7] sm:$0xf] }
 0x122   : > { %5873 = vmatprep.mubr.bf16.mxu1 %v2695_v58  ;;  %v2937_v52 = vpop.permute.xlu1 %2936  ;;  %v2925_v43 = vpop.permute.xlu0 %2924  ;;  %7248 = vmatpush3.bf16.msra.mxu1 %v7513_v3  ;;  %v2698_v58 = vrot.slane %v2658_v48, 3 }
 0x123   : > { %v2945_v26 = vrot.slane %v2937_v52, %v8075_v41  ;;  %v2933_v36 = vrot.slane %v2925_v43, %v8075_v41  ;;  %3716 = vperm.xlu1 %7446, %v3539_v49   ;;  %3704 = vperm.xlu0 %7445, %v3538_v14   ;;  %v3362_v1 = vrot.slane %v6773_v28, 3  ;;  %v2036_v14 = vrot.slane %v1997_v0, 5 }
 0x124   : > { %7249 = vmatprep.subr.bf16.mxu1 %v7515_v19  ;;  %v2619_v52 = vsel %vm1182_vm1, %v2616_v21, %v2618_v30  ;;  %v8943_v43 = vcombine.low %v2366_v50, %v2378_v33  ;;  %v1958_v23 = vrot.slane %v8921_v4, 3  ;;  %v2699_v20 = vsel %vm1265_vm2, %v8868_v57, %v2698_v58  ;;  %v7514_v33 = vld [vmem:[%s10252_s5 + $0x210] sm:$0xff]   ;;  %v9089_v4 = vld [vmem:[#allocation2 + $0x60] sm:$0xff] }
 0x125   : > { %v8882_v16 = vcombine.low %v2933_v36, %v2945_v26  ;;  %v3410_v37 = vmul.bf16 %v3362_v1, %v2849_v8  ;;  %v2786_v26 = vsel %vm603_vm0, %v2784_v29, %v2785_v44  ;;  %v1998_v36 = vmul.bf16 %v8773_v51, %v1957_v17 }
 0x126   : > { %v8894_v42 = vpop.permute.xlu1 %2393  ;;  %v8896_v56 = vpop.permute.xlu0 %2381  ;;  %7250 = vmatpush3.bf16.msra.mxu1 %v7516_v11  ;;  %v2037_v24 = vsel %vm1182_vm1, %v8858_v39, %v2036_v14  ;;  %v2620_v9 = vrot.slane %v8943_v43, 5 }
 0x127   : > { %v3363_v27 = vrot.slane %v8882_v16, 3  ;;  %3272 = vperm.xlu1 %7446, %v2897_v53   ;;  %3260 = vperm.xlu0 %7445, %v2896_v54   ;;  %v3444_v19 = vrot.slane %v3410_v37, 5  ;;  %v1718_v54 = vrot.slane %v8581_v22, %v8075_v41  ;;  %v7510_v22 = vld [vmem:[%s10252_s5 + $0x208] sm:$0xff]   ;;  %v2402_v39 = vrot.slane %v8894_v42, %v8075_v41  ;;  %v8996_v16 = vld [vmem:[#allocation2 + $0x40] sm:$0xff] }
 0x128   : > { %v2390_v57 = vrot.slane %v8896_v56, %v8075_v41  ;;  %v2787_v42 = vrot.slane %v8652_v32, 4 }
 0x129   : > { %5874 = vmatmul.mubr.bf16.gmra.mrb[32].mxu1 %v2035_v35  ;;  %v3364_v3 = vsel %vm1265_vm2, %v3362_v1, %v3363_v27  ;;  %v7530_v1 = vld [vmem:[#allocation2 + $0x50] sm:$0xff] }
 0x12a   : > { %5881 = vmatprep.mubr.bf16.mxu1 %v2697_v34  ;;  %v2961_v13 = vpop.permute.xlu1 %2960  ;;  %v2949_v46 = vpop.permute.xlu0 %2948  ;;  %v3411_v5 = vmul.bf16 %v3364_v3, %v8636_v63  ;;  %v2659_v53 = vmul.bf16 %v7530_v1, %v2619_v52  ;;  %v9016_v31 = vcombine.low %v2390_v57, %v2402_v39  ;;  %v4290_v1 = vld [vmem:[%s10254_s7 + $0x14] sm:$0xf] }
 0x12b   : > { %v2969_v47 = vrot.slane %v2961_v13, %v8075_v41  ;;  %v2957_v49 = vrot.slane %v2949_v46, %v8075_v41  ;;  %3740 = vperm.xlu1 %7446, %v3541_v2   ;;  %3728 = vperm.xlu0 %7445, %v3540_v61   ;;  %v8990_v2 = vrot.slane %v1998_v36, 5  ;;  %v9003_v61 = vcombine.low %v1706_v10, %v1718_v54 }
 0x12c   : > { %v3445_v28 = vrot.slane %v3411_v5, 5  ;;  %v8994_v56 = vrot.slane %v2659_v53, 3  ;;  %v2788_v46 = vsel %vm603_vm0, %v2785_v44, %v2787_v42  ;;  %v3545_v44 = vld [vmem:[%s10253_s6 + $0x4c] sm:$0xf]  ;;  %v2789_v36 = vrot.slane %v8683_v45, 4 }
 0x12d   : > { %v8945_v11 = vcombine.low %v2957_v49, %v2969_v47  ;;  %v2039_v13 = vsel %vm1182_vm1, %v2036_v14, %v8990_v2  ;;  %v1960_v47 = vrot.slane %v9003_v61, 3  ;;  %v7531_v14 = vld [vmem:[#allocation2 + $0x58] sm:$0xff]  ;;  %v4289_v53 = vld [vmem:[%s10254_s7 + $0x10] sm:$0xf] }
 0x12e   : > { %v8947_v12 = vpop.permute.xlu1 %1733  ;;  %v8949_v15 = vpop.permute.xlu0 %1721  ;;  %v3446_v8 = vsel %vm1182_vm1, %v3444_v19, %v3445_v28  ;;  %v2701_v29 = vsel %vm1265_vm2, %v2698_v58, %v8994_v56  ;;  %v2622_v19 = vrot.slane %v9016_v31, 5  ;;  %v4294_v31 = vld [vmem:[%s10254_s7 + $0x24] sm:$0xf] }
 0x12f   : > { %v3365_v21 = vrot.slane %v8945_v11, 3  ;;  %3764 = vperm.xlu1 %7446, %v3543_v55   ;;  %3752 = vperm.xlu0 %7445, %v3542_v18   ;;  %v1742_v49 = vrot.slane %v8947_v12, %v8075_v41  ;;  %v1730_v63 = vrot.slane %v8949_v15, %v8075_v41  ;;  %v3544_v55 = vld [vmem:[%s10253_s6 + $0x48] sm:$0xf]  ;;  %v7517_v18 = vld [vmem:[%s10252_s5 + $0x218] sm:$0xff]   ;;  %v1961_v10 = vsel %vm1265_vm2, %v1958_v23, %v1960_v47 }
 0x130   : > { %6002 = vmatprep.mubr.bf16.mxu0 %v3446_v8 }
 0x131   : > { %5882 = vmatmul.mubr.bf16.gmra.mrb[36].mxu1 %v2037_v24  ;;  %6003 = vmatmul.mubr.bf16.vlgmr.msra.gmra.mrb[48].mxu0 %v2786_v26  ;;  %v3366_v0 = vsel %vm1265_vm2, %v3363_v27, %v3365_v21  ;;  %v1959_v27 = vsel %vm1265_vm2, %v1956_v6, %v1958_v23  ;;  %v2621_v6 = vsel %vm1182_vm1, %v2618_v30, %v2620_v9  ;;  %v7518_v24 = vld [vmem:[%s10252_s5 + $0x220] sm:$0xff]  }
 0x132   : > { %5889 = vmatprep.mubr.bf16.mxu1 %v2699_v20  ;;  %v8985_v25 = vpop.permute.xlu1 %2417  ;;  %v8987_v37 = vpop.permute.xlu0 %2405  ;;  %v3412_v35 = vmul.bf16 %v3366_v0, %v8652_v32  ;;  %7372 = vmatpush3.bf16.msra.mxu0 %v8543_v60  ;;  %v4287_v60 = vld [vmem:[%s10254_s7 + $0x8] sm:$0xf]  ;;  %v1999_v5 = vmul.bf16 %v1959_v27, %v8996_v16  ;;  %v2660_v17 = vmul.bf16 %v7531_v14, %v2621_v6 }
 0x133   : > { %4331 = vperm.xlu1 %7446, %v4286_v38   ;;  %4319 = vperm.xlu0 %7445, %v4285_v7   ;;  %v2414_v58 = vrot.slane %v8987_v37, %v8075_v41  ;;  %v9078_v20 = vcombine.low %v1730_v63, %v1742_v49  ;;  %v2623_v23 = vsel %vm1182_vm1, %v2620_v9, %v2622_v19  ;;  %v4292_v9 = vld [vmem:[%s10254_s7 + $0x1c] sm:$0xf]  ;;  %v9149_v63 = vld [vmem:[#allocation2 + $0x50] sm:$0xff] }
 0x134   : > { %v9011_v48 = vrot.slane %v3412_v35, 5  ;;  %7373 = vmatprep.subr.bf16.mxu0 %v7510_v22  ;;  %v9059_v26 = vrot.slane %v1999_v5, 5  ;;  %v9068_v54 = vrot.slane %v2660_v17, 3  ;;  %v2661_v32 = vmul.bf16 %v2623_v23, %v9089_v4  ;;  %v3546_v5 = vld [vmem:[%s10253_s6 + $0x50] sm:$0xf] }
 0x136   : > { %v2985_v50 = vpop.permute.xlu1 %2984  ;;  %v2973_v34 = vpop.permute.xlu0 %2972  ;;  %v3448_v3 = vsel %vm1182_vm1, %v3445_v28, %v9011_v48  ;;  %7374 = vmatpush3.bf16.msra.mxu0 %v7510_v22  ;;  %v2426_v28 = vrot.slane %v8985_v25, %v8075_v41  ;;  %v9087_v22 = vld [vmem:[#allocation2 + $0x48] sm:$0xff]  ;;  %v2041_v11 = vsel %vm1182_vm1, %v8990_v2, %v9059_v26  ;;  %v2703_v43 = vsel %vm1265_vm2, %v8994_v56, %v9068_v54  ;;  %v4291_v25 = vld [vmem:[%s10254_s7 + $0x18] sm:$0xf] }
 0x137   : > { %v2993_v40 = vrot.slane %v2985_v50, %v8075_v41  ;;  %v2981_v30 = vrot.slane %v2973_v34, %v8075_v41  ;;  %4355 = vperm.xlu1 %7446, %v4288_v62   ;;  %4343 = vperm.xlu0 %7445, %v4287_v60   ;;  %v2000_v35 = vmul.bf16 %v1961_v10, %v9087_v22  ;;  %v7520_v2 = vld [vmem:[%s10252_s5 + $0x228] sm:$0xff]  }
 0x138   : > { %6010 = vmatprep.mubr.bf16.mxu0 %v3448_v3  ;;  %7375 = vmatprep.subr.bf16.mxu0 %v7514_v33  ;;  %v9080_v38 = vcombine.low %v2414_v58, %v2426_v28 }
 0x139   : > { %v9056_v52 = vcombine.low %v2981_v30, %v2993_v40  ;;  %5890 = vmatmul.mubr.bf16.gmra.mrb[40].mxu1 %v2039_v13  ;;  %6011 = vmatmul.mubr.bf16.gmra.mrb[52].mxu0 %v2788_v46  ;;  %v3547_v46 = vld [vmem:[%s10253_s6 + $0x54] sm:$0xf]  ;;  %v9138_v40 = vrot.slane %v2000_v35, 5  ;;  %v9140_v30 = vrot.slane %v2661_v32, 3  ;;  %v9206_v35 = vld [vmem:[#allocation2 + $0x58] sm:$0xff] }
 0x13a   : > { %5897 = vmatprep.mubr.bf16.mxu1 %v2701_v29  ;;  %v1758_v12 = vpop.permute.xlu1 %1757  ;;  %v1746_v15 = vpop.permute.xlu0 %1745  ;;  %7376 = vmatpush3.bf16.msra.mxu0 %v7514_v33  ;;  %v2624_v56 = vrot.slane %v9080_v38, 5 }
 0x13b   : > { %v3367_v8 = vrot.slane %v9056_v52, 3  ;;  %3788 = vperm.xlu1 %7446, %v3545_v44   ;;  %3776 = vperm.xlu0 %7445, %v3544_v55   ;;  %v1766_v27 = vrot.slane %v1758_v12, %v8075_v41  ;;  %v1754_v62 = vrot.slane %v1746_v15, %v8075_v41  ;;  %v9156_v55 = vld [vmem:[#allocation2 + $0x68] sm:$0xff]  ;;  %v2043_v61 = vsel %vm1182_vm1, %v9059_v26, %v9138_v40  ;;  %v7522_v26 = vld [vmem:[%s10252_s5 + $0x238] sm:$0xff]  }
 0x13c   : > { %7377 = vmatprep.subr.bf16.mxu0 %v7517_v18  ;;  %v2625_v14 = vsel %vm1182_vm1, %v2622_v19, %v2624_v56  ;;  %v4293_v19 = vld [vmem:[%s10254_s7 + $0x20] sm:$0xf]  ;;  %v4296_v52 = vld [vmem:[%s10254_s7 + $0x2c] sm:$0xf] }
 0x13d   : > { %v3368_v7 = vsel %vm1265_vm2, %v3365_v21, %v3367_v8  ;;  %v2790_v21 = vsel %vm603_vm0, %v2787_v42, %v2789_v36  ;;  %v1962_v42 = vrot.slane %v9078_v20, 3  ;;  %v9145_v29 = vcombine.low %v1754_v62, %v1766_v27 }
 0x13e   : > { %v2442_v39 = vpop.permute.xlu1 %2441  ;;  %v2430_v57 = vpop.permute.xlu0 %2429  ;;  %v3413_v0 = vmul.bf16 %v3368_v7, %v8683_v45  ;;  %7378 = vmatpush3.bf16.msra.mxu0 %v7517_v18  ;;  %v2662_v15 = vmul.bf16 %v2625_v14, %v9156_v55  ;;  %v3549_v45 = vld [vmem:[%s10253_s6 + $0x5c] sm:$0xf] }
 0x13f   : > { %4379 = vperm.xlu1 %7446, %v4290_v1   ;;  %4367 = vperm.xlu0 %7445, %v4289_v53   ;;  %v2450_v60 = vrot.slane %v2442_v39, %v8075_v41  ;;  %v2438_v33 = vrot.slane %v2430_v57, %v8075_v41  ;;  %v1963_v44 = vsel %vm1265_vm2, %v1960_v47, %v1962_v42  ;;  %v1964_v1 = vrot.slane %v9145_v29, 3 }
 0x140   : > { %v9114_v37 = vrot.slane %v3413_v0, 5  ;;  %7379 = vmatprep.subr.bf16.mxu0 %v7518_v24  ;;  %v2705_v47 = vsel %vm1265_vm2, %v9068_v54, %v9140_v30  ;;  %v2001_v12 = vmul.bf16 %v1963_v44, %v9149_v63  ;;  %v2791_v57 = vrot.slane %v8718_v59, 4 }
 0x141   : > { %5898 = vmatmul.mubr.bf16.gmra.mrb[44].mxu1 %v2041_v11  ;;  %v9163_v17 = vcombine.low %v2438_v33, %v2450_v60  ;;  %v1965_v32 = vsel %vm1265_vm2, %v1962_v42, %v1964_v1 }
 0x142   : > { %5905 = vmatprep.mubr.bf16.mxu1 %v2703_v43  ;;  %v3009_v6 = vpop.permute.xlu1 %3008  ;;  %v2997_v50 = vpop.permute.xlu0 %2996  ;;  %v3450_v34 = vsel %vm1182_vm1, %v9011_v48, %v9114_v37  ;;  %7380 = vmatpush3.bf16.msra.mxu0 %v7518_v24  ;;  %v7521_v48 = vld [vmem:[%s10252_s5 + $0x230] sm:$0xff]   ;;  %v2044_v43 = vrot.slane %v2001_v12, 5  ;;  %v2792_v33 = vsel %vm603_vm0, %v2789_v36, %v2791_v57  ;;  %v3548_v36 = vld [vmem:[%s10253_s6 + $0x58] sm:$0xf]  ;;  %v2002_v38 = vmul.bf16 %v1965_v32, %v9206_v35 }
 0x143   : > { %v3017_v3 = vrot.slane %v3009_v6, %v8075_v41  ;;  %v3005_v13 = vrot.slane %v2997_v50, %v8075_v41  ;;  %4403 = vperm.xlu1 %7446, %v4292_v9   ;;  %4391 = vperm.xlu0 %7445, %v4291_v25   ;;  %v2626_v24 = vrot.slane %v9163_v17, 5  ;;  %v2706_v25 = vrot.slane %v2662_v15, 3  ;;  %v9223_v6 = vld [vmem:[#allocation2 + $0x70] sm:$0xff] }
 0x144   : > { %6018 = vmatprep.mubr.bf16.mxu0 %v3450_v34  ;;  %7381 = vmatprep.subr.bf16.mxu0 %v7520_v2  ;;  %v4298_v17 = vld [vmem:[%s10254_s7 + $0x34] sm:$0xf] }
 0x145   : > { %v9147_v49 = vcombine.low %v3005_v13, %v3017_v3  ;;  %6019 = vmatmul.mubr.bf16.gmra.mrb[56].mxu0 %v2790_v21  ;;  %v2627_v20 = vsel %vm1182_vm1, %v2624_v56, %v2626_v24  ;;  %v2707_v3 = vsel %vm1265_vm2, %v9140_v30, %v2706_v25  ;;  %v4297_v30 = vld [vmem:[%s10254_s7 + $0x30] sm:$0xf] }
 0x146   : > { %v1782_v18 = vpop.permute.xlu1 %1781  ;;  %v1770_v28 = vpop.permute.xlu0 %1769  ;;  %7382 = vmatpush3.bf16.msra.mxu0 %v7520_v2  ;;  %v2663_v13 = vmul.bf16 %v2627_v20, %v9223_v6 }
 0x147   : > { %v3369_v58 = vrot.slane %v9147_v49, 3  ;;  %3812 = vperm.xlu1 %7446, %v3547_v46   ;;  %3800 = vperm.xlu0 %7445, %v3546_v5   ;;  %v1790_v53 = vrot.slane %v1782_v18, %v8075_v41  ;;  %v1778_v54 = vrot.slane %v1770_v28, %v8075_v41  ;;  %v2046_v18 = vrot.slane %v2002_v38, 5 }
 0x148   : > { %7383 = vmatprep.subr.bf16.mxu0 %v7521_v48 }
 0x149   : > { %5906 = vmatmul.mubr.bf16.gmra.mrb[48].mxu1 %v2043_v61  ;;  %v3370_v10 = vsel %vm1265_vm2, %v3367_v8, %v3369_v58  ;;  %v4295_v8 = vld [vmem:[%s10254_s7 + $0x28] sm:$0xf]  ;;  %v9204_v9 = vcombine.low %v1778_v54, %v1790_v53  ;;  %v2793_v53 = vrot.slane %v8773_v51, 4  ;;  %v9268_v54 = vld [vmem:[#allocation2 + $0x78] sm:$0xff]  ;;  %v2047_v29 = vsel %vm1182_vm1, %v2044_v43, %v2046_v18 }
 0x14a   : > { %5913 = vmatprep.mubr.bf16.mxu1 %v2705_v47  ;;  %v2466_v7 = vpop.permute.xlu1 %2465  ;;  %v2454_v23 = vpop.permute.xlu0 %2453  ;;  %v3414_v39 = vmul.bf16 %v3370_v10, %v8718_v59  ;;  %7384 = vmatpush3.bf16.msra.mxu0 %v7521_v48  ;;  %v2708_v47 = vrot.slane %v2663_v13, 3  ;;  %v4299_v10 = vld [vmem:[%s10254_s7 + $0x38] sm:$0xf] }
 0x14b   : > { %v2474_v0 = vrot.slane %v2466_v7, %v8075_v41  ;;  %v2462_v11 = vrot.slane %v2454_v23, %v8075_v41  ;;  %4427 = vperm.xlu1 %7446, %v4294_v31   ;;  %4415 = vperm.xlu0 %7445, %v4293_v19   ;;  %v1966_v56 = vrot.slane %v9204_v9, 3  ;;  %v2794_v9 = vsel %vm603_vm0, %v2791_v57, %v2793_v53 }
 0x14c   : > { %v9202_v21 = vrot.slane %v3414_v39, 5  ;;  %7385 = vmatprep.subr.bf16.mxu0 %v7522_v26 }
 0x14d   : > { %v9213_v2 = vcombine.low %v2462_v11, %v2474_v0  ;;  %v1967_v31 = vsel %vm1265_vm2, %v1964_v1, %v1966_v56  ;;  %v4300_v1 = vld [vmem:[%s10254_s7 + $0x3c] sm:$0xf]  ;;  %v2709_v0 = vsel %vm1265_vm2, %v2706_v25, %v2708_v47 }
 0x14e   : > { %v3033_v27 = vpop.permute.xlu1 %3032  ;;  %v3021_v62 = vpop.permute.xlu0 %3020  ;;  %v3452_v60 = vsel %vm1182_vm1, %v9114_v37, %v9202_v21  ;;  %7386 = vmatpush3.bf16.msra.mxu0 %v7522_v26  ;;  %v2045_v37 = vsel %vm1182_vm1, %v9138_v40, %v2044_v43  ;;  %v2003_v7 = vmul.bf16 %v9089_v4, %v1967_v31 }
 0x14f   : > { %v3041_v42 = vrot.slane %v3033_v27, %v8075_v41  ;;  %v3029_v50 = vrot.slane %v3021_v62, %v8075_v41  ;;  %4451 = vperm.xlu1 %7446, %v4296_v52   ;;  %4439 = vperm.xlu0 %7445, %v4295_v8   ;;  %v2628_v46 = vrot.slane %v9213_v2, 5  ;;  %v3551_v27 = vld [vmem:[%s10253_s6 + $0x64] sm:$0xf] }
 0x150   : > { %6026 = vmatprep.mubr.bf16.mxu0 %v3452_v60  ;;  %v2048_v59 = vrot.slane %v2003_v7, 5 }
 0x151   : > { %v9240_v34 = vcombine.low %v3029_v50, %v3041_v42  ;;  %5914 = vmatmul.mubr.bf16.gmra.mrb[52].mxu1 %v2045_v37  ;;  %6027 = vmatmul.mubr.bf16.gmra.mrb[60].mxu0 %v2792_v33  ;;  %v2629_v19 = vsel %vm1182_vm1, %v2626_v24, %v2628_v46  ;;  %v9310_v50 = vld [vmem:[#allocation2 + $0x80] sm:$0xff] }
 0x152   : > { %5921 = vmatprep.mubr.bf16.mxu1 %v2707_v3  ;;  %v1806_v5 = vpop.permute.xlu1 %1805  ;;  %v1794_v40 = vpop.permute.xlu0 %1793  ;;  %v2664_v11 = vmul.bf16 %v2629_v19, %v9268_v54  ;;  %v2049_v38 = vsel %vm1182_vm1, %v2046_v18, %v2048_v59  ;;  %v4301_v3 = vld [vmem:[%s10254_s7 + $0x40] sm:$0xf]  ;;  %v2795_v18 = vrot.slane %v8996_v16, 4 }
 0x153   : > { %v3371_v48 = vrot.slane %v9240_v34, 3  ;;  %v1814_v44 = vrot.slane %v1806_v5, %v8075_v41  ;;  %v1802_v14 = vrot.slane %v1794_v40, %v8075_v41  ;;  %3836 = vperm.xlu1 %7446, %v3549_v45   ;;  %3824 = vperm.xlu0 %7445, %v3548_v36  }
 0x154   : > { %v2710_v60 = vrot.slane %v2664_v11, 3 }
 0x155   : > { %v3372_v28 = vsel %vm1265_vm2, %v3369_v58, %v3371_v48  ;;  %v9260_v61 = vcombine.low %v1802_v14, %v1814_v44 }
 0x156   : > { %v2490_v12 = vpop.permute.xlu1 %2489  ;;  %v2478_v15 = vpop.permute.xlu0 %2477  ;;  %v3415_v26 = vmul.bf16 %v3372_v28, %v8773_v51  ;;  %v2711_v40 = vsel %vm1265_vm2, %v2708_v47, %v2710_v60  ;;  %v4303_v47 = vld [vmem:[%s10254_s7 + $0x48] sm:$0xf] }
 0x157   : > { %v2498_v49 = vrot.slane %v2490_v12, %v8075_v41  ;;  %v2486_v58 = vrot.slane %v2478_v15, %v8075_v41  ;;  %4475 = vperm.xlu1 %7446, %v4298_v17   ;;  %4463 = vperm.xlu0 %7445, %v4297_v30   ;;  %v1968_v23 = vrot.slane %v9260_v61, 3  ;;  %v4304_v61 = vld [vmem:[%s10254_s7 + $0x4c] sm:$0xf]  ;;  %v3552_v51 = vld [vmem:[%s10253_s6 + $0x68] sm:$0xf] }
 0x158   : > { %v9279_v24 = vrot.slane %v3415_v26, 5 }
 0x159   : > { %v9283_v39 = vcombine.low %v2486_v58, %v2498_v49  ;;  %5922 = vmatmul.mubr.bf16.gmra.mrb[56].mxu1 %v2047_v29  ;;  %v1969_v57 = vsel %vm1265_vm2, %v1966_v56, %v1968_v23  ;;  %v4302_v56 = vld [vmem:[%s10254_s7 + $0x44] sm:$0xf] }
 0x15a   : > { %5929 = vmatprep.mubr.bf16.mxu1 %v2709_v0  ;;  %v3057_v52 = vpop.permute.xlu1 %3056  ;;  %v3045_v8 = vpop.permute.xlu0 %3044  ;;  %v3454_v43 = vsel %vm1182_vm1, %v9202_v21, %v9279_v24  ;;  %v3550_v21 = vld [vmem:[%s10253_s6 + $0x60] sm:$0xf]  ;;  %v2004_v13 = vmul.bf16 %v9156_v55, %v1969_v57 }
 0x15b   : > { %v2630_v32 = vrot.slane %v9283_v39, 5  ;;  %v3065_v2 = vrot.slane %v3057_v52, %v8075_v41  ;;  %v3053_v25 = vrot.slane %v3045_v8, %v8075_v41  ;;  %4499 = vperm.xlu1 %7446, %v4300_v1   ;;  %4487 = vperm.xlu0 %7445, %v4299_v10   ;;  %v2796_v1 = vsel %vm603_vm0, %v2793_v53, %v2795_v18  ;;  %v4306_v39 = vld [vmem:[%s10254_s7 + $0x54] sm:$0xf] }
 0x15c   : > { %6034 = vmatprep.mubr.bf16.mxu0 %v3454_v43  ;;  %v2050_v19 = vrot.slane %v2004_v13, 5 }
 0x15d   : > { %v9305_v62 = vcombine.low %v3053_v25, %v3065_v2  ;;  %6035 = vmatmul.mubr.bf16.gmra.mrb[64].mxu0 %v2794_v9  ;;  %v2631_v33 = vsel %vm1182_vm1, %v2628_v46, %v2630_v32  ;;  %v9370_v2 = vld [vmem:[#allocation2 + $0x88] sm:$0xff] }
 0x15e   : > { %v1830_v20 = vpop.permute.xlu1 %1829  ;;  %v1818_v42 = vpop.permute.xlu0 %1817  ;;  %v2665_v44 = vmul.bf16 %v2631_v33, %v9310_v50 }
 0x15f   : > { %v3373_v37 = vrot.slane %v9305_v62, 3  ;;  %v1838_v45 = vrot.slane %v1830_v20, %v8075_v41  ;;  %v1826_v36 = vrot.slane %v1818_v42, %v8075_v41  ;;  %3860 = vperm.xlu1 %7446, %v3551_v27   ;;  %3848 = vperm.xlu0 %7445, %v3550_v21   ;;  %v2106_v42 = vld [vmem:[#allocation2 + $0x90] sm:$0x7] }
 0x160   : > { %v2712_v26 = vrot.slane %v2665_v44, 3 }
 0x161   : > { %v3374_v46 = vsel %vm1265_vm2, %v3371_v48, %v3373_v37  ;;  %v9328_v5 = vcombine.low %v1826_v36, %v1838_v45  ;;  %5930 = vmatmul.mubr.bf16.gmra.mrb[60].mxu1 %v2049_v38 }
 0x162   : > { %5937 = vmatprep.mubr.bf16.mxu1 %v2711_v40  ;;  %v2514_v14 = vpop.permute.xlu1 %2513  ;;  %v2502_v17 = vpop.permute.xlu0 %2501  ;;  %v3416_v30 = vmul.bf16 %v3374_v46, %v8996_v16  ;;  %v2713_v8 = vsel %vm1265_vm2, %v2710_v60, %v2712_v26  ;;  %v4307_v40 = vld [vmem:[%s10254_s7 + $0x58] sm:$0xf]  ;;  %v3554_v16 = vld [vmem:[%s10253_s6 + $0x70] sm:$0xf] }
 0x163   : > { %v1970_v28 = vrot.slane %v9328_v5, 3  ;;  %v2522_v34 = vrot.slane %v2514_v14, %v8075_v41  ;;  %v2510_v48 = vrot.slane %v2502_v17, %v8075_v41  ;;  %4523 = vperm.xlu1 %7446, %v4302_v56   ;;  %4511 = vperm.xlu0 %7445, %v4301_v3   ;;  %v2797_v56 = vrot.slane %v9087_v22, 4 }
 0x164   : > { %v9343_v31 = vrot.slane %v3416_v30, 5 }
 0x165   : > { %v1971_v12 = vsel %vm1265_vm2, %v1968_v23, %v1970_v28  ;;  %v6772_v15 = vcombine.low %v2510_v48, %v2522_v34  ;;  %v2051_v23 = vsel %vm1182_vm1, %v2048_v59, %v2050_v19 }
 0x166   : > { %v3081_v49 = vpop.permute.xlu1 %3080  ;;  %v3069_v58 = vpop.permute.xlu0 %3068  ;;  %v3456_v29 = vsel %vm1182_vm1, %v9279_v24, %v9343_v31  ;;  %v3553_v24 = vld [vmem:[%s10253_s6 + $0x6c] sm:$0xf]  ;;  %v2005_v53 = vmul.bf16 %v9223_v6, %v1971_v12 }
 0x167   : > { %v2632_v10 = vrot.slane %v6772_v15, 5  ;;  %v3089_v7 = vrot.slane %v3081_v49, %v8075_v41  ;;  %v3077_v0 = vrot.slane %v3069_v58, %v8075_v41  ;;  %4547 = vperm.xlu1 %7446, %v4304_v61   ;;  %4535 = vperm.xlu0 %7445, %v4303_v47  }
 0x168   : > { %6042 = vmatprep.mubr.bf16.mxu0 %v3456_v29  ;;  %v2052_v57 = vrot.slane %v2005_v53, 5  ;;  %v1446_v29 = vld [vmem:[#allocation2 + $0x80] sm:$0x1f] }
 0x169   : > { %v2633_v11 = vsel %vm1182_vm1, %v2630_v32, %v2632_v10  ;;  %v6780_v52 = vcombine.low %v3077_v0, %v3089_v7  ;;  %5938 = vmatmul.mubr.bf16.gmra.mrb[64].mxu1 %v2051_v23  ;;  %6043 = vmatmul.mubr.bf16.gmra.mrb[68].mxu0 %v2796_v1  ;;  %v4305_v32 = vld [vmem:[%s10254_s7 + $0x50] sm:$0xf]  ;;  %v2667_v14 = vmul.bf16 %v2632_v10, %v2106_v42 }
 0x16a   : > { %5945 = vmatprep.mubr.bf16.mxu1 %v2713_v8  ;;  %v1854_v43 = vpop.permute.xlu1 %1853  ;;  %v1842_v9 = vpop.permute.xlu0 %1841  ;;  %v2666_v25 = vmul.bf16 %v9370_v2, %v2633_v11  ;;  %v2053_v62 = vsel %vm1182_vm1, %v2050_v19, %v2052_v57  ;;  %v2798_v19 = vsel %vm603_vm0, %v2795_v18, %v2797_v56  ;;  %v2799_v11 = vrot.slane %v9149_v63, 4 }
 0x16b   : > { %v3375_v27 = vrot.slane %v6780_v52, 3  ;;  %v1862_v21 = vrot.slane %v1854_v43, %v8075_v41  ;;  %v1850_v59 = vrot.slane %v1842_v9, %v8075_v41  ;;  %3884 = vperm.xlu1 %7446, %v3553_v24   ;;  %3872 = vperm.xlu0 %7445, %v3552_v51   ;;  %v2716_v58 = vrot.slane %v2667_v14, 3 }
 0x16c   : > { %v9384_v20 = vrot.slane %v2666_v25, 3  ;;  %v4310_v25 = vld [vmem:[%s10254_s7 + $0x64] sm:$0xf] }
 0x16d   : > { %v3376_v60 = vsel %vm1265_vm2, %v3373_v37, %v3375_v27  ;;  %v6756_v33 = vcombine.low %v1850_v59, %v1862_v21  ;;  %v4308_v37 = vld [vmem:[%s10254_s7 + $0x5c] sm:$0xf]  ;;  %v4309_v59 = vld [vmem:[%s10254_s7 + $0x60] sm:$0xf] }
 0x16e   : > { %v3105_v45 = vpop.permute.xlu1 %3104  ;;  %v3093_v36 = vpop.permute.xlu0 %3092  ;;  %v3417_v38 = vmul.bf16 %v3376_v60, %v9087_v22  ;;  %v2715_v34 = vsel %vm1265_vm2, %v2712_v26, %v9384_v20  ;;  %v2717_v60 = vsel %vm1265_vm2, %v9384_v20, %v2716_v58  ;;  %v4312_v20 = vld [vmem:[%s10254_s7 + $0x6c] sm:$0xf] }
 0x16f   : > { %v1972_v3 = vrot.slane %v6756_v33, 3  ;;  %v3113_v13 = vrot.slane %v3105_v45, %v8075_v41  ;;  %v3101_v46 = vrot.slane %v3093_v36, %v8075_v41  ;;  %4571 = vperm.xlu1 %7446, %v4306_v39   ;;  %4559 = vperm.xlu0 %7445, %v4305_v32   ;;  %v4169_v32 = vld [vmem:[#allocation2 + $0x20] sm:$0xf0]  ;;  %v9445_v45 = vld [vmem:[#allocation2 + $0x28] sm:$0xff] }
 0x170   : > { %v3457_v44 = vrot.slane %v3417_v38, 5  ;;  %v2800_v38 = vsel %vm603_vm0, %v2797_v56, %v2799_v11  ;;  %v4311_v56 = vld [vmem:[%s10254_s7 + $0x68] sm:$0xf] }
 0x171   : > { %v1973_v17 = vsel %vm1265_vm2, %v1970_v28, %v1972_v3  ;;  %v6781_v30 = vcombine.low %v3101_v46, %v3113_v13  ;;  %5946 = vmatmul.mubr.bf16.gmra.mrb[68].mxu1 %v2053_v62 }
 0x172   : > { %5953 = vmatprep.mubr.bf16.mxu1 %v2715_v34  ;;  %v3129_v48 = vpop.permute.xlu1 %3128  ;;  %v3117_v61 = vpop.permute.xlu0 %3116  ;;  %v3458_v47 = vsel %vm1182_vm1, %v9343_v31, %v3457_v44  ;;  %v2006_v5 = vmul.bf16 %v9268_v54, %v1973_v17  ;;  %v3555_v31 = vld [vmem:[%s10253_s6 + $0x74] sm:$0xf] }
 0x173   : > { %v3377_v28 = vrot.slane %v6781_v30, 3  ;;  %v3137_v12 = vrot.slane %v3129_v48, %v8075_v41  ;;  %v3125_v15 = vrot.slane %v3117_v61, %v8075_v41  ;;  %v6915_v26 = vpop.f32.mrb[0].mxu0  ;;  %4595 = vperm.xlu1 %7446, %v4308_v37   ;;  %4583 = vperm.xlu0 %7445, %v4307_v40   ;;  %v4203_v37 = vrot.slane %v4169_v32, 4  ;;  %v3509_v61 = vld [vmem:[#allocation2 + $0x20] sm:$0xf8] }
 0x174   : > { %v6916_v49 = vpop.f32.mrb[1].mxu0  ;;  %6050 = vmatprep.mubr.bf16.mxu0 %v3458_v47  ;;  %v9418_v18 = vrot.slane %v2006_v5, 5  ;;  %v4204_v40 = vrot.slane %v9445_v45, 4 }
 0x175   : > { %v3378_v1 = vsel %vm1265_vm2, %v3375_v27, %v3377_v28  ;;  %v9421_v10 = vcombine.low %v3125_v15, %v3137_v12  ;;  %v9423_v7 = vadd.f32 %v6916_v49, %v6915_v26  ;;  %v6918_v0 = vpop.f32.mrb[2].mxu0  ;;  %6051 = vmatmul.mubr.bf16.gmra.mrb[72].mxu0 %v2798_v19  ;;  %v2007_v27 = vmul.bf16 %v1972_v3, %v1446_v29 }
 0x176   : > { %v6919_v23 = vpop.f32.mrb[3].mxu0  ;;  %v3573_v24 = vpop.permute.xlu1 %3572  ;;  %v2055_v51 = vsel %vm1182_vm1, %v2052_v57, %v9418_v18  ;;  %v3418_v53 = vmul.bf16 %v3378_v1, %v9149_v63  ;;  %v2801_v12 = vrot.slane %v9206_v35, 4  ;;  %v3557_v1 = vld [vmem:[%s10253_s6 + $0x7c] sm:$0xf]  ;;  %v4314_v63 = vld [vmem:[%s10254_s7 + $0x74] sm:$0xf] }
 0x177   : > { %v3379_v52 = vrot.slane %v9421_v10, 3  ;;  %v9430_v8 = vadd.f32 %v6919_v23, %v6918_v0  ;;  %v3581_v43 = vrot.slane %v3573_v24, %v8075_v41  ;;  %v3561_v9 = vpop.permute.xlu0 %3560  ;;  %3908 = vperm.xlu1 %7446, %v3555_v31   ;;  %3896 = vperm.xlu0 %7445, %v3554_v16   ;;  %v4205_v31 = vsel %vm603_vm0, %v4203_v37, %v4204_v40  ;;  %v3556_v0 = vld [vmem:[%s10253_s6 + $0x78] sm:$0xf]  ;;  %v9486_v24 = vld [vmem:[#allocation2 + $0x30] sm:$0xff] }
 0x178   : > { %v3569_v21 = vrot.slane %v3561_v9, %v8075_v41  ;;  %v3459_v39 = vrot.slane %v3418_v53, 5  ;;  %v4206_v9 = vrot.slane %v9486_v24, 4  ;;  %v2803_v10 = vrot.slane %v9089_v4, 4 }
 0x179   : > { %v3380_v57 = vsel %vm1265_vm2, %v3377_v28, %v3379_v52  ;;  %5954 = vmatmul.mubr.bf16.gmra.mrb[72].mxu1 %v2055_v51 }
 0x17a   : > { %v6789_v33 = vcombine.low %v3569_v21, %v3581_v43  ;;  %5961 = vmatprep.mubr.bf16.mxu1 %v2717_v60  ;;  %v3597_v42 = vpop.permute.xlu1 %3596  ;;  %v3460_v36 = vsel %vm1182_vm1, %v3457_v44, %v3459_v39  ;;  %v3419_v3 = vmul.bf16 %v3380_v57, %v9206_v35  ;;  %v2056_v44 = vrot.slane %v2007_v27, 5 }
 0x17b   : > { %v3605_v13 = vrot.slane %v3597_v42, %v8075_v41  ;;  %v3585_v46 = vpop.permute.xlu0 %3584  ;;  %v6921_v62 = vpop.f32.mrb[4].mxu0  ;;  %4619 = vperm.xlu1 %7446, %v4310_v25   ;;  %4607 = vperm.xlu0 %7445, %v4309_v59   ;;  %v7523_v25 = vld [vmem:[%s8880_s28 + $0xc] ss:$0 sps:$4 sm:$0xff]  }
 0x17c   : > { %v3593_v22 = vrot.slane %v3585_v46, %v8075_v41  ;;  %v6922_v14 = vpop.f32.mrb[5].mxu0  ;;  %6058 = vmatprep.mubr.bf16.mxu0 %v3460_v36  ;;  %v9463_v17 = vrot.slane %v3419_v3, 5  ;;  %v4022_v30 = vrot.slane %v6789_v33, 5  ;;  %v2057_v29 = vsel %vm1182_vm1, %v9418_v18, %v2056_v44  ;;  %428 = vst [vmem:[#allocation2 + $0xa0] sm:$0xf] %v7523_v25 }
 0x17d   : > { %v9465_v34 = vadd.f32 %v6922_v14, %v6921_v62  ;;  %v6924_v48 = vpop.f32.mrb[6].mxu0  ;;  %6059 = vmatmul.mubr.bf16.gmra.mrb[76].mxu0 %v2800_v38  ;;  %v2802_v18 = vsel %vm603_vm0, %v2799_v11, %v2801_v12  ;;  %v4313_v11 = vld [vmem:[%s10254_s7 + $0x70] sm:$0xf] }
 0x17e   : > { %v9467_v47 = vcombine.low %v3593_v22, %v3605_v13  ;;  %v6925_v19 = vpop.f32.mrb[7].mxu0  ;;  %v3153_v5 = vpop.permute.xlu1 %3152  ;;  %v3462_v28 = vsel %vm1182_vm1, %v3459_v39, %v9463_v17  ;;  %v4070_v23 = vmul.bf16 %v4022_v30, %v3509_v61  ;;  %v9529_v61 = vld [vmem:[#allocation2 + $0x38] sm:$0xff] }
 0x17f   : > { %v9472_v15 = vadd.f32 %v6925_v19, %v6924_v48  ;;  %v3161_v26 = vrot.slane %v3153_v5, %v8075_v41  ;;  %v3141_v49 = vpop.permute.xlu0 %3140  ;;  %4643 = vperm.xlu1 %7446, %v4312_v20   ;;  %4631 = vperm.xlu0 %7445, %v4311_v56   ;;  %v4207_v20 = vsel %vm603_vm0, %v4204_v40, %v4206_v9  ;;  %v4315_v40 = vld [vmem:[%s10254_s7 + $0x78] sm:$0xf] }
 0x180   : > { %v4023_v16 = vrot.slane %v9467_v47, 5  ;;  %v3149_v58 = vrot.slane %v3141_v49, %v8075_v41  ;;  %6066 = vmatprep.mubr.bf16.mxu0 %v3462_v28  ;;  %v4104_v33 = vrot.slane %v4070_v23, 3 }
 0x181   : > { %5962 = vmatmul.mubr.bf16.gmra.mrb[76].mxu1 %v2057_v29 }
 0x182   : > { %v4024_v51 = vsel %vm1182_vm1, %v4022_v30, %v4023_v16  ;;  %v9489_v53 = vcombine.low %v3149_v58, %v3161_v26  ;;  %v3621_v43 = vpop.permute.xlu1 %3620  ;;  %6163 = vmatprep.mubr.bf16.mxu1 %v4205_v31  ;;  %v4316_v30 = vld [vmem:[%s10254_s7 + $0x7c] sm:$0xf]  ;;  %v4208_v26 = vrot.slane %v9529_v61, 4 }
 0x183   : > { %v4071_v27 = vmul.bf16 %v4024_v51, %v9445_v45  ;;  %v3629_v21 = vrot.slane %v3621_v43, %v8075_v41  ;;  %v3609_v59 = vpop.permute.xlu0 %3608  ;;  %v6927_v39 = vpop.f32.mrb[8].mxu0  ;;  %3932 = vperm.xlu1 %7446, %v3557_v1   ;;  %3920 = vperm.xlu0 %7445, %v3556_v0   ;;  %v9539_v1 = vld [vmem:[%s8880_s28 + $0x4] sm:$0xff]  }
 0x184   : > { %v3381_v32 = vrot.slane %v9489_v53, 3  ;;  %v3617_v57 = vrot.slane %v3609_v59, %v8075_v41  ;;  %v6928_v60 = vpop.f32.mrb[9].mxu0  ;;  %427 = vst [vmem:[#allocation2 + $0x98] sm:$0xff] %v9539_v1  ;;  %v4209_v59 = vsel %vm603_vm0, %v4206_v9, %v4208_v26 }
 0x185   : > { %v4105_v42 = vrot.slane %v4071_v27, 3  ;;  %v9508_v36 = vadd.f32 %v6928_v60, %v6927_v39  ;;  %v6930_v38 = vpop.f32.mrb[10].mxu0  ;;  %6067 = vmatmul.mubr.bf16.gmra.mrb[80].mxu0 %v2802_v18 }
 0x186   : > { %v3382_v3 = vsel %vm1265_vm2, %v3379_v52, %v3381_v32  ;;  %v6791_v13 = vcombine.low %v3617_v57, %v3629_v21  ;;  %v6931_v46 = vpop.f32.mrb[11].mxu0  ;;  %v3177_v62 = vpop.permute.xlu1 %3176  ;;  %v2805_v21 = vrot.slane %v9156_v55, 4 }
 0x187   : > { %v9516_v37 = vadd.f32 %v6931_v46, %v6930_v38  ;;  %v3185_v44 = vrot.slane %v3177_v62, %v8075_v41  ;;  %v3165_v22 = vpop.permute.xlu0 %3164  ;;  %4667 = vperm.xlu1 %7446, %v4314_v63   ;;  %4655 = vperm.xlu0 %7445, %v4313_v11   ;;  %v4106_v14 = vsel %vm1265_vm2, %v4104_v33, %v4105_v42  ;;  %v9558_v38 = vld [vmem:[#allocation2 + $0x40] sm:$0xff] }
 0x188   : > { %v4025_v56 = vrot.slane %v6791_v13, 5  ;;  %v3173_v52 = vrot.slane %v3165_v22, %v8075_v41  ;;  %v3420_v48 = vmul.bf16 %v3382_v3, %v9089_v4  ;;  %v2804_v4 = vsel %vm603_vm0, %v2801_v12, %v2803_v10 }
 0x189   : > { %6164 = vmatmul.mubr.bf16.vlgmr.msra.gmra.mrb[80].mxu1 %v4106_v14  ;;  %v4210_v46 = vrot.slane %v9558_v38, 4 }
 0x18a   : > { %v4026_v47 = vsel %vm1182_vm1, %v4023_v16, %v4025_v56  ;;  %v6784_v19 = vcombine.low %v3173_v52, %v3185_v44  ;;  %v3645_v5 = vpop.permute.xlu1 %3644  ;;  %v3463_v28 = vrot.slane %v3420_v48, 5  ;;  %6171 = vmatprep.mubr.bf16.mxu1 %v4207_v20  ;;  %v2806_v44 = vsel %vm603_vm0, %v2803_v10, %v2805_v21 }
 0x18b   : > { %v3653_v49 = vrot.slane %v3645_v5, %v8075_v41  ;;  %v3633_v31 = vpop.permute.xlu0 %3632  ;;  %v6933_v58 = vpop.f32.mrb[12].mxu0  ;;  %4691 = vperm.xlu1 %7446, %v4316_v30   ;;  %4679 = vperm.xlu0 %7445, %v4315_v40   ;;  %v4072_v29 = vmul.bf16 %v9486_v24, %v4026_v47  ;;  %v4211_v10 = vsel %vm603_vm0, %v4208_v26, %v4210_v46 }
 0x18c   : > { %v3383_v16 = vrot.slane %v6784_v19, 3  ;;  %v3641_v0 = vrot.slane %v3633_v31, %v8075_v41  ;;  %v6934_v23 = vpop.f32.mrb[13].mxu0  ;;  %v3464_v51 = vsel %vm1182_vm1, %v9463_v17, %v3463_v28 }
 0x18d   : > { %v9544_v53 = vadd.f32 %v6934_v23, %v6933_v58  ;;  %6074 = vmatprep.mubr.bf16.mxu0 %v3464_v51  ;;  %v6936_v43 = vpop.f32.mrb[14].mxu0  ;;  %v4107_v18 = vrot.slane %v4072_v29, 3 }
 0x18e   : > { %v3384_v35 = vsel %vm1265_vm2, %v3381_v32, %v3383_v16  ;;  %v6792_v12 = vcombine.low %v3641_v0, %v3653_v49  ;;  %6075 = vmatmul.mubr.bf16.gmra.mrb[84].mxu0 %v2804_v4  ;;  %v6937_v25 = vpop.f32.mrb[15].mxu0  ;;  %v3201_v27 = vpop.permute.xlu1 %3200 }
 0x18f   : > { %v9552_v17 = vadd.f32 %v6937_v25, %v6936_v43  ;;  %v3209_v39 = vrot.slane %v3201_v27, %v8075_v41  ;;  %v3189_v57 = vpop.permute.xlu0 %3188  ;;  %v4108_v60 = vsel %vm1265_vm2, %v4105_v42, %v4107_v18  ;;  %v3421_v63 = vmul.bf16 %v3384_v35, %v9156_v55  ;;  %v9578_v43 = vld [vmem:[#allocation2 + $0x48] sm:$0xff] }
 0x190   : > { %v4027_v32 = vrot.slane %v6792_v12, 5  ;;  %v3197_v11 = vrot.slane %v3189_v57, %v8075_v41  ;;  %v4212_v25 = vrot.slane %v9578_v43, 4 }
 0x191   : > { %6172 = vmatmul.mubr.bf16.gmra.mrb[84].mxu1 %v4108_v60  ;;  %v3465_v33 = vrot.slane %v3421_v63, 5 }
 0x192   : > { %v4028_v3 = vsel %vm1182_vm1, %v4025_v56, %v4027_v32  ;;  %v6785_v13 = vcombine.low %v3197_v11, %v3209_v39  ;;  %v3669_v9 = vpop.permute.xlu1 %3668  ;;  %6179 = vmatprep.mubr.bf16.mxu1 %v4209_v59 }
 0x193   : > { %v3677_v62 = vrot.slane %v3669_v9, %v8075_v41  ;;  %v3657_v20 = vpop.permute.xlu0 %3656  ;;  %v6939_v42 = vpop.f32.mrb[16].mxu0  ;;  %v3466_v55 = vsel %vm1182_vm1, %v3463_v28, %v3465_v33  ;;  %v4073_v22 = vmul.bf16 %v9529_v61, %v4028_v3  ;;  %v2807_v28 = vrot.slane %v9223_v6, 4 }
 0x194   : > { %v3385_v14 = vrot.slane %v6785_v13, 3  ;;  %v3665_v52 = vrot.slane %v3657_v20, %v8075_v41  ;;  %v6940_v30 = vpop.f32.mrb[17].mxu0  ;;  %6082 = vmatprep.mubr.bf16.mxu0 %v3466_v55 }
 0x195   : > { %v9567_v56 = vadd.f32 %v6940_v30, %v6939_v42  ;;  %v6942_v40 = vpop.f32.mrb[18].mxu0  ;;  %v4109_v48 = vrot.slane %v4073_v22, 3  ;;  %v2808_v39 = vsel %vm603_vm0, %v2805_v21, %v2807_v28  ;;  %v4213_v21 = vsel %vm603_vm0, %v4210_v46, %v4212_v25 }
 0x196   : > { %v3386_v47 = vsel %vm1265_vm2, %v3383_v16, %v3385_v14  ;;  %v6793_v19 = vcombine.low %v3665_v52, %v3677_v62  ;;  %6083 = vmatmul.mubr.bf16.gmra.mrb[88].mxu0 %v2806_v44  ;;  %v6943_v5 = vpop.f32.mrb[19].mxu0  ;;  %v3225_v49 = vpop.permute.xlu1 %3224 }
 0x197   : > { %v9572_v31 = vadd.f32 %v6943_v5, %v6942_v40  ;;  %v3233_v58 = vrot.slane %v3225_v49, %v8075_v41  ;;  %v3213_v4 = vpop.permute.xlu0 %3212  ;;  %v4110_v29 = vsel %vm1265_vm2, %v4107_v18, %v4109_v48  ;;  %v3422_v0 = vmul.bf16 %v3386_v47, %v9223_v6 }
 0x198   : > { %v4029_v23 = vrot.slane %v6793_v19, 5  ;;  %v3221_v16 = vrot.slane %v3213_v4, %v8075_v41 }
 0x199   : > { %6180 = vmatmul.mubr.bf16.gmra.mrb[88].mxu1 %v4110_v29  ;;  %v3467_v51 = vrot.slane %v3422_v0, 5 }
 0x19a   : > { %v4030_v35 = vsel %vm1182_vm1, %v4027_v32, %v4029_v23  ;;  %v6786_v12 = vcombine.low %v3221_v16, %v3233_v58  ;;  %v3693_v26 = vpop.permute.xlu1 %3692  ;;  %6187 = vmatprep.mubr.bf16.mxu1 %v4211_v10  ;;  %v9604_v10 = vld [vmem:[#allocation2 + $0x50] sm:$0xff] }
 0x19b   : > { %v3701_v27 = vrot.slane %v3693_v26, %v8075_v41  ;;  %v3681_v59 = vpop.permute.xlu0 %3680  ;;  %v6945_v18 = vpop.f32.mrb[20].mxu0  ;;  %v3468_v6 = vsel %vm1182_vm1, %v3465_v33, %v3467_v51  ;;  %v4074_v57 = vmul.bf16 %v9558_v38, %v4030_v35  ;;  %v2809_v33 = vrot.slane %v9268_v54, 4 }
 0x19c   : > { %v3387_v60 = vrot.slane %v6786_v12, 3  ;;  %v3689_v63 = vrot.slane %v3681_v59, %v8075_v41  ;;  %v6946_v11 = vpop.f32.mrb[21].mxu0  ;;  %6090 = vmatprep.mubr.bf16.mxu0 %v3468_v6  ;;  %v4214_v0 = vrot.slane %v9604_v10, 4 }
 0x19d   : > { %v9587_v32 = vadd.f32 %v6946_v11, %v6945_v18  ;;  %v6948_v3 = vpop.f32.mrb[22].mxu0  ;;  %v4111_v13 = vrot.slane %v4074_v57, 3  ;;  %v2810_v46 = vsel %vm603_vm0, %v2807_v28, %v2809_v33 }
 0x19e   : > { %v3388_v9 = vsel %vm1265_vm2, %v3385_v14, %v3387_v60  ;;  %v6794_v62 = vcombine.low %v3689_v63, %v3701_v27  ;;  %6091 = vmatmul.mubr.bf16.gmra.mrb[92].mxu0 %v2808_v39  ;;  %v6949_v20 = vpop.f32.mrb[23].mxu0  ;;  %v3249_v42 = vpop.permute.xlu1 %3248  ;;  %v2811_v63 = vrot.slane %v9310_v50, 4 }
 0x19f   : > { %v9594_v55 = vadd.f32 %v6949_v20, %v6948_v3  ;;  %v3257_v44 = vrot.slane %v3249_v42, %v8075_v41  ;;  %v3237_v22 = vpop.permute.xlu0 %3236  ;;  %v4112_v52 = vsel %vm1265_vm2, %v4109_v48, %v4111_v13  ;;  %v3423_v30 = vmul.bf16 %v3388_v9, %v9268_v54 }
 0x1a0   : > { %v4031_v14 = vrot.slane %v6794_v62, 5  ;;  %v3245_v40 = vrot.slane %v3237_v22, %v8075_v41 }
 0x1a1   : > { %6188 = vmatmul.mubr.bf16.gmra.mrb[92].mxu1 %v4112_v52  ;;  %v3469_v47 = vrot.slane %v3423_v30, 5 }
 0x1a2   : > { %v4032_v19 = vsel %vm1182_vm1, %v4029_v23, %v4031_v14  ;;  %v9601_v5 = vcombine.low %v3245_v40, %v3257_v44  ;;  %v3717_v49 = vpop.permute.xlu1 %3716  ;;  %6195 = vmatprep.mubr.bf16.mxu1 %v4213_v21  ;;  %v9632_v40 = vld [vmem:[#allocation2 + $0x58] sm:$0xff] }
 0x1a3   : > { %v3725_v58 = vrot.slane %v3717_v49, %v8075_v41  ;;  %v3705_v48 = vpop.permute.xlu0 %3704  ;;  %v6951_v4 = vpop.f32.mrb[24].mxu0  ;;  %v3470_v54 = vsel %vm1182_vm1, %v3467_v51, %v3469_v47  ;;  %v4075_v29 = vmul.bf16 %v9578_v43, %v4032_v19  ;;  %v4216_v19 = vrot.slane %v9632_v40, 4 }
 0x1a4   : > { %v3389_v23 = vrot.slane %v9601_v5, 3  ;;  %v3713_v16 = vrot.slane %v3705_v48, %v8075_v41  ;;  %v6987_v35 = vpop.f32.mrb[0].mxu1  ;;  %v6952_v12 = vpop.f32.mrb[25].mxu0  ;;  %6098 = vmatprep.mubr.bf16.mxu0 %v3470_v54 }
 0x1a5   : > { %v9612_v28 = vadd.f32 %v6952_v12, %v6951_v4  ;;  %v6988_v26 = vpop.f32.mrb[1].mxu1  ;;  %v6954_v27 = vpop.f32.mrb[26].mxu0  ;;  %v4113_v59 = vrot.slane %v4075_v29, 3  ;;  %v2865_v4 = vld [vmem:[#allocation2 + $0x90] sm:$0x1f] }
 0x1a6   : > { %v3390_v18 = vsel %vm1265_vm2, %v3387_v60, %v3389_v23  ;;  %v9615_v6 = vcombine.low %v3713_v16, %v3725_v58  ;;  %v9617_v51 = vadd.f32 %v6988_v26, %v6987_v35  ;;  %v6990_v39 = vpop.f32.mrb[2].mxu1  ;;  %6099 = vmatmul.mubr.bf16.gmra.mrb[96].mxu0 %v2810_v46  ;;  %v6955_v57 = vpop.f32.mrb[27].mxu0  ;;  %v4215_v60 = vsel %vm603_vm0, %v4212_v25, %v4214_v0 }
 0x1a7   : > { %v9620_v11 = vadd.f32 %v6955_v57, %v6954_v27  ;;  %v6991_v3 = vpop.f32.mrb[3].mxu1  ;;  %v3273_v9 = vpop.permute.xlu1 %3272  ;;  %v4114_v62 = vsel %vm1265_vm2, %v4111_v13, %v4113_v59  ;;  %v3424_v20 = vmul.bf16 %v3390_v18, %v9310_v50  ;;  %v2812_v58 = vsel %vm603_vm0, %v2809_v33, %v2811_v63 }
 0x1a8   : > { %v4033_v42 = vrot.slane %v9615_v6, 5  ;;  %v9628_v21 = vadd.f32 %v6991_v3, %v6990_v39  ;;  %v3281_v44 = vrot.slane %v3273_v9, %v8075_v41  ;;  %v3261_v22 = vpop.permute.xlu0 %3260  ;;  %v2813_v39 = vrot.slane %v9370_v2, 4 }
 0x1a9   : > { %v3269_v52 = vrot.slane %v3261_v22, %v8075_v41  ;;  %6196 = vmatmul.mubr.bf16.gmra.mrb[96].mxu1 %v4114_v62  ;;  %v3471_v30 = vrot.slane %v3424_v20, 5  ;;  %v4217_v57 = vsel %vm603_vm0, %v4214_v0, %v4216_v19 }
 0x1aa   : > { %v4034_v13 = vsel %vm1182_vm1, %v4031_v14, %v4033_v42  ;;  %6203 = vmatprep.mubr.bf16.mxu1 %v4215_v60 }
 0x1ab   : > { %v6788_v5 = vcombine.low %v3269_v52, %v3281_v44  ;;  %v3741_v25 = vpop.permute.xlu1 %3740  ;;  %v6957_v49 = vpop.f32.mrb[28].mxu0  ;;  %v3472_v46 = vsel %vm1182_vm1, %v3469_v47, %v3471_v30  ;;  %v4076_v48 = vmul.bf16 %v9604_v10, %v4034_v13 }
 0x1ac   : > { %v3749_v54 = vrot.slane %v3741_v25, %v8075_v41  ;;  %v3729_v29 = vpop.permute.xlu0 %3728  ;;  %v6993_v16 = vpop.f32.mrb[4].mxu1  ;;  %6106 = vmatprep.mubr.bf16.mxu0 %v3472_v46 }
 0x1ad   : > { %v3391_v14 = vrot.slane %v6788_v5, 3  ;;  %v3737_v35 = vrot.slane %v3729_v29, %v8075_v41  ;;  %v6958_v12 = vpop.f32.mrb[29].mxu0  ;;  %v6994_v26 = vpop.f32.mrb[5].mxu1  ;;  %v9643_v27 = vrot.slane %v4076_v48, 3  ;;  %v9663_v48 = vld [vmem:[#allocation2 + $0x60] sm:$0xff] }
 0x1ae   : > { %v9645_v47 = vadd.f32 %v6958_v12, %v6957_v49  ;;  %v9647_v18 = vadd.f32 %v6994_v26, %v6993_v16  ;;  %v6960_v33 = vpop.f32.mrb[30].mxu0  ;;  %v6996_v6 = vpop.f32.mrb[6].mxu1  ;;  %6107 = vmatmul.mubr.bf16.gmra.mrb[100].mxu0 %v2812_v58  ;;  %v2814_v16 = vsel %vm603_vm0, %v2811_v63, %v2813_v39 }
 0x1af   : > { %v3392_v3 = vsel %vm1265_vm2, %v3389_v23, %v3391_v14  ;;  %v3426_v9 = vmul.bf16 %v3391_v14, %v2865_v4  ;;  %v6796_v62 = vcombine.low %v3737_v35, %v3749_v54  ;;  %v6961_v20 = vpop.f32.mrb[31].mxu0  ;;  %v6997_v60 = vpop.f32.mrb[7].mxu1  ;;  %v4116_v44 = vsel %vm1265_vm2, %v4113_v59, %v9643_v27 }
 0x1b0   : > { %v9656_v22 = vadd.f32 %v6961_v20, %v6960_v33  ;;  %v9658_v52 = vadd.f32 %v6997_v60, %v6996_v6  ;;  %v3765_v13 = vpop.permute.xlu1 %3764  ;;  %v3753_v5 = vpop.permute.xlu0 %3752  ;;  %v3425_v25 = vmul.bf16 %v9370_v2, %v3392_v3  ;;  %v4218_v14 = vrot.slane %v9663_v48, 4  ;;  %v2766_v6 = vld [vmem:[#allocation2 + $0x90] sm:$0xf] }
 0x1b1   : > { %v4035_v49 = vrot.slane %v6796_v62, 5  ;;  %v3773_v0 = vrot.slane %v3765_v13, %v8075_v41  ;;  %v3761_v23 = vrot.slane %v3753_v5, %v8075_v41  ;;  %6204 = vmatmul.mubr.bf16.gmra.mrb[100].mxu1 %v4116_v44  ;;  %v3475_v46 = vrot.slane %v3426_v9, 5 }
 0x1b2   : > { %v3473_v58 = vrot.slane %v3425_v25, 5  ;;  %6211 = vmatprep.mubr.bf16.mxu1 %v4217_v57 }
 0x1b3   : > { %v4036_v59 = vsel %vm1182_vm1, %v4033_v42, %v4035_v49  ;;  %v9666_v4 = vcombine.low %v3761_v23, %v3773_v0  ;;  %v6963_v54 = vpop.f32.mrb[32].mxu0  ;;  %v6999_v29 = vpop.f32.mrb[8].mxu1  ;;  %v2815_v23 = vrot.slane %v2766_v6, 4 }
 0x1b4   : > { %v4332_v35 = vpop.permute.xlu1 %4331  ;;  %v4320_v12 = vpop.permute.xlu0 %4319  ;;  %v3474_v26 = vsel %vm1182_vm1, %v3471_v30, %v3473_v58  ;;  %v4077_v33 = vmul.bf16 %v9632_v40, %v4036_v59  ;;  %v3476_v30 = vsel %vm1182_vm1, %v3473_v58, %v3475_v46  ;;  %v4219_v59 = vsel %vm603_vm0, %v4216_v19, %v4218_v14  ;;  %v4268_v19 = vld [vmem:[#allocation2 + $0x20] sm:$0xe0] }
 0x1b5   : > { %v4037_v42 = vrot.slane %v9666_v4, 5  ;;  %v4340_v57 = vrot.slane %v4332_v35, %v8075_v41  ;;  %v4328_v3 = vrot.slane %v4320_v12, %v8075_v41  ;;  %v6964_v9 = vpop.f32.mrb[33].mxu0  ;;  %v7000_v62 = vpop.f32.mrb[9].mxu1  ;;  %6114 = vmatprep.mubr.bf16.mxu0 %v3474_v26 }
 0x1b6   : > { %v9679_v50 = vadd.f32 %v6964_v9, %v6963_v54  ;;  %v9681_v63 = vadd.f32 %v7000_v62, %v6999_v29  ;;  %v6966_v20 = vpop.f32.mrb[34].mxu0  ;;  %v7002_v60 = vpop.f32.mrb[10].mxu1  ;;  %6115 = vmatmul.mubr.bf16.gmra.mrb[104].mxu0 %v2814_v16  ;;  %v4117_v44 = vrot.slane %v4077_v33, 3  ;;  %v9701_v33 = vld [vmem:[#allocation2 + $0x68] sm:$0xff]  ;;  %v2816_v9 = vsel %vm603_vm0, %v2813_v39, %v2815_v23 }
 0x1b7   : > { %v4038_v13 = vsel %vm1182_vm1, %v4035_v49, %v4037_v42  ;;  %v6805_v5 = vcombine.low %v4328_v3, %v4340_v57  ;;  %v6967_v25 = vpop.f32.mrb[35].mxu0  ;;  %v7003_v0 = vpop.f32.mrb[11].mxu1  ;;  %6122 = vmatprep.mubr.bf16.mxu0 %v3476_v30 }
 0x1b8   : > { %v9692_v54 = vadd.f32 %v6967_v25, %v6966_v20  ;;  %v9694_v29 = vadd.f32 %v7003_v0, %v7002_v60  ;;  %v4356_v46 = vpop.permute.xlu1 %4355  ;;  %v4344_v58 = vpop.permute.xlu0 %4343  ;;  %v4118_v49 = vsel %vm1265_vm2, %v9643_v27, %v4117_v44  ;;  %v4078_v16 = vmul.bf16 %v9663_v48, %v4038_v13 }
 0x1b9   : > { %v4364_v35 = vrot.slane %v4356_v46, %v8075_v41  ;;  %v4352_v12 = vrot.slane %v4344_v58, %v8075_v41  ;;  %6212 = vmatmul.mubr.bf16.gmra.mrb[104].mxu1 %v4118_v49  ;;  %v4781_v26 = vrot.slane %v6805_v5, 3  ;;  %v4220_v27 = vrot.slane %v9701_v33, 4 }
 0x1ba   : > { %6219 = vmatprep.mubr.bf16.mxu1 %v4219_v59  ;;  %v4119_v60 = vrot.slane %v4078_v16, 3 }
 0x1bb   : > { %v6806_v6 = vcombine.low %v4352_v12, %v4364_v35  ;;  %v6969_v57 = vpop.f32.mrb[36].mxu0  ;;  %v7005_v3 = vpop.f32.mrb[12].mxu1  ;;  %v4829_v59 = vmul.bf16 %v4781_v26, %v4268_v19  ;;  %v4221_v12 = vsel %vm603_vm0, %v4218_v14, %v4220_v27 }
 0x1bc   : > { %v3789_v62 = vpop.permute.xlu1 %3788  ;;  %v3777_v20 = vpop.permute.xlu0 %3776 }
 0x1bd   : > { %v4782_v30 = vrot.slane %v6806_v6, 3  ;;  %v3797_v13 = vrot.slane %v3789_v62, %v8075_v41  ;;  %v3785_v5 = vrot.slane %v3777_v20, %v8075_v41  ;;  %v6970_v25 = vpop.f32.mrb[37].mxu0  ;;  %v7006_v0 = vpop.f32.mrb[13].mxu1  ;;  %v4120_v62 = vsel %vm1265_vm2, %v4117_v44, %v4119_v60  ;;  %v9725_v20 = vld [vmem:[#allocation2 + $0x70] sm:$0xff] }
 0x1be   : > { %v9709_v46 = vadd.f32 %v6970_v25, %v6969_v57  ;;  %v9711_v58 = vadd.f32 %v7006_v0, %v7005_v3  ;;  %v6972_v2 = vpop.f32.mrb[38].mxu0  ;;  %v7008_v49 = vpop.f32.mrb[14].mxu1  ;;  %6123 = vmatmul.mubr.bf16.gmra.mrb[108].mxu0 %v2816_v9  ;;  %v4863_v14 = vrot.slane %v4829_v59, 5 }
 0x1bf   : > { %v4783_v39 = vsel %vm1265_vm2, %v4781_v26, %v4782_v30  ;;  %v9714_v23 = vcombine.low %v3785_v5, %v3797_v13  ;;  %v6973_v16 = vpop.f32.mrb[39].mxu0  ;;  %v7009_v35 = vpop.f32.mrb[15].mxu1 }
 0x1c0   : > { %10257 = vst [vmem:[#allocation4_spill] sm:$0xff] %v9711_v58  ;;  %v9719_v6 = vadd.f32 %v6973_v16, %v6972_v2  ;;  %v9721_v19 = vadd.f32 %v7009_v35, %v7008_v49  ;;  %v4380_v57 = vpop.permute.xlu1 %4379  ;;  %v4368_v3 = vpop.permute.xlu0 %4367  ;;  %v4830_v9 = vmul.bf16 %v4783_v39, %v9445_v45  ;;  %v4222_v45 = vrot.slane %v9725_v20, 4 }
 0x1c1   : > { %v4039_v26 = vrot.slane %v9714_v23, 5  ;;  %v4388_v13 = vrot.slane %v4380_v57, %v8075_v41  ;;  %v4376_v5 = vrot.slane %v4368_v3, %v8075_v41  ;;  %6220 = vmatmul.mubr.bf16.gmra.mrb[108].mxu1 %v4120_v62 }
 0x1c2   : > { %10258 = vst [vmem:[#allocation5_spill] sm:$0xff] %v9721_v19  ;;  %v4864_v25 = vrot.slane %v4830_v9, 5  ;;  %6227 = vmatprep.mubr.bf16.mxu1 %v4221_v12 }
 0x1c3   : > { %v4040_v0 = vsel %vm1182_vm1, %v4037_v42, %v4039_v26  ;;  %v6807_v2 = vcombine.low %v4376_v5, %v4388_v13  ;;  %v6975_v44 = vpop.f32.mrb[40].mxu0  ;;  %v4223_v5 = vsel %vm603_vm0, %v4220_v27, %v4222_v45 }
 0x1c4   : > { %v4404_v49 = vpop.permute.xlu1 %4403  ;;  %v4392_v39 = vpop.permute.xlu0 %4391  ;;  %v4865_v23 = vsel %vm1182_vm1, %v4863_v14, %v4864_v25  ;;  %v4079_v16 = vmul.bf16 %v9701_v33, %v4040_v0 }
 0x1c5   : > { %v4784_v35 = vrot.slane %v6807_v2, 3  ;;  %v4412_v57 = vrot.slane %v4404_v49, %v8075_v41  ;;  %v4400_v59 = vrot.slane %v4392_v39, %v8075_v41  ;;  %v6976_v12 = vpop.f32.mrb[41].mxu0  ;;  %7387 = vmatprep.mubr.bf16.mxu0 %v4865_v23 }
 0x1c6   : > { %v9738_v4 = vadd.f32 %v6976_v12, %v6975_v44  ;;  %v6978_v42 = vpop.f32.mrb[42].mxu0  ;;  %v4121_v3 = vrot.slane %v4079_v16, 3 }
 0x1c7   : > { %v4785_v62 = vsel %vm1265_vm2, %v4782_v30, %v4784_v35  ;;  %v6808_v9 = vcombine.low %v4400_v59, %v4412_v57  ;;  %v6979_v13 = vpop.f32.mrb[43].mxu0 }
 0x1c8   : > { %v4831_v14 = vmul.bf16 %v4785_v62, %v9486_v24  ;;  %v9743_v0 = vadd.f32 %v6979_v13, %v6978_v42  ;;  %v3813_v2 = vpop.permute.xlu1 %3812  ;;  %v3801_v49 = vpop.permute.xlu0 %3800  ;;  %v4122_v39 = vsel %vm1265_vm2, %v4119_v60, %v4121_v3  ;;  %v9751_v62 = vld [vmem:[#allocation2 + $0x78] sm:$0xff] }
 0x1c9   : > { %v4786_v19 = vrot.slane %v6808_v9, 3  ;;  %v3821_v44 = vrot.slane %v3813_v2, %v8075_v41  ;;  %v3809_v23 = vrot.slane %v3801_v49, %v8075_v41  ;;  %6228 = vmatmul.mubr.bf16.gmra.mrb[112].mxu1 %v4122_v39 }
 0x1ca   : > { %v4866_v16 = vrot.slane %v4831_v14, 5  ;;  %6235 = vmatprep.mubr.bf16.mxu1 %v4223_v5 }
 0x1cb   : > { %v4787_v30 = vsel %vm1265_vm2, %v4784_v35, %v4786_v19  ;;  %v6799_v57 = vcombine.low %v3809_v23, %v3821_v44  ;;  %v6981_v27 = vpop.f32.mrb[44].mxu0 }
 0x1cc   : > { %v4428_v59 = vpop.permute.xlu1 %4427  ;;  %v4416_v24 = vpop.permute.xlu0 %4415  ;;  %v4867_v12 = vsel %vm1182_vm1, %v4864_v25, %v4866_v16  ;;  %v4832_v42 = vmul.bf16 %v4787_v30, %v9529_v61  ;;  %v4224_v25 = vrot.slane %v9751_v62, 4 }
 0x1cd   : > { %v4041_v60 = vrot.slane %v6799_v57, 5  ;;  %v4436_v9 = vrot.slane %v4428_v59, %v8075_v41  ;;  %v4424_v13 = vrot.slane %v4416_v24, %v8075_v41  ;;  %v6982_v2 = vpop.f32.mrb[45].mxu0  ;;  %7388 = vmatmul.mubr.bf16.vlgmr.msra.gmra.mrb[112].mxu0 %v4867_v12 }
 0x1ce   : > { %v9755_v5 = vadd.f32 %v6982_v2, %v6981_v27  ;;  %v6984_v35 = vpop.f32.mrb[46].mxu0  ;;  %v4868_v14 = vrot.slane %v4832_v42, 5 }
 0x1cf   : > { %v4042_v49 = vsel %vm1182_vm1, %v4039_v26, %v4041_v60  ;;  %v6809_v39 = vcombine.low %v4424_v13, %v4436_v9  ;;  %v6985_v44 = vpop.f32.mrb[47].mxu0  ;;  %v4225_v13 = vsel %vm603_vm0, %v4222_v45, %v4224_v25 }
 0x1d0   : > { %v9759_v61 = vadd.f32 %v6985_v44, %v6984_v35  ;;  %v4452_v23 = vpop.permute.xlu1 %4451  ;;  %v4440_v30 = vpop.permute.xlu0 %4439  ;;  %v4869_v57 = vsel %vm1182_vm1, %v4866_v16, %v4868_v14  ;;  %v4080_v59 = vmul.bf16 %v9725_v20, %v4042_v49 }
 0x1d1   : > { %v4788_v24 = vrot.slane %v6809_v39, 3  ;;  %v4460_v27 = vrot.slane %v4452_v23, %v8075_v41  ;;  %v4448_v12 = vrot.slane %v4440_v30, %v8075_v41  ;;  %7391 = vmatprep.mubr.bf16.mxu0 %v4869_v57 }
 0x1d2   : > { %v4123_v42 = vrot.slane %v4080_v59, 3 }
 0x1d3   : > { %v4789_v26 = vsel %vm1265_vm2, %v4786_v19, %v4788_v24  ;;  %v6810_v9 = vcombine.low %v4448_v12, %v4460_v27 }
 0x1d4   : > { %v3837_v2 = vpop.permute.xlu1 %3836  ;;  %v3825_v35 = vpop.permute.xlu0 %3824  ;;  %v4124_v44 = vsel %vm1265_vm2, %v4121_v3, %v4123_v42  ;;  %v4833_v16 = vmul.bf16 %v4789_v26, %v9558_v38  ;;  %v9774_v3 = vld [vmem:[#allocation2 + $0x80] sm:$0xff] }
 0x1d5   : > { %v4790_v58 = vrot.slane %v6810_v9, 3  ;;  %v3845_v49 = vrot.slane %v3837_v2, %v8075_v41  ;;  %v3833_v39 = vrot.slane %v3825_v35, %v8075_v41  ;;  %6236 = vmatmul.mubr.bf16.gmra.mrb[116].mxu1 %v4124_v44 }
 0x1d6   : > { %v4870_v23 = vrot.slane %v4833_v16, 5  ;;  %6243 = vmatprep.mubr.bf16.mxu1 %v4225_v13 }
 0x1d7   : > { %v4791_v30 = vsel %vm1265_vm2, %v4788_v24, %v4790_v58  ;;  %v6800_v19 = vcombine.low %v3833_v39, %v3845_v49  ;;  %v4226_v24 = vrot.slane %v9774_v3, 4 }
 0x1d8   : > { %v4476_v57 = vpop.permute.xlu1 %4475  ;;  %v4464_v59 = vpop.permute.xlu0 %4463  ;;  %v4871_v45 = vsel %vm1182_vm1, %v4868_v14, %v4870_v23  ;;  %v4834_v27 = vmul.bf16 %v4791_v30, %v9578_v43 }
 0x1d9   : > { %v4043_v38 = vrot.slane %v6800_v19, 5  ;;  %v4484_v12 = vrot.slane %v4476_v57, %v8075_v41  ;;  %v4472_v26 = vrot.slane %v4464_v59, %v8075_v41  ;;  %7392 = vmatmul.mubr.bf16.gmra.mrb[116].mxu0 %v4871_v45 }
 0x1da   : > { %v4872_v9 = vrot.slane %v4834_v27, 5 }
 0x1db   : > { %v4044_v13 = vsel %vm1182_vm1, %v4041_v60, %v4043_v38  ;;  %v6811_v2 = vcombine.low %v4472_v26, %v4484_v12 }
 0x1dc   : > { %v4500_v35 = vpop.permute.xlu1 %4499  ;;  %v4488_v44 = vpop.permute.xlu0 %4487  ;;  %v4873_v14 = vsel %vm1182_vm1, %v4870_v23, %v4872_v9  ;;  %v4081_v43 = vmul.bf16 %v9751_v62, %v4044_v13  ;;  %v4227_v23 = vsel %vm603_vm0, %v4224_v25, %v4226_v24 }
 0x1dd   : > { %v4792_v16 = vrot.slane %v6811_v2, 3  ;;  %v4508_v49 = vrot.slane %v4500_v35, %v8075_v41  ;;  %v4496_v39 = vrot.slane %v4488_v44, %v8075_v41  ;;  %v7027_v30 = vpop.f32.mrb[16].mxu1  ;;  %7395 = vmatprep.mubr.bf16.mxu0 %v4873_v14 }
 0x1de   : > { %v7028_v19 = vpop.f32.mrb[17].mxu1  ;;  %v4125_v57 = vrot.slane %v4081_v43, 3 }
 0x1df   : > { %v4793_v60 = vsel %vm1265_vm2, %v4790_v58, %v4792_v16  ;;  %v6812_v59 = vcombine.low %v4496_v39, %v4508_v49  ;;  %v7029_v45 = vadd.f32 %v7028_v19, %v7027_v30  ;;  %v7030_v27 = vpop.f32.mrb[18].mxu1 }
 0x1e0   : > { %v3861_v12 = vpop.permute.xlu1 %3860  ;;  %v3849_v26 = vpop.permute.xlu0 %3848  ;;  %v4126_v13 = vsel %vm1265_vm2, %v4123_v42, %v4125_v57  ;;  %v4835_v2 = vmul.bf16 %v4793_v60, %v9604_v10 }
 0x1e1   : > { %v4794_v35 = vrot.slane %v6812_v59, 3  ;;  %v9791_v44 = vadd.f32 %v7029_v45, %v9423_v7  ;;  %v3869_v14 = vrot.slane %v3861_v12, %v8075_v41  ;;  %v3857_v58 = vrot.slane %v3849_v26, %v8075_v41  ;;  %v7031_v43 = vpop.f32.mrb[19].mxu1  ;;  %6244 = vmatmul.mubr.bf16.gmra.mrb[120].mxu1 %v4126_v13  ;;  %v9803_v59 = vld [vmem:[#allocation2 + $0x88] sm:$0xff] }
 0x1e2   : > { %v7032_v49 = vadd.f32 %v7031_v43, %v7030_v27  ;;  %v4874_v39 = vrot.slane %v4835_v2, 5  ;;  %6251 = vmatprep.mubr.bf16.mxu1 %v4227_v23 }
 0x1e3   : > { %v4795_v25 = vsel %vm1265_vm2, %v4792_v16, %v4794_v35  ;;  %v9796_v30 = vcombine.low %v3857_v58, %v3869_v14 }
 0x1e4   : > { %v9799_v42 = vadd.f32 %v7032_v49, %v9430_v8  ;;  %v4524_v10 = vpop.permute.xlu1 %4523  ;;  %v4512_v19 = vpop.permute.xlu0 %4511  ;;  %v4875_v7 = vsel %vm1182_vm1, %v4872_v9, %v4874_v39  ;;  %v4836_v60 = vmul.bf16 %v4795_v25, %v9632_v40  ;;  %v4228_v9 = vrot.slane %v9803_v59, 4 }
 0x1e5   : > { %v4045_v45 = vrot.slane %v9796_v30, 5  ;;  %v4532_v27 = vrot.slane %v4524_v10, %v8075_v41  ;;  %v4520_v23 = vrot.slane %v4512_v19, %v8075_v41  ;;  %v7033_v16 = vpop.f32.mrb[20].mxu1  ;;  %7396 = vmatmul.mubr.bf16.gmra.mrb[120].mxu0 %v4875_v7 }
 0x1e6   : > { %v7034_v12 = vpop.f32.mrb[21].mxu1  ;;  %v4876_v26 = vrot.slane %v4836_v60, 5 }
 0x1e7   : > { %v4046_v8 = vsel %vm1182_vm1, %v4043_v38, %v4045_v45  ;;  %v6813_v13 = vcombine.low %v4520_v23, %v4532_v27  ;;  %v7035_v2 = vadd.f32 %v7034_v12, %v7033_v16  ;;  %v7036_v14 = vpop.f32.mrb[22].mxu1 }
 0x1e8   : > { %v4548_v40 = vpop.permute.xlu1 %4547  ;;  %v4536_v58 = vpop.permute.xlu0 %4535  ;;  %v4877_v43 = vsel %vm1182_vm1, %v4874_v39, %v4876_v26  ;;  %v4082_v49 = vmul.bf16 %v9774_v3, %v4046_v8  ;;  %v4229_v39 = vsel %vm603_vm0, %v4226_v24, %v4228_v9 }
 0x1e9   : > { %v4796_v25 = vrot.slane %v6813_v13, 3  ;;  %v9813_v30 = vadd.f32 %v7035_v2, %v9465_v34  ;;  %v4556_v10 = vrot.slane %v4548_v40, %v8075_v41  ;;  %v4544_v19 = vrot.slane %v4536_v58, %v8075_v41  ;;  %v7037_v38 = vpop.f32.mrb[23].mxu1  ;;  %7399 = vmatprep.mubr.bf16.mxu0 %v4877_v43 }
 0x1ea   : > { %v7038_v7 = vadd.f32 %v7037_v38, %v7036_v14  ;;  %v4127_v60 = vrot.slane %v4082_v49, 3 }
 0x1eb   : > { %v4797_v27 = vsel %vm1265_vm2, %v4794_v35, %v4796_v25  ;;  %v6814_v23 = vcombine.low %v4544_v19, %v4556_v10 }
 0x1ec   : > { %v9824_v34 = vadd.f32 %v7038_v7, %v9472_v15  ;;  %v3885_v16 = vpop.permute.xlu1 %3884  ;;  %v3873_v12 = vpop.permute.xlu0 %3872  ;;  %v4128_v8 = vsel %vm1265_vm2, %v4125_v57, %v4127_v60  ;;  %v4837_v13 = vmul.bf16 %v4797_v27, %v9663_v48  ;;  %v9835_v7 = vld [vmem:[#allocation2 + $0x90] sm:$0xff] }
 0x1ed   : > { %v4798_v2 = vrot.slane %v6814_v23, 3  ;;  %v3893_v14 = vrot.slane %v3885_v16, %v8075_v41  ;;  %v3881_v35 = vrot.slane %v3873_v12, %v8075_v41  ;;  %v7039_v40 = vpop.f32.mrb[24].mxu1  ;;  %6252 = vmatmul.mubr.bf16.gmra.mrb[124].mxu1 %v4128_v8 }
 0x1ee   : > { %v7040_v58 = vpop.f32.mrb[25].mxu1  ;;  %v4878_v43 = vrot.slane %v4837_v13, 5  ;;  %6259 = vmatprep.mubr.bf16.mxu1 %v4229_v39 }
 0x1ef   : > { %v4799_v24 = vsel %vm1265_vm2, %v4796_v25, %v4798_v2  ;;  %v9831_v15 = vcombine.low %v3881_v35, %v3893_v14  ;;  %v7041_v49 = vadd.f32 %v7040_v58, %v7039_v40  ;;  %v7042_v10 = vpop.f32.mrb[26].mxu1 }
 0x1f0   : > { %v4572_v19 = vpop.permute.xlu1 %4571  ;;  %v4560_v57 = vpop.permute.xlu0 %4559  ;;  %v4879_v48 = vsel %vm1182_vm1, %v4876_v26, %v4878_v43  ;;  %v4838_v38 = vmul.bf16 %v4799_v24, %v9701_v33  ;;  %v4230_v33 = vrot.slane %v9835_v7, 4 }
 0x1f1   : > { %v4047_v27 = vrot.slane %v9831_v15, 5  ;;  %v9839_v23 = vadd.f32 %v7041_v49, %v9508_v36  ;;  %v4580_v39 = vrot.slane %v4572_v19, %v8075_v41  ;;  %v4568_v25 = vrot.slane %v4560_v57, %v8075_v41  ;;  %v7043_v16 = vpop.f32.mrb[27].mxu1  ;;  %7400 = vmatmul.mubr.bf16.gmra.mrb[124].mxu0 %v4879_v48 }
 0x1f2   : > { %v7044_v12 = vadd.f32 %v7043_v16, %v7042_v10  ;;  %v4880_v8 = vrot.slane %v4838_v38, 5 }
 0x1f3   : > { %v4048_v13 = vsel %vm1182_vm1, %v4045_v45, %v4047_v27  ;;  %v6815_v26 = vcombine.low %v4568_v25, %v4580_v39 }
 0x1f4   : > { %v9846_v14 = vadd.f32 %v7044_v12, %v9516_v37  ;;  %v4596_v35 = vpop.permute.xlu1 %4595  ;;  %v4584_v40 = vpop.permute.xlu0 %4583  ;;  %v4881_v36 = vsel %vm1182_vm1, %v4878_v43, %v4880_v8  ;;  %v4083_v58 = vmul.bf16 %v9803_v59, %v4048_v13  ;;  %v4231_v43 = vsel %vm603_vm0, %v4228_v9, %v4230_v33 }
 0x1f5   : > { %v4800_v24 = vrot.slane %v6815_v26, 3  ;;  %v4604_v15 = vrot.slane %v4596_v35, %v8075_v41  ;;  %v4592_v49 = vrot.slane %v4584_v40, %v8075_v41  ;;  %v7045_v10 = vpop.f32.mrb[28].mxu1  ;;  %7403 = vmatprep.mubr.bf16.mxu0 %v4881_v36 }
 0x1f6   : > { %v7046_v45 = vpop.f32.mrb[29].mxu1  ;;  %v4129_v19 = vrot.slane %v4083_v58, 3 }
 0x1f7   : > { %v4801_v57 = vsel %vm1265_vm2, %v4798_v2, %v4800_v24  ;;  %v6816_v48 = vcombine.low %v4592_v49, %v4604_v15  ;;  %v7047_v37 = vadd.f32 %v7046_v45, %v7045_v10  ;;  %v7048_v38 = vpop.f32.mrb[30].mxu1 }
 0x1f8   : > { %v3909_v39 = vpop.permute.xlu1 %3908  ;;  %v3897_v25 = vpop.permute.xlu0 %3896  ;;  %v4130_v16 = vsel %vm1265_vm2, %v4127_v60, %v4129_v19  ;;  %v4839_v12 = vmul.bf16 %v4801_v57, %v9725_v20 }
 0x1f9   : > { %v4802_v13 = vrot.slane %v6816_v48, 3  ;;  %v9861_v26 = vadd.f32 %v7047_v37, %v9544_v53  ;;  %v3917_v2 = vrot.slane %v3909_v39, %v8075_v41  ;;  %v3905_v35 = vrot.slane %v3897_v25, %v8075_v41  ;;  %v7049_v40 = vpop.f32.mrb[31].mxu1  ;;  %6260 = vmatmul.mubr.bf16.gmra.mrb[128].mxu1 %v4130_v16 }
 0x1fa   : > { %v7050_v36 = vadd.f32 %v7049_v40, %v7048_v38  ;;  %v4882_v58 = vrot.slane %v4839_v12, 5  ;;  %6267 = vmatprep.mubr.bf16.mxu1 %v4231_v43 }
 0x1fb   : > { %v4803_v9 = vsel %vm1265_vm2, %v4800_v24, %v4802_v13  ;;  %v9866_v15 = vcombine.low %v3905_v35, %v3917_v2 }
 0x1fc   : > { %v9869_v60 = vadd.f32 %v7050_v36, %v9552_v17  ;;  %v4620_v20 = vpop.permute.xlu1 %4619  ;;  %v4608_v49 = vpop.permute.xlu0 %4607  ;;  %v4883_v53 = vsel %vm1182_vm1, %v4880_v8, %v4882_v58  ;;  %v4840_v10 = vmul.bf16 %v4803_v9, %v9751_v62  ;;  %v4232_v8 = vrot.slane %v9539_v1, 4 }
 0x1fd   : > { %v4049_v45 = vrot.slane %v9866_v15, 5  ;;  %v4628_v57 = vrot.slane %v4620_v20, %v8075_v41  ;;  %v4616_v48 = vrot.slane %v4608_v49, %v8075_v41  ;;  %v7051_v37 = vpop.f32.mrb[32].mxu1  ;;  %7404 = vmatmul.mubr.bf16.gmra.mrb[128].mxu0 %v4883_v53 }
 0x1fe   : > { %v7052_v24 = vpop.f32.mrb[33].mxu1  ;;  %v4884_v38 = vrot.slane %v4840_v10, 5 }
 0x1ff   : > { %v4050_v17 = vsel %vm1182_vm1, %v4047_v27, %v4049_v45  ;;  %v6817_v43 = vcombine.low %v4616_v48, %v4628_v57  ;;  %v7053_v39 = vadd.f32 %v7052_v24, %v7051_v37  ;;  %v7054_v25 = vpop.f32.mrb[34].mxu1 }
 0x200   : > { %v4644_v62 = vpop.permute.xlu1 %4643  ;;  %v4632_v16 = vpop.permute.xlu0 %4631  ;;  %v4885_v12 = vsel %vm1182_vm1, %v4882_v58, %v4884_v38  ;;  %v4084_v2 = vmul.bf16 %v9835_v7, %v4050_v17 }
 0x201   : > { %v4804_v35 = vrot.slane %v6817_v43, 3  ;;  %v9883_v40 = vadd.f32 %v7053_v39, %v9567_v56  ;;  %v4652_v36 = vrot.slane %v4644_v62, %v8075_v41  ;;  %v4640_v9 = vrot.slane %v4632_v16, %v8075_v41  ;;  %v7055_v27 = vpop.f32.mrb[35].mxu1  ;;  %7407 = vmatprep.mubr.bf16.mxu0 %v4885_v12 }
 0x202   : > { %v7056_v20 = vadd.f32 %v7055_v27, %v7054_v25  ;;  %v9887_v49 = vrot.slane %v4084_v2, 3  ;;  %v4233_v56 = vsel %vm603_vm0, %v4230_v33, %v4232_v8 }
 0x203   : > { %v4805_v53 = vsel %vm1265_vm2, %v4802_v13, %v4804_v35  ;;  %v9890_v10 = vcombine.low %v4640_v9, %v4652_v36 }
 0x204   : > { %v9898_v58 = vadd.f32 %v7056_v20, %v9572_v31  ;;  %v3933_v57 = vpop.permute.xlu1 %3932  ;;  %v3921_v48 = vpop.permute.xlu0 %3920  ;;  %v4132_v37 = vsel %vm1265_vm2, %v4129_v19, %v9887_v49  ;;  %v4841_v24 = vmul.bf16 %v4805_v53, %v9774_v3 }
 0x205   : > { %v4806_v13 = vrot.slane %v9890_v10, 3  ;;  %v3941_v17 = vrot.slane %v3933_v57, %v8075_v41  ;;  %v3929_v43 = vrot.slane %v3921_v48, %v8075_v41  ;;  %v7057_v39 = vpop.f32.mrb[36].mxu1  ;;  %v7139_v25 = vpop.f32.mrb[48].mxu0  ;;  %6268 = vmatmul.mubr.bf16.gmra.mrb[132].mxu1 %v4132_v37  ;;  %v4185_v10 = vld [vmem:[#allocation2 + $0xa0] sm:$0xf] }
 0x206   : > { %v7058_v33 = vpop.f32.mrb[37].mxu1  ;;  %v7140_v62 = vpop.f32.mrb[49].mxu0  ;;  %v4886_v31 = vrot.slane %v4841_v24, 5  ;;  %6275 = vmatprep.mubr.bf16.mxu1 %v4233_v56 }
 0x207   : > { %v4807_v16 = vsel %vm1265_vm2, %v4804_v35, %v4806_v13  ;;  %v6804_v12 = vcombine.low %v3929_v43, %v3941_v17  ;;  %v7059_v2 = vadd.f32 %v7058_v33, %v7057_v39  ;;  %v7141_v19 = vadd.f32 %v7140_v62, %v7139_v25  ;;  %v7060_v36 = vpop.f32.mrb[38].mxu1  ;;  %v7142_v3 = vpop.f32.mrb[50].mxu0 }
 0x208   : > { %v4668_v9 = vpop.permute.xlu1 %4667  ;;  %v4656_v27 = vpop.permute.xlu0 %4655  ;;  %v4887_v20 = vsel %vm1182_vm1, %v4884_v38, %v4886_v31  ;;  %v4842_v53 = vmul.bf16 %v4807_v16, %v9803_v59  ;;  %v4234_v25 = vrot.slane %v4185_v10, 4 }
 0x209   : > { %v4051_v57 = vrot.slane %v6804_v12, 5  ;;  %v9910_v48 = vadd.f32 %v7059_v2, %v9587_v32  ;;  %v9913_v56 = vadd.f32 %v7141_v19, %v9791_v44  ;;  %v4676_v35 = vrot.slane %v4668_v9, %v8075_v41  ;;  %v7061_v37 = vpop.f32.mrb[39].mxu1  ;;  %v7143_v24 = vpop.f32.mrb[51].mxu0  ;;  %7408 = vmatmul.mubr.bf16.gmra.mrb[132].mxu0 %v4887_v20  ;;  %v3525_v2 = vld [vmem:[#allocation2 + $0xa0] sm:$0x7] }
 0x20a   : > { %v4664_v17 = vrot.slane %v4656_v27, %v8075_v41  ;;  %v7062_v43 = vadd.f32 %v7061_v37, %v7060_v36  ;;  %v7144_v39 = vadd.f32 %v7143_v24, %v7142_v3  ;;  %v4888_v38 = vrot.slane %v4842_v53, 5 }
 0x20b   : > { %v4052_v59 = vsel %vm1182_vm1, %v4049_v45, %v4051_v57  ;;  %v7533_v45 = vld [vmem:[#allocation2 + $0x98] sm:$0xff] }
 0x20c   : > { %v6819_v32 = vcombine.low %v4664_v17, %v4676_v35  ;;  %v9921_v33 = vadd.f32 %v7062_v43, %v9594_v55  ;;  %v9924_v44 = vadd.f32 %v7144_v39, %v9799_v42  ;;  %v4692_v62 = vpop.permute.xlu1 %4691  ;;  %v4680_v16 = vpop.permute.xlu0 %4679  ;;  %v4889_v12 = vsel %vm1182_vm1, %v4886_v31, %v4888_v38 }
 0x20d   : > { %v4700_v19 = vrot.slane %v4692_v62, %v8075_v41  ;;  %v4688_v36 = vrot.slane %v4680_v16, %v8075_v41  ;;  %v7063_v15 = vpop.f32.mrb[40].mxu1  ;;  %v7145_v3 = vpop.f32.mrb[52].mxu0  ;;  %7411 = vmatprep.mubr.bf16.mxu0 %v4889_v12  ;;  %v4085_v9 = vmul.bf16 %v7533_v45, %v4052_v59  ;;  %v4086_v31 = vmul.bf16 %v4051_v57, %v3525_v2  ;;  %v4284_v2 = vld [vmem:[#allocation2 + $0xa0] sm:$0x1f] }
 0x20e   : > { %v4808_v27 = vrot.slane %v6819_v32, 3  ;;  %v7064_v55 = vpop.f32.mrb[41].mxu1  ;;  %v7146_v20 = vpop.f32.mrb[53].mxu0  ;;  %v4235_v41 = vsel %vm603_vm0, %v4232_v8, %v4234_v25 }
 0x20f   : > { %v6820_v53 = vcombine.low %v4688_v36, %v4700_v19  ;;  %v7065_v42 = vadd.f32 %v7064_v55, %v7063_v15  ;;  %v7147_v10 = vadd.f32 %v7146_v20, %v7145_v3  ;;  %v7066_v35 = vpop.f32.mrb[42].mxu1  ;;  %v7148_v37 = vpop.f32.mrb[54].mxu0  ;;  %v4133_v24 = vrot.slane %v4085_v9, 3 }
 0x210   : > { %v4809_v17 = vsel %vm1265_vm2, %v4806_v13, %v4808_v27  ;;  %v7067_v43 = vpop.f32.mrb[43].mxu1  ;;  %v7149_v39 = vpop.f32.mrb[55].mxu0  ;;  %v4135_v36 = vrot.slane %v4086_v31, 3 }
 0x211   : > { %v4810_v62 = vrot.slane %v6820_v53, 3  ;;  %v9934_v59 = vadd.f32 %v7065_v42, %v9612_v28  ;;  %v9937_v32 = vadd.f32 %v7147_v10, %v9813_v30  ;;  %v7068_v16 = vadd.f32 %v7067_v43, %v7066_v35 }
 0x212   : > { %v7150_v12 = vadd.f32 %v7149_v39, %v7148_v37  ;;  %v4134_v57 = vsel %vm1265_vm2, %v9887_v49, %v4133_v24  ;;  %v4843_v13 = vmul.bf16 %v4809_v17, %v9835_v7 }
 0x213   : > { %v4811_v19 = vsel %vm1265_vm2, %v4808_v27, %v4810_v62  ;;  %v9944_v1 = vadd.f32 %v7068_v16, %v9620_v11  ;;  %6276 = vmatmul.mubr.bf16.gmra.mrb[136].mxu1 %v4134_v57  ;;  %v4845_v3 = vmul.bf16 %v4810_v62, %v4284_v2 }
 0x214   : > { %v9947_v28 = vadd.f32 %v7150_v12, %v9824_v34  ;;  %v7069_v8 = vpop.f32.mrb[44].mxu1  ;;  %v4890_v30 = vrot.slane %v4843_v13, 5  ;;  %6283 = vmatprep.mubr.bf16.mxu1 %v4235_v41  ;;  %v4844_v25 = vmul.bf16 %v7533_v45, %v4811_v19 }
 0x215   : > { %v7070_v15 = vpop.f32.mrb[45].mxu1  ;;  %v4894_v45 = vrot.slane %v4845_v3, 5 }
 0x216   : > { %v4891_v49 = vsel %vm1182_vm1, %v4888_v38, %v4890_v30  ;;  %v7071_v7 = vadd.f32 %v7070_v15, %v7069_v8  ;;  %v7072_v9 = vpop.f32.mrb[46].mxu1  ;;  %v4892_v55 = vrot.slane %v4844_v25, 5  ;;  %v4136_v38 = vsel %vm1265_vm2, %v4133_v24, %v4135_v36 }
 0x217   : > { %7412 = vmatmul.mubr.bf16.gmra.mrb[136].mxu0 %v4891_v49  ;;  %v7073_v27 = vpop.f32.mrb[47].mxu1 }
 0x218   : > { %v9951_v11 = vadd.f32 %v7071_v7, %v9645_v47  ;;  %v7074_v20 = vadd.f32 %v7073_v27, %v7072_v9  ;;  %v7151_v34 = vpop.f32.mrb[56].mxu0  ;;  %v4893_v53 = vsel %vm1182_vm1, %v4890_v30, %v4892_v55  ;;  %v4895_v62 = vsel %vm1182_vm1, %v4892_v55, %v4894_v45 }
 0x219   : > { %7415 = vmatprep.mubr.bf16.mxu0 %v4893_v53  ;;  %v7152_v42 = vpop.f32.mrb[57].mxu0 }
 0x21a   : > { %v9955_v10 = vadd.f32 %v7074_v20, %v9656_v22  ;;  %v7153_v35 = vadd.f32 %v7152_v42, %v7151_v34  ;;  %v7154_v37 = vpop.f32.mrb[58].mxu0 }
 0x21b   : > { %6284 = vmatmul.mubr.bf16.gmra.mrb[140].mxu1 %v4136_v38  ;;  %v7155_v31 = vpop.f32.mrb[59].mxu0 }
 0x21c   : > { %v9959_v17 = vadd.f32 %v7153_v35, %v9839_v23  ;;  %v7156_v47 = vadd.f32 %v7155_v31, %v7154_v37  ;;  %v7075_v43 = vpop.f32.mrb[48].mxu1 }
 0x21d   : > { %v7076_v39 = vpop.f32.mrb[49].mxu1 }
 0x21e   : > { %v9962_v41 = vadd.f32 %v7156_v47, %v9846_v14  ;;  %v7077_v16 = vadd.f32 %v7076_v39, %v7075_v43  ;;  %v7078_v22 = vpop.f32.mrb[50].mxu1 }
 0x21f   : > { %7416 = vmatmul.mubr.bf16.gmra.mrb[140].mxu0 %v4895_v62  ;;  %v7079_v12 = vpop.f32.mrb[51].mxu1 }
 0x220   : > { %v9966_v24 = vadd.f32 %v7077_v16, %v9679_v50  ;;  %v7080_v57 = vadd.f32 %v7079_v12, %v7078_v22 }
 0x222   : > { %v9969_v13 = vadd.f32 %v7080_v57, %v9692_v54 }
 0x224   : > { %v7081_v23 = vpop.f32.mrb[52].mxu1  ;;  %v7157_v2 = vpop.f32.mrb[60].mxu0 }
 0x225   : > { %v7082_v19 = vpop.f32.mrb[53].mxu1  ;;  %v7158_v8 = vpop.f32.mrb[61].mxu0 }
 0x226   : > { %v7083_v30 = vadd.f32 %v7082_v19, %v7081_v23  ;;  %v7159_v14 = vadd.f32 %v7158_v8, %v7157_v2  ;;  %v7084_v25 = vpop.f32.mrb[54].mxu1  ;;  %v7160_v36 = vpop.f32.mrb[62].mxu0 }
 0x227   : > { %v7085_v15 = vpop.f32.mrb[55].mxu1  ;;  %v7161_v3 = vpop.f32.mrb[63].mxu0 }
 0x228   : > { %v9972_v49 = vadd.f32 %v7083_v30, %v9709_v46  ;;  %v9975_v50 = vadd.f32 %v7159_v14, %v9861_v26  ;;  %v7086_v7 = vadd.f32 %v7085_v15, %v7084_v25  ;;  %v7162_v9 = vadd.f32 %v7161_v3, %v7160_v36 }
 0x22a   : > { %v9978_v54 = vadd.f32 %v7086_v7, %v9719_v6  ;;  %v9981_v55 = vadd.f32 %v7162_v9, %v9869_v60 }
 0x22c   : > { %v7087_v27 = vpop.f32.mrb[56].mxu1 }
 0x22d   : > { %v7088_v20 = vpop.f32.mrb[57].mxu1 }
 0x22e   : > { %v7089_v34 = vadd.f32 %v7088_v20, %v7087_v27  ;;  %v7090_v53 = vpop.f32.mrb[58].mxu1 }
 0x22f   : > { %v7091_v42 = vpop.f32.mrb[59].mxu1 }
 0x230   : > { %v9984_v45 = vadd.f32 %v7089_v34, %v9738_v4  ;;  %v7092_v46 = vadd.f32 %v7091_v42, %v7090_v53  ;;  %v7163_v38 = vpop.f32.mrb[64].mxu0 }
 0x231   : > { %v7164_v26 = vpop.f32.mrb[65].mxu0 }
 0x232   : > { %v9987_v35 = vadd.f32 %v7092_v46, %v9743_v0  ;;  %v7165_v37 = vadd.f32 %v7164_v26, %v7163_v38  ;;  %v7166_v6 = vpop.f32.mrb[66].mxu0 }
 0x233   : > { %v7167_v31 = vpop.f32.mrb[67].mxu0 }
 0x234   : > { %v9990_v60 = vadd.f32 %v7165_v37, %v9883_v40  ;;  %v7168_v47 = vadd.f32 %v7167_v31, %v7166_v6  ;;  %v7093_v43 = vpop.f32.mrb[60].mxu1 }
 0x235   : > { %v7094_v39 = vpop.f32.mrb[61].mxu1 }
 0x236   : > { %v9993_v62 = vadd.f32 %v7168_v47, %v9898_v58  ;;  %v7095_v4 = vadd.f32 %v7094_v39, %v7093_v43  ;;  %v7096_v16 = vpop.f32.mrb[62].mxu1 }
 0x237   : > { %v7097_v22 = vpop.f32.mrb[63].mxu1 }
 0x238   : > { %v9996_v12 = vadd.f32 %v7095_v4, %v9755_v5  ;;  %v7098_v0 = vadd.f32 %v7097_v22, %v7096_v16 }
 0x23a   : > { %v9999_v57 = vadd.f32 %v7098_v0, %v9759_v61 }
 0x23c   : > { %v7099_v23 = vpop.f32.mrb[64].mxu1  ;;  %v7169_v2 = vpop.f32.mrb[68].mxu0 }
 0x23d   : > { %v7100_v40 = vpop.f32.mrb[65].mxu1  ;;  %v7170_v19 = vpop.f32.mrb[69].mxu0 }
 0x23e   : > { %v7101_v8 = vadd.f32 %v7100_v40, %v7099_v23  ;;  %v7171_v30 = vadd.f32 %v7170_v19, %v7169_v2  ;;  %v7102_v14 = vpop.f32.mrb[66].mxu1  ;;  %v7172_v25 = vpop.f32.mrb[70].mxu0 }
 0x23f   : > { %v7103_v58 = vpop.f32.mrb[67].mxu1  ;;  %v7173_v36 = vpop.f32.mrb[71].mxu0 }
 0x240   : > { %v10002_v15 = vadd.f32 %v7101_v8, %v9617_v51  ;;  %v10005_v5 = vadd.f32 %v7171_v30, %v9910_v48  ;;  %v7104_v3 = vadd.f32 %v7103_v58, %v7102_v14  ;;  %v7174_v7 = vadd.f32 %v7173_v36, %v7172_v25 }
 0x242   : > { %v10008_v61 = vadd.f32 %v7104_v3, %v9628_v21  ;;  %v10011_v9 = vadd.f32 %v7174_v7, %v9921_v33  ;;  %v10259_v3 = vld [vmem:[#allocation4_spill] sm:$0xff] }
 0x244   : > { %v7105_v27 = vpop.f32.mrb[68].mxu1 }
 0x245   : > { %v7106_v20 = vpop.f32.mrb[69].mxu1 }
 0x246   : > { %v7107_v34 = vadd.f32 %v7106_v20, %v7105_v27  ;;  %v7108_v53 = vpop.f32.mrb[70].mxu1 }
 0x247   : > { %v7109_v42 = vpop.f32.mrb[71].mxu1 }
 0x248   : > { %v10014_v46 = vadd.f32 %v7107_v34, %v9647_v18  ;;  %v7110_v51 = vadd.f32 %v7109_v42, %v7108_v53  ;;  %v7175_v38 = vpop.f32.mrb[72].mxu0  ;;  %v10260_v34 = vld [vmem:[#allocation5_spill] sm:$0xff] }
 0x249   : > { %v7176_v48 = vpop.f32.mrb[73].mxu0 }
 0x24a   : > { %v10017_v26 = vadd.f32 %v7110_v51, %v9658_v52  ;;  %v7177_v37 = vadd.f32 %v7176_v48, %v7175_v38  ;;  %v7178_v21 = vpop.f32.mrb[74].mxu0 }
 0x24b   : > { %v7179_v6 = vpop.f32.mrb[75].mxu0 }
 0x24c   : > { %v10020_v33 = vadd.f32 %v7177_v37, %v9934_v59  ;;  %v7180_v31 = vadd.f32 %v7179_v6, %v7178_v21  ;;  %v7111_v47 = vpop.f32.mrb[72].mxu1 }
 0x24d   : > { %v7112_v43 = vpop.f32.mrb[73].mxu1 }
 0x24e   : > { %v10023_v39 = vadd.f32 %v7180_v31, %v9944_v1  ;;  %v7113_v18 = vadd.f32 %v7112_v43, %v7111_v47  ;;  %v7114_v4 = vpop.f32.mrb[74].mxu1 }
 0x24f   : > { %v7115_v16 = vpop.f32.mrb[75].mxu1 }
 0x250   : > { %v10026_v22 = vadd.f32 %v7113_v18, %v9681_v63  ;;  %v7116_v52 = vadd.f32 %v7115_v16, %v7114_v4  ;;  %v7181_v0 = vpop.f32.mrb[76].mxu0 }
 0x251   : > { %v7182_v23 = vpop.f32.mrb[77].mxu0 }
 0x252   : > { %v10029_v2 = vadd.f32 %v7116_v52, %v9694_v29  ;;  %v7183_v59 = vadd.f32 %v7182_v23, %v7181_v0  ;;  %v7184_v40 = vpop.f32.mrb[78].mxu0 }
 0x253   : > { %v7185_v19 = vpop.f32.mrb[79].mxu0 }
 0x254   : > { %v10032_v8 = vadd.f32 %v7183_v59, %v9951_v11  ;;  %v7186_v1 = vadd.f32 %v7185_v19, %v7184_v40  ;;  %v7117_v30 = vpop.f32.mrb[76].mxu1 }
 0x255   : > { %v7118_v14 = vpop.f32.mrb[77].mxu1 }
 0x256   : > { %v10035_v25 = vadd.f32 %v7186_v1, %v9955_v10  ;;  %v7119_v63 = vadd.f32 %v7118_v14, %v7117_v30  ;;  %v7120_v58 = vpop.f32.mrb[78].mxu1 }
 0x257   : > { %v7121_v36 = vpop.f32.mrb[79].mxu1 }
 0x258   : > { %v10038_v7 = vadd.f32 %v7119_v63, %v10259_v3  ;;  %v7122_v29 = vadd.f32 %v7121_v36, %v7120_v58  ;;  %v7187_v27 = vpop.f32.mrb[80].mxu0 }
 0x259   : > { %v7188_v20 = vpop.f32.mrb[81].mxu0 }
 0x25a   : > { %v10041_v53 = vadd.f32 %v7122_v29, %v10260_v34  ;;  %v7189_v11 = vadd.f32 %v7188_v20, %v7187_v27  ;;  %v7190_v42 = vpop.f32.mrb[82].mxu0 }
 0x25b   : > { %v7191_v51 = vpop.f32.mrb[83].mxu0 }
 0x25c   : > { %v10044_v38 = vadd.f32 %v7189_v11, %v9966_v24  ;;  %v7192_v10 = vadd.f32 %v7191_v51, %v7190_v42  ;;  %v7251_v48 = vpop.f32.mrb[80].mxu1 }
 0x25d   : > { %v7252_v37 = vpop.f32.mrb[81].mxu1 }
 0x25e   : > { %v10047_v21 = vadd.f32 %v7192_v10, %v9969_v13  ;;  %v7253_v6 = vadd.f32 %v7252_v37, %v7251_v48  ;;  %v7254_v31 = vpop.f32.mrb[82].mxu1 }
 0x25f   : > { %v7255_v47 = vpop.f32.mrb[83].mxu1 }
 0x260   : > { %v7256_v43 = vadd.f32 %v7255_v47, %v7254_v31  ;;  %v10050_v18 = vadd.f32 %v7253_v6, %v9913_v56 }
 0x261   : > { %v7193_v4 = vpop.f32.mrb[84].mxu0 }
 0x262   : > { %v7194_v16 = vpop.f32.mrb[85].mxu0  ;;  %v10053_v52 = vadd.f32 %v7256_v43, %v9924_v44 }
 0x263   : > { %v7195_v24 = vadd.f32 %v7194_v16, %v7193_v4  ;;  %v7196_v0 = vpop.f32.mrb[86].mxu0 }
 0x264   : > { %v7197_v23 = vpop.f32.mrb[87].mxu0  ;;  %v7257_v59 = vpop.f32.mrb[84].mxu1 }
 0x265   : > { %v10056_v40 = vadd.f32 %v7195_v24, %v9972_v49  ;;  %v7198_v13 = vadd.f32 %v7197_v23, %v7196_v0  ;;  %v7258_v19 = vpop.f32.mrb[85].mxu1 }
 0x266   : > { %v7259_v1 = vadd.f32 %v7258_v19, %v7257_v59  ;;  %v7260_v30 = vpop.f32.mrb[86].mxu1 }
 0x267   : > { %v10059_v14 = vadd.f32 %v7198_v13, %v9978_v54  ;;  %v7261_v56 = vpop.f32.mrb[87].mxu1 }
 0x268   : > { %v7262_v63 = vadd.f32 %v7261_v56, %v7260_v30  ;;  %v10062_v58 = vadd.f32 %v7259_v1, %v9937_v32 }
 0x269   : > { %v7199_v44 = vpop.f32.mrb[88].mxu0 }
 0x26a   : > { %v7200_v36 = vpop.f32.mrb[89].mxu0  ;;  %v10065_v3 = vadd.f32 %v7262_v63, %v9947_v28 }
 0x26b   : > { %v7201_v29 = vadd.f32 %v7200_v36, %v7199_v44  ;;  %v7202_v49 = vpop.f32.mrb[90].mxu0 }
 0x26c   : > { %v7203_v27 = vpop.f32.mrb[91].mxu0  ;;  %v7263_v20 = vpop.f32.mrb[88].mxu1 }
 0x26d   : > { %v10068_v34 = vadd.f32 %v7201_v29, %v9984_v45  ;;  %v7204_v11 = vadd.f32 %v7203_v27, %v7202_v49  ;;  %v7264_v54 = vpop.f32.mrb[89].mxu1 }
 0x26e   : > { %v7265_v42 = vadd.f32 %v7264_v54, %v7263_v20  ;;  %v7266_v51 = vpop.f32.mrb[90].mxu1 }
 0x26f   : > { %v10071_v10 = vadd.f32 %v7204_v11, %v9987_v35  ;;  %v7267_v32 = vpop.f32.mrb[91].mxu1 }
 0x270   : > { %v7268_v48 = vadd.f32 %v7267_v32, %v7266_v51  ;;  %v10074_v37 = vadd.f32 %v7265_v42, %v9959_v17 }
 0x271   : > { %v7205_v28 = vpop.f32.mrb[92].mxu0 }
 0x272   : > { %v7206_v6 = vpop.f32.mrb[93].mxu0  ;;  %v10077_v31 = vadd.f32 %v7268_v48, %v9962_v41 }
 0x273   : > { %v7207_v47 = vadd.f32 %v7206_v6, %v7205_v28  ;;  %v7208_v45 = vpop.f32.mrb[94].mxu0 }
 0x274   : > { %v7209_v43 = vpop.f32.mrb[95].mxu0  ;;  %v7269_v4 = vpop.f32.mrb[92].mxu1 }
 0x275   : > { %v10080_v16 = vadd.f32 %v7207_v47, %v9996_v12  ;;  %v7210_v24 = vadd.f32 %v7209_v43, %v7208_v45  ;;  %v7270_v35 = vpop.f32.mrb[93].mxu1 }
 0x276   : > { %v7271_v0 = vadd.f32 %v7270_v35, %v7269_v4  ;;  %v7272_v23 = vpop.f32.mrb[94].mxu1 }
 0x277   : > { %v10083_v59 = vadd.f32 %v7210_v24, %v9999_v57  ;;  %v7273_v17 = vpop.f32.mrb[95].mxu1 }
 0x278   : > { %v7274_v13 = vadd.f32 %v7273_v17, %v7272_v23  ;;  %v10086_v19 = vadd.f32 %v7271_v0, %v9975_v50 }
 0x279   : > { %v7211_v41 = vpop.f32.mrb[96].mxu0 }
 0x27a   : > { %v7212_v1 = vpop.f32.mrb[97].mxu0  ;;  %v10089_v30 = vadd.f32 %v7274_v13, %v9981_v55 }
 0x27b   : > { %v7213_v56 = vadd.f32 %v7212_v1, %v7211_v41  ;;  %v7214_v12 = vpop.f32.mrb[98].mxu0 }
 0x27c   : > { %v7215_v63 = vpop.f32.mrb[99].mxu0  ;;  %v7275_v44 = vpop.f32.mrb[96].mxu1 }
 0x27d   : > { %v10092_v36 = vadd.f32 %v7213_v56, %v10002_v15  ;;  %v7216_v29 = vadd.f32 %v7215_v63, %v7214_v12  ;;  %v7276_v57 = vpop.f32.mrb[97].mxu1 }
 0x27e   : > { %v7277_v49 = vadd.f32 %v7276_v57, %v7275_v44  ;;  %v7278_v27 = vpop.f32.mrb[98].mxu1 }
 0x27f   : > { %v10095_v20 = vadd.f32 %v7216_v29, %v10008_v61  ;;  %v7279_v50 = vpop.f32.mrb[99].mxu1 }
 0x280   : > { %v7280_v11 = vadd.f32 %v7279_v50, %v7278_v27  ;;  %v10098_v54 = vadd.f32 %v7277_v49, %v9990_v60 }
 0x281   : > { %v7217_v55 = vpop.f32.mrb[100].mxu0 }
 0x282   : > { %v7218_v42 = vpop.f32.mrb[101].mxu0  ;;  %v10101_v51 = vadd.f32 %v7280_v11, %v9993_v62 }
 0x283   : > { %v7219_v32 = vadd.f32 %v7218_v42, %v7217_v55  ;;  %v7220_v15 = vpop.f32.mrb[102].mxu0 }
 0x284   : > { %v7221_v48 = vpop.f32.mrb[103].mxu0  ;;  %v7281_v28 = vpop.f32.mrb[100].mxu1 }
 0x285   : > { %v10104_v6 = vadd.f32 %v7219_v32, %v10014_v46  ;;  %v7222_v47 = vadd.f32 %v7221_v48, %v7220_v15  ;;  %v7282_v61 = vpop.f32.mrb[101].mxu1 }
 0x286   : > { %v7283_v45 = vadd.f32 %v7282_v61, %v7281_v28  ;;  %v7284_v43 = vpop.f32.mrb[102].mxu1 }
 0x287   : > { %v10107_v4 = vadd.f32 %v7222_v47, %v10017_v26  ;;  %v7285_v60 = vpop.f32.mrb[103].mxu1 }
 0x288   : > { %v7286_v24 = vadd.f32 %v7285_v60, %v7284_v43  ;;  %v10110_v35 = vadd.f32 %v7283_v45, %v10005_v5 }
 0x289   : > { %v7223_v62 = vpop.f32.mrb[104].mxu0 }
 0x28a   : > { %v7224_v0 = vpop.f32.mrb[105].mxu0  ;;  %v10113_v23 = vadd.f32 %v7286_v24, %v10011_v9 }
 0x28b   : > { %v7225_v17 = vadd.f32 %v7224_v0, %v7223_v62  ;;  %v7226_v46 = vpop.f32.mrb[106].mxu0 }
 0x28c   : > { %v7227_v13 = vpop.f32.mrb[107].mxu0  ;;  %v7287_v41 = vpop.f32.mrb[104].mxu1 }
 0x28d   : > { %v10116_v1 = vadd.f32 %v7225_v17, %v10026_v22  ;;  %v7228_v56 = vadd.f32 %v7227_v13, %v7226_v46  ;;  %v7288_v26 = vpop.f32.mrb[105].mxu1 }
 0x28e   : > { %v7289_v12 = vadd.f32 %v7288_v26, %v7287_v41  ;;  %v7290_v63 = vpop.f32.mrb[106].mxu1 }
 0x28f   : > { %v10119_v44 = vadd.f32 %v7228_v56, %v10029_v2  ;;  %v7291_v5 = vpop.f32.mrb[107].mxu1 }
 0x290   : > { %v7292_v29 = vadd.f32 %v7291_v5, %v7290_v63  ;;  %v10122_v57 = vadd.f32 %v7289_v12, %v10020_v33 }
 0x291   : > { %v7229_v9 = vpop.f32.mrb[108].mxu0 }
 0x292   : > { %v7230_v49 = vpop.f32.mrb[109].mxu0  ;;  %v10125_v27 = vadd.f32 %v7292_v29, %v10023_v39 }
 0x293   : > { %v7231_v50 = vadd.f32 %v7230_v49, %v7229_v9  ;;  %v7232_v22 = vpop.f32.mrb[110].mxu0 }
 0x294   : > { %v7233_v11 = vpop.f32.mrb[111].mxu0  ;;  %v7293_v55 = vpop.f32.mrb[108].mxu1 }
 0x295   : > { %v10128_v42 = vadd.f32 %v7231_v50, %v10038_v7  ;;  %v7234_v2 = vadd.f32 %v7233_v11, %v7232_v22  ;;  %v7294_v32 = vpop.f32.mrb[109].mxu1 }
 0x296   : > { %v7295_v15 = vadd.f32 %v7294_v32, %v7293_v55  ;;  %v7296_v48 = vpop.f32.mrb[110].mxu1 }
 0x297   : > { %v10131_v33 = vadd.f32 %v7234_v2, %v10041_v53  ;;  %v7297_v28 = vpop.f32.mrb[111].mxu1 }
 0x298   : > { %v7298_v47 = vadd.f32 %v7297_v28, %v7296_v48  ;;  %v10134_v39 = vadd.f32 %v7295_v15, %v10032_v8 }
 0x29a   : > { %v10137_v61 = vadd.f32 %v7298_v47, %v10035_v25 }
 0x29c   : > { %v7299_v45 = vpop.f32.mrb[112].mxu1 }
 0x29d   : > { %v7300_v43 = vpop.f32.mrb[113].mxu1 }
 0x29e   : > { %v7301_v60 = vadd.f32 %v7300_v43, %v7299_v45  ;;  %v7302_v7 = vpop.f32.mrb[114].mxu1 }
 0x29f   : > { %v7303_v24 = vpop.f32.mrb[115].mxu1 }
 0x2a0   : > { %v7304_v53 = vadd.f32 %v7303_v24, %v7302_v7  ;;  %v7389_v8 = vpop.f32.mrb[112].mxu0  ;;  %v10147_v25 = vadd.f32 %v7301_v60, %v10044_v38 }
 0x2a1   : > { %v6335_v62 = vadd.f32 %v7389_v8, %v10062_v58  ;;  %v6326_v0 = vpop.f32.mrb[113].mxu0 }
 0x2a2   : > { %v6327_v17 = vadd.f32 %v6326_v0, %v10050_v18  ;;  %v7390_v46 = vpop.f32.mrb[114].mxu0  ;;  %v10152_v13 = vadd.f32 %v7304_v53, %v10047_v21 }
 0x2a3   : > { %6563 = vst [vmem:[%s10144_s22 + $0x10] sm:$0xff] %v6335_v62  ;;  %v6338_v41 = vadd.f32 %v7390_v46, %v10065_v3  ;;  %v6329_v56 = vpop.f32.mrb[115].mxu0  ;;  %v6493_v58 = vmul.f32 %v6335_v62, %v6335_v62 }
 0x2a4   : > { %6561 = vst [vmem:[%s10144_s22] sm:$0xff] %v6327_v17  ;;  %v6330_v26 = vadd.f32 %v6329_v56, %v10053_v52  ;;  %v6491_v12 = vmul.f32 %v6327_v17, %v6327_v17 }
 0x2a5   : > { %6564 = vst [vmem:[%s10144_s22 + $0x18] sm:$0xff] %v6338_v41  ;;  %v6494_v21 = vmul.f32 %v6338_v41, %v6338_v41 }
 0x2a6   : > { %v6453_v38 = vadd.f32 %v6330_v26, %v6327_v17  ;;  %v6492_v63 = vmul.f32 %v6330_v26, %v6330_v26  ;;  %6562 = vst [vmem:[%s10144_s22 + $0x8] sm:$0xff] %v6330_v26 }
 0x2a8   : > { %v6454_v5 = vadd.f32 %v6453_v38, %v6335_v62  ;;  %v6523_v29 = vadd.f32 %v6492_v63, %v6491_v12  ;;  %v7305_v18 = vpop.f32.mrb[116].mxu1 }
 0x2a9   : > { %v7306_v9 = vpop.f32.mrb[117].mxu1 }
 0x2aa   : > { %v6524_v49 = vadd.f32 %v6523_v29, %v6493_v58  ;;  %v7307_v50 = vadd.f32 %v7306_v9, %v7305_v18  ;;  %v7308_v22 = vpop.f32.mrb[118].mxu1  ;;  %v6455_v3 = vadd.f32 %v6454_v5, %v6338_v41 }
 0x2ab   : > { %v7309_v11 = vpop.f32.mrb[119].mxu1 }
 0x2ac   : > { %v7310_v55 = vadd.f32 %v7309_v11, %v7308_v22  ;;  %v7393_v52 = vpop.f32.mrb[116].mxu0  ;;  %v6525_v2 = vadd.f32 %v6524_v49, %v6494_v21  ;;  %v10161_v32 = vadd.f32 %v7307_v50, %v10056_v40 }
 0x2ad   : > { %v6351_v15 = vadd.f32 %v7393_v52, %v10086_v19  ;;  %v6342_v48 = vpop.f32.mrb[117].mxu0 }
 0x2ae   : > { %v6343_v28 = vadd.f32 %v6342_v48, %v10074_v37  ;;  %v7394_v47 = vpop.f32.mrb[118].mxu0  ;;  %v10166_v45 = vadd.f32 %v7310_v55, %v10059_v14 }
 0x2af   : > { %6567 = vst [vmem:[%s10144_s22 + $0x30] sm:$0xff] %v6351_v15  ;;  %v6354_v43 = vadd.f32 %v7394_v47, %v10089_v30  ;;  %v6345_v60 = vpop.f32.mrb[119].mxu0  ;;  %v6497_v62 = vmul.f32 %v6351_v15, %v6351_v15 }
 0x2b0   : > { %v6456_v7 = vadd.f32 %v6455_v3, %v6343_v28  ;;  %v6495_v24 = vmul.f32 %v6343_v28, %v6343_v28  ;;  %6565 = vst [vmem:[%s10144_s22 + $0x20] sm:$0xff] %v6343_v28  ;;  %v6346_v40 = vadd.f32 %v6345_v60, %v10077_v31 }
 0x2b1   : > { %6568 = vst [vmem:[%s10144_s22 + $0x38] sm:$0xff] %v6354_v43  ;;  %v6498_v46 = vmul.f32 %v6354_v43, %v6354_v43 }
 0x2b2   : > { %v6526_v53 = vadd.f32 %v6525_v2, %v6495_v24  ;;  %v6457_v19 = vadd.f32 %v6456_v7, %v6346_v40  ;;  %v6496_v8 = vmul.f32 %v6346_v40, %v6346_v40  ;;  %6566 = vst [vmem:[%s10144_s22 + $0x28] sm:$0xff] %v6346_v40 }
 0x2b4   : > { %v6458_v37 = vadd.f32 %v6457_v19, %v6351_v15  ;;  %v6527_v0 = vadd.f32 %v6526_v53, %v6496_v8  ;;  %v7311_v17 = vpop.f32.mrb[120].mxu1 }
 0x2b5   : > { %v7312_v14 = vpop.f32.mrb[121].mxu1 }
 0x2b6   : > { %v6528_v41 = vadd.f32 %v6527_v0, %v6497_v62  ;;  %v7313_v30 = vadd.f32 %v7312_v14, %v7311_v17  ;;  %v7314_v56 = vpop.f32.mrb[122].mxu1  ;;  %v6459_v26 = vadd.f32 %v6458_v37, %v6354_v43 }
 0x2b7   : > { %v7315_v12 = vpop.f32.mrb[123].mxu1 }
 0x2b8   : > { %v7316_v38 = vadd.f32 %v7315_v12, %v7314_v56  ;;  %v7397_v31 = vpop.f32.mrb[120].mxu0  ;;  %v6529_v63 = vadd.f32 %v6528_v41, %v6498_v46  ;;  %v10175_v58 = vadd.f32 %v7313_v30, %v10068_v34 }
 0x2b9   : > { %v6367_v5 = vadd.f32 %v7397_v31, %v10110_v35  ;;  %v6358_v29 = vpop.f32.mrb[121].mxu0 }
 0x2ba   : > { %v6359_v18 = vadd.f32 %v6358_v29, %v10098_v54  ;;  %v7398_v9 = vpop.f32.mrb[122].mxu0  ;;  %v10180_v21 = vadd.f32 %v7316_v38, %v10071_v10 }
 0x2bb   : > { %6571 = vst [vmem:[%s10144_s22 + $0x50] sm:$0xff] %v6367_v5  ;;  %v6370_v49 = vadd.f32 %v7398_v9, %v10113_v23  ;;  %v6361_v50 = vpop.f32.mrb[123].mxu0  ;;  %v6501_v52 = vmul.f32 %v6367_v5, %v6367_v5 }
 0x2bc   : > { %v6460_v22 = vadd.f32 %v6459_v26, %v6359_v18  ;;  %v6499_v3 = vmul.f32 %v6359_v18, %v6359_v18  ;;  %6569 = vst [vmem:[%s10144_s22 + $0x40] sm:$0xff] %v6359_v18  ;;  %v6362_v34 = vadd.f32 %v6361_v50, %v10101_v51 }
 0x2bd   : > { %6572 = vst [vmem:[%s10144_s22 + $0x58] sm:$0xff] %v6370_v49  ;;  %v6502_v48 = vmul.f32 %v6370_v49, %v6370_v49 }
 0x2be   : > { %v6530_v11 = vadd.f32 %v6529_v63, %v6499_v3  ;;  %v6461_v35 = vadd.f32 %v6460_v22, %v6362_v34  ;;  %v6500_v55 = vmul.f32 %v6362_v34, %v6362_v34  ;;  %6570 = vst [vmem:[%s10144_s22 + $0x48] sm:$0xff] %v6362_v34 }
 0x2c0   : > { %v6462_v54 = vadd.f32 %v6461_v35, %v6367_v5  ;;  %v6531_v2 = vadd.f32 %v6530_v11, %v6500_v55  ;;  %v7317_v15 = vpop.f32.mrb[124].mxu1 }
 0x2c1   : > { %v7318_v10 = vpop.f32.mrb[125].mxu1 }
 0x2c2   : > { %v6532_v28 = vadd.f32 %v6531_v2, %v6501_v52  ;;  %v7319_v23 = vadd.f32 %v7318_v10, %v7317_v15  ;;  %v7320_v47 = vpop.f32.mrb[126].mxu1  ;;  %v6463_v43 = vadd.f32 %v6462_v54, %v6370_v49 }
 0x2c3   : > { %v7321_v60 = vpop.f32.mrb[127].mxu1 }
 0x2c4   : > { %v7322_v7 = vadd.f32 %v7321_v60, %v7320_v47  ;;  %v7401_v51 = vpop.f32.mrb[124].mxu0  ;;  %v6533_v24 = vadd.f32 %v6532_v28, %v6502_v48  ;;  %v10189_v40 = vadd.f32 %v7319_v23, %v10080_v16 }
 0x2c5   : > { %v6383_v53 = vadd.f32 %v7401_v51, %v10134_v39  ;;  %v6374_v19 = vpop.f32.mrb[125].mxu0 }
 0x2c6   : > { %v6375_v8 = vadd.f32 %v6374_v19, %v10122_v57  ;;  %v7402_v62 = vpop.f32.mrb[126].mxu0  ;;  %v10194_v37 = vadd.f32 %v7322_v7, %v10083_v59 }
 0x2c7   : > { %6575 = vst [vmem:[%s10144_s22 + $0x70] sm:$0xff] %v6383_v53  ;;  %v6386_v0 = vadd.f32 %v7402_v62, %v10137_v61  ;;  %v6377_v17 = vpop.f32.mrb[127].mxu0  ;;  %v6505_v56 = vmul.f32 %v6383_v53, %v6383_v53 }
 0x2c8   : > { %v6464_v14 = vadd.f32 %v6463_v43, %v6375_v8  ;;  %v6503_v46 = vmul.f32 %v6375_v8, %v6375_v8  ;;  %6573 = vst [vmem:[%s10144_s22 + $0x60] sm:$0xff] %v6375_v8  ;;  %v6378_v16 = vadd.f32 %v6377_v17, %v10125_v27 }
 0x2c9   : > { %6576 = vst [vmem:[%s10144_s22 + $0x78] sm:$0xff] %v6386_v0  ;;  %v6506_v38 = vmul.f32 %v6386_v0, %v6386_v0 }
 0x2ca   : > { %v6534_v41 = vadd.f32 %v6533_v24, %v6503_v46  ;;  %v6465_v39 = vadd.f32 %v6464_v14, %v6378_v16  ;;  %v6504_v30 = vmul.f32 %v6378_v16, %v6378_v16  ;;  %6574 = vst [vmem:[%s10144_s22 + $0x68] sm:$0xff] %v6378_v16 }
 0x2cc   : > { %v6466_v57 = vadd.f32 %v6465_v39, %v6383_v53  ;;  %v6535_v26 = vadd.f32 %v6534_v41, %v6504_v30  ;;  %v7323_v12 = vpop.f32.mrb[128].mxu1 }
 0x2cd   : > { %v7324_v59 = vpop.f32.mrb[129].mxu1 }
 0x2ce   : > { %v6536_v31 = vadd.f32 %v6535_v26, %v6505_v56  ;;  %v7325_v61 = vadd.f32 %v7324_v59, %v7323_v12  ;;  %v7326_v63 = vpop.f32.mrb[130].mxu1  ;;  %v6467_v5 = vadd.f32 %v6466_v57, %v6386_v0 }
 0x2cf   : > { %v7327_v29 = vpop.f32.mrb[131].mxu1 }
 0x2d0   : > { %v7328_v18 = vadd.f32 %v7327_v29, %v7326_v63  ;;  %v7405_v27 = vpop.f32.mrb[128].mxu0  ;;  %v6537_v9 = vadd.f32 %v6536_v31, %v6506_v38  ;;  %v10203_v49 = vadd.f32 %v7325_v61, %v10092_v36 }
 0x2d1   : > { %v6399_v50 = vadd.f32 %v7405_v27, %v10161_v32  ;;  %v6390_v22 = vpop.f32.mrb[129].mxu0 }
 0x2d2   : > { %v6391_v3 = vadd.f32 %v6390_v22, %v10147_v25  ;;  %v7406_v34 = vpop.f32.mrb[130].mxu0  ;;  %v10208_v11 = vadd.f32 %v7328_v18, %v10095_v20 }
 0x2d3   : > { %6579 = vst [vmem:[%s10144_s22 + $0x90] sm:$0xff] %v6399_v50  ;;  %v6402_v35 = vadd.f32 %v7406_v34, %v10166_v45  ;;  %v6393_v55 = vpop.f32.mrb[131].mxu0  ;;  %v6509_v10 = vmul.f32 %v6399_v50, %v6399_v50 }
 0x2d4   : > { %v6468_v52 = vadd.f32 %v6467_v5, %v6391_v3  ;;  %v6507_v54 = vmul.f32 %v6391_v3, %v6391_v3  ;;  %6577 = vst [vmem:[%s10144_s22 + $0x80] sm:$0xff] %v6391_v3  ;;  %v6394_v36 = vadd.f32 %v6393_v55, %v10152_v13 }
 0x2d5   : > { %6580 = vst [vmem:[%s10144_s22 + $0x98] sm:$0xff] %v6402_v35  ;;  %v6510_v23 = vmul.f32 %v6402_v35, %v6402_v35 }
 0x2d6   : > { %v6538_v2 = vadd.f32 %v6537_v9, %v6507_v54  ;;  %v6469_v32 = vadd.f32 %v6468_v52, %v6394_v36  ;;  %v6508_v15 = vmul.f32 %v6394_v36, %v6394_v36  ;;  %6578 = vst [vmem:[%s10144_s22 + $0x88] sm:$0xff] %v6394_v36 }
 0x2d8   : > { %v6470_v25 = vadd.f32 %v6469_v32, %v6399_v50  ;;  %v6539_v48 = vadd.f32 %v6538_v2, %v6508_v15  ;;  %v7329_v28 = vpop.f32.mrb[132].mxu1 }
 0x2d9   : > { %v7330_v20 = vpop.f32.mrb[133].mxu1 }
 0x2da   : > { %v6540_v47 = vadd.f32 %v6539_v48, %v6509_v10  ;;  %v7331_v45 = vadd.f32 %v7330_v20, %v7329_v28  ;;  %v7332_v43 = vpop.f32.mrb[134].mxu1  ;;  %v6471_v60 = vadd.f32 %v6470_v25, %v6402_v35 }
 0x2db   : > { %v7333_v7 = vpop.f32.mrb[135].mxu1 }
 0x2dc   : > { %v7334_v51 = vadd.f32 %v7333_v7, %v7332_v43  ;;  %v7409_v13 = vpop.f32.mrb[132].mxu0  ;;  %v6541_v24 = vadd.f32 %v6540_v47, %v6510_v23  ;;  %v6270_v53 = vadd.f32 %v7331_v45, %v10104_v6 }
 0x2dd   : > { %v6415_v19 = vadd.f32 %v7409_v13, %v10189_v40  ;;  %v6406_v8 = vpop.f32.mrb[133].mxu0 }
 0x2de   : > { %v6407_v62 = vadd.f32 %v6406_v8, %v10175_v58  ;;  %v7410_v0 = vpop.f32.mrb[134].mxu0  ;;  %v6273_v17 = vadd.f32 %v7334_v51, %v10107_v4 }
 0x2df   : > { %6583 = vst [vmem:[%s10144_s22 + $0xb0] sm:$0xff] %v6415_v19  ;;  %v6418_v14 = vadd.f32 %v7410_v0, %v10194_v37  ;;  %v6409_v46 = vpop.f32.mrb[135].mxu0  ;;  %v6513_v56 = vmul.f32 %v6415_v19, %v6415_v19 }
 0x2e0   : > { %v6472_v16 = vadd.f32 %v6471_v60, %v6407_v62  ;;  %v6511_v41 = vmul.f32 %v6407_v62, %v6407_v62  ;;  %6581 = vst [vmem:[%s10144_s22 + $0xa0] sm:$0xff] %v6407_v62  ;;  %v6410_v39 = vadd.f32 %v6409_v46, %v10180_v21 }
 0x2e1   : > { %6584 = vst [vmem:[%s10144_s22 + $0xb8] sm:$0xff] %v6418_v14  ;;  %v6514_v26 = vmul.f32 %v6418_v14, %v6418_v14 }
 0x2e2   : > { %v6542_v6 = vadd.f32 %v6541_v24, %v6511_v41  ;;  %v6473_v30 = vadd.f32 %v6472_v16, %v6410_v39  ;;  %v6512_v40 = vmul.f32 %v6410_v39, %v6410_v39  ;;  %6582 = vst [vmem:[%s10144_s22 + $0xa8] sm:$0xff] %v6410_v39 }
 0x2e4   : > { %v6474_v57 = vadd.f32 %v6473_v30, %v6415_v19  ;;  %v6543_v58 = vadd.f32 %v6542_v6, %v6512_v40 }
 0x2e6   : > { %v6544_v12 = vadd.f32 %v6543_v58, %v6513_v56  ;;  %v7335_v4 = vpop.f32.mrb[136].mxu1  ;;  %v6475_v59 = vadd.f32 %v6474_v57, %v6418_v14 }
 0x2e7   : > { %v7336_v37 = vpop.f32.mrb[137].mxu1 }
 0x2e8   : > { %v7337_v38 = vadd.f32 %v7336_v37, %v7335_v4  ;;  %v7338_v31 = vpop.f32.mrb[138].mxu1  ;;  %v6545_v61 = vadd.f32 %v6544_v12, %v6514_v26 }
 0x2e9   : > { %v7339_v63 = vpop.f32.mrb[139].mxu1 }
 0x2ea   : > { %v7340_v21 = vadd.f32 %v7339_v63, %v7338_v31  ;;  %v7413_v5 = vpop.f32.mrb[136].mxu0  ;;  %v6278_v29 = vadd.f32 %v7337_v38, %v10116_v1 }
 0x2eb   : > { %v6431_v18 = vadd.f32 %v7413_v5, %v6270_v53  ;;  %v6422_v27 = vpop.f32.mrb[137].mxu0 }
 0x2ec   : > { %v6423_v9 = vadd.f32 %v6422_v27, %v10203_v49  ;;  %v7414_v50 = vpop.f32.mrb[138].mxu0  ;;  %v6281_v22 = vadd.f32 %v7340_v21, %v10119_v44 }
 0x2ed   : > { %6587 = vst [vmem:[%s10144_s22 + $0xd0] sm:$0xff] %v6431_v18  ;;  %v6434_v3 = vadd.f32 %v7414_v50, %v6273_v17  ;;  %v6425_v34 = vpop.f32.mrb[139].mxu0  ;;  %v6517_v10 = vmul.f32 %v6431_v18, %v6431_v18 }
 0x2ee   : > { %v6476_v35 = vadd.f32 %v6475_v59, %v6423_v9  ;;  %v6515_v55 = vmul.f32 %v6423_v9, %v6423_v9  ;;  %6585 = vst [vmem:[%s10144_s22 + $0xc0] sm:$0xff] %v6423_v9  ;;  %v6426_v52 = vadd.f32 %v6425_v34, %v10208_v11  ;;  %v7341_v54 = vpop.f32.mrb[140].mxu1 }
 0x2ef   : > { %6588 = vst [vmem:[%s10144_s22 + $0xd8] sm:$0xff] %v6434_v3  ;;  %v7342_v36 = vpop.f32.mrb[141].mxu1  ;;  %v6518_v11 = vmul.f32 %v6434_v3, %v6434_v3 }
 0x2f0   : > { %v6546_v1 = vadd.f32 %v6545_v61, %v6515_v55  ;;  %v6477_v2 = vadd.f32 %v6476_v35, %v6426_v52  ;;  %v6516_v32 = vmul.f32 %v6426_v52, %v6426_v52  ;;  %6586 = vst [vmem:[%s10144_s22 + $0xc8] sm:$0xff] %v6426_v52  ;;  %v7343_v49 = vadd.f32 %v7342_v36, %v7341_v54  ;;  %v7344_v15 = vpop.f32.mrb[142].mxu1 }
 0x2f1   : > { %v7345_v44 = vpop.f32.mrb[143].mxu1 }
 0x2f2   : > { %v6478_v25 = vadd.f32 %v6477_v2, %v6431_v18  ;;  %v6547_v48 = vadd.f32 %v6546_v1, %v6516_v32  ;;  %v7346_v28 = vadd.f32 %v7345_v44, %v7344_v15  ;;  %v6286_v20 = vadd.f32 %v7343_v49, %v10128_v42  ;;  %v7417_v23 = vpop.f32.mrb[140].mxu0 }
 0x2f3   : > { %v6438_v47 = vpop.f32.mrb[141].mxu0 }
 0x2f4   : > { %v6548_v45 = vadd.f32 %v6547_v48, %v6517_v10  ;;  %v6447_v43 = vadd.f32 %v7417_v23, %v6286_v20  ;;  %v6439_v60 = vadd.f32 %v6438_v47, %v6278_v29  ;;  %v6479_v7 = vadd.f32 %v6478_v25, %v6434_v3  ;;  %v7418_v51 = vpop.f32.mrb[142].mxu0 }
 0x2f5   : > { %v6289_v13 = vadd.f32 %v7346_v28, %v10131_v33  ;;  %v6441_v24 = vpop.f32.mrb[143].mxu0 }
 0x2f6   : > { %6591 = vst [vmem:[%s10144_s22 + $0xf0] sm:$0xff] %v6447_v43  ;;  %v6480_v53 = vadd.f32 %v6479_v7, %v6439_v60  ;;  %v6519_v19 = vmul.f32 %v6439_v60, %v6439_v60  ;;  %v6549_v8 = vadd.f32 %v6548_v45, %v6518_v11  ;;  %6589 = vst [vmem:[%s10144_s22 + $0xe0] sm:$0xff] %v6439_v60 }
 0x2f7   : > { %v6450_v62 = vadd.f32 %v7418_v51, %v6289_v13  ;;  %v6442_v42 = vadd.f32 %v6441_v24, %v6281_v22  ;;  %v6521_v46 = vmul.f32 %v6447_v43, %v6447_v43 }
 0x2f8   : > { %v6550_v0 = vadd.f32 %v6549_v8, %v6519_v19 }
 0x2f9   : > { %6592 = vst [vmem:[%s10144_s22 + $0xf8] sm:$0xff] %v6450_v62  ;;  %v6481_v17 = vadd.f32 %v6480_v53, %v6442_v42  ;;  %v6520_v14 = vmul.f32 %v6442_v42, %v6442_v42  ;;  %6590 = vst [vmem:[%s10144_s22 + $0xe8] sm:$0xff] %v6442_v42  ;;  %v6522_v39 = vmul.f32 %v6450_v62, %v6450_v62 }
 0x2fb   : > { %v6482_v16 = vadd.f32 %v6481_v17, %v6447_v43  ;;  %v6551_v41 = vadd.f32 %v6550_v0, %v6520_v14 }
 0x2fd   : > { %v6483_v6 = vadd.f32 %v6482_v16, %v6450_v62  ;;  %v6552_v33 = vadd.f32 %v6551_v41, %v6521_v46 }
 0x2ff   : > { %v6484_v30 = vrot.slane %v6483_v6, 4  ;;  %v6553_v40 = vadd.f32 %v6552_v33, %v6522_v39 }
 0x301   : > { %v6485_v56 = vadd.f32 %v6484_v30, %v6483_v6  ;;  %v6554_v57 = vrot.slane %v6553_v40, 4 }
 0x303   : > { %v6486_v58 = vrot.slane %v6485_v56, 2  ;;  %v6555_v26 = vadd.f32 %v6554_v57, %v6553_v40 }
 0x305   : > { %v6487_v12 = vadd.f32 %v6486_v58, %v6485_v56  ;;  %v6556_v4 = vrot.slane %v6555_v26, 2 }
 0x307   : > { %v6488_v59 = vrot.slane %v6487_v12, 1  ;;  %v6557_v37 = vadd.f32 %v6556_v4, %v6555_v26 }
 0x309   : > { %v6489_v38 = vadd.f32 %v6488_v59, %v6487_v12  ;;  %v6558_v31 = vrot.slane %v6557_v37, 1 }
 0x30b   : > { %6490 = vst [vmem:[%s383_s27] sm:$0x1] %v6489_v38  ;;  %v6559_v61 = vadd.f32 %v6558_v31, %v6557_v37 }
 0x30d   : > { %6560 = vst [vmem:[%s383_s27 + $0x1] sm:$0x1] %v6559_v61 }
 0x30e PF: > { %s20_s30 = sadd.s32 1, %s7540_s30  }
 0x30f   : > { %p17_p4 = scmp.ge.s32.totalorder %s20_s30, 4  }
 0x311   :  { %19 = sbr.rel (!%p17_p4) target bundleno = 1 (0x1), region = 100 }

</bundles_post_ra>
